<compile_context>
chip_gen: v5e
topology: v5e:2x2
jax: 0.10.0
libtpu: 0.0.40
codegen_flags: <defaults>
</compile_context>

<pallas_src>
import functools

import jax
import jax.numpy as jnp
import numpy as np
from jax.experimental import pallas as pl
from jax.experimental.pallas import tpu as pltpu

LRELU_SLOPE = 0.2
PIXNORM_EPS = 1e-8

_VMEM = pl.BlockSpec(memory_space=pltpu.MemorySpace.VMEM)
_PARALLEL = pltpu.CompilerParams(dimension_semantics=("parallel",))


# --------------------------------------------------------------------------
# Pallas kernels
# --------------------------------------------------------------------------
def _deconv4x4_kernel(x_ref, w_ref, b_ref, m_ref, o_ref):
    # x: [B, Cin], w: [Cin, 16*Cout], b: [1, 16*Cout], m: block-diag pixnorm
    # matrix [16*Cout, 16*Cout], o: [B, 16*Cout]   (lane-dense output)
    y = jnp.dot(x_ref[...], w_ref[...], preferred_element_type=jnp.float32) + b_ref[...]
    y = jnp.where(y >= 0.0, y, LRELU_SLOPE * y)                    # LeakyReLU(0.2)
    # per-pixel mean of squares over each Cout chunk, via block-diagonal matmul
    ss = jnp.dot(y * y, m_ref[...], preferred_element_type=jnp.float32)
    o_ref[...] = y * jax.lax.rsqrt(ss + PIXNORM_EPS)               # PixelwiseNorm


def _make_conv3x3_kernel(H, W, cin, cout):
    # Fused 3x3 conv (pad=1) + bias + LeakyReLU + PixelwiseNorm.
    # Input ref: zero-padded image flattened to [(H+2)*(W+2)+8, cin]
    # Output ref: [H*(W+2), cout]  (2 junk columns per row, stripped outside)
    Wp = W + 2
    L = H * Wp

    def kernel(x_ref, w_ref, b_ref, o_ref):
        acc = None
        for ky in range(3):
            for kx in range(3):
                off = ky * Wp + kx
                t = jnp.dot(x_ref[off:off + L, :], w_ref[ky * 3 + kx],
                            preferred_element_type=jnp.float32)
                acc = t if acc is None else acc + t
        y = acc + b_ref[...]
        y = jnp.where(y >= 0.0, y, LRELU_SLOPE * y)
        inv = jax.lax.rsqrt(jnp.mean(y * y, axis=-1, keepdims=True) + PIXNORM_EPS)
        o_ref[...] = y * inv

    return kernel


def _to_rgb_kernel(x_ref, w_ref, b_ref, o_ref):
    # 1x1 conv: x: [M, C], w: [C, 3], b: [1, 3], o: [M, 3]
    o_ref[...] = (
        jnp.dot(x_ref[...], w_ref[...], preferred_element_type=jnp.float32) + b_ref[...]
    )


def _to_rgb_blend_kernel(x_ref, w_ref, b_ref, res_ref, alpha_ref, o_ref):
    # fused straight-path toRGB + fade-in blend
    rgb = jnp.dot(x_ref[...], w_ref[...], preferred_element_type=jnp.float32) + b_ref[...]
    a = alpha_ref[...]                                 # (1, 1), broadcasts
    o_ref[...] = a * rgb + (1.0 - a) * res_ref[...]


# --------------------------------------------------------------------------
# Kernel wrappers
# --------------------------------------------------------------------------
def _pallas_deconv4x4(x, w_flat, b_row, m_mat):
    B = x.shape[0]
    n = w_flat.shape[1]                               # 16 * Cout
    out = pl.pallas_call(
        _deconv4x4_kernel,
        out_shape=jax.ShapeDtypeStruct((B, n), jnp.float32),
        in_specs=[_VMEM, _VMEM, _VMEM, _VMEM],
        out_specs=_VMEM,
    )(x, w_flat, b_row, m_mat)
    cout = n // 16
    return out.reshape(B, 4, 4, cout)                 # p = i*4 + j (ConvTranspose2d order)


def _pallas_conv3x3(x, w9, b_row):
    # x: [B, H, W, Cin] NHWC;  w9: [9, Cin, Cout];  b_row: [1, Cout]
    B, H, W, cin = x.shape
    cout = w9.shape[-1]
    Wp = W + 2
    L = H * Wp
    Lin = (H + 2) * Wp + 8                            # +8 zero rows keep tap slices in-bounds
    xp = jnp.pad(x, ((0, 0), (1, 1), (1, 1), (0, 0))).reshape(B, (H + 2) * Wp, cin)
    xp = jnp.pad(xp, ((0, 0), (0, 8), (0, 0)))
    out = pl.pallas_call(
        _make_conv3x3_kernel(H, W, cin, cout),
        out_shape=jax.ShapeDtypeStruct((B, L, cout), jnp.float32),
        grid=(B,),
        in_specs=[pl.BlockSpec((None, Lin, cin), lambda b: (b, 0, 0)),
                  pl.BlockSpec((9, cin, cout), lambda b: (0, 0, 0)),
                  pl.BlockSpec((1, cout), lambda b: (0, 0))],
        out_specs=pl.BlockSpec((None, L, cout), lambda b: (b, 0, 0)),
        compiler_params=_PARALLEL,
    )(xp, w9, b_row)
    # strip the 2 junk columns per row (fuses with the next pad/upsample in XLA)
    return out.reshape(B, H, Wp, cout)[:, :, :W, :]


def _pallas_to_rgb(x, w, b_row):
    B, H, W, C = x.shape
    M = H * W
    out = pl.pallas_call(
        _to_rgb_kernel,
        out_shape=jax.ShapeDtypeStruct((B, M, 3), jnp.float32),
        grid=(B,),
        in_specs=[pl.BlockSpec((None, M, C), lambda b: (b, 0, 0)),
                  pl.BlockSpec((C, 3), lambda b: (0, 0)),
                  pl.BlockSpec((1, 3), lambda b: (0, 0))],
        out_specs=pl.BlockSpec((None, M, 3), lambda b: (b, 0, 0)),
        compiler_params=_PARALLEL,
    )(x.reshape(B, M, C), w, b_row)
    return out.reshape(B, H, W, 3)


def _pallas_to_rgb_blend(x, w, b_row, residual, alpha_arr):
    B, H, W, C = x.shape
    M = H * W
    out = pl.pallas_call(
        _to_rgb_blend_kernel,
        out_shape=jax.ShapeDtypeStruct((B, M, 3), jnp.float32),
        grid=(B,),
        in_specs=[pl.BlockSpec((None, M, C), lambda b: (b, 0, 0)),
                  pl.BlockSpec((C, 3), lambda b: (0, 0)),
                  pl.BlockSpec((1, 3), lambda b: (0, 0)),
                  pl.BlockSpec((None, M, 3), lambda b: (b, 0, 0)),
                  pl.BlockSpec((1, 1), lambda b: (0, 0))],
        out_specs=pl.BlockSpec((None, M, 3), lambda b: (b, 0, 0)),
        compiler_params=_PARALLEL,
    )(x.reshape(B, M, C), w, b_row, residual.reshape(B, M, 3), alpha_arr)
    return out.reshape(B, H, W, 3)


# --------------------------------------------------------------------------
# Parameters (deterministic, equalized-lr style: N(0,1) weights, zero bias)
# --------------------------------------------------------------------------
def init_generator_params(key, depth=3, latent_size=32):
    assert latent_size != 0 and latent_size & (latent_size - 1) == 0
    if depth >= 4:
        assert latent_size >= 2 ** (depth - 4)
    keys = iter(jax.random.split(key, 4 * depth + 8))

    def normal(shape):
        return jax.random.normal(next(keys), shape, jnp.float32)

    params = {
        "init": {
            "deconv_w": normal((latent_size, latent_size, 4, 4)),  # ConvT: [Cin,Cout,kH,kW]
            "deconv_b": jnp.zeros((latent_size,), jnp.float32),
            "conv_w": normal((latent_size, latent_size, 3, 3)),    # Conv:  [Cout,Cin,kH,kW]
            "conv_b": jnp.zeros((latent_size,), jnp.float32),
        }
    }
    layers, chans = [], [latent_size]
    for i in range(depth - 1):
        if i <= 2:
            cin, cout = latent_size, latent_size
        else:
            cin = latent_size // (2 ** (i - 3))
            cout = latent_size // (2 ** (i - 2))
        layers.append({
            "conv1_w": normal((cout, cin, 3, 3)),
            "conv1_b": jnp.zeros((cout,), jnp.float32),
            "conv2_w": normal((cout, cout, 3, 3)),
            "conv2_b": jnp.zeros((cout,), jnp.float32),
        })
        chans.append(cout)
    params["layers"] = layers
    params["rgb"] = [
        {"w": normal((3, c, 1, 1)), "b": jnp.zeros((3,), jnp.float32)} for c in chans
    ]
    return params


def _eq_deconv_w(w):
    # ConvTranspose weight [Cin,Cout,4,4] -> [16, Cin, Cout], scale = sqrt(2/Cin)
    cin, cout, kh, kw = w.shape
    scale = np.sqrt(2.0 / cin).astype(np.float32)
    return (jnp.transpose(w, (2, 3, 0, 1)) * scale).reshape(kh * kw, cin, cout)


def _eq_conv_w9(w):
    # Conv weight [Cout,Cin,3,3] -> [9, Cin, Cout] (k = ky*3+kx), scale = sqrt(2/fan_in)
    cout, cin, kh, kw = w.shape
    scale = np.sqrt(2.0 / (cin * kh * kw)).astype(np.float32)
    return (jnp.transpose(w, (2, 3, 1, 0)) * scale).reshape(kh * kw, cin, cout)


def _eq_rgb_w(w):
    # [3,Cin,1,1] -> [Cin, 3], scale = sqrt(2/Cin)
    _, cin, _, _ = w.shape
    scale = np.sqrt(2.0 / cin).astype(np.float32)
    return jnp.transpose(w[:, :, 0, 0], (1, 0)) * scale


def preprocess_params(params):
    """One-time equalized-lr scaling / layout prep (kept out of the hot forward)."""
    fp = {}
    p0 = params["init"]
    w16 = _eq_deconv_w(p0["deconv_w"])                      # [16, Cin, Cout]
    cin, cout = w16.shape[1], w16.shape[2]
    fp["deconv_w"] = jnp.transpose(w16, (1, 0, 2)).reshape(cin, 16 * cout)
    fp["deconv_b"] = jnp.tile(p0["deconv_b"], 16).reshape(1, 16 * cout)
    fp["deconv_m"] = jnp.kron(jnp.eye(16, dtype=jnp.float32),
                              jnp.full((cout, cout), 1.0 / cout, jnp.float32))
    fp["init_conv_w"] = _eq_conv_w9(p0["conv_w"])
    fp["init_conv_b"] = p0["conv_b"].reshape(1, -1)
    fp["layers"] = [
        {"w1": _eq_conv_w9(lp["conv1_w"]), "b1": lp["conv1_b"].reshape(1, -1),
         "w2": _eq_conv_w9(lp["conv2_w"]), "b2": lp["conv2_b"].reshape(1, -1)}
        for lp in params["layers"]
    ]
    fp["rgb"] = [{"w": _eq_rgb_w(rp["w"]), "b": rp["b"].reshape(1, -1)}
                 for rp in params["rgb"]]
    return fp


# --------------------------------------------------------------------------
# Generator forward (mirrors Generator.forward)
# --------------------------------------------------------------------------
def _upsample2x(y):  # nearest-neighbour, matches F.interpolate(scale_factor=2)
    return jnp.repeat(jnp.repeat(y, 2, axis=1), 2, axis=2)


def generator_forward(fp, x, depth, alpha):
    total_depth = len(fp["layers"]) + 1
    assert depth < total_depth, "Requested output depth cannot be produced"
    alpha_arr = jnp.asarray(alpha, jnp.float32).reshape(1, 1)

    # initial block: 4x4 deconv from 1x1 latent, then 3x3 conv (both fused w/ lrelu+pixnorm)
    y = _pallas_deconv4x4(x, fp["deconv_w"], fp["deconv_b"], fp["deconv_m"])
    y = _pallas_conv3x3(y, fp["init_conv_w"], fp["init_conv_b"])

    def block(y, lp):  # GenGeneralConvBlock
        y = _upsample2x(y)
        y = _pallas_conv3x3(y, lp["w1"], lp["b1"])
        y = _pallas_conv3x3(y, lp["w2"], lp["b2"])
        return y

    if depth > 0:
        for lp in fp["layers"][:depth - 1]:
            y = block(y, lp)
        # residual: toRGB is a 1x1 conv so it commutes exactly with nearest 2x
        # upsample -> compute RGB at half res (4x less work), upsample 3 channels.
        rp_res = fp["rgb"][depth - 1]
        residual = _upsample2x(_pallas_to_rgb(y, rp_res["w"], rp_res["b"]))
        y = block(y, fp["layers"][depth - 1])
        rp = fp["rgb"][depth]
        out = _pallas_to_rgb_blend(y, rp["w"], rp["b"], residual, alpha_arr)
    else:
        rp = fp["rgb"][0]
        out = _pallas_to_rgb(y, rp["w"], rp["b"])
    return jnp.transpose(out, (0, 3, 1, 2))  # NHWC -> NCHW (PyTorch convention)


# --------------------------------------------------------------------------
# Pure-JAX reference (for numerical validation)
# --------------------------------------------------------------------------
def _ref_lrelu(y):
    return jnp.where(y >= 0.0, y, LRELU_SLOPE * y)


def _ref_pixnorm(y):
    return y / jnp.sqrt(jnp.mean(y * y, axis=-1, keepdims=True) + PIXNORM_EPS)


def _ref_conv3x3(x, w, b):
    cout, cin, kh, kw = w.shape
    scale = np.sqrt(2.0 / (cin * kh * kw)).astype(np.float32)
    w_hwio = jnp.transpose(w, (2, 3, 1, 0)) * scale
    y = jax.lax.conv_general_dilated(
        x, w_hwio, window_strides=(1, 1), padding="SAME",
        dimension_numbers=("NHWC", "HWIO", "NHWC"))
    return _ref_pixnorm(_ref_lrelu(y + b))


def _ref_to_rgb(y, rp):
    cin = rp["w"].shape[1]
    scale = np.sqrt(2.0 / cin).astype(np.float32)
    w = rp["w"][:, :, 0, 0] * scale  # [3, Cin]
    return jnp.einsum("bhwc,oc->bhwo", y, w) + rp["b"]


def _ref_forward(params, x, depth, alpha):
    p0 = params["init"]
    B = x.shape[0]
    y = jnp.einsum("bk,pkc->bpc", x, _eq_deconv_w(p0["deconv_w"])) + p0["deconv_b"]
    y = _ref_pixnorm(_ref_lrelu(y)).reshape(B, 4, 4, -1)
    y = _ref_conv3x3(y, p0["conv_w"], p0["conv_b"])

    def ref_block(y, lp):
        y = _upsample2x(y)
        y = _ref_conv3x3(y, lp["conv1_w"], lp["conv1_b"])
        y = _ref_conv3x3(y, lp["conv2_w"], lp["conv2_b"])
        return y

    if depth > 0:
        for lp in params["layers"][:depth - 1]:
            y = ref_block(y, lp)
        residual = _ref_to_rgb(_upsample2x(y), params["rgb"][depth - 1])
        straight = _ref_to_rgb(ref_block(y, params["layers"][depth - 1]), params["rgb"][depth])
        out = alpha * straight + (1.0 - alpha) * residual
    else:
        out = _ref_to_rgb(y, params["rgb"][0])
    return jnp.transpose(out, (0, 3, 1, 2))


# --------------------------------------------------------------------------
if __name__ == "__main__":
    TOTAL_DEPTH = 3   # Generator(depth=3, latent_size=32, use_eql=True)
    LATENT = 32
    B = 2

    key = jax.random.PRNGKey(0)
    pkey, xkey = jax.random.split(key)
    params = init_generator_params(pkey, depth=TOTAL_DEPTH, latent_size=LATENT)
    fp = preprocess_params(params)                     # one-time weight prep
    x = jax.random.normal(xkey, (B, LATENT), jnp.float32)   # input noise

    fwd = jax.jit(generator_forward, static_argnums=(2,))

    out_depth, alpha = 2, 0.6
    out = jax.block_until_ready(fwd(fp, x, out_depth, alpha))
    assert out.shape == (B, 3, 4 * 2 ** out_depth, 4 * 2 ** out_depth)

    ref = jax.block_until_ready(_ref_forward(params, x, out_depth, alpha))
    np.testing.assert_allclose(np.asarray(out), np.asarray(ref), rtol=2e-3, atol=2e-3)

    # also exercise the depth == 0 path (no fade-in branch)
    out0 = jax.block_until_ready(fwd(fp, x, 0, 1.0))
    ref0 = jax.block_until_ready(_ref_forward(params, x, 0, 1.0))
    assert out0.shape == (B, 3, 4, 4)
    np.testing.assert_allclose(np.asarray(out0), np.asarray(ref0), rtol=2e-3, atol=2e-3)

    print("KERNEL_OK")
</pallas_src>

<mosaic_0001>
module attributes {stable_mosaic.version = 11 : i64} {
  func.func @_deconv4x4_kernel(%arg0: memref<2x32xf32, #tpu.memory_space<vmem>>, %arg1: memref<32x512xf32, #tpu.memory_space<vmem>>, %arg2: memref<1x512xf32, #tpu.memory_space<vmem>>, %arg3: memref<512x512xf32, #tpu.memory_space<vmem>>, %arg4: memref<2x512xf32, #tpu.memory_space<vmem>>) attributes {dimension_semantics = [], scalar_prefetch = 0 : i64, scratch_operands = 0 : i64, tpu.core_type = #tpu.core_type<tc>} {
    %c0 = arith.constant 0 : index
    %c0_0 = arith.constant 0 : index
    %0 = vector.load %arg0[%c0, %c0_0] : memref<2x32xf32, #tpu.memory_space<vmem>>, vector<2x32xf32>
    %c0_1 = arith.constant 0 : index
    %c0_2 = arith.constant 0 : index
    %1 = vector.load %arg1[%c0_1, %c0_2] : memref<32x512xf32, #tpu.memory_space<vmem>>, vector<32x512xf32>
    %cst = arith.constant dense<0.000000e+00> : vector<2x512xf32>
    %2 = tpu.matmul %0, %1, %cst {dimension_numbers = #tpu.dot_dimension_numbers<[1], [0], [0], [1], [0, 0, 1, 1], [], []>} : vector<2x32xf32>, vector<32x512xf32>, vector<2x512xf32> -> vector<2x512xf32>
    %c0_3 = arith.constant 0 : index
    %c0_4 = arith.constant 0 : index
    %3 = vector.load %arg2[%c0_3, %c0_4] : memref<1x512xf32, #tpu.memory_space<vmem>>, vector<1x512xf32>
    %4 = vector.broadcast %3 : vector<1x512xf32> to vector<2x512xf32>
    %5 = arith.addf %2, %4 : vector<2x512xf32>
    %cst_5 = arith.constant 0.000000e+00 : f32
    %6 = vector.broadcast %cst_5 : f32 to vector<2x512xf32>
    %7 = arith.cmpf oge, %5, %6 : vector<2x512xf32>
    %cst_6 = arith.constant 2.000000e-01 : f32
    %8 = vector.broadcast %cst_6 : f32 to vector<2x512xf32>
    %9 = arith.mulf %8, %5 : vector<2x512xf32>
    %10 = arith.select %7, %5, %9 : vector<2x512xi1>, vector<2x512xf32>
    %11 = arith.mulf %10, %10 : vector<2x512xf32>
    %c0_7 = arith.constant 0 : index
    %c0_8 = arith.constant 0 : index
    %12 = vector.load %arg3[%c0_7, %c0_8] : memref<512x512xf32, #tpu.memory_space<vmem>>, vector<512x512xf32>
    %cst_9 = arith.constant dense<0.000000e+00> : vector<2x512xf32>
    %13 = tpu.matmul %11, %12, %cst_9 {dimension_numbers = #tpu.dot_dimension_numbers<[1], [0], [0], [1], [0, 0, 1, 1], [], []>} : vector<2x512xf32>, vector<512x512xf32>, vector<2x512xf32> -> vector<2x512xf32>
    %cst_10 = arith.constant 9.99999993E-9 : f32
    %14 = vector.broadcast %cst_10 : f32 to vector<2x512xf32>
    %15 = arith.addf %13, %14 : vector<2x512xf32>
    %16 = math.rsqrt %15 : vector<2x512xf32>
    %17 = arith.mulf %10, %16 : vector<2x512xf32>
    %c0_11 = arith.constant 0 : index
    %c0_12 = arith.constant 0 : index
    %18 = vector.load %arg4[%c0_11, %c0_12] : memref<2x512xf32, #tpu.memory_space<vmem>>, vector<2x512xf32>
    tpu.vector_store %arg4[%c0_11, %c0_12], %17 {strides = array<i32>} : memref<2x512xf32, #tpu.memory_space<vmem>>, vector<2x512xf32>,
    return
  }
}

module attributes {stable_mosaic.version = 11 : i64} {
  func.func @kernel(%arg0: i32, %arg1: memref<1x44x32xf32, #tpu.memory_space<vmem>>, %arg2: memref<9x32x32xf32, #tpu.memory_space<vmem>>, %arg3: memref<1x32xf32, #tpu.memory_space<vmem>>, %arg4: memref<1x24x32xf32, #tpu.memory_space<vmem>>) attributes {dimension_semantics = [#tpu.dimension_semantics<parallel>], iteration_bounds = array<i64: 2>, scalar_prefetch = 0 : i64, scratch_operands = 0 : i64, tpu.core_type = #tpu.core_type<tc>, window_params = [{transform_indices = @transform_0, window_bounds = array<i64: 1, 44, 32>}, {pipeline_mode = #tpu.pipeline_mode<synchronous>, transform_indices = @transform_1, window_bounds = array<i64: 9, 32, 32>}, {pipeline_mode = #tpu.pipeline_mode<synchronous>, transform_indices = @transform_2, window_bounds = array<i64: 1, 32>}, {transform_indices = @transform_3, window_bounds = array<i64: 1, 24, 32>}]} {
    %c0 = arith.constant 0 : index
    %c0_0 = arith.constant 0 : index
    %c0_1 = arith.constant 0 : index
    %0 = vector.load %arg1[%c0, %c0_0, %c0_1] : memref<1x44x32xf32, #tpu.memory_space<vmem>>, vector<1x24x32xf32>
    %1 = vector.shape_cast %0 : vector<1x24x32xf32> to vector<24x32xf32>
    %c0_2 = arith.constant 0 : index
    %c0_3 = arith.constant 0 : index
    %c0_4 = arith.constant 0 : index
    %2 = vector.load %arg2[%c0_2, %c0_3, %c0_4] : memref<9x32x32xf32, #tpu.memory_space<vmem>>, vector<1x32x32xf32>
    %3 = vector.shape_cast %2 : vector<1x32x32xf32> to vector<32x32xf32>
    %cst = arith.constant dense<0.000000e+00> : vector<24x32xf32>
    %4 = tpu.matmul %1, %3, %cst {dimension_numbers = #tpu.dot_dimension_numbers<[1], [0], [0], [1], [0, 0, 1, 1], [], []>} : vector<24x32xf32>, vector<32x32xf32>, vector<24x32xf32> -> vector<24x32xf32>
    %c0_5 = arith.constant 0 : index
    %c1 = arith.constant 1 : index
    %c0_6 = arith.constant 0 : index
    %5 = vector.load %arg1[%c0_5, %c1, %c0_6] : memref<1x44x32xf32, #tpu.memory_space<vmem>>, vector<1x24x32xf32>
    %6 = vector.shape_cast %5 : vector<1x24x32xf32> to vector<24x32xf32>
    %c1_7 = arith.constant 1 : index
    %c0_8 = arith.constant 0 : index
    %c0_9 = arith.constant 0 : index
    %7 = vector.load %arg2[%c1_7, %c0_8, %c0_9] : memref<9x32x32xf32, #tpu.memory_space<vmem>>, vector<1x32x32xf32>
    %8 = vector.shape_cast %7 : vector<1x32x32xf32> to vector<32x32xf32>
    %cst_10 = arith.constant dense<0.000000e+00> : vector<24x32xf32>
    %9 = tpu.matmul %6, %8, %cst_10 {dimension_numbers = #tpu.dot_dimension_numbers<[1], [0], [0], [1], [0, 0, 1, 1], [], []>} : vector<24x32xf32>, vector<32x32xf32>, vector<24x32xf32> -> vector<24x32xf32>
    %10 = arith.addf %4, %9 : vector<24x32xf32>
    %c0_11 = arith.constant 0 : index
    %c2 = arith.constant 2 : index
    %c0_12 = arith.constant 0 : index
    %11 = vector.load %arg1[%c0_11, %c2, %c0_12] : memref<1x44x32xf32, #tpu.memory_space<vmem>>, vector<1x24x32xf32>
    %12 = vector.shape_cast %11 : vector<1x24x32xf32> to vector<24x32xf32>
    %c2_13 = arith.constant 2 : index
    %c0_14 = arith.constant 0 : index
    %c0_15 = arith.constant 0 : index
    %13 = vector.load %arg2[%c2_13, %c0_14, %c0_15] : memref<9x32x32xf32, #tpu.memory_space<vmem>>, vector<1x32x32xf32>
    %14 = vector.shape_cast %13 : vector<1x32x32xf32> to vector<32x32xf32>
    %cst_16 = arith.constant dense<0.000000e+00> : vector<24x32xf32>
    %15 = tpu.matmul %12, %14, %cst_16 {dimension_numbers = #tpu.dot_dimension_numbers<[1], [0], [0], [1], [0, 0, 1, 1], [], []>} : vector<24x32xf32>, vector<32x32xf32>, vector<24x32xf32> -> vector<24x32xf32>
    %16 = arith.addf %10, %15 : vector<24x32xf32>
    %c0_17 = arith.constant 0 : index
    %c6 = arith.constant 6 : index
    %c0_18 = arith.constant 0 : index
    %17 = vector.load %arg1[%c0_17, %c6, %c0_18] : memref<1x44x32xf32, #tpu.memory_space<vmem>>, vector<1x24x32xf32>
    %18 = vector.shape_cast %17 : vector<1x24x32xf32> to vector<24x32xf32>
    %c3 = arith.constant 3 : index
    %c0_19 = arith.constant 0 : index
    %c0_20 = arith.constant 0 : index
    %19 = vector.load %arg2[%c3, %c0_19, %c0_20] : memref<9x32x32xf32, #tpu.memory_space<vmem>>, vector<1x32x32xf32>
    %20 = vector.shape_cast %19 : vector<1x32x32xf32> to vector<32x32xf32>
    %cst_21 = arith.constant dense<0.000000e+00> : vector<24x32xf32>
    %21 = tpu.matmul %18, %20, %cst_21 {dimension_numbers = #tpu.dot_dimension_numbers<[1], [0], [0], [1], [0, 0, 1, 1], [], []>} : vector<24x32xf32>, vector<32x32xf32>, vector<24x32xf32> -> vector<24x32xf32>
    %22 = arith.addf %16, %21 : vector<24x32xf32>
    %c0_22 = arith.constant 0 : index
    %c7 = arith.constant 7 : index
    %c0_23 = arith.constant 0 : index
    %23 = vector.load %arg1[%c0_22, %c7, %c0_23] : memref<1x44x32xf32, #tpu.memory_space<vmem>>, vector<1x24x32xf32>
    %24 = vector.shape_cast %23 : vector<1x24x32xf32> to vector<24x32xf32>
    %c4 = arith.constant 4 : index
    %c0_24 = arith.constant 0 : index
    %c0_25 = arith.constant 0 : index
    %25 = vector.load %arg2[%c4, %c0_24, %c0_25] : memref<9x32x32xf32, #tpu.memory_space<vmem>>, vector<1x32x32xf32>
    %26 = vector.shape_cast %25 : vector<1x32x32xf32> to vector<32x32xf32>
    %cst_26 = arith.constant dense<0.000000e+00> : vector<24x32xf32>
    %27 = tpu.matmul %24, %26, %cst_26 {dimension_numbers = #tpu.dot_dimension_numbers<[1], [0], [0], [1], [0, 0, 1, 1], [], []>} : vector<24x32xf32>, vector<32x32xf32>, vector<24x32xf32> -> vector<24x32xf32>
    %28 = arith.addf %22, %27 : vector<24x32xf32>
    %c0_27 = arith.constant 0 : index
    %c8 = arith.constant 8 : index
    %c0_28 = arith.constant 0 : index
    %29 = vector.load %arg1[%c0_27, %c8, %c0_28] : memref<1x44x32xf32, #tpu.memory_space<vmem>>, vector<1x24x32xf32>
    %30 = vector.shape_cast %29 : vector<1x24x32xf32> to vector<24x32xf32>
    %c5 = arith.constant 5 : index
    %c0_29 = arith.constant 0 : index
    %c0_30 = arith.constant 0 : index
    %31 = vector.load %arg2[%c5, %c0_29, %c0_30] : memref<9x32x32xf32, #tpu.memory_space<vmem>>, vector<1x32x32xf32>
    %32 = vector.shape_cast %31 : vector<1x32x32xf32> to vector<32x32xf32>
    %cst_31 = arith.constant dense<0.000000e+00> : vector<24x32xf32>
    %33 = tpu.matmul %30, %32, %cst_31 {dimension_numbers = #tpu.dot_dimension_numbers<[1], [0], [0], [1], [0, 0, 1, 1], [], []>} : vector<24x32xf32>, vector<32x32xf32>, vector<24x32xf32> -> vector<24x32xf32>
    %34 = arith.addf %28, %33 : vector<24x32xf32>
    %c0_32 = arith.constant 0 : index
    %c12 = arith.constant 12 : index
    %c0_33 = arith.constant 0 : index
    %35 = vector.load %arg1[%c0_32, %c12, %c0_33] : memref<1x44x32xf32, #tpu.memory_space<vmem>>, vector<1x24x32xf32>
    %36 = vector.shape_cast %35 : vector<1x24x32xf32> to vector<24x32xf32>
    %c6_34 = arith.constant 6 : index
    %c0_35 = arith.constant 0 : index
    %c0_36 = arith.constant 0 : index
    %37 = vector.load %arg2[%c6_34, %c0_35, %c0_36] : memref<9x32x32xf32, #tpu.memory_space<vmem>>, vector<1x32x32xf32>
    %38 = vector.shape_cast %37 : vector<1x32x32xf32> to vector<32x32xf32>
    %cst_37 = arith.constant dense<0.000000e+00> : vector<24x32xf32>
    %39 = tpu.matmul %36, %38, %cst_37 {dimension_numbers = #tpu.dot_dimension_numbers<[1], [0], [0], [1], [0, 0, 1, 1], [], []>} : vector<24x32xf32>, vector<32x32xf32>, vector<24x32xf32> -> vector<24x32xf32>
    %40 = arith.addf %34, %39 : vector<24x32xf32>
    %c0_38 = arith.constant 0 : index
    %c13 = arith.constant 13 : index
    %c0_39 = arith.constant 0 : index
    %41 = vector.load %arg1[%c0_38, %c13, %c0_39] : memref<1x44x32xf32, #tpu.memory_space<vmem>>, vector<1x24x32xf32>
    %42 = vector.shape_cast %41 : vector<1x24x32xf32> to vector<24x32xf32>
    %c7_40 = arith.constant 7 : index
    %c0_41 = arith.constant 0 : index
    %c0_42 = arith.constant 0 : index
    %43 = vector.load %arg2[%c7_40, %c0_41, %c0_42] : memref<9x32x32xf32, #tpu.memory_space<vmem>>, vector<1x32x32xf32>
    %44 = vector.shape_cast %43 : vector<1x32x32xf32> to vector<32x32xf32>
    %cst_43 = arith.constant dense<0.000000e+00> : vector<24x32xf32>
    %45 = tpu.matmul %42, %44, %cst_43 {dimension_numbers = #tpu.dot_dimension_numbers<[1], [0], [0], [1], [0, 0, 1, 1], [], []>} : vector<24x32xf32>, vector<32x32xf32>, vector<24x32xf32> -> vector<24x32xf32>
    %46 = arith.addf %40, %45 : vector<24x32xf32>
    %c0_44 = arith.constant 0 : index
    %c14 = arith.constant 14 : index
    %c0_45 = arith.constant 0 : index
    %47 = vector.load %arg1[%c0_44, %c14, %c0_45] : memref<1x44x32xf32, #tpu.memory_space<vmem>>, vector<1x24x32xf32>
    %48 = vector.shape_cast %47 : vector<1x24x32xf32> to vector<24x32xf32>
    %c8_46 = arith.constant 8 : index
    %c0_47 = arith.constant 0 : index
    %c0_48 = arith.constant 0 : index
    %49 = vector.load %arg2[%c8_46, %c0_47, %c0_48] : memref<9x32x32xf32, #tpu.memory_space<vmem>>, vector<1x32x32xf32>
    %50 = vector.shape_cast %49 : vector<1x32x32xf32> to vector<32x32xf32>
    %cst_49 = arith.constant dense<0.000000e+00> : vector<24x32xf32>
    %51 = tpu.matmul %48, %50, %cst_49 {dimension_numbers = #tpu.dot_dimension_numbers<[1], [0], [0], [1], [0, 0, 1, 1], [], []>} : vector<24x32xf32>, vector<32x32xf32>, vector<24x32xf32> -> vector<24x32xf32>
    %52 = arith.addf %46, %51 : vector<24x32xf32>
    %c0_50 = arith.constant 0 : index
    %c0_51 = arith.constant 0 : index
    %53 = vector.load %arg3[%c0_50, %c0_51] : memref<1x32xf32, #tpu.memory_space<vmem>>, vector<1x32xf32>
    %54 = vector.broadcast %53 : vector<1x32xf32> to vector<24x32xf32>
    %55 = arith.addf %52, %54 : vector<24x32xf32>
    %cst_52 = arith.constant 0.000000e+00 : f32
    %56 = vector.broadcast %cst_52 : f32 to vector<24x32xf32>
    %57 = arith.cmpf oge, %55, %56 : vector<24x32xf32>
    %cst_53 = arith.constant 2.000000e-01 : f32
    %58 = vector.broadcast %cst_53 : f32 to vector<24x32xf32>
    %59 = arith.mulf %58, %55 : vector<24x32xf32>
    %60 = arith.select %57, %55, %59 : vector<24x32xi1>, vector<24x32xf32>
    %61 = arith.mulf %60, %60 : vector<24x32xf32>
    %cst_54 = arith.constant dense<0.000000e+00> : vector<24xf32>
    %62 = vector.multi_reduction <add>, %61, %cst_54 [1] : vector<24x32xf32> to vector<24xf32>
    %63 = vector.shape_cast %62 : vector<24xf32> to vector<24x1xf32>
    %cst_55 = arith.constant 3.200000e+01 : f32
    %64 = vector.broadcast %cst_55 : f32 to vector<24x1xf32>
    %65 = arith.divf %63, %64 : vector<24x1xf32>
    %cst_56 = arith.constant 9.99999993E-9 : f32
    %66 = vector.broadcast %cst_56 : f32 to vector<24x1xf32>
    %67 = arith.addf %65, %66 : vector<24x1xf32>
    %68 = math.rsqrt %67 : vector<24x1xf32>
    %69 = vector.broadcast %68 : vector<24x1xf32> to vector<24x32xf32>
    %70 = arith.mulf %60, %69 : vector<24x32xf32>
    %c0_57 = arith.constant 0 : index
    %c0_58 = arith.constant 0 : index
    %c0_59 = arith.constant 0 : index
    %71 = vector.load %arg4[%c0_57, %c0_58, %c0_59] : memref<1x24x32xf32, #tpu.memory_space<vmem>>, vector<1x24x32xf32>
    %72 = vector.shape_cast %71 : vector<1x24x32xf32> to vector<24x32xf32>
    %73 = vector.shape_cast %70 : vector<24x32xf32> to vector<1x24x32xf32>
    tpu.vector_store %arg4[%c0_57, %c0_58, %c0_59], %73 {strides = array<i32>} : memref<1x24x32xf32, #tpu.memory_space<vmem>>, vector<1x24x32xf32>,
    return
  }
  func.func @transform_0(%arg0: i32) -> (i32, i32, i32) {
    %c0_i32 = arith.constant 0 : i32
    %c0_i32_0 = arith.constant 0 : i32
    %c0_i32_1 = arith.constant 0 : i32
    return %arg0, %c0_i32, %c0_i32_0 : i32, i32, i32
  }
  func.func @transform_1(%arg0: i32) -> (i32, i32, i32) {
    %c0_i32 = arith.constant 0 : i32
    %c0_i32_0 = arith.constant 0 : i32
    %c0_i32_1 = arith.constant 0 : i32
    %c0_i32_2 = arith.constant 0 : i32
    return %c0_i32, %c0_i32_0, %c0_i32_1 : i32, i32, i32
  }
  func.func @transform_2(%arg0: i32) -> (i32, i32) {
    %c0_i32 = arith.constant 0 : i32
    %c0_i32_0 = arith.constant 0 : i32
    %c0_i32_1 = arith.constant 0 : i32
    return %c0_i32, %c0_i32_0 : i32, i32
  }
  func.func @transform_3(%arg0: i32) -> (i32, i32, i32) {
    %c0_i32 = arith.constant 0 : i32
    %c0_i32_0 = arith.constant 0 : i32
    %c0_i32_1 = arith.constant 0 : i32
    return %arg0, %c0_i32, %c0_i32_0 : i32, i32, i32
  }
}

module attributes {stable_mosaic.version = 11 : i64} {
  func.func @kernel(%arg0: i32, %arg1: memref<1x108x32xf32, #tpu.memory_space<vmem>>, %arg2: memref<9x32x32xf32, #tpu.memory_space<vmem>>, %arg3: memref<1x32xf32, #tpu.memory_space<vmem>>, %arg4: memref<1x80x32xf32, #tpu.memory_space<vmem>>) attributes {dimension_semantics = [#tpu.dimension_semantics<parallel>], iteration_bounds = array<i64: 2>, scalar_prefetch = 0 : i64, scratch_operands = 0 : i64, tpu.core_type = #tpu.core_type<tc>, window_params = [{transform_indices = @transform_0, window_bounds = array<i64: 1, 108, 32>}, {pipeline_mode = #tpu.pipeline_mode<synchronous>, transform_indices = @transform_1, window_bounds = array<i64: 9, 32, 32>}, {pipeline_mode = #tpu.pipeline_mode<synchronous>, transform_indices = @transform_2, window_bounds = array<i64: 1, 32>}, {transform_indices = @transform_3, window_bounds = array<i64: 1, 80, 32>}]} {
    %c0 = arith.constant 0 : index
    %c0_0 = arith.constant 0 : index
    %c0_1 = arith.constant 0 : index
    %0 = vector.load %arg1[%c0, %c0_0, %c0_1] : memref<1x108x32xf32, #tpu.memory_space<vmem>>, vector<1x80x32xf32>
    %1 = vector.shape_cast %0 : vector<1x80x32xf32> to vector<80x32xf32>
    %c0_2 = arith.constant 0 : index
    %c0_3 = arith.constant 0 : index
    %c0_4 = arith.constant 0 : index
    %2 = vector.load %arg2[%c0_2, %c0_3, %c0_4] : memref<9x32x32xf32, #tpu.memory_space<vmem>>, vector<1x32x32xf32>
    %3 = vector.shape_cast %2 : vector<1x32x32xf32> to vector<32x32xf32>
    %cst = arith.constant dense<0.000000e+00> : vector<80x32xf32>
    %4 = tpu.matmul %1, %3, %cst {dimension_numbers = #tpu.dot_dimension_numbers<[1], [0], [0], [1], [0, 0, 1, 1], [], []>} : vector<80x32xf32>, vector<32x32xf32>, vector<80x32xf32> -> vector<80x32xf32>
    %c0_5 = arith.constant 0 : index
    %c1 = arith.constant 1 : index
    %c0_6 = arith.constant 0 : index
    %5 = vector.load %arg1[%c0_5, %c1, %c0_6] : memref<1x108x32xf32, #tpu.memory_space<vmem>>, vector<1x80x32xf32>
    %6 = vector.shape_cast %5 : vector<1x80x32xf32> to vector<80x32xf32>
    %c1_7 = arith.constant 1 : index
    %c0_8 = arith.constant 0 : index
    %c0_9 = arith.constant 0 : index
    %7 = vector.load %arg2[%c1_7, %c0_8, %c0_9] : memref<9x32x32xf32, #tpu.memory_space<vmem>>, vector<1x32x32xf32>
    %8 = vector.shape_cast %7 : vector<1x32x32xf32> to vector<32x32xf32>
    %cst_10 = arith.constant dense<0.000000e+00> : vector<80x32xf32>
    %9 = tpu.matmul %6, %8, %cst_10 {dimension_numbers = #tpu.dot_dimension_numbers<[1], [0], [0], [1], [0, 0, 1, 1], [], []>} : vector<80x32xf32>, vector<32x32xf32>, vector<80x32xf32> -> vector<80x32xf32>
    %10 = arith.addf %4, %9 : vector<80x32xf32>
    %c0_11 = arith.constant 0 : index
    %c2 = arith.constant 2 : index
    %c0_12 = arith.constant 0 : index
    %11 = vector.load %arg1[%c0_11, %c2, %c0_12] : memref<1x108x32xf32, #tpu.memory_space<vmem>>, vector<1x80x32xf32>
    %12 = vector.shape_cast %11 : vector<1x80x32xf32> to vector<80x32xf32>
    %c2_13 = arith.constant 2 : index
    %c0_14 = arith.constant 0 : index
    %c0_15 = arith.constant 0 : index
    %13 = vector.load %arg2[%c2_13, %c0_14, %c0_15] : memref<9x32x32xf32, #tpu.memory_space<vmem>>, vector<1x32x32xf32>
    %14 = vector.shape_cast %13 : vector<1x32x32xf32> to vector<32x32xf32>
    %cst_16 = arith.constant dense<0.000000e+00> : vector<80x32xf32>
    %15 = tpu.matmul %12, %14, %cst_16 {dimension_numbers = #tpu.dot_dimension_numbers<[1], [0], [0], [1], [0, 0, 1, 1], [], []>} : vector<80x32xf32>, vector<32x32xf32>, vector<80x32xf32> -> vector<80x32xf32>
    %16 = arith.addf %10, %15 : vector<80x32xf32>
    %c0_17 = arith.constant 0 : index
    %c10 = arith.constant 10 : index
    %c0_18 = arith.constant 0 : index
    %17 = vector.load %arg1[%c0_17, %c10, %c0_18] : memref<1x108x32xf32, #tpu.memory_space<vmem>>, vector<1x80x32xf32>
    %18 = vector.shape_cast %17 : vector<1x80x32xf32> to vector<80x32xf32>
    %c3 = arith.constant 3 : index
    %c0_19 = arith.constant 0 : index
    %c0_20 = arith.constant 0 : index
    %19 = vector.load %arg2[%c3, %c0_19, %c0_20] : memref<9x32x32xf32, #tpu.memory_space<vmem>>, vector<1x32x32xf32>
    %20 = vector.shape_cast %19 : vector<1x32x32xf32> to vector<32x32xf32>
    %cst_21 = arith.constant dense<0.000000e+00> : vector<80x32xf32>
    %21 = tpu.matmul %18, %20, %cst_21 {dimension_numbers = #tpu.dot_dimension_numbers<[1], [0], [0], [1], [0, 0, 1, 1], [], []>} : vector<80x32xf32>, vector<32x32xf32>, vector<80x32xf32> -> vector<80x32xf32>
    %22 = arith.addf %16, %21 : vector<80x32xf32>
    %c0_22 = arith.constant 0 : index
    %c11 = arith.constant 11 : index
    %c0_23 = arith.constant 0 : index
    %23 = vector.load %arg1[%c0_22, %c11, %c0_23] : memref<1x108x32xf32, #tpu.memory_space<vmem>>, vector<1x80x32xf32>
    %24 = vector.shape_cast %23 : vector<1x80x32xf32> to vector<80x32xf32>
    %c4 = arith.constant 4 : index
    %c0_24 = arith.constant 0 : index
    %c0_25 = arith.constant 0 : index
    %25 = vector.load %arg2[%c4, %c0_24, %c0_25] : memref<9x32x32xf32, #tpu.memory_space<vmem>>, vector<1x32x32xf32>
    %26 = vector.shape_cast %25 : vector<1x32x32xf32> to vector<32x32xf32>
    %cst_26 = arith.constant dense<0.000000e+00> : vector<80x32xf32>
    %27 = tpu.matmul %24, %26, %cst_26 {dimension_numbers = #tpu.dot_dimension_numbers<[1], [0], [0], [1], [0, 0, 1, 1], [], []>} : vector<80x32xf32>, vector<32x32xf32>, vector<80x32xf32> -> vector<80x32xf32>
    %28 = arith.addf %22, %27 : vector<80x32xf32>
    %c0_27 = arith.constant 0 : index
    %c12 = arith.constant 12 : index
    %c0_28 = arith.constant 0 : index
    %29 = vector.load %arg1[%c0_27, %c12, %c0_28] : memref<1x108x32xf32, #tpu.memory_space<vmem>>, vector<1x80x32xf32>
    %30 = vector.shape_cast %29 : vector<1x80x32xf32> to vector<80x32xf32>
    %c5 = arith.constant 5 : index
    %c0_29 = arith.constant 0 : index
    %c0_30 = arith.constant 0 : index
    %31 = vector.load %arg2[%c5, %c0_29, %c0_30] : memref<9x32x32xf32, #tpu.memory_space<vmem>>, vector<1x32x32xf32>
    %32 = vector.shape_cast %31 : vector<1x32x32xf32> to vector<32x32xf32>
    %cst_31 = arith.constant dense<0.000000e+00> : vector<80x32xf32>
    %33 = tpu.matmul %30, %32, %cst_31 {dimension_numbers = #tpu.dot_dimension_numbers<[1], [0], [0], [1], [0, 0, 1, 1], [], []>} : vector<80x32xf32>, vector<32x32xf32>, vector<80x32xf32> -> vector<80x32xf32>
    %34 = arith.addf %28, %33 : vector<80x32xf32>
    %c0_32 = arith.constant 0 : index
    %c20 = arith.constant 20 : index
    %c0_33 = arith.constant 0 : index
    %35 = vector.load %arg1[%c0_32, %c20, %c0_33] : memref<1x108x32xf32, #tpu.memory_space<vmem>>, vector<1x80x32xf32>
    %36 = vector.shape_cast %35 : vector<1x80x32xf32> to vector<80x32xf32>
    %c6 = arith.constant 6 : index
    %c0_34 = arith.constant 0 : index
    %c0_35 = arith.constant 0 : index
    %37 = vector.load %arg2[%c6, %c0_34, %c0_35] : memref<9x32x32xf32, #tpu.memory_space<vmem>>, vector<1x32x32xf32>
    %38 = vector.shape_cast %37 : vector<1x32x32xf32> to vector<32x32xf32>
    %cst_36 = arith.constant dense<0.000000e+00> : vector<80x32xf32>
    %39 = tpu.matmul %36, %38, %cst_36 {dimension_numbers = #tpu.dot_dimension_numbers<[1], [0], [0], [1], [0, 0, 1, 1], [], []>} : vector<80x32xf32>, vector<32x32xf32>, vector<80x32xf32> -> vector<80x32xf32>
    %40 = arith.addf %34, %39 : vector<80x32xf32>
    %c0_37 = arith.constant 0 : index
    %c21 = arith.constant 21 : index
    %c0_38 = arith.constant 0 : index
    %41 = vector.load %arg1[%c0_37, %c21, %c0_38] : memref<1x108x32xf32, #tpu.memory_space<vmem>>, vector<1x80x32xf32>
    %42 = vector.shape_cast %41 : vector<1x80x32xf32> to vector<80x32xf32>
    %c7 = arith.constant 7 : index
    %c0_39 = arith.constant 0 : index
    %c0_40 = arith.constant 0 : index
    %43 = vector.load %arg2[%c7, %c0_39, %c0_40] : memref<9x32x32xf32, #tpu.memory_space<vmem>>, vector<1x32x32xf32>
    %44 = vector.shape_cast %43 : vector<1x32x32xf32> to vector<32x32xf32>
    %cst_41 = arith.constant dense<0.000000e+00> : vector<80x32xf32>
    %45 = tpu.matmul %42, %44, %cst_41 {dimension_numbers = #tpu.dot_dimension_numbers<[1], [0], [0], [1], [0, 0, 1, 1], [], []>} : vector<80x32xf32>, vector<32x32xf32>, vector<80x32xf32> -> vector<80x32xf32>
    %46 = arith.addf %40, %45 : vector<80x32xf32>
    %c0_42 = arith.constant 0 : index
    %c22 = arith.constant 22 : index
    %c0_43 = arith.constant 0 : index
    %47 = vector.load %arg1[%c0_42, %c22, %c0_43] : memref<1x108x32xf32, #tpu.memory_space<vmem>>, vector<1x80x32xf32>
    %48 = vector.shape_cast %47 : vector<1x80x32xf32> to vector<80x32xf32>
    %c8 = arith.constant 8 : index
    %c0_44 = arith.constant 0 : index
    %c0_45 = arith.constant 0 : index
    %49 = vector.load %arg2[%c8, %c0_44, %c0_45] : memref<9x32x32xf32, #tpu.memory_space<vmem>>, vector<1x32x32xf32>
    %50 = vector.shape_cast %49 : vector<1x32x32xf32> to vector<32x32xf32>
    %cst_46 = arith.constant dense<0.000000e+00> : vector<80x32xf32>
    %51 = tpu.matmul %48, %50, %cst_46 {dimension_numbers = #tpu.dot_dimension_numbers<[1], [0], [0], [1], [0, 0, 1, 1], [], []>} : vector<80x32xf32>, vector<32x32xf32>, vector<80x32xf32> -> vector<80x32xf32>
    %52 = arith.addf %46, %51 : vector<80x32xf32>
    %c0_47 = arith.constant 0 : index
    %c0_48 = arith.constant 0 : index
    %53 = vector.load %arg3[%c0_47, %c0_48] : memref<1x32xf32, #tpu.memory_space<vmem>>, vector<1x32xf32>
    %54 = vector.broadcast %53 : vector<1x32xf32> to vector<80x32xf32>
    %55 = arith.addf %52, %54 : vector<80x32xf32>
    %cst_49 = arith.constant 0.000000e+00 : f32
    %56 = vector.broadcast %cst_49 : f32 to vector<80x32xf32>
    %57 = arith.cmpf oge, %55, %56 : vector<80x32xf32>
    %cst_50 = arith.constant 2.000000e-01 : f32
    %58 = vector.broadcast %cst_50 : f32 to vector<80x32xf32>
    %59 = arith.mulf %58, %55 : vector<80x32xf32>
    %60 = arith.select %57, %55, %59 : vector<80x32xi1>, vector<80x32xf32>
    %61 = arith.mulf %60, %60 : vector<80x32xf32>
    %cst_51 = arith.constant dense<0.000000e+00> : vector<80xf32>
    %62 = vector.multi_reduction <add>, %61, %cst_51 [1] : vector<80x32xf32> to vector<80xf32>
    %63 = vector.shape_cast %62 : vector<80xf32> to vector<80x1xf32>
    %cst_52 = arith.constant 3.200000e+01 : f32
    %64 = vector.broadcast %cst_52 : f32 to vector<80x1xf32>
    %65 = arith.divf %63, %64 : vector<80x1xf32>
    %cst_53 = arith.constant 9.99999993E-9 : f32
    %66 = vector.broadcast %cst_53 : f32 to vector<80x1xf32>
    %67 = arith.addf %65, %66 : vector<80x1xf32>
    %68 = math.rsqrt %67 : vector<80x1xf32>
    %69 = vector.broadcast %68 : vector<80x1xf32> to vector<80x32xf32>
    %70 = arith.mulf %60, %69 : vector<80x32xf32>
    %c0_54 = arith.constant 0 : index
    %c0_55 = arith.constant 0 : index
    %c0_56 = arith.constant 0 : index
    %71 = vector.load %arg4[%c0_54, %c0_55, %c0_56] : memref<1x80x32xf32, #tpu.memory_space<vmem>>, vector<1x80x32xf32>
    %72 = vector.shape_cast %71 : vector<1x80x32xf32> to vector<80x32xf32>
    %73 = vector.shape_cast %70 : vector<80x32xf32> to vector<1x80x32xf32>
    tpu.vector_store %arg4[%c0_54, %c0_55, %c0_56], %73 {strides = array<i32>} : memref<1x80x32xf32, #tpu.memory_space<vmem>>, vector<1x80x32xf32>,
    return
  }
  func.func @transform_0(%arg0: i32) -> (i32, i32, i32) {
    %c0_i32 = arith.constant 0 : i32
    %c0_i32_0 = arith.constant 0 : i32
    %c0_i32_1 = arith.constant 0 : i32
    return %arg0, %c0_i32, %c0_i32_0 : i32, i32, i32
  }
  func.func @transform_1(%arg0: i32) -> (i32, i32, i32) {
    %c0_i32 = arith.constant 0 : i32
    %c0_i32_0 = arith.constant 0 : i32
    %c0_i32_1 = arith.constant 0 : i32
    %c0_i32_2 = arith.constant 0 : i32
    return %c0_i32, %c0_i32_0, %c0_i32_1 : i32, i32, i32
  }
  func.func @transform_2(%arg0: i32) -> (i32, i32) {
    %c0_i32 = arith.constant 0 : i32
    %c0_i32_0 = arith.constant 0 : i32
    %c0_i32_1 = arith.constant 0 : i32
    return %c0_i32, %c0_i32_0 : i32, i32
  }
  func.func @transform_3(%arg0: i32) -> (i32, i32, i32) {
    %c0_i32 = arith.constant 0 : i32
    %c0_i32_0 = arith.constant 0 : i32
    %c0_i32_1 = arith.constant 0 : i32
    return %arg0, %c0_i32, %c0_i32_0 : i32, i32, i32
  }
}

module attributes {stable_mosaic.version = 11 : i64} {
  func.func @kernel(%arg0: i32, %arg1: memref<1x332x32xf32, #tpu.memory_space<vmem>>, %arg2: memref<9x32x32xf32, #tpu.memory_space<vmem>>, %arg3: memref<1x32xf32, #tpu.memory_space<vmem>>, %arg4: memref<1x288x32xf32, #tpu.memory_space<vmem>>) attributes {dimension_semantics = [#tpu.dimension_semantics<parallel>], iteration_bounds = array<i64: 2>, scalar_prefetch = 0 : i64, scratch_operands = 0 : i64, tpu.core_type = #tpu.core_type<tc>, window_params = [{transform_indices = @transform_0, window_bounds = array<i64: 1, 332, 32>}, {pipeline_mode = #tpu.pipeline_mode<synchronous>, transform_indices = @transform_1, window_bounds = array<i64: 9, 32, 32>}, {pipeline_mode = #tpu.pipeline_mode<synchronous>, transform_indices = @transform_2, window_bounds = array<i64: 1, 32>}, {transform_indices = @transform_3, window_bounds = array<i64: 1, 288, 32>}]} {
    %c0 = arith.constant 0 : index
    %c0_0 = arith.constant 0 : index
    %c0_1 = arith.constant 0 : index
    %0 = vector.load %arg1[%c0, %c0_0, %c0_1] : memref<1x332x32xf32, #tpu.memory_space<vmem>>, vector<1x288x32xf32>
    %1 = vector.shape_cast %0 : vector<1x288x32xf32> to vector<288x32xf32>
    %c0_2 = arith.constant 0 : index
    %c0_3 = arith.constant 0 : index
    %c0_4 = arith.constant 0 : index
    %2 = vector.load %arg2[%c0_2, %c0_3, %c0_4] : memref<9x32x32xf32, #tpu.memory_space<vmem>>, vector<1x32x32xf32>
    %3 = vector.shape_cast %2 : vector<1x32x32xf32> to vector<32x32xf32>
    %cst = arith.constant dense<0.000000e+00> : vector<288x32xf32>
    %4 = tpu.matmul %1, %3, %cst {dimension_numbers = #tpu.dot_dimension_numbers<[1], [0], [0], [1], [0, 0, 1, 1], [], []>} : vector<288x32xf32>, vector<32x32xf32>, vector<288x32xf32> -> vector<288x32xf32>
    %c0_5 = arith.constant 0 : index
    %c1 = arith.constant 1 : index
    %c0_6 = arith.constant 0 : index
    %5 = vector.load %arg1[%c0_5, %c1, %c0_6] : memref<1x332x32xf32, #tpu.memory_space<vmem>>, vector<1x288x32xf32>
    %6 = vector.shape_cast %5 : vector<1x288x32xf32> to vector<288x32xf32>
    %c1_7 = arith.constant 1 : index
    %c0_8 = arith.constant 0 : index
    %c0_9 = arith.constant 0 : index
    %7 = vector.load %arg2[%c1_7, %c0_8, %c0_9] : memref<9x32x32xf32, #tpu.memory_space<vmem>>, vector<1x32x32xf32>
    %8 = vector.shape_cast %7 : vector<1x32x32xf32> to vector<32x32xf32>
    %cst_10 = arith.constant dense<0.000000e+00> : vector<288x32xf32>
    %9 = tpu.matmul %6, %8, %cst_10 {dimension_numbers = #tpu.dot_dimension_numbers<[1], [0], [0], [1], [0, 0, 1, 1], [], []>} : vector<288x32xf32>, vector<32x32xf32>, vector<288x32xf32> -> vector<288x32xf32>
    %10 = arith.addf %4, %9 : vector<288x32xf32>
    %c0_11 = arith.constant 0 : index
    %c2 = arith.constant 2 : index
    %c0_12 = arith.constant 0 : index
    %11 = vector.load %arg1[%c0_11, %c2, %c0_12] : memref<1x332x32xf32, #tpu.memory_space<vmem>>, vector<1x288x32xf32>
    %12 = vector.shape_cast %11 : vector<1x288x32xf32> to vector<288x32xf32>
    %c2_13 = arith.constant 2 : index
    %c0_14 = arith.constant 0 : index
    %c0_15 = arith.constant 0 : index
    %13 = vector.load %arg2[%c2_13, %c0_14, %c0_15] : memref<9x32x32xf32, #tpu.memory_space<vmem>>, vector<1x32x32xf32>
    %14 = vector.shape_cast %13 : vector<1x32x32xf32> to vector<32x32xf32>
    %cst_16 = arith.constant dense<0.000000e+00> : vector<288x32xf32>
    %15 = tpu.matmul %12, %14, %cst_16 {dimension_numbers = #tpu.dot_dimension_numbers<[1], [0], [0], [1], [0, 0, 1, 1], [], []>} : vector<288x32xf32>, vector<32x32xf32>, vector<288x32xf32> -> vector<288x32xf32>
    %16 = arith.addf %10, %15 : vector<288x32xf32>
    %c0_17 = arith.constant 0 : index
    %c18 = arith.constant 18 : index
    %c0_18 = arith.constant 0 : index
    %17 = vector.load %arg1[%c0_17, %c18, %c0_18] : memref<1x332x32xf32, #tpu.memory_space<vmem>>, vector<1x288x32xf32>
    %18 = vector.shape_cast %17 : vector<1x288x32xf32> to vector<288x32xf32>
    %c3 = arith.constant 3 : index
    %c0_19 = arith.constant 0 : index
    %c0_20 = arith.constant 0 : index
    %19 = vector.load %arg2[%c3, %c0_19, %c0_20] : memref<9x32x32xf32, #tpu.memory_space<vmem>>, vector<1x32x32xf32>
    %20 = vector.shape_cast %19 : vector<1x32x32xf32> to vector<32x32xf32>
    %cst_21 = arith.constant dense<0.000000e+00> : vector<288x32xf32>
    %21 = tpu.matmul %18, %20, %cst_21 {dimension_numbers = #tpu.dot_dimension_numbers<[1], [0], [0], [1], [0, 0, 1, 1], [], []>} : vector<288x32xf32>, vector<32x32xf32>, vector<288x32xf32> -> vector<288x32xf32>
    %22 = arith.addf %16, %21 : vector<288x32xf32>
    %c0_22 = arith.constant 0 : index
    %c19 = arith.constant 19 : index
    %c0_23 = arith.constant 0 : index
    %23 = vector.load %arg1[%c0_22, %c19, %c0_23] : memref<1x332x32xf32, #tpu.memory_space<vmem>>, vector<1x288x32xf32>
    %24 = vector.shape_cast %23 : vector<1x288x32xf32> to vector<288x32xf32>
    %c4 = arith.constant 4 : index
    %c0_24 = arith.constant 0 : index
    %c0_25 = arith.constant 0 : index
    %25 = vector.load %arg2[%c4, %c0_24, %c0_25] : memref<9x32x32xf32, #tpu.memory_space<vmem>>, vector<1x32x32xf32>
    %26 = vector.shape_cast %25 : vector<1x32x32xf32> to vector<32x32xf32>
    %cst_26 = arith.constant dense<0.000000e+00> : vector<288x32xf32>
    %27 = tpu.matmul %24, %26, %cst_26 {dimension_numbers = #tpu.dot_dimension_numbers<[1], [0], [0], [1], [0, 0, 1, 1], [], []>} : vector<288x32xf32>, vector<32x32xf32>, vector<288x32xf32> -> vector<288x32xf32>
    %28 = arith.addf %22, %27 : vector<288x32xf32>
    %c0_27 = arith.constant 0 : index
    %c20 = arith.constant 20 : index
    %c0_28 = arith.constant 0 : index
    %29 = vector.load %arg1[%c0_27, %c20, %c0_28] : memref<1x332x32xf32, #tpu.memory_space<vmem>>, vector<1x288x32xf32>
    %30 = vector.shape_cast %29 : vector<1x288x32xf32> to vector<288x32xf32>
    %c5 = arith.constant 5 : index
    %c0_29 = arith.constant 0 : index
    %c0_30 = arith.constant 0 : index
    %31 = vector.load %arg2[%c5, %c0_29, %c0_30] : memref<9x32x32xf32, #tpu.memory_space<vmem>>, vector<1x32x32xf32>
    %32 = vector.shape_cast %31 : vector<1x32x32xf32> to vector<32x32xf32>
    %cst_31 = arith.constant dense<0.000000e+00> : vector<288x32xf32>
    %33 = tpu.matmul %30, %32, %cst_31 {dimension_numbers = #tpu.dot_dimension_numbers<[1], [0], [0], [1], [0, 0, 1, 1], [], []>} : vector<288x32xf32>, vector<32x32xf32>, vector<288x32xf32> -> vector<288x32xf32>
    %34 = arith.addf %28, %33 : vector<288x32xf32>
    %c0_32 = arith.constant 0 : index
    %c36 = arith.constant 36 : index
    %c0_33 = arith.constant 0 : index
    %35 = vector.load %arg1[%c0_32, %c36, %c0_33] : memref<1x332x32xf32, #tpu.memory_space<vmem>>, vector<1x288x32xf32>
    %36 = vector.shape_cast %35 : vector<1x288x32xf32> to vector<288x32xf32>
    %c6 = arith.constant 6 : index
    %c0_34 = arith.constant 0 : index
    %c0_35 = arith.constant 0 : index
    %37 = vector.load %arg2[%c6, %c0_34, %c0_35] : memref<9x32x32xf32, #tpu.memory_space<vmem>>, vector<1x32x32xf32>
    %38 = vector.shape_cast %37 : vector<1x32x32xf32> to vector<32x32xf32>
    %cst_36 = arith.constant dense<0.000000e+00> : vector<288x32xf32>
    %39 = tpu.matmul %36, %38, %cst_36 {dimension_numbers = #tpu.dot_dimension_numbers<[1], [0], [0], [1], [0, 0, 1, 1], [], []>} : vector<288x32xf32>, vector<32x32xf32>, vector<288x32xf32> -> vector<288x32xf32>
    %40 = arith.addf %34, %39 : vector<288x32xf32>
    %c0_37 = arith.constant 0 : index
    %c37 = arith.constant 37 : index
    %c0_38 = arith.constant 0 : index
    %41 = vector.load %arg1[%c0_37, %c37, %c0_38] : memref<1x332x32xf32, #tpu.memory_space<vmem>>, vector<1x288x32xf32>
    %42 = vector.shape_cast %41 : vector<1x288x32xf32> to vector<288x32xf32>
    %c7 = arith.constant 7 : index
    %c0_39 = arith.constant 0 : index
    %c0_40 = arith.constant 0 : index
    %43 = vector.load %arg2[%c7, %c0_39, %c0_40] : memref<9x32x32xf32, #tpu.memory_space<vmem>>, vector<1x32x32xf32>
    %44 = vector.shape_cast %43 : vector<1x32x32xf32> to vector<32x32xf32>
    %cst_41 = arith.constant dense<0.000000e+00> : vector<288x32xf32>
    %45 = tpu.matmul %42, %44, %cst_41 {dimension_numbers = #tpu.dot_dimension_numbers<[1], [0], [0], [1], [0, 0, 1, 1], [], []>} : vector<288x32xf32>, vector<32x32xf32>, vector<288x32xf32> -> vector<288x32xf32>
    %46 = arith.addf %40, %45 : vector<288x32xf32>
    %c0_42 = arith.constant 0 : index
    %c38 = arith.constant 38 : index
    %c0_43 = arith.constant 0 : index
    %47 = vector.load %arg1[%c0_42, %c38, %c0_43] : memref<1x332x32xf32, #tpu.memory_space<vmem>>, vector<1x288x32xf32>
    %48 = vector.shape_cast %47 : vector<1x288x32xf32> to vector<288x32xf32>
    %c8 = arith.constant 8 : index
    %c0_44 = arith.constant 0 : index
    %c0_45 = arith.constant 0 : index
    %49 = vector.load %arg2[%c8, %c0_44, %c0_45] : memref<9x32x32xf32, #tpu.memory_space<vmem>>, vector<1x32x32xf32>
    %50 = vector.shape_cast %49 : vector<1x32x32xf32> to vector<32x32xf32>
    %cst_46 = arith.constant dense<0.000000e+00> : vector<288x32xf32>
    %51 = tpu.matmul %48, %50, %cst_46 {dimension_numbers = #tpu.dot_dimension_numbers<[1], [0], [0], [1], [0, 0, 1, 1], [], []>} : vector<288x32xf32>, vector<32x32xf32>, vector<288x32xf32> -> vector<288x32xf32>
    %52 = arith.addf %46, %51 : vector<288x32xf32>
    %c0_47 = arith.constant 0 : index
    %c0_48 = arith.constant 0 : index
    %53 = vector.load %arg3[%c0_47, %c0_48] : memref<1x32xf32, #tpu.memory_space<vmem>>, vector<1x32xf32>
    %54 = vector.broadcast %53 : vector<1x32xf32> to vector<288x32xf32>
    %55 = arith.addf %52, %54 : vector<288x32xf32>
    %cst_49 = arith.constant 0.000000e+00 : f32
    %56 = vector.broadcast %cst_49 : f32 to vector<288x32xf32>
    %57 = arith.cmpf oge, %55, %56 : vector<288x32xf32>
    %cst_50 = arith.constant 2.000000e-01 : f32
    %58 = vector.broadcast %cst_50 : f32 to vector<288x32xf32>
    %59 = arith.mulf %58, %55 : vector<288x32xf32>
    %60 = arith.select %57, %55, %59 : vector<288x32xi1>, vector<288x32xf32>
    %61 = arith.mulf %60, %60 : vector<288x32xf32>
    %cst_51 = arith.constant dense<0.000000e+00> : vector<288xf32>
    %62 = vector.multi_reduction <add>, %61, %cst_51 [1] : vector<288x32xf32> to vector<288xf32>
    %63 = vector.shape_cast %62 : vector<288xf32> to vector<288x1xf32>
    %cst_52 = arith.constant 3.200000e+01 : f32
    %64 = vector.broadcast %cst_52 : f32 to vector<288x1xf32>
    %65 = arith.divf %63, %64 : vector<288x1xf32>
    %cst_53 = arith.constant 9.99999993E-9 : f32
    %66 = vector.broadcast %cst_53 : f32 to vector<288x1xf32>
    %67 = arith.addf %65, %66 : vector<288x1xf32>
    %68 = math.rsqrt %67 : vector<288x1xf32>
    %69 = vector.broadcast %68 : vector<288x1xf32> to vector<288x32xf32>
    %70 = arith.mulf %60, %69 : vector<288x32xf32>
    %c0_54 = arith.constant 0 : index
    %c0_55 = arith.constant 0 : index
    %c0_56 = arith.constant 0 : index
    %71 = vector.load %arg4[%c0_54, %c0_55, %c0_56] : memref<1x288x32xf32, #tpu.memory_space<vmem>>, vector<1x288x32xf32>
    %72 = vector.shape_cast %71 : vector<1x288x32xf32> to vector<288x32xf32>
    %73 = vector.shape_cast %70 : vector<288x32xf32> to vector<1x288x32xf32>
    tpu.vector_store %arg4[%c0_54, %c0_55, %c0_56], %73 {strides = array<i32>} : memref<1x288x32xf32, #tpu.memory_space<vmem>>, vector<1x288x32xf32>,
    return
  }
  func.func @transform_0(%arg0: i32) -> (i32, i32, i32) {
    %c0_i32 = arith.constant 0 : i32
    %c0_i32_0 = arith.constant 0 : i32
    %c0_i32_1 = arith.constant 0 : i32
    return %arg0, %c0_i32, %c0_i32_0 : i32, i32, i32
  }
  func.func @transform_1(%arg0: i32) -> (i32, i32, i32) {
    %c0_i32 = arith.constant 0 : i32
    %c0_i32_0 = arith.constant 0 : i32
    %c0_i32_1 = arith.constant 0 : i32
    %c0_i32_2 = arith.constant 0 : i32
    return %c0_i32, %c0_i32_0, %c0_i32_1 : i32, i32, i32
  }
  func.func @transform_2(%arg0: i32) -> (i32, i32) {
    %c0_i32 = arith.constant 0 : i32
    %c0_i32_0 = arith.constant 0 : i32
    %c0_i32_1 = arith.constant 0 : i32
    return %c0_i32, %c0_i32_0 : i32, i32
  }
  func.func @transform_3(%arg0: i32) -> (i32, i32, i32) {
    %c0_i32 = arith.constant 0 : i32
    %c0_i32_0 = arith.constant 0 : i32
    %c0_i32_1 = arith.constant 0 : i32
    return %arg0, %c0_i32, %c0_i32_0 : i32, i32, i32
  }
}

module attributes {stable_mosaic.version = 11 : i64} {
  func.func @_to_rgb_kernel(%arg0: i32, %arg1: memref<1x64x32xf32, #tpu.memory_space<vmem>>, %arg2: memref<32x3xf32, #tpu.memory_space<vmem>>, %arg3: memref<1x3xf32, #tpu.memory_space<vmem>>, %arg4: memref<1x64x3xf32, #tpu.memory_space<vmem>>) attributes {dimension_semantics = [#tpu.dimension_semantics<parallel>], iteration_bounds = array<i64: 2>, scalar_prefetch = 0 : i64, scratch_operands = 0 : i64, tpu.core_type = #tpu.core_type<tc>, window_params = [{transform_indices = @transform_0, window_bounds = array<i64: 1, 64, 32>}, {pipeline_mode = #tpu.pipeline_mode<synchronous>, transform_indices = @transform_1, window_bounds = array<i64: 32, 3>}, {pipeline_mode = #tpu.pipeline_mode<synchronous>, transform_indices = @transform_2, window_bounds = array<i64: 1, 3>}, {transform_indices = @transform_3, window_bounds = array<i64: 1, 64, 3>}]} {
    %c0 = arith.constant 0 : index
    %c0_0 = arith.constant 0 : index
    %c0_1 = arith.constant 0 : index
    %0 = vector.load %arg1[%c0, %c0_0, %c0_1] : memref<1x64x32xf32, #tpu.memory_space<vmem>>, vector<1x64x32xf32>
    %1 = vector.shape_cast %0 : vector<1x64x32xf32> to vector<64x32xf32>
    %c0_2 = arith.constant 0 : index
    %c0_3 = arith.constant 0 : index
    %2 = vector.load %arg2[%c0_2, %c0_3] : memref<32x3xf32, #tpu.memory_space<vmem>>, vector<32x3xf32>
    %cst = arith.constant dense<0.000000e+00> : vector<64x3xf32>
    %3 = tpu.matmul %1, %2, %cst {dimension_numbers = #tpu.dot_dimension_numbers<[1], [0], [0], [1], [0, 0, 1, 1], [], []>} : vector<64x32xf32>, vector<32x3xf32>, vector<64x3xf32> -> vector<64x3xf32>
    %c0_4 = arith.constant 0 : index
    %c0_5 = arith.constant 0 : index
    %4 = vector.load %arg3[%c0_4, %c0_5] : memref<1x3xf32, #tpu.memory_space<vmem>>, vector<1x3xf32>
    %5 = vector.broadcast %4 : vector<1x3xf32> to vector<64x3xf32>
    %6 = arith.addf %3, %5 : vector<64x3xf32>
    %c0_6 = arith.constant 0 : index
    %c0_7 = arith.constant 0 : index
    %c0_8 = arith.constant 0 : index
    %7 = vector.load %arg4[%c0_6, %c0_7, %c0_8] : memref<1x64x3xf32, #tpu.memory_space<vmem>>, vector<1x64x3xf32>
    %8 = vector.shape_cast %7 : vector<1x64x3xf32> to vector<64x3xf32>
    %9 = vector.shape_cast %6 : vector<64x3xf32> to vector<1x64x3xf32>
    tpu.vector_store %arg4[%c0_6, %c0_7, %c0_8], %9 {strides = array<i32>} : memref<1x64x3xf32, #tpu.memory_space<vmem>>, vector<1x64x3xf32>,
    return
  }
  func.func @transform_0(%arg0: i32) -> (i32, i32, i32) {
    %c0_i32 = arith.constant 0 : i32
    %c0_i32_0 = arith.constant 0 : i32
    %c0_i32_1 = arith.constant 0 : i32
    return %arg0, %c0_i32, %c0_i32_0 : i32, i32, i32
  }
  func.func @transform_1(%arg0: i32) -> (i32, i32) {
    %c0_i32 = arith.constant 0 : i32
    %c0_i32_0 = arith.constant 0 : i32
    %c0_i32_1 = arith.constant 0 : i32
    return %c0_i32, %c0_i32_0 : i32, i32
  }
  func.func @transform_2(%arg0: i32) -> (i32, i32) {
    %c0_i32 = arith.constant 0 : i32
    %c0_i32_0 = arith.constant 0 : i32
    %c0_i32_1 = arith.constant 0 : i32
    return %c0_i32, %c0_i32_0 : i32, i32
  }
  func.func @transform_3(%arg0: i32) -> (i32, i32, i32) {
    %c0_i32 = arith.constant 0 : i32
    %c0_i32_0 = arith.constant 0 : i32
    %c0_i32_1 = arith.constant 0 : i32
    return %arg0, %c0_i32, %c0_i32_0 : i32, i32, i32
  }
}

module attributes {stable_mosaic.version = 11 : i64} {
  func.func @_to_rgb_blend_kernel(%arg0: i32, %arg1: memref<1x256x32xf32, #tpu.memory_space<vmem>>, %arg2: memref<32x3xf32, #tpu.memory_space<vmem>>, %arg3: memref<1x3xf32, #tpu.memory_space<vmem>>, %arg4: memref<1x256x3xf32, #tpu.memory_space<vmem>>, %arg5: memref<1x1xf32, #tpu.memory_space<vmem>>, %arg6: memref<1x256x3xf32, #tpu.memory_space<vmem>>) attributes {dimension_semantics = [#tpu.dimension_semantics<parallel>], iteration_bounds = array<i64: 2>, scalar_prefetch = 0 : i64, scratch_operands = 0 : i64, tpu.core_type = #tpu.core_type<tc>, window_params = [{transform_indices = @transform_0, window_bounds = array<i64: 1, 256, 32>}, {pipeline_mode = #tpu.pipeline_mode<synchronous>, transform_indices = @transform_1, window_bounds = array<i64: 32, 3>}, {pipeline_mode = #tpu.pipeline_mode<synchronous>, transform_indices = @transform_2, window_bounds = array<i64: 1, 3>}, {transform_indices = @transform_3, window_bounds = array<i64: 1, 256, 3>}, {pipeline_mode = #tpu.pipeline_mode<synchronous>, transform_indices = @transform_4, window_bounds = array<i64: 1, 1>}, {transform_indices = @transform_5, window_bounds = array<i64: 1, 256, 3>}]} {
    %c0 = arith.constant 0 : index
    %c0_0 = arith.constant 0 : index
    %c0_1 = arith.constant 0 : index
    %0 = vector.load %arg1[%c0, %c0_0, %c0_1] : memref<1x256x32xf32, #tpu.memory_space<vmem>>, vector<1x256x32xf32>
    %1 = vector.shape_cast %0 : vector<1x256x32xf32> to vector<256x32xf32>
    %c0_2 = arith.constant 0 : index
    %c0_3 = arith.constant 0 : index
    %2 = vector.load %arg2[%c0_2, %c0_3] : memref<32x3xf32, #tpu.memory_space<vmem>>, vector<32x3xf32>
    %cst = arith.constant dense<0.000000e+00> : vector<256x3xf32>
    %3 = tpu.matmul %1, %2, %cst {dimension_numbers = #tpu.dot_dimension_numbers<[1], [0], [0], [1], [0, 0, 1, 1], [], []>} : vector<256x32xf32>, vector<32x3xf32>, vector<256x3xf32> -> vector<256x3xf32>
    %c0_4 = arith.constant 0 : index
    %c0_5 = arith.constant 0 : index
    %4 = vector.load %arg3[%c0_4, %c0_5] : memref<1x3xf32, #tpu.memory_space<vmem>>, vector<1x3xf32>
    %5 = vector.broadcast %4 : vector<1x3xf32> to vector<256x3xf32>
    %6 = arith.addf %3, %5 : vector<256x3xf32>
    %c0_6 = arith.constant 0 : index
    %c0_7 = arith.constant 0 : index
    %7 = vector.load %arg5[%c0_6, %c0_7] : memref<1x1xf32, #tpu.memory_space<vmem>>, vector<1x1xf32>
    %8 = vector.broadcast %7 : vector<1x1xf32> to vector<256x3xf32>
    %9 = arith.mulf %8, %6 : vector<256x3xf32>
    %cst_8 = arith.constant 1.000000e+00 : f32
    %10 = vector.broadcast %cst_8 : f32 to vector<1x1xf32>
    %11 = arith.subf %10, %7 : vector<1x1xf32>
    %c0_9 = arith.constant 0 : index
    %c0_10 = arith.constant 0 : index
    %c0_11 = arith.constant 0 : index
    %12 = vector.load %arg4[%c0_9, %c0_10, %c0_11] : memref<1x256x3xf32, #tpu.memory_space<vmem>>, vector<1x256x3xf32>
    %13 = vector.shape_cast %12 : vector<1x256x3xf32> to vector<256x3xf32>
    %14 = vector.broadcast %11 : vector<1x1xf32> to vector<256x3xf32>
    %15 = arith.mulf %14, %13 : vector<256x3xf32>
    %16 = arith.addf %9, %15 : vector<256x3xf32>
    %c0_12 = arith.constant 0 : index
    %c0_13 = arith.constant 0 : index
    %c0_14 = arith.constant 0 : index
    %17 = vector.load %arg6[%c0_12, %c0_13, %c0_14] : memref<1x256x3xf32, #tpu.memory_space<vmem>>, vector<1x256x3xf32>
    %18 = vector.shape_cast %17 : vector<1x256x3xf32> to vector<256x3xf32>
    %19 = vector.shape_cast %16 : vector<256x3xf32> to vector<1x256x3xf32>
    tpu.vector_store %arg6[%c0_12, %c0_13, %c0_14], %19 {strides = array<i32>} : memref<1x256x3xf32, #tpu.memory_space<vmem>>, vector<1x256x3xf32>,
    return
  }
  func.func @transform_0(%arg0: i32) -> (i32, i32, i32) {
    %c0_i32 = arith.constant 0 : i32
    %c0_i32_0 = arith.constant 0 : i32
    %c0_i32_1 = arith.constant 0 : i32
    return %arg0, %c0_i32, %c0_i32_0 : i32, i32, i32
  }
  func.func @transform_1(%arg0: i32) -> (i32, i32) {
    %c0_i32 = arith.constant 0 : i32
    %c0_i32_0 = arith.constant 0 : i32
    %c0_i32_1 = arith.constant 0 : i32
    return %c0_i32, %c0_i32_0 : i32, i32
  }
  func.func @transform_2(%arg0: i32) -> (i32, i32) {
    %c0_i32 = arith.constant 0 : i32
    %c0_i32_0 = arith.constant 0 : i32
    %c0_i32_1 = arith.constant 0 : i32
    return %c0_i32, %c0_i32_0 : i32, i32
  }
  func.func @transform_3(%arg0: i32) -> (i32, i32, i32) {
    %c0_i32 = arith.constant 0 : i32
    %c0_i32_0 = arith.constant 0 : i32
    %c0_i32_1 = arith.constant 0 : i32
    return %arg0, %c0_i32, %c0_i32_0 : i32, i32, i32
  }
  func.func @transform_4(%arg0: i32) -> (i32, i32) {
    %c0_i32 = arith.constant 0 : i32
    %c0_i32_0 = arith.constant 0 : i32
    %c0_i32_1 = arith.constant 0 : i32
    return %c0_i32, %c0_i32_0 : i32, i32
  }
  func.func @transform_5(%arg0: i32) -> (i32, i32, i32) {
    %c0_i32 = arith.constant 0 : i32
    %c0_i32_0 = arith.constant 0 : i32
    %c0_i32_1 = arith.constant 0 : i32
    return %arg0, %c0_i32, %c0_i32_0 : i32, i32, i32
  }
}

</mosaic_0001>

<bundles_post_ra>
// kernel: generator_forward.8
= control target key start
LH: loop header
LB: loop body
LE: loop exit
PB: predicated region body
PF: predicated region fallthrough
CT: control target
= control target key end

     0   :  { %9 = vsyncpa [#allocation3], 0  ;;  %s973_s0 = inlined_call_operand.vmem [shape: f32[2,32], index: 0, kind: input, shape index: {}]   ;;  %s974_s1 = inlined_call_operand.hbm [shape: f32[32,512], index: 1, kind: input, shape index: {}]   ;;  %s975_s2 = inlined_call_operand.vmem [shape: f32[1,512], index: 2, kind: input, shape index: {}]   ;;  %s976_s3 = inlined_call_operand.hbm [shape: f32[512,512], index: 3, kind: input, shape index: {}]   ;;  %s977_s4 = inlined_call_operand.vmem [shape: f32[2,512], index: 4, kind: output, shape index: {}]  }
   0x1   :  { %s17_s17 = sshll.u32 %s974_s1, 4  ;;  %s18_s17 = int_to_ptr.hbm [resolvable:$true] %s17_s17 }
   0x2   :  { %10 = vsyncpa [#allocation5], 0  ;;  %s885_s18 = smov [#allocation2]   ;;  %s32_s22 = sshll.u32 %s976_s3, 4  ;;  %s33_s22 = int_to_ptr.hbm [resolvable:$true] %s32_s22 }
   0x3   :  { %s19_s19 = sshll.u32 %s885_s18, 4  ;;  %s886_s23 = smov 512   ;;  %s20_s19 = int_to_ptr.vmem [resolvable:$true] %s19_s19 }
   0x4   :  { %s887_s24 = smov 32   ;;  %s888_s25 = smov [#allocation4]  }
   0x5   :  { %25 = dma.hbm_to_vmem [thread:$0]  %s18_s17, 2048, %s20_s19, [#allocation3], %s886_s23, %s886_s23, %s887_s24  }
   0x6   :  { %s34_s26 = sshll.u32 %s888_s25, 4  ;;  %s35_s26 = int_to_ptr.vmem [resolvable:$true] %s34_s26 }
   0x7   :  { %40 = dma.hbm_to_vmem [thread:$0]  %s33_s22, 32768, %s35_s26, [#allocation5], %s886_s23, %s886_s23, %s887_s24  }
   0x8   :  { %881 = dma.done.wait [#allocation3], 2048  }
   0x9   :  { %882 = vsyncadd [#allocation3], 4294965248 }
   0xa   :  { %883 = dma.done.wait [#allocation5], 32768  }
   0xb   :  { %884 = vsyncadd [#allocation5], 4294934528  ;;  %v62_v0 = vld [vmem:[#allocation2 + $0x60] sm:$0xff]  ;;  %v63_v1 = vld [vmem:[#allocation2 + $0x68] sm:$0xff]  ;;  %vm76_vm0 = vcmask 261120  }
   0xc   :  { %v64_v2 = vld [vmem:[#allocation2 + $0x70] sm:$0xff]  ;;  %92 = vmatpush.msra.mxu0 %v62_v0  ;;  %112 = vmatpush.msra.mxu1 %v63_v1  ;;  %v65_v3 = vld [vmem:[#allocation2 + $0x78] sm:$0xff]  ;;  %v58_v4 = vld [vmem:[#allocation2 + $0x40] sm:$0xff] }
   0xd   :  { %v59_v5 = vld [vmem:[#allocation2 + $0x48] sm:$0xff]  ;;  %132 = vmatpush.msra.mxu2 %v64_v2  ;;  %152 = vmatpush.msra.mxu3 %v65_v3  ;;  %v60_v6 = vld [vmem:[#allocation2 + $0x50] sm:$0xff]  ;;  %v61_v7 = vld [vmem:[#allocation2 + $0x58] sm:$0xff] }
   0xe   :  { %v54_v8 = vld [vmem:[#allocation2 + $0x20] sm:$0xff]  ;;  %93 = vmatpush.msra.mxu0 %v58_v4  ;;  %113 = vmatpush.msra.mxu1 %v59_v5  ;;  %v55_v9 = vld [vmem:[#allocation2 + $0x28] sm:$0xff]  ;;  %v56_v10 = vld [vmem:[#allocation2 + $0x30] sm:$0xff] }
   0xf   :  { %v57_v11 = vld [vmem:[#allocation2 + $0x38] sm:$0xff]  ;;  %133 = vmatpush.msra.mxu2 %v60_v6  ;;  %153 = vmatpush.msra.mxu3 %v61_v7  ;;  %v50_v12 = vld [vmem:[#allocation2] sm:$0xff]  ;;  %v51_v13 = vld [vmem:[#allocation2 + $0x8] sm:$0xff] }
  0x10   :  { %94 = vmatpush.msra.mxu0 %v54_v8  ;;  %114 = vmatpush.msra.mxu1 %v55_v9  ;;  %v52_v14 = vld [vmem:[#allocation2 + $0x10] sm:$0xff]  ;;  %v53_v15 = vld [vmem:[#allocation2 + $0x18] sm:$0xff]  ;;  %v49_v16 = vld [vmem:[%s973_s0] sm:$0x3] }
  0x11   :  { %134 = vmatpush.msra.mxu2 %v56_v10  ;;  %154 = vmatpush.msra.mxu3 %v57_v11  ;;  %v236_v17 = vld [vmem:[#allocation4 + $0x1e0] sm:$0xff] }
  0x12   :  { %95 = vmatpush.msra.mxu0 %v50_v12  ;;  %115 = vmatpush.msra.mxu1 %v51_v13  ;;  %v300_v18 = vld [vmem:[#allocation4 + $0x3e0] sm:$0xff] }
  0x13   :  { %135 = vmatpush.msra.mxu2 %v52_v14  ;;  %155 = vmatpush.msra.mxu3 %v53_v15  ;;  %v364_v19 = vld [vmem:[#allocation4 + $0x5e0] sm:$0xff]  ;;  %v237_v15 = vld [vmem:[#allocation4 + $0x1e8] sm:$0xff] }
  0x14   :  { %817 = vmatmul.msk.f32.vlgmr.msra.gmra.mxu0 %vm76_vm0, %v49_v16  ;;  %818 = vmatmul.msk.f32.vlgmr.msra.gmra.mxu1 %vm76_vm0, %v49_v16  ;;  %v428_v20 = vld [vmem:[#allocation4 + $0x7e0] sm:$0xff] }
  0x15   :  { %819 = vmatmul.msk.f32.vlgmr.msra.gmra.mxu2 %vm76_vm0, %v49_v16  ;;  %820 = vmatmul.msk.f32.vlgmr.msra.gmra.mxu3 %vm76_vm0, %v49_v16  ;;  %v232_v21 = vld [vmem:[#allocation4 + $0x1c0] sm:$0xff]  ;;  %v301_v16 = vld [vmem:[#allocation4 + $0x3e8] sm:$0xff] }
  0x16   :  { %v296_v22 = vld [vmem:[#allocation4 + $0x3c0] sm:$0xff]  ;;  %432 = vmatpush.msrb.mxu0 %v236_v17  ;;  %452 = vmatpush.msrb.mxu1 %v300_v18 }
  0x17   :  { %v360_v23 = vld [vmem:[#allocation4 + $0x5c0] sm:$0xff]  ;;  %472 = vmatpush.msrb.mxu2 %v364_v19  ;;  %492 = vmatpush.msrb.mxu3 %v428_v20  ;;  %v233_v19 = vld [vmem:[#allocation4 + $0x1c8] sm:$0xff] }
  0x18   :  { %v424_v24 = vld [vmem:[#allocation4 + $0x7c0] sm:$0xff]  ;;  %433 = vmatpush.msrb.mxu0 %v232_v21  ;;  %453 = vmatpush.msrb.mxu1 %v296_v22  ;;  %v297_v20 = vld [vmem:[#allocation4 + $0x3c8] sm:$0xff] }
  0x19   :  { %v228_v25 = vld [vmem:[#allocation4 + $0x1a0] sm:$0xff]  ;;  %473 = vmatpush.msrb.mxu2 %v360_v23  ;;  %493 = vmatpush.msrb.mxu3 %v424_v24  ;;  %v365_v21 = vld [vmem:[#allocation4 + $0x5e8] sm:$0xff] }
  0x1a   :  { %v292_v26 = vld [vmem:[#allocation4 + $0x3a0] sm:$0xff]  ;;  %434 = vmatpush.msrb.mxu0 %v228_v25  ;;  %v429_v22 = vld [vmem:[#allocation4 + $0x7e8] sm:$0xff] }
  0x1b   :  { %v356_v27 = vld [vmem:[#allocation4 + $0x5a0] sm:$0xff]  ;;  %454 = vmatpush.msrb.mxu1 %v292_v26  ;;  %v229_v23 = vld [vmem:[#allocation4 + $0x1a8] sm:$0xff] }
  0x1c   :  { %v420_v28 = vld [vmem:[#allocation4 + $0x7a0] sm:$0xff]  ;;  %474 = vmatpush.msrb.mxu2 %v356_v27  ;;  %v293_v24 = vld [vmem:[#allocation4 + $0x3a8] sm:$0xff] }
  0x1d   :  { %v224_v29 = vld [vmem:[#allocation4 + $0x180] sm:$0xff]  ;;  %494 = vmatpush.msrb.mxu3 %v420_v28  ;;  %v361_v25 = vld [vmem:[#allocation4 + $0x5c8] sm:$0xff] }
  0x1e   :  { %v288_v30 = vld [vmem:[#allocation4 + $0x380] sm:$0xff]  ;;  %435 = vmatpush.msrb.mxu0 %v224_v29  ;;  %v425_v26 = vld [vmem:[#allocation4 + $0x7c8] sm:$0xff] }
  0x1f   :  { %v352_v31 = vld [vmem:[#allocation4 + $0x580] sm:$0xff]  ;;  %455 = vmatpush.msrb.mxu1 %v288_v30  ;;  %v225_v27 = vld [vmem:[#allocation4 + $0x188] sm:$0xff] }
  0x20   :  { %v416_v32 = vld [vmem:[#allocation4 + $0x780] sm:$0xff]  ;;  %475 = vmatpush.msrb.mxu2 %v352_v31  ;;  %v289_v28 = vld [vmem:[#allocation4 + $0x388] sm:$0xff] }
  0x21   :  { %v220_v33 = vld [vmem:[#allocation4 + $0x160] sm:$0xff]  ;;  %495 = vmatpush.msrb.mxu3 %v416_v32  ;;  %v357_v29 = vld [vmem:[#allocation4 + $0x5a8] sm:$0xff] }
  0x22   :  { %v284_v34 = vld [vmem:[#allocation4 + $0x360] sm:$0xff]  ;;  %436 = vmatpush.msrb.mxu0 %v220_v33  ;;  %v421_v30 = vld [vmem:[#allocation4 + $0x7a8] sm:$0xff] }
  0x23   :  { %v348_v35 = vld [vmem:[#allocation4 + $0x560] sm:$0xff]  ;;  %456 = vmatpush.msrb.mxu1 %v284_v34  ;;  %v221_v31 = vld [vmem:[#allocation4 + $0x168] sm:$0xff] }
  0x24   :  { %v412_v36 = vld [vmem:[#allocation4 + $0x760] sm:$0xff]  ;;  %476 = vmatpush.msrb.mxu2 %v348_v35  ;;  %v285_v32 = vld [vmem:[#allocation4 + $0x368] sm:$0xff] }
  0x25   :  { %v216_v37 = vld [vmem:[#allocation4 + $0x140] sm:$0xff]  ;;  %496 = vmatpush.msrb.mxu3 %v412_v36  ;;  %v353_v33 = vld [vmem:[#allocation4 + $0x588] sm:$0xff] }
  0x26   :  { %v280_v38 = vld [vmem:[#allocation4 + $0x340] sm:$0xff]  ;;  %437 = vmatpush.msrb.mxu0 %v216_v37  ;;  %v417_v34 = vld [vmem:[#allocation4 + $0x788] sm:$0xff] }
  0x27   :  { %v344_v39 = vld [vmem:[#allocation4 + $0x540] sm:$0xff]  ;;  %457 = vmatpush.msrb.mxu1 %v280_v38  ;;  %v217_v35 = vld [vmem:[#allocation4 + $0x148] sm:$0xff] }
  0x28   :  { %v408_v40 = vld [vmem:[#allocation4 + $0x740] sm:$0xff]  ;;  %477 = vmatpush.msrb.mxu2 %v344_v39  ;;  %v281_v36 = vld [vmem:[#allocation4 + $0x348] sm:$0xff] }
  0x29   :  { %v212_v41 = vld [vmem:[#allocation4 + $0x120] sm:$0xff]  ;;  %497 = vmatpush.msrb.mxu3 %v408_v40  ;;  %v349_v37 = vld [vmem:[#allocation4 + $0x568] sm:$0xff] }
  0x2a   :  { %v276_v42 = vld [vmem:[#allocation4 + $0x320] sm:$0xff]  ;;  %438 = vmatpush.msrb.mxu0 %v212_v41  ;;  %v413_v38 = vld [vmem:[#allocation4 + $0x768] sm:$0xff] }
  0x2b   :  { %v340_v43 = vld [vmem:[#allocation4 + $0x520] sm:$0xff]  ;;  %458 = vmatpush.msrb.mxu1 %v276_v42  ;;  %v213_v39 = vld [vmem:[#allocation4 + $0x128] sm:$0xff] }
  0x2c   :  { %v404_v44 = vld [vmem:[#allocation4 + $0x720] sm:$0xff]  ;;  %478 = vmatpush.msrb.mxu2 %v340_v43  ;;  %v277_v40 = vld [vmem:[#allocation4 + $0x328] sm:$0xff] }
  0x2d   :  { %v208_v45 = vld [vmem:[#allocation4 + $0x100] sm:$0xff]  ;;  %498 = vmatpush.msrb.mxu3 %v404_v44  ;;  %v345_v41 = vld [vmem:[#allocation4 + $0x548] sm:$0xff] }
  0x2e   :  { %v272_v46 = vld [vmem:[#allocation4 + $0x300] sm:$0xff]  ;;  %439 = vmatpush.msrb.mxu0 %v208_v45  ;;  %v409_v42 = vld [vmem:[#allocation4 + $0x748] sm:$0xff] }
  0x2f   :  { %v336_v47 = vld [vmem:[#allocation4 + $0x500] sm:$0xff]  ;;  %459 = vmatpush.msrb.mxu1 %v272_v46  ;;  %v209_v43 = vld [vmem:[#allocation4 + $0x108] sm:$0xff] }
  0x30   :  { %v400_v48 = vld [vmem:[#allocation4 + $0x700] sm:$0xff]  ;;  %479 = vmatpush.msrb.mxu2 %v336_v47  ;;  %v273_v44 = vld [vmem:[#allocation4 + $0x308] sm:$0xff] }
  0x31   :  { %v204_v49 = vld [vmem:[#allocation4 + $0xe0] sm:$0xff]  ;;  %499 = vmatpush.msrb.mxu3 %v400_v48  ;;  %v341_v45 = vld [vmem:[#allocation4 + $0x528] sm:$0xff] }
  0x32   :  { %v268_v50 = vld [vmem:[#allocation4 + $0x2e0] sm:$0xff]  ;;  %440 = vmatpush.msrb.mxu0 %v204_v49  ;;  %v405_v46 = vld [vmem:[#allocation4 + $0x728] sm:$0xff] }
  0x33   :  { %v332_v51 = vld [vmem:[#allocation4 + $0x4e0] sm:$0xff]  ;;  %460 = vmatpush.msrb.mxu1 %v268_v50  ;;  %v205_v47 = vld [vmem:[#allocation4 + $0xe8] sm:$0xff] }
  0x34   :  { %v396_v52 = vld [vmem:[#allocation4 + $0x6e0] sm:$0xff]  ;;  %480 = vmatpush.msrb.mxu2 %v332_v51  ;;  %v269_v48 = vld [vmem:[#allocation4 + $0x2e8] sm:$0xff] }
  0x35   :  { %v200_v53 = vld [vmem:[#allocation4 + $0xc0] sm:$0xff]  ;;  %500 = vmatpush.msrb.mxu3 %v396_v52  ;;  %v337_v49 = vld [vmem:[#allocation4 + $0x508] sm:$0xff] }
  0x36   :  { %v264_v54 = vld [vmem:[#allocation4 + $0x2c0] sm:$0xff]  ;;  %441 = vmatpush.msrb.mxu0 %v200_v53  ;;  %v401_v50 = vld [vmem:[#allocation4 + $0x708] sm:$0xff] }
  0x37   :  { %v328_v55 = vld [vmem:[#allocation4 + $0x4c0] sm:$0xff]  ;;  %461 = vmatpush.msrb.mxu1 %v264_v54  ;;  %v201_v51 = vld [vmem:[#allocation4 + $0xc8] sm:$0xff] }
  0x38   :  { %v392_v56 = vld [vmem:[#allocation4 + $0x6c0] sm:$0xff]  ;;  %481 = vmatpush.msrb.mxu2 %v328_v55  ;;  %v265_v52 = vld [vmem:[#allocation4 + $0x2c8] sm:$0xff] }
  0x39   :  { %v196_v57 = vld [vmem:[#allocation4 + $0xa0] sm:$0xff]  ;;  %501 = vmatpush.msrb.mxu3 %v392_v56  ;;  %v333_v53 = vld [vmem:[#allocation4 + $0x4e8] sm:$0xff] }
  0x3a   :  { %v260_v58 = vld [vmem:[#allocation4 + $0x2a0] sm:$0xff]  ;;  %442 = vmatpush.msrb.mxu0 %v196_v57  ;;  %v397_v54 = vld [vmem:[#allocation4 + $0x6e8] sm:$0xff] }
  0x3b   :  { %v324_v59 = vld [vmem:[#allocation4 + $0x4a0] sm:$0xff]  ;;  %462 = vmatpush.msrb.mxu1 %v260_v58  ;;  %v197_v55 = vld [vmem:[#allocation4 + $0xa8] sm:$0xff] }
  0x3c   :  { %v388_v60 = vld [vmem:[#allocation4 + $0x6a0] sm:$0xff]  ;;  %482 = vmatpush.msrb.mxu2 %v324_v59  ;;  %v261_v56 = vld [vmem:[#allocation4 + $0x2a8] sm:$0xff] }
  0x3d   :  { %v192_v61 = vld [vmem:[#allocation4 + $0x80] sm:$0xff]  ;;  %502 = vmatpush.msrb.mxu3 %v388_v60  ;;  %v193_v57 = vld [vmem:[#allocation4 + $0x88] sm:$0xff] }
  0x3e   :  { %v256_v62 = vld [vmem:[#allocation4 + $0x280] sm:$0xff]  ;;  %443 = vmatpush.msrb.mxu0 %v192_v61  ;;  %v257_v58 = vld [vmem:[#allocation4 + $0x288] sm:$0xff] }
  0x3f   :  { %v320_v63 = vld [vmem:[#allocation4 + $0x480] sm:$0xff]  ;;  %463 = vmatpush.msrb.mxu1 %v256_v62  ;;  %v189_v59 = vld [vmem:[#allocation4 + $0x68] sm:$0xff] }
  0x40   :  { %v384_v0 = vld [vmem:[#allocation4 + $0x680] sm:$0xff]  ;;  %483 = vmatpush.msrb.mxu2 %v320_v63  ;;  %v253_v60 = vld [vmem:[#allocation4 + $0x268] sm:$0xff] }
  0x41   :  { %v188_v1 = vld [vmem:[#allocation4 + $0x60] sm:$0xff]  ;;  %503 = vmatpush.msrb.mxu3 %v384_v0  ;;  %v329_v61 = vld [vmem:[#allocation4 + $0x4c8] sm:$0xff] }
  0x42   :  { %v252_v2 = vld [vmem:[#allocation4 + $0x260] sm:$0xff]  ;;  %444 = vmatpush.msrb.mxu0 %v188_v1  ;;  %v393_v62 = vld [vmem:[#allocation4 + $0x6c8] sm:$0xff] }
  0x43   :  { %v316_v3 = vld [vmem:[#allocation4 + $0x460] sm:$0xff]  ;;  %464 = vmatpush.msrb.mxu1 %v252_v2  ;;  %v185_v63 = vld [vmem:[#allocation4 + $0x48] sm:$0xff] }
  0x44   :  { %v380_v4 = vld [vmem:[#allocation4 + $0x660] sm:$0xff]  ;;  %484 = vmatpush.msrb.mxu2 %v316_v3  ;;  %v249_v0 = vld [vmem:[#allocation4 + $0x248] sm:$0xff] }
  0x45   :  { %v184_v5 = vld [vmem:[#allocation4 + $0x40] sm:$0xff]  ;;  %504 = vmatpush.msrb.mxu3 %v380_v4  ;;  %v325_v1 = vld [vmem:[#allocation4 + $0x4a8] sm:$0xff] }
  0x46   :  { %v248_v6 = vld [vmem:[#allocation4 + $0x240] sm:$0xff]  ;;  %445 = vmatpush.msrb.mxu0 %v184_v5  ;;  %v389_v2 = vld [vmem:[#allocation4 + $0x6a8] sm:$0xff] }
  0x47   :  { %v312_v7 = vld [vmem:[#allocation4 + $0x440] sm:$0xff]  ;;  %465 = vmatpush.msrb.mxu1 %v248_v6  ;;  %v181_v3 = vld [vmem:[#allocation4 + $0x28] sm:$0xff] }
  0x48   :  { %v376_v8 = vld [vmem:[#allocation4 + $0x640] sm:$0xff]  ;;  %485 = vmatpush.msrb.mxu2 %v312_v7  ;;  %v245_v4 = vld [vmem:[#allocation4 + $0x228] sm:$0xff] }
  0x49   :  { %v180_v9 = vld [vmem:[#allocation4 + $0x20] sm:$0xff]  ;;  %505 = vmatpush.msrb.mxu3 %v376_v8  ;;  %v321_v5 = vld [vmem:[#allocation4 + $0x488] sm:$0xff] }
  0x4a   :  { %v244_v10 = vld [vmem:[#allocation4 + $0x220] sm:$0xff]  ;;  %446 = vmatpush.msrb.mxu0 %v180_v9  ;;  %v385_v6 = vld [vmem:[#allocation4 + $0x688] sm:$0xff] }
  0x4b   :  { %v308_v11 = vld [vmem:[#allocation4 + $0x420] sm:$0xff]  ;;  %466 = vmatpush.msrb.mxu1 %v244_v10  ;;  %v177_v7 = vld [vmem:[#allocation4 + $0x8] sm:$0xff] }
  0x4c   :  { %v372_v12 = vld [vmem:[#allocation4 + $0x620] sm:$0xff]  ;;  %486 = vmatpush.msrb.mxu2 %v308_v11  ;;  %v241_v8 = vld [vmem:[#allocation4 + $0x208] sm:$0xff] }
  0x4d   :  { %v176_v13 = vld [vmem:[#allocation4] sm:$0xff]  ;;  %506 = vmatpush.msrb.mxu3 %v372_v12  ;;  %v317_v9 = vld [vmem:[#allocation4 + $0x468] sm:$0xff] }
  0x4e   :  { %v240_v14 = vld [vmem:[#allocation4 + $0x200] sm:$0xff]  ;;  %447 = vmatpush.msrb.mxu0 %v176_v13  ;;  %v381_v10 = vld [vmem:[#allocation4 + $0x668] sm:$0xff] }
  0x4f   :  { %v304_v17 = vld [vmem:[#allocation4 + $0x400] sm:$0xff]  ;;  %467 = vmatpush.msrb.mxu1 %v240_v14  ;;  %v313_v11 = vld [vmem:[#allocation4 + $0x448] sm:$0xff] }
  0x50   :  { %v368_v18 = vld [vmem:[#allocation4 + $0x600] sm:$0xff]  ;;  %512 = vmatpush.msra.mxu0 %v237_v15  ;;  %487 = vmatpush.msrb.mxu2 %v304_v17  ;;  %v377_v12 = vld [vmem:[#allocation4 + $0x648] sm:$0xff] }
  0x51   :  { %532 = vmatpush.msra.mxu1 %v301_v16  ;;  %507 = vmatpush.msrb.mxu3 %v368_v18  ;;  %v309_v13 = vld [vmem:[#allocation4 + $0x428] sm:$0xff]  ;;  %v66_v17 = vld [vmem:[%s975_s2] sm:$0xf] }
  0x52   :  { %513 = vmatpush.msra.mxu0 %v233_v19  ;;  %552 = vmatpush.msra.mxu2 %v365_v21  ;;  %v373_v14 = vld [vmem:[#allocation4 + $0x628] sm:$0xff]  ;;  %v68_v18 = vperm.slane %v66_v17, 0  ;;  %v69_v19 = vperm.slane %v66_v17, 1 }
  0x53   :  { %533 = vmatpush.msra.mxu1 %v297_v20  ;;  %572 = vmatpush.msra.mxu3 %v429_v22  ;;  %v305_v15 = vld [vmem:[#allocation4 + $0x408] sm:$0xff] }
  0x54   :  { %514 = vmatpush.msra.mxu0 %v229_v23  ;;  %553 = vmatpush.msra.mxu2 %v361_v25  ;;  %v369_v16 = vld [vmem:[#allocation4 + $0x608] sm:$0xff] }
  0x55   :  { %534 = vmatpush.msra.mxu1 %v293_v24  ;;  %573 = vmatpush.msra.mxu3 %v425_v26  ;;  %v70_v26 = vperm.slane %v66_v17, 2 }
  0x56   :  { %515 = vmatpush.msra.mxu0 %v225_v27  ;;  %554 = vmatpush.msra.mxu2 %v357_v29  ;;  %v71_v27 = vperm.slane %v66_v17, 3  ;;  %v258_v17 = vld [vmem:[#allocation4 + $0x290] sm:$0xff] }
  0x57   :  { %535 = vmatpush.msra.mxu1 %v289_v28  ;;  %574 = vmatpush.msra.mxu3 %v421_v30 }
  0x58   :  { %516 = vmatpush.msra.mxu0 %v221_v31  ;;  %555 = vmatpush.msra.mxu2 %v353_v33  ;;  %v302_v33 = vld [vmem:[#allocation4 + $0x3f0] sm:$0xff] }
  0x59   :  { %536 = vmatpush.msra.mxu1 %v285_v32  ;;  %575 = vmatpush.msra.mxu3 %v417_v34  ;;  %v238_v32 = vld [vmem:[#allocation4 + $0x1f0] sm:$0xff] }
  0x5a   :  { %517 = vmatpush.msra.mxu0 %v217_v35  ;;  %556 = vmatpush.msra.mxu2 %v349_v37 }
  0x5b   :  { %537 = vmatpush.msra.mxu1 %v281_v36  ;;  %576 = vmatpush.msra.mxu3 %v413_v38  ;;  %v234_v38 = vld [vmem:[#allocation4 + $0x1d0] sm:$0xff] }
  0x5c   :  { %518 = vmatpush.msra.mxu0 %v213_v39  ;;  %557 = vmatpush.msra.mxu2 %v345_v41  ;;  %v298_v39 = vld [vmem:[#allocation4 + $0x3d0] sm:$0xff] }
  0x5d   :  { %538 = vmatpush.msra.mxu1 %v277_v40  ;;  %577 = vmatpush.msra.mxu3 %v409_v42  ;;  %v230_v40 = vld [vmem:[#allocation4 + $0x1b0] sm:$0xff] }
  0x5e   :  { %519 = vmatpush.msra.mxu0 %v209_v43  ;;  %558 = vmatpush.msra.mxu2 %v341_v45  ;;  %v294_v41 = vld [vmem:[#allocation4 + $0x3b0] sm:$0xff] }
  0x5f   :  { %539 = vmatpush.msra.mxu1 %v273_v44  ;;  %578 = vmatpush.msra.mxu3 %v405_v46 }
  0x60   :  { %520 = vmatpush.msra.mxu0 %v205_v47  ;;  %559 = vmatpush.msra.mxu2 %v337_v49  ;;  %v290_v49 = vld [vmem:[#allocation4 + $0x390] sm:$0xff] }
  0x61   :  { %540 = vmatpush.msra.mxu1 %v269_v48  ;;  %579 = vmatpush.msra.mxu3 %v401_v50  ;;  %v226_v48 = vld [vmem:[#allocation4 + $0x190] sm:$0xff] }
  0x62   :  { %521 = vmatpush.msra.mxu0 %v201_v51  ;;  %560 = vmatpush.msra.mxu2 %v333_v53  ;;  %v366_v50 = vld [vmem:[#allocation4 + $0x5f0] sm:$0xff] }
  0x63   :  { %541 = vmatpush.msra.mxu1 %v265_v52  ;;  %580 = vmatpush.msra.mxu3 %v397_v54  ;;  %v430_v51 = vld [vmem:[#allocation4 + $0x7f0] sm:$0xff] }
  0x64   :  { %522 = vmatpush.msra.mxu0 %v197_v55  ;;  %561 = vmatpush.msra.mxu2 %v329_v61  ;;  %v222_v52 = vld [vmem:[#allocation4 + $0x170] sm:$0xff] }
  0x65   :  { %542 = vmatpush.msra.mxu1 %v261_v56  ;;  %581 = vmatpush.msra.mxu3 %v393_v62  ;;  %v286_v53 = vld [vmem:[#allocation4 + $0x370] sm:$0xff] }
  0x66   :  { %523 = vmatpush.msra.mxu0 %v193_v57  ;;  %562 = vmatpush.msra.mxu2 %v325_v1  ;;  %v362_v54 = vld [vmem:[#allocation4 + $0x5d0] sm:$0xff] }
  0x67   :  { %543 = vmatpush.msra.mxu1 %v257_v58  ;;  %582 = vmatpush.msra.mxu3 %v389_v2  ;;  %v426_v55 = vld [vmem:[#allocation4 + $0x7d0] sm:$0xff] }
  0x68   :  { %524 = vmatpush.msra.mxu0 %v189_v59  ;;  %563 = vmatpush.msra.mxu2 %v321_v5  ;;  %v218_v56 = vld [vmem:[#allocation4 + $0x150] sm:$0xff] }
  0x69   :  { %544 = vmatpush.msra.mxu1 %v253_v60  ;;  %583 = vmatpush.msra.mxu3 %v385_v6  ;;  %v282_v57 = vld [vmem:[#allocation4 + $0x350] sm:$0xff] }
  0x6a   :  { %525 = vmatpush.msra.mxu0 %v185_v63  ;;  %564 = vmatpush.msra.mxu2 %v317_v9  ;;  %v358_v58 = vld [vmem:[#allocation4 + $0x5b0] sm:$0xff] }
  0x6b   :  { %545 = vmatpush.msra.mxu1 %v249_v0  ;;  %584 = vmatpush.msra.mxu3 %v381_v10  ;;  %v422_v59 = vld [vmem:[#allocation4 + $0x7b0] sm:$0xff] }
  0x6c   :  { %526 = vmatpush.msra.mxu0 %v181_v3  ;;  %565 = vmatpush.msra.mxu2 %v313_v11  ;;  %v214_v60 = vld [vmem:[#allocation4 + $0x130] sm:$0xff] }
  0x6d   :  { %546 = vmatpush.msra.mxu1 %v245_v4  ;;  %585 = vmatpush.msra.mxu3 %v377_v12  ;;  %v278_v61 = vld [vmem:[#allocation4 + $0x330] sm:$0xff] }
  0x6e   :  { %527 = vmatpush.msra.mxu0 %v177_v7  ;;  %566 = vmatpush.msra.mxu2 %v309_v13  ;;  %v354_v62 = vld [vmem:[#allocation4 + $0x590] sm:$0xff] }
  0x6f   :  { %547 = vmatpush.msra.mxu1 %v241_v8  ;;  %586 = vmatpush.msra.mxu3 %v373_v14  ;;  %v418_v63 = vld [vmem:[#allocation4 + $0x790] sm:$0xff] }
  0x70   :  { %567 = vmatpush.msra.mxu2 %v305_v15  ;;  %v210_v0 = vld [vmem:[#allocation4 + $0x110] sm:$0xff] }
  0x71   :  { %587 = vmatpush.msra.mxu3 %v369_v16  ;;  %v274_v1 = vld [vmem:[#allocation4 + $0x310] sm:$0xff] }
  0x72   :  { %v350_v2 = vld [vmem:[#allocation4 + $0x570] sm:$0xff] }
  0x73   :  { %v414_v3 = vld [vmem:[#allocation4 + $0x770] sm:$0xff] }
  0x74   :  { %v206_v4 = vld [vmem:[#allocation4 + $0xf0] sm:$0xff] }
  0x75   :  { %v270_v5 = vld [vmem:[#allocation4 + $0x2f0] sm:$0xff] }
  0x76   :  { %v346_v6 = vld [vmem:[#allocation4 + $0x550] sm:$0xff] }
  0x77   :  { %v410_v7 = vld [vmem:[#allocation4 + $0x750] sm:$0xff] }
  0x78   :  { %v202_v8 = vld [vmem:[#allocation4 + $0xd0] sm:$0xff] }
  0x79   :  { %v266_v9 = vld [vmem:[#allocation4 + $0x2d0] sm:$0xff] }
  0x7a   :  { %v342_v10 = vld [vmem:[#allocation4 + $0x530] sm:$0xff] }
  0x7b   :  { %v406_v11 = vld [vmem:[#allocation4 + $0x730] sm:$0xff] }
  0x7c   :  { %v198_v12 = vld [vmem:[#allocation4 + $0xb0] sm:$0xff] }
  0x7d   :  { %v262_v13 = vld [vmem:[#allocation4 + $0x2b0] sm:$0xff] }
  0x7e   :  { %v338_v14 = vld [vmem:[#allocation4 + $0x510] sm:$0xff] }
  0x7f   :  { %v402_v15 = vld [vmem:[#allocation4 + $0x710] sm:$0xff] }
  0x80   :  { %v194_v16 = vld [vmem:[#allocation4 + $0x90] sm:$0xff] }
  0x91   :  { %v97_v20 = vpop.f32.mrf.mxu0  ;;  %v117_v21 = vpop.f32.mrf.mxu1 }
  0x92   :  { %v98_v22 = vadd.f32 %v97_v20, %v68_v18  ;;  %v118_v23 = vadd.f32 %v117_v21, %v69_v19  ;;  %v334_v18 = vld [vmem:[#allocation4 + $0x4f0] sm:$0xff] }
  0x93   :  { %v398_v19 = vld [vmem:[#allocation4 + $0x6f0] sm:$0xff] }
  0x94   :  { %vm160_vm1 = vcmp.ge.f32.partialorder %v98_v22, 0.0  ;;  %v164_v24 = vmul.f32 0.2, %v98_v22  ;;  %vm161_vm2 = vcmp.ge.f32.partialorder %v118_v23, 0.0  ;;  %v165_v25 = vmul.f32 0.2, %v118_v23 }
  0x95   :  { %v190_v20 = vld [vmem:[#allocation4 + $0x70] sm:$0xff] }
  0x96   :  { %v926_v28 = vsel %vm160_vm1, %v98_v22, %v164_v24  ;;  %v928_v29 = vsel %vm161_vm2, %v118_v23, %v165_v25  ;;  %v254_v21 = vld [vmem:[#allocation4 + $0x270] sm:$0xff]  ;;  %vm803_vm1 = vcmask 1041408   ;;  %vm805_vm2 = vcmask 1045508  }
  0x97   :  { %v932_v30 = vmul.f32 %v926_v28, %v926_v28  ;;  %v936_v31 = vmul.f32 %v928_v29, %v928_v29  ;;  %v330_v22 = vld [vmem:[#allocation4 + $0x4d0] sm:$0xff] }
  0x98   :  { %v137_v34 = vpop.f32.mrf.mxu2  ;;  %v157_v35 = vpop.f32.mrf.mxu3  ;;  %v394_v23 = vld [vmem:[#allocation4 + $0x6d0] sm:$0xff] }
  0x99   :  { %v138_v36 = vadd.f32 %v137_v34, %v70_v26  ;;  %v158_v37 = vadd.f32 %v157_v35, %v71_v27  ;;  %448 = vmatmul.f32.vlgmr.msrb.gmra.mxu0 %v932_v30  ;;  %468 = vmatmul.f32.vlgmr.msrb.gmra.mxu1 %v936_v31  ;;  %v186_v24 = vld [vmem:[#allocation4 + $0x50] sm:$0xff] }
  0x9a   :  { %592 = vmatpush.msrb.mxu0 %v238_v32  ;;  %612 = vmatpush.msrb.mxu1 %v302_v33  ;;  %v250_v25 = vld [vmem:[#allocation4 + $0x250] sm:$0xff] }
  0x9b   :  { %vm162_vm3 = vcmp.ge.f32.partialorder %v138_v36, 0.0  ;;  %v166_v42 = vmul.f32 0.2, %v138_v36  ;;  %vm163_vm4 = vcmp.ge.f32.partialorder %v158_v37, 0.0  ;;  %v167_v43 = vmul.f32 0.2, %v158_v37 }
  0x9c   :  { %593 = vmatpush.msrb.mxu0 %v234_v38  ;;  %613 = vmatpush.msrb.mxu1 %v298_v39  ;;  %v326_v26 = vld [vmem:[#allocation4 + $0x4b0] sm:$0xff] }
  0x9d   :  { %v940_v44 = vsel %vm162_vm3, %v138_v36, %v166_v42  ;;  %v942_v45 = vsel %vm163_vm4, %v158_v37, %v167_v43  ;;  %v390_v27 = vld [vmem:[#allocation4 + $0x6b0] sm:$0xff]  ;;  %vm807_vm3 = vcmask 1043456  }
  0x9e   :  { %v946_v46 = vmul.f32 %v940_v44, %v940_v44  ;;  %v950_v47 = vmul.f32 %v942_v45, %v942_v45  ;;  %594 = vmatpush.msrb.mxu0 %v230_v40  ;;  %614 = vmatpush.msrb.mxu1 %v294_v41  ;;  %v182_v32 = vld [vmem:[#allocation4 + $0x30] sm:$0xff]  ;;  %v239_v40 = vld [vmem:[#allocation4 + $0x1f8] sm:$0xff] }
  0x9f   :  { %v246_v33 = vld [vmem:[#allocation4 + $0x230] sm:$0xff]  ;;  %v303_v41 = vld [vmem:[#allocation4 + $0x3f8] sm:$0xff] }
  0xa0   :  { %488 = vmatmul.f32.vlgmr.msrb.gmra.mxu2 %v946_v46  ;;  %508 = vmatmul.f32.vlgmr.msrb.gmra.mxu3 %v950_v47  ;;  %v322_v34 = vld [vmem:[#allocation4 + $0x490] sm:$0xff] }
  0xa1   :  { %595 = vmatpush.msrb.mxu0 %v226_v48  ;;  %615 = vmatpush.msrb.mxu1 %v290_v49  ;;  %v386_v35 = vld [vmem:[#allocation4 + $0x690] sm:$0xff]  ;;  %v235_v48 = vld [vmem:[#allocation4 + $0x1d8] sm:$0xff] }
  0xa2   :  { %632 = vmatpush.msrb.mxu2 %v366_v50  ;;  %652 = vmatpush.msrb.mxu3 %v430_v51  ;;  %v178_v36 = vld [vmem:[#allocation4 + $0x10] sm:$0xff]  ;;  %v299_v49 = vld [vmem:[#allocation4 + $0x3d8] sm:$0xff] }
  0xa3   :  { %528 = vmatmul.f32.vlgmr.msra.gmra.mxu0 %v932_v30  ;;  %548 = vmatmul.f32.vlgmr.msra.gmra.mxu1 %v936_v31  ;;  %v242_v37 = vld [vmem:[#allocation4 + $0x210] sm:$0xff] }
  0xa4   :  { %596 = vmatpush.msrb.mxu0 %v222_v52  ;;  %616 = vmatpush.msrb.mxu1 %v286_v53  ;;  %v318_v38 = vld [vmem:[#allocation4 + $0x470] sm:$0xff]  ;;  %v231_v52 = vld [vmem:[#allocation4 + $0x1b8] sm:$0xff] }
  0xa5   :  { %633 = vmatpush.msrb.mxu2 %v362_v54  ;;  %653 = vmatpush.msrb.mxu3 %v426_v55  ;;  %v382_v39 = vld [vmem:[#allocation4 + $0x670] sm:$0xff]  ;;  %v295_v53 = vld [vmem:[#allocation4 + $0x3b8] sm:$0xff] }
  0xa6   :  { %597 = vmatpush.msrb.mxu0 %v218_v56  ;;  %617 = vmatpush.msrb.mxu1 %v282_v57  ;;  %v314_v42 = vld [vmem:[#allocation4 + $0x450] sm:$0xff]  ;;  %v227_v56 = vld [vmem:[#allocation4 + $0x198] sm:$0xff] }
  0xa7   :  { %634 = vmatpush.msrb.mxu2 %v358_v58  ;;  %654 = vmatpush.msrb.mxu3 %v422_v59  ;;  %v378_v43 = vld [vmem:[#allocation4 + $0x650] sm:$0xff]  ;;  %v291_v57 = vld [vmem:[#allocation4 + $0x398] sm:$0xff] }
  0xa8   :  { %598 = vmatpush.msrb.mxu0 %v214_v60  ;;  %618 = vmatpush.msrb.mxu1 %v278_v61  ;;  %v310_v50 = vld [vmem:[#allocation4 + $0x430] sm:$0xff]  ;;  %v367_v58 = vld [vmem:[#allocation4 + $0x5f8] sm:$0xff] }
  0xa9   :  { %635 = vmatpush.msrb.mxu2 %v354_v62  ;;  %655 = vmatpush.msrb.mxu3 %v418_v63  ;;  %v374_v51 = vld [vmem:[#allocation4 + $0x630] sm:$0xff]  ;;  %v431_v59 = vld [vmem:[#allocation4 + $0x7f8] sm:$0xff] }
  0xaa   :  { %568 = vmatmul.f32.vlgmr.msra.gmra.mxu2 %v946_v46  ;;  %588 = vmatmul.f32.vlgmr.msra.gmra.mxu3 %v950_v47  ;;  %v306_v54 = vld [vmem:[#allocation4 + $0x410] sm:$0xff]  ;;  %v223_v60 = vld [vmem:[#allocation4 + $0x178] sm:$0xff] }
  0xab   :  { %599 = vmatpush.msrb.mxu0 %v210_v0  ;;  %619 = vmatpush.msrb.mxu1 %v274_v1  ;;  %v370_v55 = vld [vmem:[#allocation4 + $0x610] sm:$0xff]  ;;  %v287_v61 = vld [vmem:[#allocation4 + $0x378] sm:$0xff] }
  0xac   :  { %636 = vmatpush.msrb.mxu2 %v350_v2  ;;  %656 = vmatpush.msrb.mxu3 %v414_v3  ;;  %v363_v62 = vld [vmem:[#allocation4 + $0x5d8] sm:$0xff] }
  0xad   :  { %600 = vmatpush.msrb.mxu0 %v206_v4  ;;  %620 = vmatpush.msrb.mxu1 %v270_v5  ;;  %v427_v63 = vld [vmem:[#allocation4 + $0x7d8] sm:$0xff] }
  0xae   :  { %637 = vmatpush.msrb.mxu2 %v346_v6  ;;  %657 = vmatpush.msrb.mxu3 %v410_v7  ;;  %v219_v0 = vld [vmem:[#allocation4 + $0x158] sm:$0xff] }
  0xaf   :  { %601 = vmatpush.msrb.mxu0 %v202_v8  ;;  %621 = vmatpush.msrb.mxu1 %v266_v9  ;;  %v283_v1 = vld [vmem:[#allocation4 + $0x358] sm:$0xff] }
  0xb0   :  { %638 = vmatpush.msrb.mxu2 %v342_v10  ;;  %658 = vmatpush.msrb.mxu3 %v406_v11  ;;  %v359_v2 = vld [vmem:[#allocation4 + $0x5b8] sm:$0xff] }
  0xb1   :  { %602 = vmatpush.msrb.mxu0 %v198_v12  ;;  %622 = vmatpush.msrb.mxu1 %v262_v13  ;;  %v423_v3 = vld [vmem:[#allocation4 + $0x7b8] sm:$0xff] }
  0xb2   :  { %639 = vmatpush.msrb.mxu2 %v338_v14  ;;  %659 = vmatpush.msrb.mxu3 %v402_v15  ;;  %v215_v4 = vld [vmem:[#allocation4 + $0x138] sm:$0xff] }
  0xb3   :  { %603 = vmatpush.msrb.mxu0 %v194_v16  ;;  %623 = vmatpush.msrb.mxu1 %v258_v17  ;;  %v279_v5 = vld [vmem:[#allocation4 + $0x338] sm:$0xff] }
  0xb4   :  { %640 = vmatpush.msrb.mxu2 %v334_v18  ;;  %660 = vmatpush.msrb.mxu3 %v398_v19  ;;  %v355_v6 = vld [vmem:[#allocation4 + $0x598] sm:$0xff] }
  0xb5   :  { %604 = vmatpush.msrb.mxu0 %v190_v20  ;;  %624 = vmatpush.msrb.mxu1 %v254_v21  ;;  %v419_v7 = vld [vmem:[#allocation4 + $0x798] sm:$0xff] }
  0xb6   :  { %641 = vmatpush.msrb.mxu2 %v330_v22  ;;  %661 = vmatpush.msrb.mxu3 %v394_v23  ;;  %v211_v8 = vld [vmem:[#allocation4 + $0x118] sm:$0xff] }
  0xb7   :  { %605 = vmatpush.msrb.mxu0 %v186_v24  ;;  %625 = vmatpush.msrb.mxu1 %v250_v25  ;;  %v275_v9 = vld [vmem:[#allocation4 + $0x318] sm:$0xff] }
  0xb8   :  { %642 = vmatpush.msrb.mxu2 %v326_v26  ;;  %662 = vmatpush.msrb.mxu3 %v390_v27  ;;  %v351_v10 = vld [vmem:[#allocation4 + $0x578] sm:$0xff] }
  0xb9   :  { %606 = vmatpush.msrb.mxu0 %v182_v32  ;;  %626 = vmatpush.msrb.mxu1 %v246_v33  ;;  %v415_v11 = vld [vmem:[#allocation4 + $0x778] sm:$0xff] }
  0xba   :  { %643 = vmatpush.msrb.mxu2 %v322_v34  ;;  %663 = vmatpush.msrb.mxu3 %v386_v35  ;;  %v207_v12 = vld [vmem:[#allocation4 + $0xf8] sm:$0xff] }
  0xbb   :  { %607 = vmatpush.msrb.mxu0 %v178_v36  ;;  %627 = vmatpush.msrb.mxu1 %v242_v37  ;;  %v271_v13 = vld [vmem:[#allocation4 + $0x2f8] sm:$0xff] }
  0xbc   :  { %644 = vmatpush.msrb.mxu2 %v318_v38  ;;  %664 = vmatpush.msrb.mxu3 %v382_v39  ;;  %v347_v14 = vld [vmem:[#allocation4 + $0x558] sm:$0xff] }
  0xbd   :  { %608 = vmatmul.f32.vlgmr.msrb.gmra.mxu0 %v932_v30  ;;  %628 = vmatmul.f32.vlgmr.msrb.gmra.mxu1 %v936_v31  ;;  %v411_v15 = vld [vmem:[#allocation4 + $0x758] sm:$0xff] }
  0xbe   :  { %672 = vmatpush.msra.mxu0 %v239_v40  ;;  %692 = vmatpush.msra.mxu1 %v303_v41  ;;  %v203_v16 = vld [vmem:[#allocation4 + $0xd8] sm:$0xff] }
  0xbf   :  { %645 = vmatpush.msrb.mxu2 %v314_v42  ;;  %665 = vmatpush.msrb.mxu3 %v378_v43  ;;  %v267_v17 = vld [vmem:[#allocation4 + $0x2d8] sm:$0xff] }
  0xc0   :  { %673 = vmatpush.msra.mxu0 %v235_v48  ;;  %693 = vmatpush.msra.mxu1 %v299_v49  ;;  %v343_v18 = vld [vmem:[#allocation4 + $0x538] sm:$0xff] }
  0xc1   :  { %646 = vmatpush.msrb.mxu2 %v310_v50  ;;  %666 = vmatpush.msrb.mxu3 %v374_v51  ;;  %v407_v19 = vld [vmem:[#allocation4 + $0x738] sm:$0xff] }
  0xc2   :  { %674 = vmatpush.msra.mxu0 %v231_v52  ;;  %694 = vmatpush.msra.mxu1 %v295_v53  ;;  %v199_v20 = vld [vmem:[#allocation4 + $0xb8] sm:$0xff] }
  0xc3   :  { %647 = vmatpush.msrb.mxu2 %v306_v54  ;;  %667 = vmatpush.msrb.mxu3 %v370_v55  ;;  %v263_v21 = vld [vmem:[#allocation4 + $0x2b8] sm:$0xff] }
  0xc4   :  { %648 = vmatmul.f32.vlgmr.msrb.gmra.mxu2 %v946_v46  ;;  %668 = vmatmul.f32.vlgmr.msrb.gmra.mxu3 %v950_v47  ;;  %v339_v22 = vld [vmem:[#allocation4 + $0x518] sm:$0xff] }
  0xc5   :  { %675 = vmatpush.msra.mxu0 %v227_v56  ;;  %695 = vmatpush.msra.mxu1 %v291_v57  ;;  %v403_v23 = vld [vmem:[#allocation4 + $0x718] sm:$0xff] }
  0xc6   :  { %712 = vmatpush.msra.mxu2 %v367_v58  ;;  %732 = vmatpush.msra.mxu3 %v431_v59  ;;  %v195_v24 = vld [vmem:[#allocation4 + $0x98] sm:$0xff] }
  0xc7   :  { %676 = vmatpush.msra.mxu0 %v223_v60  ;;  %696 = vmatpush.msra.mxu1 %v287_v61  ;;  %v259_v25 = vld [vmem:[#allocation4 + $0x298] sm:$0xff] }
  0xc8   :  { %713 = vmatpush.msra.mxu2 %v363_v62  ;;  %733 = vmatpush.msra.mxu3 %v427_v63  ;;  %v335_v26 = vld [vmem:[#allocation4 + $0x4f8] sm:$0xff] }
  0xc9   :  { %677 = vmatpush.msra.mxu0 %v219_v0  ;;  %697 = vmatpush.msra.mxu1 %v283_v1  ;;  %v399_v27 = vld [vmem:[#allocation4 + $0x6f8] sm:$0xff] }
  0xca   :  { %714 = vmatpush.msra.mxu2 %v359_v2  ;;  %734 = vmatpush.msra.mxu3 %v423_v3  ;;  %v191_v32 = vld [vmem:[#allocation4 + $0x78] sm:$0xff] }
  0xcb   :  { %678 = vmatpush.msra.mxu0 %v215_v4  ;;  %698 = vmatpush.msra.mxu1 %v279_v5  ;;  %v255_v33 = vld [vmem:[#allocation4 + $0x278] sm:$0xff] }
  0xcc   :  { %715 = vmatpush.msra.mxu2 %v355_v6  ;;  %735 = vmatpush.msra.mxu3 %v419_v7  ;;  %v331_v34 = vld [vmem:[#allocation4 + $0x4d8] sm:$0xff] }
  0xcd   :  { %679 = vmatpush.msra.mxu0 %v211_v8  ;;  %699 = vmatpush.msra.mxu1 %v275_v9  ;;  %v395_v35 = vld [vmem:[#allocation4 + $0x6d8] sm:$0xff] }
  0xce   :  { %716 = vmatpush.msra.mxu2 %v351_v10  ;;  %736 = vmatpush.msra.mxu3 %v415_v11  ;;  %v187_v36 = vld [vmem:[#allocation4 + $0x58] sm:$0xff] }
  0xcf   :  { %680 = vmatpush.msra.mxu0 %v207_v12  ;;  %700 = vmatpush.msra.mxu1 %v271_v13  ;;  %v251_v37 = vld [vmem:[#allocation4 + $0x258] sm:$0xff] }
  0xd0   :  { %717 = vmatpush.msra.mxu2 %v347_v14  ;;  %737 = vmatpush.msra.mxu3 %v411_v15  ;;  %v327_v38 = vld [vmem:[#allocation4 + $0x4b8] sm:$0xff] }
  0xd1   :  { %681 = vmatpush.msra.mxu0 %v203_v16  ;;  %701 = vmatpush.msra.mxu1 %v267_v17  ;;  %v391_v39 = vld [vmem:[#allocation4 + $0x6b8] sm:$0xff] }
  0xd2   :  { %718 = vmatpush.msra.mxu2 %v343_v18  ;;  %738 = vmatpush.msra.mxu3 %v407_v19  ;;  %v183_v40 = vld [vmem:[#allocation4 + $0x38] sm:$0xff] }
  0xd3   :  { %682 = vmatpush.msra.mxu0 %v199_v20  ;;  %702 = vmatpush.msra.mxu1 %v263_v21  ;;  %v247_v41 = vld [vmem:[#allocation4 + $0x238] sm:$0xff] }
  0xd4   :  { %719 = vmatpush.msra.mxu2 %v339_v22  ;;  %739 = vmatpush.msra.mxu3 %v403_v23  ;;  %v323_v42 = vld [vmem:[#allocation4 + $0x498] sm:$0xff] }
  0xd5   :  { %683 = vmatpush.msra.mxu0 %v195_v24  ;;  %703 = vmatpush.msra.mxu1 %v259_v25  ;;  %v387_v43 = vld [vmem:[#allocation4 + $0x698] sm:$0xff] }
  0xd6   :  { %720 = vmatpush.msra.mxu2 %v335_v26  ;;  %740 = vmatpush.msra.mxu3 %v399_v27  ;;  %v179_v48 = vld [vmem:[#allocation4 + $0x18] sm:$0xff] }
  0xd7   :  { %684 = vmatpush.msra.mxu0 %v191_v32  ;;  %704 = vmatpush.msra.mxu1 %v255_v33  ;;  %v243_v49 = vld [vmem:[#allocation4 + $0x218] sm:$0xff] }
  0xd8   :  { %721 = vmatpush.msra.mxu2 %v331_v34  ;;  %741 = vmatpush.msra.mxu3 %v395_v35  ;;  %v319_v50 = vld [vmem:[#allocation4 + $0x478] sm:$0xff] }
  0xd9   :  { %685 = vmatpush.msra.mxu0 %v187_v36  ;;  %705 = vmatpush.msra.mxu1 %v251_v37  ;;  %v383_v51 = vld [vmem:[#allocation4 + $0x678] sm:$0xff] }
  0xda   :  { %722 = vmatpush.msra.mxu2 %v327_v38  ;;  %742 = vmatpush.msra.mxu3 %v391_v39  ;;  %v315_v52 = vld [vmem:[#allocation4 + $0x458] sm:$0xff] }
  0xdb   :  { %686 = vmatpush.msra.mxu0 %v183_v40  ;;  %706 = vmatpush.msra.mxu1 %v247_v41  ;;  %v379_v53 = vld [vmem:[#allocation4 + $0x658] sm:$0xff] }
  0xdc   :  { %723 = vmatpush.msra.mxu2 %v323_v42  ;;  %743 = vmatpush.msra.mxu3 %v387_v43  ;;  %v311_v54 = vld [vmem:[#allocation4 + $0x438] sm:$0xff] }
  0xdd   :  { %687 = vmatpush.msra.mxu0 %v179_v48  ;;  %707 = vmatpush.msra.mxu1 %v243_v49  ;;  %v375_v55 = vld [vmem:[#allocation4 + $0x638] sm:$0xff] }
  0xde   :  { %724 = vmatpush.msra.mxu2 %v319_v50  ;;  %744 = vmatpush.msra.mxu3 %v383_v51  ;;  %v307_v56 = vld [vmem:[#allocation4 + $0x418] sm:$0xff] }
  0xdf   :  { %688 = vmatmul.f32.vlgmr.msra.gmra.mxu0 %v932_v30  ;;  %708 = vmatmul.f32.vlgmr.msra.gmra.mxu1 %v936_v31  ;;  %v371_v57 = vld [vmem:[#allocation4 + $0x618] sm:$0xff] }
  0xe0   :  { %725 = vmatpush.msra.mxu2 %v315_v52  ;;  %745 = vmatpush.msra.mxu3 %v379_v53 }
  0xe2   :  { %726 = vmatpush.msra.mxu2 %v311_v54  ;;  %746 = vmatpush.msra.mxu3 %v375_v55 }
  0xe4   :  { %727 = vmatpush.msra.mxu2 %v307_v56  ;;  %747 = vmatpush.msra.mxu3 %v371_v57 }
  0xe5   :  { %728 = vmatmul.f32.vlgmr.msra.gmra.mxu2 %v946_v46  ;;  %748 = vmatmul.f32.vlgmr.msra.gmra.mxu3 %v950_v47 }
 0x116   :  { %v449_v58 = vpop.f32.mrf.mxu0  ;;  %v469_v59 = vpop.f32.mrf.mxu1 }
 0x117   :  { %v450_v6 = vadd.f32 1e-08, %v449_v58 }
 0x119   :  { %v470_v9 = vadd.f32 %v469_v59, %v450_v6 }
 0x120   :  { %v529_v30 = vpop.f32.mrf.mxu0  ;;  %v549_v31 = vpop.f32.mrf.mxu1 }
 0x121   :  { %v530_v0 = vadd.f32 1e-08, %v529_v30 }
 0x123   :  { %v489_v60 = vpop.f32.mrf.mxu2  ;;  %v509_v61 = vpop.f32.mrf.mxu3  ;;  %v550_v3 = vadd.f32 %v549_v31, %v530_v0 }
 0x124   :  { %v490_v11 = vadd.f32 %v489_v60, %v470_v9 }
 0x126   :  { %v510_v13 = vadd.f32 %v509_v61, %v490_v11 }
 0x128   :  { %vm758_vm13 = vweird.f32 %v510_v13 }
 0x12d   :  { %v569_v62 = vpop.f32.mrf.mxu2  ;;  %v589_v2 = vpop.f32.mrf.mxu3 }
 0x12e   :  { %v570_v7 = vadd.f32 %v569_v62, %v550_v3 }
 0x130   :  { %v590_v47 = vadd.f32 %v589_v2, %v570_v7 }
 0x132   :  { %825 = vrsqrt.f32 %v590_v47  ;;  %vm768_vm6 = vweird.f32 %v590_v47 }
 0x138   :  { %v826_v15 = vpop.eup %825 }
 0x139   :  { %v763_v18 = vmul.f32 %v826_v15, %v590_v47  ;;  %vm769_vm5 = vweird.f32 %v826_v15 }
 0x13a   :  { %v609_v63 = vpop.f32.mrf.mxu0  ;;  %v629_v4 = vpop.f32.mrf.mxu1  ;;  %vm770_vm8 = vmor %vm768_vm6, %vm769_vm5 }
 0x13b   :  { %v610_v1 = vadd.f32 1e-08, %v609_v63  ;;  %v764_v23 = vmul.f32 %v826_v15, %v763_v18 }
 0x13d   :  { %v630_v8 = vadd.f32 %v629_v4, %v610_v1  ;;  %v765_v34 = vmul.f32 0.5, %v764_v23 }
 0x13f   :  { %v766_v37 = vsub.f32 1.5, %v765_v34 }
 0x141   :  { %v767_v41 = vmul.f32 %v826_v15, %v766_v37 }
 0x143   :  { %v771_v50 = vsel %vm770_vm8, %v826_v15, %v767_v41 }
 0x144   :  { %v793_v55 = vmul.f32 %v771_v50, %v928_v29 }
 0x146   :  { %v800_v60 = vrot.slane %v793_v55, 6 }
 0x147   :  { %v649_v5 = vpop.f32.mrf.mxu2  ;;  %v669_v10 = vpop.f32.mrf.mxu3 }
 0x148   :  { %v650_v46 = vadd.f32 %v649_v5, %v630_v8 }
 0x14a   :  { %v670_v12 = vadd.f32 %v669_v10, %v650_v46 }
 0x14c   :  { %827 = vrsqrt.f32 %v670_v12  ;;  %vm778_vm9 = vweird.f32 %v670_v12 }
 0x14d   :  { %829 = vrsqrt.f32 %v510_v13 }
 0x152   :  { %v828_v16 = vpop.eup %827 }
 0x153   :  { %v773_v19 = vmul.f32 %v828_v16, %v670_v12  ;;  %v830_v21 = vpop.eup %829  ;;  %vm779_vm7 = vweird.f32 %v828_v16 }
 0x154   :  { %v753_v26 = vmul.f32 %v830_v21, %v510_v13  ;;  %vm759_vm10 = vweird.f32 %v830_v21  ;;  %vm780_vm11 = vmor %vm778_vm9, %vm779_vm7 }
 0x155   :  { %v774_v27 = vmul.f32 %v828_v16, %v773_v19  ;;  %vm760_vm14 = vmor %vm758_vm13, %vm759_vm10 }
 0x156   :  { %v754_v35 = vmul.f32 %v830_v21, %v753_v26 }
 0x157   :  { %v775_v36 = vmul.f32 0.5, %v774_v27 }
 0x158   :  { %v755_v38 = vmul.f32 0.5, %v754_v35 }
 0x159   :  { %v776_v39 = vsub.f32 1.5, %v775_v36 }
 0x15a   :  { %v756_v43 = vsub.f32 1.5, %v755_v38 }
 0x15b   :  { %v777_v48 = vmul.f32 %v828_v16, %v776_v39 }
 0x15c   :  { %v689_v14 = vpop.f32.mrf.mxu0  ;;  %v709_v20 = vpop.f32.mrf.mxu1  ;;  %v757_v52 = vmul.f32 %v830_v21, %v756_v43 }
 0x15d   :  { %v690_v17 = vadd.f32 1e-08, %v689_v14  ;;  %v781_v53 = vsel %vm780_vm11, %v828_v16, %v777_v48 }
 0x15e   :  { %v794_v57 = vmul.f32 %v781_v53, %v940_v44  ;;  %v761_v58 = vsel %vm760_vm14, %v830_v21, %v757_v52 }
 0x15f   :  { %v710_v22 = vadd.f32 %v709_v20, %v690_v17  ;;  %v792_v61 = vmul.f32 %v761_v58, %v926_v28 }
 0x160   :  { %v801_v31 = vrot.slane %v794_v57, 4 }
 0x161   :  { %v804_v63 = vsel %vm803_vm1, %v792_v61, %v800_v60 }
 0x168   :  { %v729_v24 = vpop.f32.mrf.mxu2  ;;  %v749_v32 = vpop.f32.mrf.mxu3 }
 0x169   :  { %v730_v25 = vadd.f32 %v729_v24, %v710_v22 }
 0x16b   :  { %v750_v33 = vadd.f32 %v749_v32, %v730_v25 }
 0x16d   :  { %831 = vrsqrt.f32 %v750_v33  ;;  %vm788_vm15 = vweird.f32 %v750_v33 }
 0x173   :  { %v832_v40 = vpop.eup %831 }
 0x174   :  { %v783_v42 = vmul.f32 %v832_v40, %v750_v33  ;;  %vm789_vm12 = vweird.f32 %v832_v40 }
 0x175   :  { %vm790_vm0 = vmor %vm788_vm15, %vm789_vm12 }
 0x176   :  { %v784_v49 = vmul.f32 %v832_v40, %v783_v42 }
 0x178   :  { %v785_v51 = vmul.f32 0.5, %v784_v49 }
 0x17a   :  { %v786_v54 = vsub.f32 1.5, %v785_v51 }
 0x17c   :  { %v787_v56 = vmul.f32 %v832_v40, %v786_v54 }
 0x17e   :  { %v791_v59 = vsel %vm790_vm0, %v832_v40, %v787_v56 }
 0x17f   :  { %v795_v30 = vmul.f32 %v791_v59, %v942_v45 }
 0x181   :  { %v802_v62 = vrot.slane %v795_v30, 2 }
 0x183   :  { %v806_v29 = vsel %vm805_vm2, %v801_v31, %v802_v62 }
 0x184   :  { %v808_v0 = vsel %vm807_vm3, %v804_v63, %v806_v29 }
 0x185   :  { %810 = vst [vmem:[%s977_s4] sm:$0xff] %v808_v0 }
 0x186   :  { %815 = vsyncpa [#allocation3], 1 }
 0x187   :  { %816 = vsyncpa [#allocation5], 1 }

// kernel: generator_forward.9
= control target key start
LH: loop header
LB: loop body
LE: loop exit
PB: predicated region body
PF: predicated region fallthrough
CT: control target
= control target key end

     0   :  { %s836_s12 = smov 0   ;;  %s1031_s0 = inlined_call_operand.vmem [shape: f32[2,44,32], index: 0, kind: input, shape index: {}]   ;;  %s1032_s1 = inlined_call_operand.vmem [shape: f32[9,32,32], index: 1, kind: input, shape index: {}]   ;;  %s1033_s2 = inlined_call_operand.vmem [shape: f32[1,32], index: 2, kind: input, shape index: {}]   ;;  %s1034_s3 = inlined_call_operand.vmem [shape: f32[2,24,32], index: 3, kind: output, shape index: {}]  }
   0x1 LB: > { %s711_s13 = sadd.s32 4294967295, %s813_s12   ;;  %p715_p0 = scmp.ge.s32.totalorder %s813_s12, 1  ;;  %s813_s12 = sphi %s836_s12, %s13_s12  }
   0x2   : > { %p137_p1 = scmp.lt.s32.totalorder %s813_s12, 3 }
   0x4   : > { %p138_p2 = pnand %p715_p0, %p137_p1 }
   0x5   : > { %p161_p3 = scmp.lt.s32.totalorder (!%p138_p2), %s711_s13, 1 }
   0x6   : > { %141 = sbr.rel (%p138_p2) target bundleno = 354 (0x162), region = 32 }
   0xb   : > { %v721_v0 = vld [vmem:[%s1032_s1 + $0x38] sm:$0xff]  ;;  %v720_v1 = vld [vmem:[%s1032_s1 + $0x30] sm:$0xff]  ;;  %v719_v2 = vld [vmem:[%s1032_s1 + $0x28] sm:$0xff]  ;;  %s1036_s13 = smov (!%p161_p3, %s711_s13), 1  ;;  %vm186_vm0 = vcmask 261120  }
   0xc   : > { %779 = vmatpush.msra.mxu1 %v721_v0  ;;  %780 = vmatpush.msra.mxu2 %v721_v0  ;;  %v738_v3 = vld [vmem:[%s1032_s1 + $0x78] sm:$0xff]  ;;  %v737_v4 = vld [vmem:[%s1032_s1 + $0x70] sm:$0xff]  ;;  %v718_v5 = vld [vmem:[%s1032_s1 + $0x20] sm:$0xff]  ;;  %s787_s26 = smul.u32 48, %s1036_s13 }
   0xd   : > { %208 = vmatpush.msra.mxu0 %v721_v0  ;;  %332 = vmatpush.msra.mxu3 %v738_v3  ;;  %v731_v6 = vld [vmem:[%s1032_s1 + $0x58] sm:$0xff]  ;;  %v736_v10 = vld [vmem:[%s1032_s1 + $0x68] sm:$0xff]  ;;  %v730_v11 = vld [vmem:[%s1032_s1 + $0x50] sm:$0xff]  ;;  %s788_s18 = smul.u32 24, %s1036_s13 }
   0xe   : > { %781 = vmatpush.msra.mxu1 %v720_v1  ;;  %782 = vmatpush.msra.mxu2 %v720_v1  ;;  %s868_s29 = scalar_lea.vmem %s1031_s0, %s787_s26  ;;  %v177_v7 = vld [vmem:[%s1032_s1 + $0x18] sm:$0xff]  ;;  %v176_v12 = vld [vmem:[%s1032_s1 + $0x10] sm:$0xff]  ;;  %v735_v13 = vld [vmem:[%s1032_s1 + $0x60] sm:$0xff] }
   0xf   : > { %209 = vmatpush.msra.mxu0 %v720_v1  ;;  %333 = vmatpush.msra.mxu3 %v737_v4  ;;  %v179_v8 = vld [vmem:[%s868_s29 + $0x9] sm:$0xff]  ;;  %v180_v9 = vld [vmem:[%s868_s29 + $0x11] sm:$0xff]  ;;  %v178_v14 = vld [vmem:[%s868_s29 + $0x1] sm:$0xff]  ;;  %s170_s21 = scalar_lea.vmem %s1034_s3, %s788_s18 }
  0x10   : > { %783 = vmatpush.msra.mxu1 %v719_v2  ;;  %784 = vmatpush.msra.mxu2 %v719_v2  ;;  %v729_v15 = vld [vmem:[%s1032_s1 + $0x48] sm:$0xff]  ;;  %v745_v18 = vld [vmem:[%s1032_s1 + $0x98] sm:$0xff]  ;;  %v728_v19 = vld [vmem:[%s1032_s1 + $0x40] sm:$0xff] }
  0x11   : > { %210 = vmatpush.msra.mxu0 %v719_v2  ;;  %v175_v16 = vld [vmem:[%s1032_s1 + $0x8] sm:$0xff]  ;;  %334 = vmatpush.msra.mxu3 %v736_v10  ;;  %v174_v20 = vld [vmem:[%s1032_s1] sm:$0xff]  ;;  %v759_v23 = vld [vmem:[%s1032_s1 + $0xd8] sm:$0xff] }
  0x12   : > { %785 = vmatpush.msra.mxu1 %v718_v5  ;;  %786 = vmatpush.msra.mxu2 %v718_v5  ;;  %v303_v17 = vld [vmem:[%s868_s29 + $0x6] sm:$0xff]  ;;  %v766_v24 = vld [vmem:[%s1032_s1 + $0xf8] sm:$0xff]  ;;  %v744_v25 = vld [vmem:[%s1032_s1 + $0x90] sm:$0xff] }
  0x13   : > { %723 = vmatmul.msk.f32.vlgmr.msra.gmra.mxu1 %vm186_vm0, %v179_v8  ;;  %724 = vmatmul.msk.f32.vlgmr.msra.gmra.mxu2 %vm186_vm0, %v180_v9  ;;  %v171_v21 = vld [vmem:[%s868_s29] sm:$0xff]  ;;  %v752_v26 = vld [vmem:[%s1032_s1 + $0xb8] sm:$0xff]  ;;  %v758_v27 = vld [vmem:[%s1032_s1 + $0xd0] sm:$0xff] }
  0x14   : > { %286 = vmatpush.msrb.mxu2 %v731_v6  ;;  %243 = vmatpush.msrb.mxu1 %v177_v7  ;;  %v257_v22 = vld [vmem:[%s868_s29 + $0x2] sm:$0xff]  ;;  %v765_v28 = vld [vmem:[%s1032_s1 + $0xf0] sm:$0xff]  ;;  %v773_v39 = vld [vmem:[%s1032_s1 + $0x118] sm:$0xff] }
  0x15   : > { %211 = vmatpush.msra.mxu0 %v718_v5  ;;  %335 = vmatpush.msra.mxu3 %v735_v13  ;;  %v743_v29 = vld [vmem:[%s1032_s1 + $0x88] sm:$0xff]  ;;  %v751_v30 = vld [vmem:[%s1032_s1 + $0xb0] sm:$0xff]  ;;  %v742_v33 = vld [vmem:[%s1032_s1 + $0x80] sm:$0xff] }
  0x16   : > { %287 = vmatpush.msrb.mxu2 %v730_v11  ;;  %244 = vmatpush.msrb.mxu1 %v176_v12  ;;  %v757_v31 = vld [vmem:[%s1032_s1 + $0xc8] sm:$0xff]  ;;  %v756_v40 = vld [vmem:[%s1032_s1 + $0xc0] sm:$0xff]  ;;  %v772_v43 = vld [vmem:[%s1032_s1 + $0x110] sm:$0xff] }
  0x17   : > { %722 = vmatmul.msk.f32.vlgmr.msra.gmra.mxu0 %vm186_vm0, %v178_v14  ;;  %739 = vmatmul.msk.f32.vlgmr.msra.gmra.mxu3 %vm186_vm0, %v303_v17  ;;  %v764_v32 = vld [vmem:[%s1032_s1 + $0xe8] sm:$0xff]  ;;  %v763_v41 = vld [vmem:[%s1032_s1 + $0xe0] sm:$0xff]  ;;  %v305_v45 = vld [vmem:[%s868_s29 + $0x16] sm:$0xff] }
  0x18   : > { %288 = vmatpush.msrb.mxu2 %v729_v15  ;;  %245 = vmatpush.msrb.mxu1 %v175_v16  ;;  %v304_v34 = vld [vmem:[%s868_s29 + $0xe] sm:$0xff]  ;;  %v749_v42 = vld [vmem:[%s1032_s1 + $0xa0] sm:$0xff]  ;;  %v351_v51 = vld [vmem:[%s868_s29 + $0x17] sm:$0xff] }
  0x19   : > { %378 = vmatpush.msrb.mxu0 %v745_v18  ;;  %516 = vmatpush.msrb.mxu3 %v766_v24  ;;  %v349_v35 = vld [vmem:[%s868_s29 + $0x7] sm:$0xff]  ;;  %v350_v46 = vld [vmem:[%s868_s29 + $0xf] sm:$0xff]  ;;  %v489_v55 = vld [vmem:[%s868_s29 + $0x1d] sm:$0xff] }
  0x1a   : > { %289 = vmatpush.msrb.mxu2 %v728_v19  ;;  %246 = vmatpush.msrb.mxu1 %v174_v20  ;;  %v750_v36 = vld [vmem:[%s1032_s1 + $0xa8] sm:$0xff]  ;;  %v173_v47 = vld [vmem:[%s868_s29 + $0x10] sm:$0xff]  ;;  %v770_v49 = vld [vmem:[%s1032_s1 + $0x100] sm:$0xff] }
  0x1b   : > { %725 = vmatmul.msk.f32.vlgmr.msrb.gmra.mxu1 %vm186_vm0, %v171_v21  ;;  %732 = vmatmul.msk.f32.vlgmr.msrb.gmra.mxu2 %vm186_vm0, %v257_v22  ;;  %v172_v37 = vld [vmem:[%s868_s29 + $0x8] sm:$0xff]  ;;  %v259_v48 = vld [vmem:[%s868_s29 + $0x12] sm:$0xff]  ;;  %v443_v57 = vld [vmem:[%s868_s29 + $0x1c] sm:$0xff] }
  0x1c   : > { %470 = vmatpush.msra.mxu2 %v759_v23  ;;  %379 = vmatpush.msrb.mxu0 %v744_v25  ;;  %v258_v38 = vld [vmem:[%s868_s29 + $0xa] sm:$0xff]  ;;  %v488_v53 = vld [vmem:[%s868_s29 + $0x15] sm:$0xff]  ;;  %v535_v58 = vld [vmem:[%s868_s29 + $0x1e] sm:$0xff] }
  0x1d   : > { %424 = vmatpush.msra.mxu1 %v752_v26  ;;  %517 = vmatpush.msrb.mxu3 %v765_v28  ;;  %v771_v44 = vld [vmem:[%s1032_s1 + $0x108] sm:$0xff]  ;;  %v442_v54 = vld [vmem:[%s868_s29 + $0x14] sm:$0xff]  ;;  %v798_v26 = vld [vmem:[%s1033_s2] ss:$0 sm:$0xff] }
  0x1e   : > { %471 = vmatpush.msra.mxu2 %v758_v27  ;;  %380 = vmatpush.msrb.mxu0 %v743_v29  ;;  %v487_v50 = vld [vmem:[%s868_s29 + $0xd] sm:$0xff]  ;;  %v397_v56 = vld [vmem:[%s868_s29 + $0x18] sm:$0xff] }
  0x1f   : > { %425 = vmatpush.msra.mxu1 %v751_v30  ;;  %518 = vmatpush.msrb.mxu3 %v764_v32  ;;  %v441_v52 = vld [vmem:[%s868_s29 + $0xc] sm:$0xff] }
  0x20   : > { %472 = vmatpush.msra.mxu2 %v757_v31  ;;  %381 = vmatpush.msrb.mxu0 %v742_v33 }
  0x21   : > { %740 = vmatmul.msk.f32.gmra.mxu3 %vm186_vm0, %v304_v34  ;;  %746 = vmatmul.msk.f32.vlgmr.msrb.gmra.mxu0 %vm186_vm0, %v349_v35 }
  0x22   : > { %426 = vmatpush.msra.mxu1 %v750_v36  ;;  %562 = vmatpush.msra.mxu0 %v773_v39 }
  0x23   : > { %726 = vmatmul.msk.f32.gmra.mxu1 %vm186_vm0, %v172_v37  ;;  %733 = vmatmul.msk.f32.gmra.mxu2 %vm186_vm0, %v258_v38 }
  0x24   : > { %473 = vmatpush.msra.mxu2 %v756_v40  ;;  %519 = vmatpush.msrb.mxu3 %v763_v41 }
  0x25   : > { %427 = vmatpush.msra.mxu1 %v749_v42  ;;  %563 = vmatpush.msra.mxu0 %v772_v43 }
  0x27   : > { %564 = vmatpush.msra.mxu0 %v771_v44 }
  0x29   : > { %741 = vmatmul.msk.f32.gmra.mxu3 %vm186_vm0, %v305_v45  ;;  %747 = vmatmul.msk.f32.gmra.mxu0 %vm186_vm0, %v350_v46 }
  0x2a   : > { %565 = vmatpush.msra.mxu0 %v770_v49 }
  0x2b   : > { %727 = vmatmul.msk.f32.gmra.mxu1 %vm186_vm0, %v173_v47  ;;  %734 = vmatmul.msk.f32.gmra.mxu2 %vm186_vm0, %v259_v48 }
  0x31   : > { %767 = vmatmul.msk.f32.vlgmr.msrb.gmra.mxu3 %vm186_vm0, %v487_v50  ;;  %748 = vmatmul.msk.f32.gmra.mxu0 %vm186_vm0, %v351_v51 }
  0x33   : > { %753 = vmatmul.msk.f32.vlgmr.msra.gmra.mxu1 %vm186_vm0, %v172_v37  ;;  %760 = vmatmul.msk.f32.vlgmr.msra.gmra.mxu2 %vm186_vm0, %v441_v52 }
  0x39   : > { %768 = vmatmul.msk.f32.gmra.mxu3 %vm186_vm0, %v488_v53  ;;  %774 = vmatmul.msk.f32.vlgmr.msra.gmra.mxu0 %vm186_vm0, %v304_v34 }
  0x3b   : > { %754 = vmatmul.msk.f32.gmra.mxu1 %vm186_vm0, %v173_v47  ;;  %761 = vmatmul.msk.f32.gmra.mxu2 %vm186_vm0, %v442_v54 }
  0x41   : > { %769 = vmatmul.msk.f32.gmra.mxu3 %vm186_vm0, %v489_v55  ;;  %775 = vmatmul.msk.f32.gmra.mxu0 %vm186_vm0, %v305_v45 }
  0x43   : > { %755 = vmatmul.msk.f32.gmra.mxu1 %vm186_vm0, %v397_v56  ;;  %762 = vmatmul.msk.f32.gmra.mxu2 %vm186_vm0, %v443_v57 }
  0x49   : > { %776 = vmatmul.msk.f32.gmra.mxu0 %vm186_vm0, %v535_v58 }
  0x90   : > { %v216_v59 = vpop.f32.mrf.mxu1 }
  0x94   : > { %v213_v60 = vpop.f32.mrf.mxu0 }
  0x96   : > { %v219_v61 = vpop.f32.mrf.mxu2 }
  0x98   : > { %v248_v62 = vpop.f32.mrf.mxu1 }
  0x99   : > { %v249_v7 = vadd.f32 %v248_v62, %v213_v60  ;;  %v815_v62 = vmov 32.0  }
  0x9a   : > { %v337_v63 = vpop.f32.mrf.mxu3  ;;  %799 = vrcp.f32 %v815_v62 }
  0x9e   : > { %v291_v0 = vpop.f32.mrf.mxu2  ;;  %v383_v1 = vpop.f32.mrf.mxu0 }
  0x9f   : > { %v300_v8 = vadd.f32 %v291_v0, %v249_v7 }
  0xa0   : > { %v251_v2 = vpop.f32.mrf.mxu1 }
  0xa1   : > { %v346_v11 = vadd.f32 %v337_v63, %v300_v8  ;;  %v252_v14 = vadd.f32 %v251_v2, %v216_v59  ;;  %v800_v63 = vpop.eup %799 }
  0xa2   : > { %v608_v0 = vmul.f32 32.0, %v800_v63  ;;  %vm612_vm4 = vweird.f32 %v800_v63 }
  0xa3   : > { %v392_v15 = vadd.f32 %v383_v1, %v346_v11 }
  0xa4   : > { %v340_v3 = vpop.f32.mrf.mxu3  ;;  %v609_v1 = vsub.f32 1.0, %v608_v0 }
  0xa6   : > { %v294_v4 = vpop.f32.mrf.mxu2  ;;  %v386_v5 = vpop.f32.mrf.mxu0  ;;  %v610_v2 = vmul.f32 %v800_v63, %v609_v1 }
  0xa7   : > { %v301_v16 = vadd.f32 %v294_v4, %v252_v14 }
  0xa8   : > { %v254_v6 = vpop.f32.mrf.mxu1 }
  0xa9   : > { %v347_v20 = vadd.f32 %v340_v3, %v301_v16  ;;  %v255_v24 = vadd.f32 %v254_v6, %v219_v61  ;;  %v611_v3 = vadd.f32 %v800_v63, %v610_v2 }
  0xab   : > { %v393_v27 = vadd.f32 %v386_v5, %v347_v20  ;;  %v613_v4 = vsel %vm612_vm4, %v800_v63, %v611_v3 }
  0xac   : > { %v343_v9 = vpop.f32.mrf.mxu3 }
  0xae   : > { %v297_v10 = vpop.f32.mrf.mxu2  ;;  %v389_v12 = vpop.f32.mrf.mxu0 }
  0xaf   : > { %v302_v28 = vadd.f32 %v297_v10, %v255_v24 }
  0xb0   : > { %v429_v13 = vpop.f32.mrf.mxu1 }
  0xb1   : > { %v438_v18 = vadd.f32 %v429_v13, %v392_v15  ;;  %v348_v34 = vadd.f32 %v343_v9, %v302_v28 }
  0xb3   : > { %v394_v42 = vadd.f32 %v389_v12, %v348_v34 }
  0xb4   : > { %v521_v17 = vpop.f32.mrf.mxu3 }
  0xb6   : > { %v475_v19 = vpop.f32.mrf.mxu2  ;;  %v567_v22 = vpop.f32.mrf.mxu0 }
  0xb7   : > { %v484_v21 = vadd.f32 %v475_v19, %v438_v18 }
  0xb8   : > { %v432_v23 = vpop.f32.mrf.mxu1 }
  0xb9   : > { %v530_v25 = vadd.f32 %v521_v17, %v484_v21  ;;  %v439_v31 = vadd.f32 %v432_v23, %v393_v27 }
  0xbb   : > { %v576_v29 = vadd.f32 %v567_v22, %v530_v25 }
  0xbc   : > { %v524_v30 = vpop.f32.mrf.mxu3 }
  0xbd   : > { %v583_v32 = vadd.f32 %v798_v26, %v576_v29 }
  0xbe   : > { %v478_v33 = vpop.f32.mrf.mxu2  ;;  %v570_v37 = vpop.f32.mrf.mxu0 }
  0xbf   : > { %v589_v35 = vmul.f32 0.2, %v583_v32  ;;  %v485_v36 = vadd.f32 %v478_v33, %v439_v31  ;;  %vm586_vm1 = vcmp.ge.f32.partialorder %v583_v32, 0.0 }
  0xc0   : > { %v435_v40 = vpop.f32.mrf.mxu1 }
  0xc1   : > { %v531_v38 = vadd.f32 %v524_v30, %v485_v36  ;;  %v1013_v39 = vsel %vm586_vm1, %v583_v32, %v589_v35  ;;  %v440_v45 = vadd.f32 %v435_v40, %v394_v42 }
  0xc2   : > { %v595_v41 = vmul.f32 %v1013_v39, %v1013_v39 }
  0xc3   : > { %v577_v43 = vadd.f32 %v570_v37, %v531_v38 }
  0xc4   : > { %v598_v44 = vsel %vm186_vm0, %v595_v41, 0.0  ;;  %v527_v48 = vpop.f32.mrf.mxu3 }
  0xc5   : > { %v584_v46 = vadd.f32 %v798_v26, %v577_v43  ;;  %599 = vadd.xlane.f32.xlu0 %v598_v44 }
  0xc6   : > { %v481_v47 = vpop.f32.mrf.mxu2  ;;  %v573_v51 = vpop.f32.mrf.mxu0 }
  0xc7   : > { %v590_v49 = vmul.f32 0.2, %v584_v46  ;;  %v486_v50 = vadd.f32 %v481_v47, %v440_v45  ;;  %vm587_vm2 = vcmp.ge.f32.partialorder %v584_v46, 0.0 }
  0xc9   : > { %v532_v52 = vadd.f32 %v527_v48, %v486_v50  ;;  %v593_v53 = vsel %vm587_vm2, %v584_v46, %v590_v49 }
  0xca   : > { %v596_v54 = vmul.f32 %v593_v53, %v593_v53 }
  0xcb   : > { %v578_v55 = vadd.f32 %v573_v51, %v532_v52 }
  0xcc   : > { %v601_v56 = vsel %vm186_vm0, %v596_v54, 0.0 }
  0xcd   : > { %v585_v57 = vadd.f32 %v798_v26, %v578_v55  ;;  %602 = vadd.xlane.f32.xlu0 %v601_v56 }
  0xcf   : > { %v591_v58 = vmul.f32 0.2, %v585_v57  ;;  %vm588_vm3 = vcmp.ge.f32.partialorder %v585_v57, 0.0 }
  0xd1   : > { %v594_v59 = vsel %vm588_vm3, %v585_v57, %v591_v58 }
  0xd2   : > { %v597_v60 = vmul.f32 %v594_v59, %v594_v59 }
  0xd4   : > { %v604_v61 = vsel %vm186_vm0, %v597_v60, 0.0 }
  0xd5   : > { %605 = vadd.xlane.f32.xlu1 %v604_v61 }
 0x138   : > { %v600_v5 = vpop.xlane.xlu0 %599 }
 0x139   : > { %v614_v6 = vmul.f32 %v613_v4, %v600_v5 }
 0x13b   : > { %v617_v7 = vadd.f32 1e-08, %v614_v6 }
 0x13d   : > { %801 = vrsqrt.f32 %v617_v7  ;;  %vm626_vm6 = vweird.f32 %v617_v7 }
 0x140   : > { %v603_v8 = vpop.xlane.xlu0 %602 }
 0x141   : > { %v615_v9 = vmul.f32 %v613_v4, %v603_v8 }
 0x143   : > { %v802_v10 = vpop.eup %801  ;;  %v618_v11 = vadd.f32 1e-08, %v615_v9 }
 0x144   : > { %v621_v12 = vmul.f32 %v802_v10, %v617_v7  ;;  %vm627_vm5 = vweird.f32 %v802_v10 }
 0x145   : > { %803 = vrsqrt.f32 %v618_v11  ;;  %vm628_vm7 = vmor %vm626_vm6, %vm627_vm5  ;;  %vm636_vm9 = vweird.f32 %v618_v11 }
 0x146   : > { %v622_v13 = vmul.f32 %v802_v10, %v621_v12 }
 0x148   : > { %v623_v14 = vmul.f32 0.5, %v622_v13  ;;  %v606_v15 = vpop.xlane.xlu1 %605 }
 0x149   : > { %v616_v16 = vmul.f32 %v613_v4, %v606_v15 }
 0x14a   : > { %v624_v17 = vsub.f32 1.5, %v623_v14 }
 0x14b   : > { %v804_v18 = vpop.eup %803  ;;  %v619_v19 = vadd.f32 1e-08, %v616_v16 }
 0x14c   : > { %v625_v20 = vmul.f32 %v802_v10, %v624_v17  ;;  %v631_v21 = vmul.f32 %v804_v18, %v618_v11  ;;  %vm637_vm8 = vweird.f32 %v804_v18 }
 0x14d   : > { %805 = vrsqrt.f32 %v619_v19  ;;  %vm638_vm10 = vmor %vm636_vm9, %vm637_vm8  ;;  %vm646_vm12 = vweird.f32 %v619_v19 }
 0x14e   : > { %v629_v22 = vsel %vm628_vm7, %v802_v10, %v625_v20  ;;  %v632_v23 = vmul.f32 %v804_v18, %v631_v21 }
 0x14f   : > { %v650_v24 = vmul.f32 %v629_v22, %v1013_v39 }
 0x150   : > { %v633_v25 = vmul.f32 0.5, %v632_v23 }
 0x151   : > { %653 = vst.msk [vmem:[%s170_s21] sm:$0xff] %vm186_vm0, %v650_v24 }
 0x152   : > { %v634_v26 = vsub.f32 1.5, %v633_v25 }
 0x153   : > { %v806_v27 = vpop.eup %805 }
 0x154   : > { %v635_v28 = vmul.f32 %v804_v18, %v634_v26  ;;  %v641_v29 = vmul.f32 %v806_v27, %v619_v19  ;;  %vm647_vm11 = vweird.f32 %v806_v27 }
 0x155   : > { %vm648_vm13 = vmor %vm646_vm12, %vm647_vm11 }
 0x156   : > { %v639_v30 = vsel %vm638_vm10, %v804_v18, %v635_v28  ;;  %v642_v31 = vmul.f32 %v806_v27, %v641_v29 }
 0x157   : > { %v651_v32 = vmul.f32 %v639_v30, %v593_v53 }
 0x158   : > { %v643_v33 = vmul.f32 0.5, %v642_v31 }
 0x159   : > { %654 = vst.msk [vmem:[%s170_s21 + $0x8] sm:$0xff] %vm186_vm0, %v651_v32 }
 0x15a   : > { %v644_v34 = vsub.f32 1.5, %v643_v33 }
 0x15c   : > { %v645_v35 = vmul.f32 %v806_v27, %v644_v34 }
 0x15e   : > { %v649_v36 = vsel %vm648_vm13, %v806_v27, %v645_v35 }
 0x15f   : > { %v652_v37 = vmul.f32 %v649_v36, %v594_v59 }
 0x161   : > { %655 = vst.msk [vmem:[%s170_s21 + $0x10] sm:$0xff] %vm186_vm0, %v652_v37 }
 0x162 PF: > { %s13_s12 = sadd.s32 1, %s813_s12  }
 0x163   : > { %p10_p4 = scmp.ge.s32.totalorder %s13_s12, 4  }
 0x165   :  { %12 = sbr.rel (!%p10_p4) target bundleno = 1 (0x1), region = 70 }

// kernel: generator_forward.10
= control target key start
LH: loop header
LB: loop body
LE: loop exit
PB: predicated region body
PF: predicated region fallthrough
CT: control target
= control target key end

     0   :  { %s1561_s12 = smov 0   ;;  %s2014_s0 = inlined_call_operand.vmem [shape: f32[2,108,32], index: 0, kind: input, shape index: {}]   ;;  %s2015_s1 = inlined_call_operand.vmem [shape: f32[9,32,32], index: 1, kind: input, shape index: {}]   ;;  %s2016_s2 = inlined_call_operand.vmem [shape: f32[1,32], index: 2, kind: input, shape index: {}]   ;;  %s2017_s3 = inlined_call_operand.vmem [shape: f32[2,80,32], index: 3, kind: output, shape index: {}]  }
   0x1 LB: > { %s1355_s13 = sadd.s32 4294967295, %s1538_s12   ;;  %p1359_p0 = scmp.ge.s32.totalorder %s1538_s12, 1  ;;  %s1538_s12 = sphi %s1561_s12, %s13_s12  }
   0x2   : > { %p137_p1 = scmp.lt.s32.totalorder %s1538_s12, 3 }
   0x4   : > { %p138_p2 = pnand %p1359_p0, %p137_p1 }
   0x5   : > { %p161_p3 = scmp.lt.s32.totalorder (!%p138_p2), %s1355_s13, 1 }
   0x6   : > { %141 = sbr.rel (%p138_p2) target bundleno = 480 (0x1e0), region = 32 }
   0xb   : > { %v1365_v0 = vld [vmem:[%s2015_s1 + $0x38] sm:$0xff]  ;;  %v1364_v1 = vld [vmem:[%s2015_s1 + $0x30] sm:$0xff]  ;;  %v1363_v2 = vld [vmem:[%s2015_s1 + $0x28] sm:$0xff]  ;;  %s2019_s13 = smov (!%p161_p3, %s1355_s13), 1  ;;  %vm200_vm0 = vcmask 261120  }
   0xc   : > { %1486 = vmatpush.msra.mxu1 %v1365_v0  ;;  %1488 = vmatpush.msra.mxu3 %v1365_v0  ;;  %v1362_v3 = vld [vmem:[%s2015_s1 + $0x20] sm:$0xff]  ;;  %s1498_s22 = smul.u32 112, %s2019_s13  ;;  %v1403_v4 = vld [vmem:[%s2015_s1 + $0x78] sm:$0xff]  ;;  %v1402_v8 = vld [vmem:[%s2015_s1 + $0x70] sm:$0xff] }
   0xd   : > { %243 = vmatpush.msra.mxu0 %v1365_v0  ;;  %1487 = vmatpush.msra.mxu2 %v1365_v0  ;;  %v184_v5 = vld [vmem:[%s2015_s1 + $0x18] sm:$0xff]  ;;  %v183_v10 = vld [vmem:[%s2015_s1 + $0x10] sm:$0xff]  ;;  %v1401_v13 = vld [vmem:[%s2015_s1 + $0x68] sm:$0xff]  ;;  %s1499_s18 = smul.u32 80, %s2019_s13 }
   0xe   : > { %1489 = vmatpush.msra.mxu1 %v1364_v1  ;;  %1491 = vmatpush.msra.mxu3 %v1364_v1  ;;  %s1587_s25 = scalar_lea.vmem %s2014_s0, %s1498_s22  ;;  %v1417_v11 = vld [vmem:[%s2015_s1 + $0x98] sm:$0xff]  ;;  %v182_v15 = vld [vmem:[%s2015_s1 + $0x8] sm:$0xff]  ;;  %v1416_v16 = vld [vmem:[%s2015_s1 + $0x90] sm:$0xff] }
   0xf   : > { %244 = vmatpush.msra.mxu0 %v1364_v1  ;;  %1490 = vmatpush.msra.mxu2 %v1364_v1  ;;  %v188_v6 = vld [vmem:[%s1587_s25 + $0x19] sm:$0xff]  ;;  %v185_v9 = vld [vmem:[%s1587_s25 + $0x1] sm:$0xff]  ;;  %v191_v12 = vld [vmem:[%s1587_s25 + $0x31] sm:$0xff]  ;;  %s1972_s21 = scalar_lea.vmem %s2017_s3, %s1499_s18 }
  0x10   : > { %1492 = vmatpush.msra.mxu1 %v1363_v2  ;;  %1494 = vmatpush.msra.mxu3 %v1363_v2  ;;  %v192_v7 = vld [vmem:[%s1587_s25 + $0x39] sm:$0xff]  ;;  %v189_v18 = vld [vmem:[%s1587_s25 + $0x21] sm:$0xff]  ;;  %v1388_v20 = vld [vmem:[%s2015_s1 + $0x50] sm:$0xff] }
  0x11   : > { %245 = vmatpush.msra.mxu0 %v1363_v2  ;;  %1493 = vmatpush.msra.mxu2 %v1363_v2  ;;  %v1389_v14 = vld [vmem:[%s2015_s1 + $0x58] sm:$0xff]  ;;  %v1400_v17 = vld [vmem:[%s2015_s1 + $0x60] sm:$0xff]  ;;  %v1415_v22 = vld [vmem:[%s2015_s1 + $0x88] sm:$0xff] }
  0x12   : > { %1495 = vmatpush.msra.mxu1 %v1362_v3  ;;  %1497 = vmatpush.msra.mxu3 %v1362_v3  ;;  %v193_v19 = vld [vmem:[%s1587_s25 + $0x41] sm:$0xff]  ;;  %v1459_v23 = vld [vmem:[%s2015_s1 + $0xf8] sm:$0xff]  ;;  %v186_v24 = vld [vmem:[%s1587_s25 + $0x9] sm:$0xff] }
  0x13   : > { %1369 = vmatmul.msk.f32.vlgmr.msra.gmra.mxu1 %vm200_vm0, %v188_v6  ;;  %1373 = vmatmul.msk.f32.vlgmr.msra.gmra.mxu3 %vm200_vm0, %v192_v7  ;;  %v181_v21 = vld [vmem:[%s2015_s1] sm:$0xff]  ;;  %v1387_v25 = vld [vmem:[%s2015_s1 + $0x48] sm:$0xff]  ;;  %v1431_v27 = vld [vmem:[%s2015_s1 + $0xb8] sm:$0xff] }
  0x14   : > { %514 = vmatpush.msrb.mxu3 %v1403_v4  ;;  %320 = vmatpush.msrb.mxu1 %v184_v5  ;;  %v1414_v26 = vld [vmem:[%s2015_s1 + $0x80] sm:$0xff]  ;;  %v1473_v29 = vld [vmem:[%s2015_s1 + $0x118] sm:$0xff]  ;;  %v1458_v31 = vld [vmem:[%s2015_s1 + $0xf0] sm:$0xff] }
  0x15   : > { %246 = vmatpush.msra.mxu0 %v1362_v3  ;;  %1496 = vmatpush.msra.mxu2 %v1362_v3  ;;  %v1386_v28 = vld [vmem:[%s2015_s1 + $0x40] sm:$0xff]  ;;  %v1445_v32 = vld [vmem:[%s2015_s1 + $0xd8] sm:$0xff]  ;;  %v1430_v33 = vld [vmem:[%s2015_s1 + $0xb0] sm:$0xff] }
  0x16   : > { %515 = vmatpush.msrb.mxu3 %v1402_v8  ;;  %1366 = vmatmul.msk.f32.vlgmr.msra.gmra.mxu0 %vm200_vm0, %v185_v9  ;;  %v355_v30 = vld [vmem:[%s1587_s25 + $0x2] sm:$0xff]  ;;  %v1444_v36 = vld [vmem:[%s2015_s1 + $0xd0] sm:$0xff]  ;;  %v459_v49 = vld [vmem:[%s1587_s25 + $0x1a] sm:$0xff] }
  0x17   : > { %321 = vmatpush.msrb.mxu1 %v183_v10  ;;  %616 = vmatpush.msrb.mxu0 %v1417_v11  ;;  %v190_v34 = vld [vmem:[%s1587_s25 + $0x29] sm:$0xff]  ;;  %v187_v37 = vld [vmem:[%s1587_s25 + $0x11] sm:$0xff]  ;;  %v171_v39 = vld [vmem:[%s1587_s25] sm:$0xff] }
  0x18   : > { %1372 = vmatmul.msk.f32.vlgmr.msra.gmra.mxu2 %vm200_vm0, %v191_v12  ;;  %516 = vmatpush.msrb.mxu3 %v1401_v13  ;;  %v194_v35 = vld [vmem:[%s1587_s25 + $0x49] sm:$0xff]  ;;  %v458_v44 = vld [vmem:[%s1587_s25 + $0x12] sm:$0xff]  ;;  %v561_v50 = vld [vmem:[%s1587_s25 + $0x1b] sm:$0xff] }
  0x19   : > { %412 = vmatpush.msrb.mxu2 %v1389_v14  ;;  %322 = vmatpush.msrb.mxu1 %v182_v15  ;;  %v1472_v38 = vld [vmem:[%s2015_s1 + $0x110] sm:$0xff]  ;;  %v1443_v42 = vld [vmem:[%s2015_s1 + $0xc8] sm:$0xff]  ;;  %v174_v52 = vld [vmem:[%s1587_s25 + $0x18] sm:$0xff] }
  0x1a   : > { %617 = vmatpush.msrb.mxu0 %v1416_v16  ;;  %517 = vmatpush.msrb.mxu3 %v1400_v17  ;;  %v457_v40 = vld [vmem:[%s1587_s25 + $0xa] sm:$0xff]  ;;  %v560_v45 = vld [vmem:[%s1587_s25 + $0x13] sm:$0xff]  ;;  %v460_v53 = vld [vmem:[%s1587_s25 + $0x22] sm:$0xff] }
  0x1b   : > { %1370 = vmatmul.msk.f32.gmra.mxu1 %vm200_vm0, %v189_v18  ;;  %1374 = vmatmul.msk.f32.gmra.mxu3 %vm200_vm0, %v193_v19  ;;  %v559_v41 = vld [vmem:[%s1587_s25 + $0xb] sm:$0xff]  ;;  %v562_v54 = vld [vmem:[%s1587_s25 + $0x23] sm:$0xff]  ;;  %v564_v0 = vld [vmem:[%s1587_s25 + $0x33] sm:$0xff] }
  0x1c   : > { %413 = vmatpush.msrb.mxu2 %v1388_v20  ;;  %323 = vmatpush.msrb.mxu1 %v181_v21  ;;  %v172_v43 = vld [vmem:[%s1587_s25 + $0x8] sm:$0xff]  ;;  %v173_v48 = vld [vmem:[%s1587_s25 + $0x10] sm:$0xff]  ;;  %v1442_v55 = vld [vmem:[%s2015_s1 + $0xc0] sm:$0xff] }
  0x1d   : > { %618 = vmatpush.msrb.mxu0 %v1415_v22  ;;  %922 = vmatpush.msra.mxu3 %v1459_v23  ;;  %v1457_v46 = vld [vmem:[%s2015_s1 + $0xe8] sm:$0xff]  ;;  %v1456_v56 = vld [vmem:[%s2015_s1 + $0xe0] sm:$0xff]  ;;  %v462_v63 = vld [vmem:[%s1587_s25 + $0x32] sm:$0xff] }
  0x1e   : > { %1367 = vmatmul.msk.f32.gmra.mxu0 %vm200_vm0, %v186_v24  ;;  %414 = vmatpush.msrb.mxu2 %v1387_v25  ;;  %v1429_v47 = vld [vmem:[%s2015_s1 + $0xa8] sm:$0xff]  ;;  %v1428_v57 = vld [vmem:[%s2015_s1 + $0xa0] sm:$0xff]  ;;  %v177_v1 = vld [vmem:[%s1587_s25 + $0x30] sm:$0xff] }
  0x1f   : > { %619 = vmatpush.msrb.mxu0 %v1414_v26  ;;  %718 = vmatpush.msra.mxu1 %v1431_v27  ;;  %v1471_v51 = vld [vmem:[%s2015_s1 + $0x108] sm:$0xff]  ;;  %v175_v58 = vld [vmem:[%s1587_s25 + $0x20] sm:$0xff]  ;;  %v178_v4 = vld [vmem:[%s1587_s25 + $0x38] sm:$0xff] }
  0x20   : > { %415 = vmatpush.msrb.mxu2 %v1386_v28  ;;  %923 = vmatpush.msra.mxu3 %v1458_v31  ;;  %v461_v59 = vld [vmem:[%s1587_s25 + $0x2a] sm:$0xff]  ;;  %v1470_v61 = vld [vmem:[%s2015_s1 + $0x100] sm:$0xff]  ;;  %v763_v10 = vld [vmem:[%s1587_s25 + $0x14] sm:$0xff] }
  0x21   : > { %1024 = vmatpush.msra.mxu0 %v1473_v29  ;;  %1390 = vmatmul.msk.f32.vlgmr.msrb.gmra.mxu2 %vm200_vm0, %v355_v30  ;;  %v563_v60 = vld [vmem:[%s1587_s25 + $0x2b] sm:$0xff]  ;;  %v463_v2 = vld [vmem:[%s1587_s25 + $0x3a] sm:$0xff]  ;;  %v464_v5 = vld [vmem:[%s1587_s25 + $0x42] sm:$0xff] }
  0x22   : > { %820 = vmatpush.msra.mxu2 %v1445_v32  ;;  %719 = vmatpush.msra.mxu1 %v1430_v33  ;;  %v176_v62 = vld [vmem:[%s1587_s25 + $0x28] sm:$0xff]  ;;  %v565_v3 = vld [vmem:[%s1587_s25 + $0x3b] sm:$0xff]  ;;  %v466_v12 = vld [vmem:[%s1587_s25 + $0x52] sm:$0xff] }
  0x23   : > { %1371 = vmatmul.msk.f32.gmra.mxu1 %vm200_vm0, %v190_v34  ;;  %1375 = vmatmul.msk.f32.gmra.mxu3 %vm200_vm0, %v194_v35  ;;  %v566_v6 = vld [vmem:[%s1587_s25 + $0x43] sm:$0xff]  ;;  %v567_v9 = vld [vmem:[%s1587_s25 + $0x4b] sm:$0xff]  ;;  %v568_v13 = vld [vmem:[%s1587_s25 + $0x53] sm:$0xff] }
  0x24   : > { %821 = vmatpush.msra.mxu2 %v1444_v36  ;;  %1025 = vmatpush.msra.mxu0 %v1472_v38  ;;  %v179_v7 = vld [vmem:[%s1587_s25 + $0x40] sm:$0xff]  ;;  %v465_v8 = vld [vmem:[%s1587_s25 + $0x4a] sm:$0xff]  ;;  %v865_v16 = vld [vmem:[%s1587_s25 + $0x15] sm:$0xff] }
  0x25   : > { %924 = vmatpush.msra.mxu3 %v1457_v46  ;;  %720 = vmatpush.msra.mxu1 %v1429_v47  ;;  %v180_v11 = vld [vmem:[%s1587_s25 + $0x48] sm:$0xff]  ;;  %v764_v14 = vld [vmem:[%s1587_s25 + $0x1c] sm:$0xff]  ;;  %v767_v24 = vld [vmem:[%s1587_s25 + $0x34] sm:$0xff] }
  0x26   : > { %1368 = vmatmul.msk.f32.gmra.mxu0 %vm200_vm0, %v187_v37  ;;  %822 = vmatpush.msra.mxu2 %v1443_v42  ;;  %v661_v15 = vld [vmem:[%s1587_s25 + $0xc] sm:$0xff]  ;;  %v967_v17 = vld [vmem:[%s1587_s25 + $0x16] sm:$0xff]  ;;  %v765_v18 = vld [vmem:[%s1587_s25 + $0x24] sm:$0xff] }
  0x27   : > { %1026 = vmatpush.msra.mxu0 %v1471_v51  ;;  %925 = vmatpush.msra.mxu3 %v1456_v56  ;;  %v866_v19 = vld [vmem:[%s1587_s25 + $0x1d] sm:$0xff]  ;;  %v766_v21 = vld [vmem:[%s1587_s25 + $0x2c] sm:$0xff]  ;;  %v869_v32 = vld [vmem:[%s1587_s25 + $0x35] sm:$0xff] }
  0x28   : > { %823 = vmatpush.msra.mxu2 %v1442_v55  ;;  %721 = vmatpush.msra.mxu1 %v1428_v57  ;;  %v968_v20 = vld [vmem:[%s1587_s25 + $0x1e] sm:$0xff]  ;;  %v969_v23 = vld [vmem:[%s1587_s25 + $0x26] sm:$0xff]  ;;  %v970_v28 = vld [vmem:[%s1587_s25 + $0x2e] sm:$0xff] }
  0x29   : > { %1391 = vmatmul.msk.f32.gmra.mxu2 %vm200_vm0, %v457_v40  ;;  %1027 = vmatpush.msra.mxu0 %v1470_v61  ;;  %v867_v22 = vld [vmem:[%s1587_s25 + $0x25] sm:$0xff]  ;;  %v868_v26 = vld [vmem:[%s1587_s25 + $0x2d] sm:$0xff]  ;;  %v768_v30 = vld [vmem:[%s1587_s25 + $0x3c] sm:$0xff] }
  0x2a   : > { %v971_v35 = vld [vmem:[%s1587_s25 + $0x36] sm:$0xff]  ;;  %v769_v37 = vld [vmem:[%s1587_s25 + $0x44] sm:$0xff]  ;;  %v872_v56 = vld [vmem:[%s1587_s25 + $0x4d] sm:$0xff] }
  0x2b   : > { %1376 = vmatmul.msk.f32.vlgmr.msrb.gmra.mxu1 %vm200_vm0, %v171_v39  ;;  %1404 = vmatmul.msk.f32.vlgmr.msrb.gmra.mxu3 %vm200_vm0, %v457_v40  ;;  %v870_v39 = vld [vmem:[%s1587_s25 + $0x3d] sm:$0xff]  ;;  %v871_v46 = vld [vmem:[%s1587_s25 + $0x45] sm:$0xff]  ;;  %v974_v61 = vld [vmem:[%s1587_s25 + $0x4e] sm:$0xff] }
  0x2e   : > { %1418 = vmatmul.msk.f32.vlgmr.msrb.gmra.mxu0 %vm200_vm0, %v559_v41  ;;  %v972_v41 = vld [vmem:[%s1587_s25 + $0x3e] sm:$0xff] }
  0x31   : > { %1392 = vmatmul.msk.f32.gmra.mxu2 %vm200_vm0, %v458_v44 }
  0x33   : > { %1377 = vmatmul.msk.f32.gmra.mxu1 %vm200_vm0, %v172_v43  ;;  %1405 = vmatmul.msk.f32.gmra.mxu3 %vm200_vm0, %v458_v44  ;;  %v770_v44 = vld [vmem:[%s1587_s25 + $0x4c] sm:$0xff] }
  0x36   : > { %1419 = vmatmul.msk.f32.gmra.mxu0 %vm200_vm0, %v560_v45 }
  0x39   : > { %1393 = vmatmul.msk.f32.gmra.mxu2 %vm200_vm0, %v459_v49 }
  0x3b   : > { %1378 = vmatmul.msk.f32.gmra.mxu1 %vm200_vm0, %v173_v48  ;;  %1406 = vmatmul.msk.f32.gmra.mxu3 %vm200_vm0, %v459_v49 }
  0x3e   : > { %1420 = vmatmul.msk.f32.gmra.mxu0 %vm200_vm0, %v561_v50  ;;  %v973_v50 = vld [vmem:[%s1587_s25 + $0x46] sm:$0xff] }
  0x41   : > { %1394 = vmatmul.msk.f32.gmra.mxu2 %vm200_vm0, %v460_v53 }
  0x43   : > { %1379 = vmatmul.msk.f32.gmra.mxu1 %vm200_vm0, %v174_v52  ;;  %1407 = vmatmul.msk.f32.gmra.mxu3 %vm200_vm0, %v460_v53  ;;  %v771_v53 = vld [vmem:[%s1587_s25 + $0x54] sm:$0xff] }
  0x46   : > { %1421 = vmatmul.msk.f32.gmra.mxu0 %vm200_vm0, %v562_v54 }
  0x49   : > { %1395 = vmatmul.msk.f32.gmra.mxu2 %vm200_vm0, %v461_v59 }
  0x4b   : > { %1380 = vmatmul.msk.f32.gmra.mxu1 %vm200_vm0, %v175_v58  ;;  %1408 = vmatmul.msk.f32.gmra.mxu3 %vm200_vm0, %v461_v59 }
  0x4e   : > { %1422 = vmatmul.msk.f32.gmra.mxu0 %vm200_vm0, %v563_v60 }
  0x51   : > { %1396 = vmatmul.msk.f32.gmra.mxu2 %vm200_vm0, %v462_v63 }
  0x53   : > { %1381 = vmatmul.msk.f32.gmra.mxu1 %vm200_vm0, %v176_v62  ;;  %1409 = vmatmul.msk.f32.gmra.mxu3 %vm200_vm0, %v462_v63 }
  0x56   : > { %1423 = vmatmul.msk.f32.gmra.mxu0 %vm200_vm0, %v564_v0  ;;  %v772_v0 = vld [vmem:[%s1587_s25 + $0x5c] sm:$0xff] }
  0x59   : > { %1397 = vmatmul.msk.f32.gmra.mxu2 %vm200_vm0, %v463_v2 }
  0x5b   : > { %1382 = vmatmul.msk.f32.gmra.mxu1 %vm200_vm0, %v177_v1  ;;  %1410 = vmatmul.msk.f32.gmra.mxu3 %vm200_vm0, %v463_v2 }
  0x5e   : > { %1424 = vmatmul.msk.f32.gmra.mxu0 %vm200_vm0, %v565_v3  ;;  %v873_v3 = vld [vmem:[%s1587_s25 + $0x55] sm:$0xff] }
  0x61   : > { %1398 = vmatmul.msk.f32.gmra.mxu2 %vm200_vm0, %v464_v5 }
  0x63   : > { %1383 = vmatmul.msk.f32.gmra.mxu1 %vm200_vm0, %v178_v4  ;;  %1411 = vmatmul.msk.f32.gmra.mxu3 %vm200_vm0, %v464_v5 }
  0x66   : > { %1425 = vmatmul.msk.f32.gmra.mxu0 %vm200_vm0, %v566_v6 }
  0x69   : > { %1399 = vmatmul.msk.f32.gmra.mxu2 %vm200_vm0, %v465_v8 }
  0x6b   : > { %1384 = vmatmul.msk.f32.gmra.mxu1 %vm200_vm0, %v179_v7  ;;  %1412 = vmatmul.msk.f32.gmra.mxu3 %vm200_vm0, %v465_v8  ;;  %v975_v8 = vld [vmem:[%s1587_s25 + $0x56] sm:$0xff] }
  0x6e   : > { %1426 = vmatmul.msk.f32.gmra.mxu0 %vm200_vm0, %v567_v9 }
  0x71   : > { %1446 = vmatmul.msk.f32.vlgmr.msra.gmra.mxu2 %vm200_vm0, %v763_v10 }
  0x73   : > { %1385 = vmatmul.msk.f32.gmra.mxu1 %vm200_vm0, %v180_v11  ;;  %1413 = vmatmul.msk.f32.gmra.mxu3 %vm200_vm0, %v466_v12 }
  0x76   : > { %1427 = vmatmul.msk.f32.gmra.mxu0 %vm200_vm0, %v568_v13  ;;  %v874_v13 = vld [vmem:[%s1587_s25 + $0x5d] sm:$0xff] }
  0x79   : > { %1447 = vmatmul.msk.f32.gmra.mxu2 %vm200_vm0, %v764_v14 }
  0x7b   : > { %1432 = vmatmul.msk.f32.vlgmr.msra.gmra.mxu1 %vm200_vm0, %v661_v15  ;;  %1460 = vmatmul.msk.f32.vlgmr.msra.gmra.mxu3 %vm200_vm0, %v865_v16 }
  0x7e   : > { %1474 = vmatmul.msk.f32.vlgmr.msra.gmra.mxu0 %vm200_vm0, %v967_v17 }
  0x81   : > { %1448 = vmatmul.msk.f32.gmra.mxu2 %vm200_vm0, %v765_v18 }
  0x83   : > { %1433 = vmatmul.msk.f32.gmra.mxu1 %vm200_vm0, %v763_v10  ;;  %1461 = vmatmul.msk.f32.gmra.mxu3 %vm200_vm0, %v866_v19 }
  0x86   : > { %1475 = vmatmul.msk.f32.gmra.mxu0 %vm200_vm0, %v968_v20 }
  0x89   : > { %1449 = vmatmul.msk.f32.gmra.mxu2 %vm200_vm0, %v766_v21 }
  0x8b   : > { %1434 = vmatmul.msk.f32.gmra.mxu1 %vm200_vm0, %v764_v14  ;;  %1462 = vmatmul.msk.f32.gmra.mxu3 %vm200_vm0, %v867_v22 }
  0x8e   : > { %1476 = vmatmul.msk.f32.gmra.mxu0 %vm200_vm0, %v969_v23 }
  0x90   : > { %v1801_v25 = vpop.f32.mrf.mxu1 }
  0x91   : > { %1450 = vmatmul.msk.f32.gmra.mxu2 %vm200_vm0, %v767_v24 }
  0x93   : > { %1435 = vmatmul.msk.f32.gmra.mxu1 %vm200_vm0, %v765_v18  ;;  %1463 = vmatmul.msk.f32.gmra.mxu3 %vm200_vm0, %v868_v26  ;;  %v248_v27 = vpop.f32.mrf.mxu0  ;;  %v976_v18 = vld [vmem:[%s1587_s25 + $0x5e] sm:$0xff] }
  0x96   : > { %v1808_v29 = vpop.f32.mrf.mxu3  ;;  %1477 = vmatmul.msk.f32.gmra.mxu0 %vm200_vm0, %v970_v28 }
  0x98   : > { %v1812_v31 = vpop.f32.mrf.mxu1 }
  0x99   : > { %1451 = vmatmul.msk.f32.gmra.mxu2 %vm200_vm0, %v768_v30 }
  0x9b   : > { %1436 = vmatmul.msk.f32.gmra.mxu1 %vm200_vm0, %v766_v21  ;;  %1464 = vmatmul.msk.f32.gmra.mxu3 %vm200_vm0, %v869_v32  ;;  %v251_v33 = vpop.f32.mrf.mxu0  ;;  %v1818_v34 = vpop.f32.mrf.mxu2 }
  0x9e   : > { %v1821_v36 = vpop.f32.mrf.mxu3  ;;  %1478 = vmatmul.msk.f32.gmra.mxu0 %vm200_vm0, %v971_v35 }
  0xa0   : > { %v1825_v38 = vpop.f32.mrf.mxu1 }
  0xa1   : > { %1452 = vmatmul.msk.f32.gmra.mxu2 %vm200_vm0, %v769_v37 }
  0xa3   : > { %1437 = vmatmul.msk.f32.gmra.mxu1 %vm200_vm0, %v767_v24  ;;  %1465 = vmatmul.msk.f32.gmra.mxu3 %vm200_vm0, %v870_v39  ;;  %v254_v40 = vpop.f32.mrf.mxu0 }
  0xa4   : > { %v417_v42 = vpop.f32.mrf.mxu2 }
  0xa6   : > { %v1832_v43 = vpop.f32.mrf.mxu3  ;;  %1479 = vmatmul.msk.f32.gmra.mxu0 %vm200_vm0, %v972_v41 }
  0xa8   : > { %v325_v45 = vpop.f32.mrf.mxu1 }
  0xa9   : > { %v326_v47 = vadd.f32 %v325_v45, %v248_v27  ;;  %1453 = vmatmul.msk.f32.gmra.mxu2 %vm200_vm0, %v770_v44 }
  0xab   : > { %v447_v48 = vadd.f32 %v417_v42, %v326_v47  ;;  %1438 = vmatmul.msk.f32.gmra.mxu1 %vm200_vm0, %v768_v30  ;;  %1466 = vmatmul.msk.f32.gmra.mxu3 %vm200_vm0, %v871_v46  ;;  %v621_v49 = vpop.f32.mrf.mxu0 }
  0xac   : > { %v420_v51 = vpop.f32.mrf.mxu2 }
  0xae   : > { %v519_v52 = vpop.f32.mrf.mxu3  ;;  %1480 = vmatmul.msk.f32.gmra.mxu0 %vm200_vm0, %v973_v50 }
  0xaf   : > { %v549_v54 = vadd.f32 %v519_v52, %v447_v48 }
  0xb0   : > { %v328_v55 = vpop.f32.mrf.mxu1 }
  0xb1   : > { %v329_v57 = vadd.f32 %v328_v55, %v251_v33  ;;  %v1844_v58 = vadd.f32 %v621_v49, %v549_v54  ;;  %1454 = vmatmul.msk.f32.gmra.mxu2 %vm200_vm0, %v771_v53 }
  0xb3   : > { %v448_v59 = vadd.f32 %v420_v51, %v329_v57  ;;  %1439 = vmatmul.msk.f32.gmra.mxu1 %vm200_vm0, %v769_v37  ;;  %1467 = vmatmul.msk.f32.gmra.mxu3 %vm200_vm0, %v872_v56  ;;  %v624_v60 = vpop.f32.mrf.mxu0 }
  0xb4   : > { %v423_v62 = vpop.f32.mrf.mxu2 }
  0xb6   : > { %v522_v63 = vpop.f32.mrf.mxu3  ;;  %1481 = vmatmul.msk.f32.gmra.mxu0 %vm200_vm0, %v974_v61 }
  0xb7   : > { %v550_v1 = vadd.f32 %v522_v63, %v448_v59 }
  0xb8   : > { %v331_v2 = vpop.f32.mrf.mxu1 }
  0xb9   : > { %v332_v4 = vadd.f32 %v331_v2, %v254_v40  ;;  %v1853_v5 = vadd.f32 %v624_v60, %v550_v1  ;;  %1455 = vmatmul.msk.f32.gmra.mxu2 %vm200_vm0, %v772_v0 }
  0xbb   : > { %v449_v6 = vadd.f32 %v423_v62, %v332_v4  ;;  %1440 = vmatmul.msk.f32.gmra.mxu1 %vm200_vm0, %v770_v44  ;;  %1468 = vmatmul.msk.f32.gmra.mxu3 %vm200_vm0, %v873_v3  ;;  %v627_v7 = vpop.f32.mrf.mxu0 }
  0xbc   : > { %v426_v9 = vpop.f32.mrf.mxu2 }
  0xbe   : > { %v525_v10 = vpop.f32.mrf.mxu3  ;;  %1482 = vmatmul.msk.f32.gmra.mxu0 %vm200_vm0, %v975_v8 }
  0xbf   : > { %v551_v11 = vadd.f32 %v525_v10, %v449_v6 }
  0xc0   : > { %v334_v12 = vpop.f32.mrf.mxu1 }
  0xc1   : > { %v335_v14 = vadd.f32 %v334_v12, %v1801_v25  ;;  %v1862_v15 = vadd.f32 %v627_v7, %v551_v11 }
  0xc3   : > { %v450_v16 = vadd.f32 %v426_v9, %v335_v14  ;;  %1441 = vmatmul.msk.f32.gmra.mxu1 %vm200_vm0, %v771_v53  ;;  %1469 = vmatmul.msk.f32.gmra.mxu3 %vm200_vm0, %v874_v13  ;;  %v630_v17 = vpop.f32.mrf.mxu0 }
  0xc4   : > { %v429_v19 = vpop.f32.mrf.mxu2 }
  0xc6   : > { %v528_v20 = vpop.f32.mrf.mxu3  ;;  %1483 = vmatmul.msk.f32.gmra.mxu0 %vm200_vm0, %v976_v18 }
  0xc7   : > { %v552_v21 = vadd.f32 %v528_v20, %v450_v16 }
  0xc8   : > { %v337_v22 = vpop.f32.mrf.mxu1 }
  0xc9   : > { %v338_v23 = vadd.f32 %v337_v22, %v1812_v31  ;;  %v1869_v24 = vadd.f32 %v630_v17, %v552_v21 }
  0xcb   : > { %v451_v25 = vadd.f32 %v429_v19, %v338_v23  ;;  %v633_v26 = vpop.f32.mrf.mxu0 }
  0xcc   : > { %v432_v27 = vpop.f32.mrf.mxu2 }
  0xce   : > { %v531_v28 = vpop.f32.mrf.mxu3 }
  0xcf   : > { %v553_v30 = vadd.f32 %v531_v28, %v451_v25 }
  0xd0   : > { %v340_v32 = vpop.f32.mrf.mxu1 }
  0xd1   : > { %v341_v33 = vadd.f32 %v340_v32, %v1825_v38  ;;  %v1872_v35 = vadd.f32 %v633_v26, %v553_v30 }
  0xd3   : > { %v452_v37 = vadd.f32 %v432_v27, %v341_v33  ;;  %v636_v39 = vpop.f32.mrf.mxu0 }
  0xd4   : > { %v435_v40 = vpop.f32.mrf.mxu2 }
  0xd6   : > { %v534_v41 = vpop.f32.mrf.mxu3 }
  0xd7   : > { %v554_v42 = vadd.f32 %v534_v41, %v452_v37 }
  0xd8   : > { %v343_v44 = vpop.f32.mrf.mxu1 }
  0xd9   : > { %v344_v31 = vadd.f32 %v343_v44, %v1818_v34  ;;  %v1875_v45 = vadd.f32 %v636_v39, %v554_v42 }
  0xdb   : > { %v453_v46 = vadd.f32 %v435_v40, %v344_v31  ;;  %v639_v47 = vpop.f32.mrf.mxu0 }
  0xdc   : > { %v438_v48 = vpop.f32.mrf.mxu2 }
  0xde   : > { %v537_v49 = vpop.f32.mrf.mxu3 }
  0xdf   : > { %v555_v50 = vadd.f32 %v537_v49, %v453_v46 }
  0xe0   : > { %v346_v51 = vpop.f32.mrf.mxu1 }
  0xe1   : > { %v347_v38 = vadd.f32 %v346_v51, %v1808_v29  ;;  %v1878_v52 = vadd.f32 %v639_v47, %v555_v50 }
  0xe3   : > { %v454_v53 = vadd.f32 %v438_v48, %v347_v38  ;;  %v642_v54 = vpop.f32.mrf.mxu0 }
  0xe4   : > { %v441_v55 = vpop.f32.mrf.mxu2 }
  0xe6   : > { %v540_v56 = vpop.f32.mrf.mxu3 }
  0xe7   : > { %v556_v57 = vadd.f32 %v540_v56, %v454_v53 }
  0xe8   : > { %v349_v59 = vpop.f32.mrf.mxu1 }
  0xe9   : > { %v350_v34 = vadd.f32 %v349_v59, %v1821_v36  ;;  %v1881_v60 = vadd.f32 %v642_v54, %v556_v57 }
  0xeb   : > { %v455_v61 = vadd.f32 %v441_v55, %v350_v34  ;;  %v645_v62 = vpop.f32.mrf.mxu0 }
  0xec   : > { %v444_v63 = vpop.f32.mrf.mxu2 }
  0xee   : > { %v543_v0 = vpop.f32.mrf.mxu3 }
  0xef   : > { %v557_v1 = vadd.f32 %v543_v0, %v455_v61 }
  0xf0   : > { %v352_v2 = vpop.f32.mrf.mxu1 }
  0xf1   : > { %v353_v29 = vadd.f32 %v352_v2, %v1832_v43  ;;  %v1884_v3 = vadd.f32 %v645_v62, %v557_v1  ;;  %v1892_v43 = vld [vmem:[%s2016_s2] ss:$0 sm:$0xff] }
  0xf3   : > { %v456_v4 = vadd.f32 %v444_v63, %v353_v29  ;;  %v648_v6 = vpop.f32.mrf.mxu0 }
  0xf4   : > { %v825_v7 = vpop.f32.mrf.mxu2 }
  0xf6   : > { %v546_v8 = vpop.f32.mrf.mxu3 }
  0xf7   : > { %v558_v9 = vadd.f32 %v546_v8, %v456_v4 }
  0xf8   : > { %v723_v10 = vpop.f32.mrf.mxu1 }
  0xf9   : > { %v1886_v11 = vadd.f32 %v648_v6, %v558_v9  ;;  %v753_v36 = vadd.f32 %v723_v10, %v1844_v58 }
  0xfb   : > { %v1029_v12 = vpop.f32.mrf.mxu0  ;;  %v855_v14 = vadd.f32 %v825_v7, %v753_v36 }
  0xfc   : > { %v828_v13 = vpop.f32.mrf.mxu2 }
  0xfe   : > { %v927_v16 = vpop.f32.mrf.mxu3 }
  0xff   : > { %v957_v17 = vadd.f32 %v927_v16, %v855_v14 }
 0x100   : > { %v726_v18 = vpop.f32.mrf.mxu1 }
 0x101   : > { %v754_v19 = vadd.f32 %v726_v18, %v1853_v5  ;;  %v1059_v20 = vadd.f32 %v1029_v12, %v957_v17 }
 0x103   : > { %v1073_v21 = vadd.f32 %v1892_v43, %v1059_v20  ;;  %v1032_v22 = vpop.f32.mrf.mxu0  ;;  %v856_v58 = vadd.f32 %v828_v13, %v754_v19 }
 0x104   : > { %v831_v23 = vpop.f32.mrf.mxu2 }
 0x105   : > { %v1093_v25 = vmul.f32 0.2, %v1073_v21  ;;  %vm1083_vm1 = vcmp.ge.f32.partialorder %v1073_v21, 0.0 }
 0x106   : > { %v930_v26 = vpop.f32.mrf.mxu3 }
 0x107   : > { %v958_v27 = vadd.f32 %v930_v26, %v856_v58  ;;  %v1896_v28 = vsel %vm1083_vm1, %v1073_v21, %v1093_v25 }
 0x108   : > { %v729_v30 = vpop.f32.mrf.mxu1  ;;  %v1113_v32 = vmul.f32 %v1896_v28, %v1896_v28 }
 0x109   : > { %v755_v33 = vadd.f32 %v729_v30, %v1862_v15  ;;  %v1060_v37 = vadd.f32 %v1032_v22, %v958_v27 }
 0x10a   : > { %v1123_v5 = vsel %vm200_vm0, %v1113_v32, 0.0 }
 0x10b   : > { %v1074_v39 = vadd.f32 %v1892_v43, %v1060_v37  ;;  %1124 = vadd.xlane.f32.xlu0 %v1123_v5  ;;  %v1035_v40 = vpop.f32.mrf.mxu0  ;;  %v857_v44 = vadd.f32 %v831_v23, %v755_v33 }
 0x10c   : > { %v834_v41 = vpop.f32.mrf.mxu2 }
 0x10d   : > { %v1094_v42 = vmul.f32 0.2, %v1074_v39  ;;  %vm1084_vm2 = vcmp.ge.f32.partialorder %v1074_v39, 0.0 }
 0x10e   : > { %v933_v31 = vpop.f32.mrf.mxu3 }
 0x10f   : > { %v959_v46 = vadd.f32 %v933_v31, %v857_v44  ;;  %v1903_v47 = vsel %vm1084_vm2, %v1074_v39, %v1094_v42 }
 0x110   : > { %v732_v48 = vpop.f32.mrf.mxu1  ;;  %v1114_v49 = vmul.f32 %v1903_v47, %v1903_v47 }
 0x111   : > { %v756_v15 = vadd.f32 %v732_v48, %v1869_v24  ;;  %v1061_v50 = vadd.f32 %v1035_v40, %v959_v46 }
 0x112   : > { %v1126_v51 = vsel %vm200_vm0, %v1114_v49, 0.0 }
 0x113   : > { %v1075_v38 = vadd.f32 %v1892_v43, %v1061_v50  ;;  %1127 = vadd.xlane.f32.xlu0 %v1126_v51  ;;  %v1038_v53 = vpop.f32.mrf.mxu0  ;;  %v858_v56 = vadd.f32 %v834_v41, %v756_v15 }
 0x114   : > { %v837_v54 = vpop.f32.mrf.mxu2 }
 0x115   : > { %v1095_v55 = vmul.f32 0.2, %v1075_v38  ;;  %vm1085_vm3 = vcmp.ge.f32.partialorder %v1075_v38, 0.0 }
 0x116   : > { %v936_v57 = vpop.f32.mrf.mxu3 }
 0x117   : > { %v960_v59 = vadd.f32 %v936_v57, %v858_v56  ;;  %v1910_v34 = vsel %vm1085_vm3, %v1075_v38, %v1095_v55 }
 0x118   : > { %v735_v61 = vpop.f32.mrf.mxu1  ;;  %v1115_v62 = vmul.f32 %v1910_v34, %v1910_v34 }
 0x119   : > { %v757_v24 = vadd.f32 %v735_v61, %v1872_v35  ;;  %v1062_v63 = vadd.f32 %v1038_v53, %v960_v59 }
 0x11a   : > { %v1129_v0 = vsel %vm200_vm0, %v1115_v62, 0.0 }
 0x11b   : > { %v1076_v1 = vadd.f32 %v1892_v43, %v1062_v63  ;;  %1130 = vadd.xlane.f32.xlu1 %v1129_v0  ;;  %v1041_v2 = vpop.f32.mrf.mxu0  ;;  %v859_v6 = vadd.f32 %v837_v54, %v757_v24 }
 0x11c   : > { %v840_v29 = vpop.f32.mrf.mxu2 }
 0x11d   : > { %v1096_v4 = vmul.f32 0.2, %v1076_v1  ;;  %vm1086_vm4 = vcmp.ge.f32.partialorder %v1076_v1, 0.0 }
 0x11e   : > { %v939_v7 = vpop.f32.mrf.mxu3 }
 0x11f   : > { %v961_v8 = vadd.f32 %v939_v7, %v859_v6  ;;  %v1917_v9 = vsel %vm1086_vm4, %v1076_v1, %v1096_v4 }
 0x120   : > { %v738_v10 = vpop.f32.mrf.mxu1  ;;  %v1116_v36 = vmul.f32 %v1917_v9, %v1917_v9 }
 0x121   : > { %v758_v35 = vadd.f32 %v738_v10, %v1875_v45  ;;  %v1063_v12 = vadd.f32 %v1041_v2, %v961_v8 }
 0x122   : > { %v1132_v13 = vsel %vm200_vm0, %v1116_v36, 0.0 }
 0x123   : > { %v1077_v14 = vadd.f32 %v1892_v43, %v1063_v12  ;;  %1133 = vadd.xlane.f32.xlu1 %v1132_v13  ;;  %v1044_v16 = vpop.f32.mrf.mxu0  ;;  %v860_v19 = vadd.f32 %v840_v29, %v758_v35 }
 0x124   : > { %v843_v17 = vpop.f32.mrf.mxu2 }
 0x125   : > { %v1097_v18 = vmul.f32 0.2, %v1077_v14  ;;  %vm1087_vm5 = vcmp.ge.f32.partialorder %v1077_v14, 0.0 }
 0x126   : > { %v942_v20 = vpop.f32.mrf.mxu3 }
 0x127   : > { %v962_v21 = vadd.f32 %v942_v20, %v860_v19  ;;  %v1924_v22 = vsel %vm1087_vm5, %v1077_v14, %v1097_v18 }
 0x128   : > { %v741_v23 = vpop.f32.mrf.mxu1  ;;  %v1117_v25 = vmul.f32 %v1924_v22, %v1924_v22 }
 0x129   : > { %v759_v45 = vadd.f32 %v741_v23, %v1878_v52  ;;  %v1064_v58 = vadd.f32 %v1044_v16, %v962_v21 }
 0x12a   : > { %v1135_v26 = vsel %vm200_vm0, %v1117_v25, 0.0  ;;  %v1540_v25 = vmov 32.0  }
 0x12b   : > { %v1078_v27 = vadd.f32 %v1892_v43, %v1064_v58  ;;  %1136 = vadd.xlane.f32.xlu2 %v1135_v26  ;;  %v1047_v30 = vpop.f32.mrf.mxu0  ;;  %v861_v33 = vadd.f32 %v843_v17, %v759_v45  ;;  %1510 = vrcp.f32 %v1540_v25 }
 0x12c   : > { %v846_v5 = vpop.f32.mrf.mxu2 }
 0x12d   : > { %v1098_v32 = vmul.f32 0.2, %v1078_v27  ;;  %vm1088_vm6 = vcmp.ge.f32.partialorder %v1078_v27, 0.0 }
 0x12e   : > { %v945_v37 = vpop.f32.mrf.mxu3 }
 0x12f   : > { %v963_v39 = vadd.f32 %v945_v37, %v861_v33  ;;  %v1931_v40 = vsel %vm1088_vm6, %v1078_v27, %v1098_v32 }
 0x130   : > { %v744_v41 = vpop.f32.mrf.mxu1  ;;  %v1118_v42 = vmul.f32 %v1931_v40, %v1931_v40 }
 0x131   : > { %v760_v52 = vadd.f32 %v744_v41, %v1881_v60  ;;  %v1065_v44 = vadd.f32 %v1047_v30, %v963_v39  ;;  %v1511_v45 = vpop.eup %1510 }
 0x132   : > { %v1138_v31 = vsel %vm200_vm0, %v1118_v42, 0.0  ;;  %v1154_v58 = vmul.f32 32.0, %v1511_v45  ;;  %vm1158_vm11 = vweird.f32 %v1511_v45 }
 0x133   : > { %v1079_v46 = vadd.f32 %v1892_v43, %v1065_v44  ;;  %1139 = vadd.xlane.f32.xlu2 %v1138_v31  ;;  %v1050_v48 = vpop.f32.mrf.mxu0  ;;  %v862_v15 = vadd.f32 %v846_v5, %v760_v52 }
 0x134   : > { %v849_v54 = vpop.f32.mrf.mxu2  ;;  %v1155_v26 = vsub.f32 1.0, %v1154_v58 }
 0x135   : > { %v1099_v49 = vmul.f32 0.2, %v1079_v46  ;;  %vm1089_vm7 = vcmp.ge.f32.partialorder %v1079_v46, 0.0 }
 0x136   : > { %v948_v50 = vpop.f32.mrf.mxu3  ;;  %v1156_v27 = vmul.f32 %v1511_v45, %v1155_v26 }
 0x137   : > { %v964_v51 = vadd.f32 %v948_v50, %v862_v15  ;;  %v1938_v38 = vsel %vm1089_vm7, %v1079_v46, %v1099_v49 }
 0x138   : > { %v747_v53 = vpop.f32.mrf.mxu1  ;;  %v1119_v55 = vmul.f32 %v1938_v38, %v1938_v38  ;;  %v1157_v30 = vadd.f32 %v1511_v45, %v1156_v27 }
 0x139   : > { %v761_v60 = vadd.f32 %v747_v53, %v1884_v3  ;;  %v1066_v56 = vadd.f32 %v1050_v48, %v964_v51 }
 0x13a   : > { %v1141_v57 = vsel %vm200_vm0, %v1119_v55, 0.0 }
 0x13b   : > { %v1080_v59 = vadd.f32 %v1892_v43, %v1066_v56  ;;  %1142 = vadd.xlane.f32.xlu0 %v1141_v57  ;;  %v1053_v61 = vpop.f32.mrf.mxu0  ;;  %v863_v24 = vadd.f32 %v849_v54, %v761_v60 }
 0x13c   : > { %v852_v6 = vpop.f32.mrf.mxu2 }
 0x13d   : > { %v1100_v62 = vmul.f32 0.2, %v1080_v59  ;;  %vm1090_vm8 = vcmp.ge.f32.partialorder %v1080_v59, 0.0 }
 0x13e   : > { %v951_v63 = vpop.f32.mrf.mxu3 }
 0x13f   : > { %v965_v0 = vadd.f32 %v951_v63, %v863_v24  ;;  %v1945_v1 = vsel %vm1090_vm8, %v1080_v59, %v1100_v62 }
 0x140   : > { %v750_v2 = vpop.f32.mrf.mxu1  ;;  %v1120_v29 = vmul.f32 %v1945_v1, %v1945_v1 }
 0x141   : > { %v762_v3 = vadd.f32 %v750_v2, %v1886_v11  ;;  %v1067_v4 = vadd.f32 %v1053_v61, %v965_v0 }
 0x142   : > { %v1144_v7 = vsel %vm200_vm0, %v1120_v29, 0.0 }
 0x143   : > { %v1081_v8 = vadd.f32 %v1892_v43, %v1067_v4  ;;  %1145 = vadd.xlane.f32.xlu1 %v1144_v7  ;;  %v864_v36 = vadd.f32 %v852_v6, %v762_v3  ;;  %v1056_v12 = vpop.f32.mrf.mxu0 }
 0x145   : > { %v1101_v10 = vmul.f32 0.2, %v1081_v8  ;;  %vm1091_vm9 = vcmp.ge.f32.partialorder %v1081_v8, 0.0 }
 0x146   : > { %v954_v35 = vpop.f32.mrf.mxu3 }
 0x147   : > { %v966_v13 = vadd.f32 %v954_v35, %v864_v36  ;;  %v1952_v14 = vsel %vm1091_vm9, %v1081_v8, %v1101_v10 }
 0x148   : > { %v1121_v16 = vmul.f32 %v1952_v14, %v1952_v14 }
 0x149   : > { %v1068_v17 = vadd.f32 %v1056_v12, %v966_v13 }
 0x14a   : > { %v1147_v11 = vsel %vm200_vm0, %v1121_v16, 0.0 }
 0x14b   : > { %v1082_v18 = vadd.f32 %v1892_v43, %v1068_v17  ;;  %1148 = vadd.xlane.f32.xlu2 %v1147_v11  ;;  %v1963_v43 = vsel %vm1158_vm11, %v1511_v45, %v1157_v30 }
 0x14d   : > { %v1102_v19 = vmul.f32 0.2, %v1082_v18  ;;  %vm1092_vm10 = vcmp.ge.f32.partialorder %v1082_v18, 0.0 }
 0x14f   : > { %v1958_v20 = vsel %vm1092_vm10, %v1082_v18, %v1102_v19 }
 0x150   : > { %v1122_v21 = vmul.f32 %v1958_v20, %v1958_v20 }
 0x152   : > { %v1150_v23 = vsel %vm200_vm0, %v1122_v21, 0.0 }
 0x153   : > { %1151 = vadd.xlane.f32.xlu0 %v1150_v23 }
 0x17e   : > { %v1125_v32 = vpop.xlane.xlu0 %1124 }
 0x17f   : > { %v1160_v33 = vmul.f32 %v1963_v43, %v1125_v32 }
 0x181   : > { %v1170_v37 = vadd.f32 1e-08, %v1160_v33 }
 0x183   : > { %1512 = vrsqrt.f32 %v1170_v37  ;;  %vm1186_vm13 = vweird.f32 %v1170_v37 }
 0x186   : > { %v1128_v5 = vpop.xlane.xlu0 %1127 }
 0x187   : > { %v1161_v39 = vmul.f32 %v1963_v43, %v1128_v5 }
 0x189   : > { %v1513_v41 = vpop.eup %1512  ;;  %v1171_v42 = vadd.f32 1e-08, %v1161_v39 }
 0x18a   : > { %v1181_v52 = vmul.f32 %v1513_v41, %v1170_v37  ;;  %vm1187_vm12 = vweird.f32 %v1513_v41 }
 0x18b   : > { %1514 = vrsqrt.f32 %v1171_v42  ;;  %vm1188_vm14 = vmor %vm1186_vm13, %vm1187_vm12  ;;  %vm1196_vm1 = vweird.f32 %v1171_v42 }
 0x18c   : > { %v1182_v44 = vmul.f32 %v1513_v41, %v1181_v52 }
 0x18e   : > { %v1183_v31 = vmul.f32 0.5, %v1182_v44  ;;  %v1131_v46 = vpop.xlane.xlu1 %1130 }
 0x18f   : > { %v1162_v48 = vmul.f32 %v1963_v43, %v1131_v46 }
 0x190   : > { %v1184_v49 = vsub.f32 1.5, %v1183_v31 }
 0x191   : > { %v1515_v15 = vpop.eup %1514  ;;  %v1172_v50 = vadd.f32 1e-08, %v1162_v48 }
 0x192   : > { %v1185_v51 = vmul.f32 %v1513_v41, %v1184_v49  ;;  %v1191_v53 = vmul.f32 %v1515_v15, %v1171_v42  ;;  %vm1197_vm15 = vweird.f32 %v1515_v15 }
 0x193   : > { %1516 = vrsqrt.f32 %v1172_v50  ;;  %vm1198_vm2 = vmor %vm1196_vm1, %vm1197_vm15  ;;  %vm1206_vm4 = vweird.f32 %v1172_v50 }
 0x194   : > { %v1189_v54 = vsel %vm1188_vm14, %v1513_v41, %v1185_v51  ;;  %v1192_v55 = vmul.f32 %v1515_v15, %v1191_v53 }
 0x195   : > { %v1280_v60 = vmul.f32 %v1189_v54, %v1896_v28 }
 0x196   : > { %v1193_v56 = vmul.f32 0.5, %v1192_v55  ;;  %v1134_v57 = vpop.xlane.xlu1 %1133 }
 0x197   : > { %1290 = vst.msk [vmem:[%s1972_s21] sm:$0xff] %vm200_vm0, %v1280_v60  ;;  %v1163_v59 = vmul.f32 %v1963_v43, %v1134_v57 }
 0x198   : > { %v1194_v61 = vsub.f32 1.5, %v1193_v56 }
 0x199   : > { %v1517_v62 = vpop.eup %1516  ;;  %v1173_v24 = vadd.f32 1e-08, %v1163_v59 }
 0x19a   : > { %v1195_v63 = vmul.f32 %v1515_v15, %v1194_v61  ;;  %v1201_v0 = vmul.f32 %v1517_v62, %v1172_v50  ;;  %vm1207_vm3 = vweird.f32 %v1517_v62 }
 0x19b   : > { %1518 = vrsqrt.f32 %v1173_v24  ;;  %vm1208_vm5 = vmor %vm1206_vm4, %vm1207_vm3  ;;  %vm1216_vm7 = vweird.f32 %v1173_v24 }
 0x19c   : > { %v1199_v2 = vsel %vm1198_vm2, %v1515_v15, %v1195_v63  ;;  %v1202_v29 = vmul.f32 %v1517_v62, %v1201_v0 }
 0x19d   : > { %v1281_v28 = vmul.f32 %v1199_v2, %v1903_v47 }
 0x19e   : > { %v1203_v3 = vmul.f32 0.5, %v1202_v29  ;;  %v1137_v4 = vpop.xlane.xlu2 %1136 }
 0x19f   : > { %1291 = vst.msk [vmem:[%s1972_s21 + $0x8] sm:$0xff] %vm200_vm0, %v1281_v28  ;;  %v1164_v6 = vmul.f32 %v1963_v43, %v1137_v4 }
 0x1a0   : > { %v1204_v7 = vsub.f32 1.5, %v1203_v3 }
 0x1a1   : > { %v1519_v8 = vpop.eup %1518  ;;  %v1174_v10 = vadd.f32 1e-08, %v1164_v6 }
 0x1a2   : > { %v1205_v36 = vmul.f32 %v1517_v62, %v1204_v7  ;;  %v1211_v35 = vmul.f32 %v1519_v8, %v1173_v24  ;;  %vm1217_vm6 = vweird.f32 %v1519_v8 }
 0x1a3   : > { %1520 = vrsqrt.f32 %v1174_v10  ;;  %vm1218_vm8 = vmor %vm1216_vm7, %vm1217_vm6  ;;  %vm1226_vm10 = vweird.f32 %v1174_v10 }
 0x1a4   : > { %v1209_v12 = vsel %vm1208_vm5, %v1517_v62, %v1205_v36  ;;  %v1212_v13 = vmul.f32 %v1519_v8, %v1211_v35 }
 0x1a5   : > { %v1282_v47 = vmul.f32 %v1209_v12, %v1910_v34 }
 0x1a6   : > { %v1213_v16 = vmul.f32 0.5, %v1212_v13  ;;  %v1140_v17 = vpop.xlane.xlu2 %1139 }
 0x1a7   : > { %1292 = vst.msk [vmem:[%s1972_s21 + $0x10] sm:$0xff] %vm200_vm0, %v1282_v47  ;;  %v1165_v11 = vmul.f32 %v1963_v43, %v1140_v17 }
 0x1a8   : > { %v1214_v18 = vsub.f32 1.5, %v1213_v16 }
 0x1a9   : > { %v1521_v19 = vpop.eup %1520  ;;  %v1175_v21 = vadd.f32 1e-08, %v1165_v11 }
 0x1aa   : > { %v1215_v23 = vmul.f32 %v1519_v8, %v1214_v18  ;;  %v1221_v25 = vmul.f32 %v1521_v19, %v1174_v10  ;;  %vm1227_vm9 = vweird.f32 %v1521_v19 }
 0x1ab   : > { %1522 = vrsqrt.f32 %v1175_v21  ;;  %vm1228_vm11 = vmor %vm1226_vm10, %vm1227_vm9  ;;  %vm1236_vm13 = vweird.f32 %v1175_v21 }
 0x1ac   : > { %v1219_v45 = vsel %vm1218_vm8, %v1519_v8, %v1215_v23  ;;  %v1222_v58 = vmul.f32 %v1521_v19, %v1221_v25 }
 0x1ad   : > { %v1283_v34 = vmul.f32 %v1219_v45, %v1917_v9 }
 0x1ae   : > { %v1223_v26 = vmul.f32 0.5, %v1222_v58  ;;  %v1143_v27 = vpop.xlane.xlu0 %1142 }
 0x1af   : > { %1293 = vst.msk [vmem:[%s1972_s21 + $0x18] sm:$0xff] %vm200_vm0, %v1283_v34  ;;  %v1166_v30 = vmul.f32 %v1963_v43, %v1143_v27 }
 0x1b0   : > { %v1224_v32 = vsub.f32 1.5, %v1223_v26 }
 0x1b1   : > { %v1523_v33 = vpop.eup %1522  ;;  %v1176_v37 = vadd.f32 1e-08, %v1166_v30 }
 0x1b2   : > { %v1225_v5 = vmul.f32 %v1521_v19, %v1224_v32  ;;  %v1231_v39 = vmul.f32 %v1523_v33, %v1175_v21  ;;  %vm1237_vm12 = vweird.f32 %v1523_v33 }
 0x1b3   : > { %1524 = vrsqrt.f32 %v1176_v37  ;;  %vm1238_vm14 = vmor %vm1236_vm13, %vm1237_vm12  ;;  %vm1246_vm1 = vweird.f32 %v1176_v37 }
 0x1b4   : > { %v1229_v41 = vsel %vm1228_vm11, %v1521_v19, %v1225_v5  ;;  %v1232_v42 = vmul.f32 %v1523_v33, %v1231_v39 }
 0x1b5   : > { %v1284_v9 = vmul.f32 %v1229_v41, %v1924_v22 }
 0x1b6   : > { %v1233_v52 = vmul.f32 0.5, %v1232_v42  ;;  %v1146_v44 = vpop.xlane.xlu1 %1145 }
 0x1b7   : > { %1294 = vst.msk [vmem:[%s1972_s21 + $0x20] sm:$0xff] %vm200_vm0, %v1284_v9  ;;  %v1167_v31 = vmul.f32 %v1963_v43, %v1146_v44 }
 0x1b8   : > { %v1234_v46 = vsub.f32 1.5, %v1233_v52 }
 0x1b9   : > { %v1525_v48 = vpop.eup %1524  ;;  %v1177_v49 = vadd.f32 1e-08, %v1167_v31 }
 0x1ba   : > { %v1235_v15 = vmul.f32 %v1523_v33, %v1234_v46  ;;  %v1241_v50 = vmul.f32 %v1525_v48, %v1176_v37  ;;  %vm1247_vm15 = vweird.f32 %v1525_v48 }
 0x1bb   : > { %1526 = vrsqrt.f32 %v1177_v49  ;;  %vm1248_vm2 = vmor %vm1246_vm1, %vm1247_vm15  ;;  %vm1256_vm4 = vweird.f32 %v1177_v49 }
 0x1bc   : > { %v1239_v51 = vsel %vm1238_vm14, %v1523_v33, %v1235_v15  ;;  %v1242_v53 = vmul.f32 %v1525_v48, %v1241_v50 }
 0x1bd   : > { %v1285_v22 = vmul.f32 %v1239_v51, %v1931_v40 }
 0x1be   : > { %v1243_v54 = vmul.f32 0.5, %v1242_v53  ;;  %v1149_v55 = vpop.xlane.xlu2 %1148 }
 0x1bf   : > { %1295 = vst.msk [vmem:[%s1972_s21 + $0x28] sm:$0xff] %vm200_vm0, %v1285_v22  ;;  %v1168_v60 = vmul.f32 %v1963_v43, %v1149_v55 }
 0x1c0   : > { %v1244_v56 = vsub.f32 1.5, %v1243_v54 }
 0x1c1   : > { %v1527_v57 = vpop.eup %1526  ;;  %v1178_v59 = vadd.f32 1e-08, %v1168_v60 }
 0x1c2   : > { %v1245_v61 = vmul.f32 %v1525_v48, %v1244_v56  ;;  %v1251_v62 = vmul.f32 %v1527_v57, %v1177_v49  ;;  %vm1257_vm3 = vweird.f32 %v1527_v57 }
 0x1c3   : > { %1528 = vrsqrt.f32 %v1178_v59  ;;  %vm1258_vm5 = vmor %vm1256_vm4, %vm1257_vm3  ;;  %vm1266_vm7 = vweird.f32 %v1178_v59 }
 0x1c4   : > { %v1249_v24 = vsel %vm1248_vm2, %v1525_v48, %v1245_v61  ;;  %v1252_v63 = vmul.f32 %v1527_v57, %v1251_v62 }
 0x1c5   : > { %v1286_v40 = vmul.f32 %v1249_v24, %v1938_v38 }
 0x1c6   : > { %v1253_v0 = vmul.f32 0.5, %v1252_v63  ;;  %v1152_v2 = vpop.xlane.xlu0 %1151 }
 0x1c7   : > { %1296 = vst.msk [vmem:[%s1972_s21 + $0x30] sm:$0xff] %vm200_vm0, %v1286_v40  ;;  %v1169_v29 = vmul.f32 %v1963_v43, %v1152_v2 }
 0x1c8   : > { %v1254_v28 = vsub.f32 1.5, %v1253_v0 }
 0x1c9   : > { %v1529_v3 = vpop.eup %1528  ;;  %v1179_v4 = vadd.f32 1e-08, %v1169_v29 }
 0x1ca   : > { %v1255_v6 = vmul.f32 %v1527_v57, %v1254_v28  ;;  %v1261_v7 = vmul.f32 %v1529_v3, %v1178_v59  ;;  %vm1267_vm6 = vweird.f32 %v1529_v3 }
 0x1cb   : > { %1530 = vrsqrt.f32 %v1179_v4  ;;  %vm1268_vm8 = vmor %vm1266_vm7, %vm1267_vm6  ;;  %vm1276_vm10 = vweird.f32 %v1179_v4 }
 0x1cc   : > { %v1259_v8 = vsel %vm1258_vm5, %v1527_v57, %v1255_v6  ;;  %v1262_v10 = vmul.f32 %v1529_v3, %v1261_v7 }
 0x1cd   : > { %v1287_v38 = vmul.f32 %v1259_v8, %v1945_v1 }
 0x1ce   : > { %v1263_v36 = vmul.f32 0.5, %v1262_v10 }
 0x1cf   : > { %1297 = vst.msk [vmem:[%s1972_s21 + $0x38] sm:$0xff] %vm200_vm0, %v1287_v38 }
 0x1d0   : > { %v1264_v35 = vsub.f32 1.5, %v1263_v36 }
 0x1d1   : > { %v1531_v43 = vpop.eup %1530 }
 0x1d2   : > { %v1265_v12 = vmul.f32 %v1529_v3, %v1264_v35  ;;  %v1271_v13 = vmul.f32 %v1531_v43, %v1179_v4  ;;  %vm1277_vm9 = vweird.f32 %v1531_v43 }
 0x1d3   : > { %vm1278_vm11 = vmor %vm1276_vm10, %vm1277_vm9 }
 0x1d4   : > { %v1269_v47 = vsel %vm1268_vm8, %v1529_v3, %v1265_v12  ;;  %v1272_v16 = vmul.f32 %v1531_v43, %v1271_v13 }
 0x1d5   : > { %v1288_v17 = vmul.f32 %v1269_v47, %v1952_v14 }
 0x1d6   : > { %v1273_v11 = vmul.f32 0.5, %v1272_v16 }
 0x1d7   : > { %1298 = vst.msk [vmem:[%s1972_s21 + $0x40] sm:$0xff] %vm200_vm0, %v1288_v17 }
 0x1d8   : > { %v1274_v18 = vsub.f32 1.5, %v1273_v11 }
 0x1da   : > { %v1275_v1 = vmul.f32 %v1531_v43, %v1274_v18 }
 0x1dc   : > { %v1279_v19 = vsel %vm1278_vm11, %v1531_v43, %v1275_v1 }
 0x1dd   : > { %v1289_v21 = vmul.f32 %v1279_v19, %v1958_v20 }
 0x1df   : > { %1299 = vst.msk [vmem:[%s1972_s21 + $0x48] sm:$0xff] %vm200_vm0, %v1289_v21 }
 0x1e0 PF: > { %s13_s12 = sadd.s32 1, %s1538_s12  }
 0x1e1   : > { %p10_p4 = scmp.ge.s32.totalorder %s13_s12, 4  }
 0x1e3   :  { %12 = sbr.rel (!%p10_p4) target bundleno = 1 (0x1), region = 70 }

// kernel: generator_forward.12
= control target key start
LH: loop header
LB: loop body
LE: loop exit
PB: predicated region body
PF: predicated region fallthrough
CT: control target
= control target key end

     0   :  { %s387_s12 = smov 0   ;;  %s442_s0 = inlined_call_operand.vmem [shape: f32[2,64,32], index: 0, kind: input, shape index: {}]   ;;  %s443_s1 = inlined_call_operand.vmem [shape: f32[32,3], index: 1, kind: input, shape index: {}]   ;;  %s444_s2 = inlined_call_operand.vmem [shape: f32[1,3], index: 2, kind: input, shape index: {}]   ;;  %s445_s3 = inlined_call_operand.vmem [shape: f32[2,64,3], index: 3, kind: output, shape index: {}]  }
   0x1 LB: > { %s317_s13 = sadd.s32 4294967295, %s365_s12   ;;  %p321_p0 = scmp.ge.s32.totalorder %s365_s12, 1  ;;  %s365_s12 = sphi %s387_s12, %s13_s12  }
   0x2   : > { %p137_p1 = scmp.lt.s32.totalorder %s365_s12, 3 }
   0x4   : > { %p138_p2 = pnand %p321_p0, %p137_p1 }
   0x5   : > { %p161_p3 = scmp.lt.s32.totalorder (!%p138_p2), %s317_s13, 1 }
   0x6   : > { %141 = sbr.rel (%p138_p2) target bundleno = 163 (0xa3), region = 32 }
   0xb   : > { %v182_v0 = vld [vmem:[%s443_s1 + $0x18] sm:$0xff]  ;;  %v181_v1 = vld [vmem:[%s443_s1 + $0x10] sm:$0xff]  ;;  %v180_v2 = vld [vmem:[%s443_s1 + $0x8] sm:$0xff]  ;;  %s447_s13 = smov (!%p161_p3, %s317_s13), 1  ;;  %vm187_vm0 = vcmask 261120   ;;  %vm253_vm1 = vcmask 23552  }
   0xc   : > { %339 = vmatpush.msra.mxu2 %v182_v0  ;;  %340 = vmatpush.msra.mxu3 %v182_v0  ;;  %v179_v3 = vld [vmem:[%s443_s1] sm:$0xff]  ;;  %s336_s22 = sshll.u32 %s447_s13, 6 }
   0xd   : > { %224 = vmatpush.msra.mxu0 %v182_v0  ;;  %338 = vmatpush.msra.mxu1 %v182_v0  ;;  %s165_s25 = scalar_lea.vmem %s442_s0, %s336_s22  ;;  %v358_v12 = vld [vmem:[%s444_s2] ss:$0 sm:$0xff]  ;;  %s170_s30 = scalar_lea.vmem %s445_s3, %s336_s22 }
   0xe   : > { %342 = vmatpush.msra.mxu2 %v181_v1  ;;  %343 = vmatpush.msra.mxu3 %v181_v1  ;;  %v175_v4 = vld [vmem:[%s165_s25 + $0x20] sm:$0xff]  ;;  %v177_v5 = vld [vmem:[%s165_s25 + $0x30] sm:$0xff]  ;;  %v176_v8 = vld [vmem:[%s165_s25 + $0x28] sm:$0xff] }
   0xf   : > { %225 = vmatpush.msra.mxu0 %v181_v1  ;;  %341 = vmatpush.msra.mxu1 %v181_v1  ;;  %v171_v6 = vld [vmem:[%s165_s25] sm:$0xff]  ;;  %v173_v7 = vld [vmem:[%s165_s25 + $0x10] sm:$0xff]  ;;  %v178_v9 = vld [vmem:[%s165_s25 + $0x38] sm:$0xff] }
  0x10   : > { %345 = vmatpush.msra.mxu2 %v180_v2  ;;  %346 = vmatpush.msra.mxu3 %v180_v2  ;;  %v172_v10 = vld [vmem:[%s165_s25 + $0x8] sm:$0xff]  ;;  %v174_v11 = vld [vmem:[%s165_s25 + $0x18] sm:$0xff] }
  0x11   : > { %226 = vmatpush.msra.mxu0 %v180_v2  ;;  %344 = vmatpush.msra.mxu1 %v180_v2 }
  0x12   : > { %348 = vmatpush.msra.mxu2 %v179_v3  ;;  %349 = vmatpush.msra.mxu3 %v179_v3 }
  0x13   : > { %330 = vmatmul.msk.f32.vlgmr.msra.gmra.mxu2 %vm187_vm0, %v175_v4  ;;  %332 = vmatmul.msk.f32.vlgmr.msra.gmra.mxu3 %vm187_vm0, %v177_v5 }
  0x14   : > { %227 = vmatpush.msra.mxu0 %v179_v3  ;;  %347 = vmatpush.msra.mxu1 %v179_v3 }
  0x15   : > { %326 = vmatmul.msk.f32.vlgmr.msra.gmra.mxu0 %vm187_vm0, %v171_v6  ;;  %328 = vmatmul.msk.f32.vlgmr.msra.gmra.mxu1 %vm187_vm0, %v173_v7 }
  0x1b   : > { %331 = vmatmul.msk.f32.gmra.mxu2 %vm187_vm0, %v176_v8  ;;  %333 = vmatmul.msk.f32.gmra.mxu3 %vm187_vm0, %v178_v9 }
  0x1d   : > { %327 = vmatmul.msk.f32.gmra.mxu0 %vm187_vm0, %v172_v10  ;;  %329 = vmatmul.msk.f32.gmra.mxu1 %vm187_vm0, %v174_v11 }
  0x92   : > { %v229_v13 = vpop.f32.mrf.mxu0  ;;  %v235_v14 = vpop.f32.mrf.mxu1 }
  0x93   : > { %v230_v15 = vadd.f32 %v358_v12, %v229_v13  ;;  %v236_v16 = vadd.f32 %v358_v12, %v235_v14 }
  0x95   : > { %254 = vst.msk [vmem:[%s170_s30] sm:$0xff] %vm253_vm1, %v230_v15 }
  0x96   : > { %256 = vst.msk [vmem:[%s170_s30 + $0x10] sm:$0xff] %vm253_vm1, %v236_v16  ;;  %v241_v17 = vpop.f32.mrf.mxu2  ;;  %v247_v18 = vpop.f32.mrf.mxu3 }
  0x97   : > { %v242_v19 = vadd.f32 %v358_v12, %v241_v17  ;;  %v248_v20 = vadd.f32 %v358_v12, %v247_v18 }
  0x99   : > { %258 = vst.msk [vmem:[%s170_s30 + $0x20] sm:$0xff] %vm253_vm1, %v242_v19 }
  0x9a   : > { %260 = vst.msk [vmem:[%s170_s30 + $0x30] sm:$0xff] %vm253_vm1, %v248_v20  ;;  %v232_v21 = vpop.f32.mrf.mxu0  ;;  %v238_v22 = vpop.f32.mrf.mxu1 }
  0x9b   : > { %v233_v23 = vadd.f32 %v358_v12, %v232_v21  ;;  %v239_v24 = vadd.f32 %v358_v12, %v238_v22 }
  0x9d   : > { %255 = vst.msk [vmem:[%s170_s30 + $0x8] sm:$0xff] %vm253_vm1, %v233_v23 }
  0x9e   : > { %257 = vst.msk [vmem:[%s170_s30 + $0x18] sm:$0xff] %vm253_vm1, %v239_v24  ;;  %v244_v25 = vpop.f32.mrf.mxu2  ;;  %v250_v26 = vpop.f32.mrf.mxu3 }
  0x9f   : > { %v245_v27 = vadd.f32 %v358_v12, %v244_v25  ;;  %v251_v28 = vadd.f32 %v358_v12, %v250_v26 }
  0xa1   : > { %259 = vst.msk [vmem:[%s170_s30 + $0x28] sm:$0xff] %vm253_vm1, %v245_v27 }
  0xa2   : > { %261 = vst.msk [vmem:[%s170_s30 + $0x38] sm:$0xff] %vm253_vm1, %v251_v28 }
  0xa3 PF: > { %s13_s12 = sadd.s32 1, %s365_s12  }
  0xa4   : > { %p10_p4 = scmp.ge.s32.totalorder %s13_s12, 4  }
  0xa6   :  { %12 = sbr.rel (!%p10_p4) target bundleno = 1 (0x1), region = 62 }

// kernel: generator_forward.15
= control target key start
LH: loop header
LB: loop body
LE: loop exit
PB: predicated region body
PF: predicated region fallthrough
CT: control target
= control target key end

     0   :  { %s853_s20 = smov 0   ;;  %s1164_s0 = inlined_call_operand.vmem [shape: f32[2,256,32], index: 0, kind: input, shape index: {}]   ;;  %s1165_s1 = inlined_call_operand.vmem [shape: f32[32,3], index: 1, kind: input, shape index: {}]   ;;  %s1166_s2 = inlined_call_operand.vmem [shape: f32[1,3], index: 2, kind: input, shape index: {}]   ;;  %s1167_s3 = inlined_call_operand.vmem [shape: f32[2,256,3], index: 3, kind: input, shape index: {}]   ;;  %s1168_s4 = inlined_call_operand.<no memory space> [shape: f32[1,1], index: 4, kind: input, shape index: {}]   ;;  %s1169_s5 = inlined_call_operand.vmem [shape: f32[2,256,3], index: 5, kind: output, shape index: {}]  }
   0x1   :  { %v10_v0 = vstv %s1168_s4 }
   0x2   :  { %11 = vst [vmem:[#allocation2] sm:$0x1] %v10_v0 }
   0x3 LB: > { %s739_s21 = sadd.s32 4294967295, %s817_s20   ;;  %p743_p0 = scmp.ge.s32.totalorder %s817_s20, 1  ;;  %s817_s20 = sphi %s853_s20, %s17_s20  }
   0x4   : > { %p199_p1 = scmp.lt.s32.totalorder %s817_s20, 3 }
   0x6   : > { %p200_p2 = pnand %p743_p0, %p199_p1 }
   0x7   : > { %p232_p3 = scmp.lt.s32.totalorder (!%p200_p2), %s739_s21, 1 }
   0x8   : > { %203 = sbr.rel (%p200_p2) target bundleno = 219 (0xdb), region = 40 }
   0xd   : > { %v282_v1 = vld [vmem:[%s1165_s1 + $0x18] sm:$0xff]  ;;  %v281_v2 = vld [vmem:[%s1165_s1 + $0x10] sm:$0xff]  ;;  %v280_v3 = vld [vmem:[%s1165_s1 + $0x8] sm:$0xff]  ;;  %s1171_s21 = smov (!%p232_p3, %s739_s21), 1  ;;  %vm287_vm0 = vcmask 261120   ;;  %v819_v11 = vmov 0  }
   0xe   : > { %396 = vmatpush.msra.mxu0 %v282_v1  ;;  %787 = vmatpush.msra.mxu1 %v282_v1  ;;  %v279_v4 = vld [vmem:[%s1165_s1] sm:$0xff]  ;;  %s873_s29 = sshll.u32 %s1171_s21, 8  ;;  %vm639_vm1 = vcmask 23552  }
   0xf   : > { %788 = vmatpush.msra.mxu2 %v282_v1  ;;  %789 = vmatpush.msra.mxu3 %v282_v1  ;;  %s879_s7 = scalar_lea.vmem %s1164_s0, %s873_s29  ;;  %v809_v9 = vld [vmem:[#allocation2] ss:$0 sm:$0xff]  ;;  %s951_s10 = scalar_lea.vmem %s1167_s3, %s873_s29 }
  0x10   : > { %397 = vmatpush.msra.mxu0 %v281_v2  ;;  %790 = vmatpush.msra.mxu1 %v281_v2  ;;  %v247_v5 = vld [vmem:[%s879_s7] sm:$0xff]  ;;  %v248_v13 = vld [vmem:[%s879_s7 + $0x8] sm:$0xff]  ;;  %v249_v18 = vld [vmem:[%s879_s7 + $0x10] sm:$0xff]  ;;  %s972_s15 = scalar_lea.vmem %s1169_s5, %s873_s29 }
  0x11   : > { %791 = vmatpush.msra.mxu2 %v281_v2  ;;  %792 = vmatpush.msra.mxu3 %v281_v2  ;;  %v255_v6 = vld [vmem:[%s879_s7 + $0x40] sm:$0xff]  ;;  %v256_v14 = vld [vmem:[%s879_s7 + $0x48] sm:$0xff]  ;;  %v257_v19 = vld [vmem:[%s879_s7 + $0x50] sm:$0xff] }
  0x12   : > { %398 = vmatpush.msra.mxu0 %v280_v3  ;;  %793 = vmatpush.msra.mxu1 %v280_v3  ;;  %v263_v7 = vld [vmem:[%s879_s7 + $0x80] sm:$0xff]  ;;  %v264_v15 = vld [vmem:[%s879_s7 + $0x88] sm:$0xff]  ;;  %v265_v20 = vld [vmem:[%s879_s7 + $0x90] sm:$0xff] }
  0x13   : > { %794 = vmatpush.msra.mxu2 %v280_v3  ;;  %795 = vmatpush.msra.mxu3 %v280_v3  ;;  %v271_v8 = vld [vmem:[%s879_s7 + $0xc0] sm:$0xff]  ;;  %v272_v16 = vld [vmem:[%s879_s7 + $0xc8] sm:$0xff]  ;;  %v273_v21 = vld [vmem:[%s879_s7 + $0xd0] sm:$0xff] }
  0x14   : > { %399 = vmatpush.msra.mxu0 %v279_v4  ;;  %796 = vmatpush.msra.mxu1 %v279_v4  ;;  %v497_v10 = vld [vmem:[#allocation2] sm:$0x1]  ;;  %v250_v22 = vld [vmem:[%s879_s7 + $0x18] sm:$0xff]  ;;  %v252_v30 = vld [vmem:[%s879_s7 + $0x28] sm:$0xff] }
  0x15   : > { %797 = vmatpush.msra.mxu2 %v279_v4  ;;  %798 = vmatpush.msra.mxu3 %v279_v4  ;;  %v536_v12 = vsub.f32 1.0, %v497_v10  ;;  %v258_v23 = vld [vmem:[%s879_s7 + $0x58] sm:$0xff]  ;;  %v251_v26 = vld [vmem:[%s879_s7 + $0x20] sm:$0xff]  ;;  %v260_v31 = vld [vmem:[%s879_s7 + $0x68] sm:$0xff] }
  0x16   : > { %750 = vmatmul.msk.f32.vlgmr.msra.gmra.mxu0 %vm287_vm0, %v247_v5  ;;  %758 = vmatmul.msk.f32.vlgmr.msra.gmra.mxu1 %vm287_vm0, %v255_v6  ;;  %v266_v24 = vld [vmem:[%s879_s7 + $0x98] sm:$0xff]  ;;  %v259_v27 = vld [vmem:[%s879_s7 + $0x60] sm:$0xff]  ;;  %v268_v32 = vld [vmem:[%s879_s7 + $0xa8] sm:$0xff] }
  0x17   : > { %766 = vmatmul.msk.f32.vlgmr.msra.gmra.mxu2 %vm287_vm0, %v263_v7  ;;  %774 = vmatmul.msk.f32.vlgmr.msra.gmra.mxu3 %vm287_vm0, %v271_v8  ;;  %v570_v17 = vperm.slane %v536_v12, 0  ;;  %v274_v25 = vld [vmem:[%s879_s7 + $0xd8] sm:$0xff]  ;;  %v267_v28 = vld [vmem:[%s879_s7 + $0xa0] sm:$0xff]  ;;  %v276_v33 = vld [vmem:[%s879_s7 + $0xe8] sm:$0xff] }
  0x18   : > { %808 = vset.pattern.permute.xlu0 %v819_v11  ;;  %v275_v29 = vld [vmem:[%s879_s7 + $0xe0] sm:$0xff]  ;;  %v253_v34 = vld [vmem:[%s879_s7 + $0x30] sm:$0xff]  ;;  %v254_v38 = vld [vmem:[%s879_s7 + $0x38] sm:$0xff] }
  0x19   : > { %501 = vperm.xlu0 %808, %v809_v9   ;;  %v261_v35 = vld [vmem:[%s879_s7 + $0x70] sm:$0xff]  ;;  %v262_v39 = vld [vmem:[%s879_s7 + $0x78] sm:$0xff]  ;;  %v956_v43 = vld [vmem:[%s1166_s2] ss:$0 sm:$0xff] }
  0x1a   : > { %v269_v36 = vld [vmem:[%s879_s7 + $0xb0] sm:$0xff]  ;;  %v270_v40 = vld [vmem:[%s879_s7 + $0xb8] sm:$0xff]  ;;  %v537_v44 = vld [vmem:[%s951_s10] sm:$0xff] }
  0x1b   : > { %v277_v37 = vld [vmem:[%s879_s7 + $0xf0] sm:$0xff]  ;;  %v278_v41 = vld [vmem:[%s879_s7 + $0xf8] sm:$0xff]  ;;  %v545_v45 = vld [vmem:[%s951_s10 + $0x40] sm:$0xff] }
  0x1c   : > { %v553_v55 = vld [vmem:[%s951_s10 + $0x80] sm:$0xff]  ;;  %v538_v59 = vld [vmem:[%s951_s10 + $0x8] sm:$0xff] }
  0x1d   : > { %v561_v56 = vld [vmem:[%s951_s10 + $0xc0] sm:$0xff]  ;;  %v546_v60 = vld [vmem:[%s951_s10 + $0x48] sm:$0xff] }
  0x1e   : > { %751 = vmatmul.msk.f32.gmra.mxu0 %vm287_vm0, %v248_v13  ;;  %759 = vmatmul.msk.f32.gmra.mxu1 %vm287_vm0, %v256_v14 }
  0x1f   : > { %767 = vmatmul.msk.f32.gmra.mxu2 %vm287_vm0, %v264_v15  ;;  %775 = vmatmul.msk.f32.gmra.mxu3 %vm287_vm0, %v272_v16 }
  0x21   : > { %572 = vperm.xlu0 %808, %v570_v17   ;;  %v554_v17 = vld [vmem:[%s951_s10 + $0x88] sm:$0xff] }
  0x26   : > { %752 = vmatmul.msk.f32.gmra.mxu0 %vm287_vm0, %v249_v18  ;;  %760 = vmatmul.msk.f32.gmra.mxu1 %vm287_vm0, %v257_v19  ;;  %v562_v18 = vld [vmem:[%s951_s10 + $0xc8] sm:$0xff]  ;;  %v539_v19 = vld [vmem:[%s951_s10 + $0x10] sm:$0xff] }
  0x27   : > { %768 = vmatmul.msk.f32.gmra.mxu2 %vm287_vm0, %v265_v20  ;;  %776 = vmatmul.msk.f32.gmra.mxu3 %vm287_vm0, %v273_v21  ;;  %v547_v20 = vld [vmem:[%s951_s10 + $0x50] sm:$0xff] }
  0x2e   : > { %753 = vmatmul.msk.f32.gmra.mxu0 %vm287_vm0, %v250_v22  ;;  %761 = vmatmul.msk.f32.gmra.mxu1 %vm287_vm0, %v258_v23 }
  0x2f   : > { %769 = vmatmul.msk.f32.gmra.mxu2 %vm287_vm0, %v266_v24  ;;  %777 = vmatmul.msk.f32.gmra.mxu3 %vm287_vm0, %v274_v25 }
  0x36   : > { %754 = vmatmul.msk.f32.gmra.mxu0 %vm287_vm0, %v251_v26  ;;  %762 = vmatmul.msk.f32.gmra.mxu1 %vm287_vm0, %v259_v27 }
  0x37   : > { %770 = vmatmul.msk.f32.gmra.mxu2 %vm287_vm0, %v267_v28  ;;  %778 = vmatmul.msk.f32.gmra.mxu3 %vm287_vm0, %v275_v29 }
  0x3e   : > { %755 = vmatmul.msk.f32.gmra.mxu0 %vm287_vm0, %v252_v30  ;;  %763 = vmatmul.msk.f32.gmra.mxu1 %vm287_vm0, %v260_v31 }
  0x3f   : > { %771 = vmatmul.msk.f32.gmra.mxu2 %vm287_vm0, %v268_v32  ;;  %779 = vmatmul.msk.f32.gmra.mxu3 %vm287_vm0, %v276_v33 }
  0x46   : > { %756 = vmatmul.msk.f32.gmra.mxu0 %vm287_vm0, %v253_v34  ;;  %764 = vmatmul.msk.f32.gmra.mxu1 %vm287_vm0, %v261_v35 }
  0x47   : > { %772 = vmatmul.msk.f32.gmra.mxu2 %vm287_vm0, %v269_v36  ;;  %780 = vmatmul.msk.f32.gmra.mxu3 %vm287_vm0, %v277_v37 }
  0x4e   : > { %757 = vmatmul.msk.f32.gmra.mxu0 %vm287_vm0, %v254_v38  ;;  %765 = vmatmul.msk.f32.gmra.mxu1 %vm287_vm0, %v262_v39 }
  0x4f   : > { %773 = vmatmul.msk.f32.gmra.mxu2 %vm287_vm0, %v270_v40  ;;  %781 = vmatmul.msk.f32.gmra.mxu3 %vm287_vm0, %v278_v41  ;;  %v555_v41 = vld [vmem:[%s951_s10 + $0x90] sm:$0xff] }
  0x8b   : > { %v945_v42 = vpop.permute.xlu0 %501 }
  0x93   : > { %v401_v46 = vpop.f32.mrf.mxu0  ;;  %v425_v47 = vpop.f32.mrf.mxu1 }
  0x94   : > { %v402_v48 = vadd.f32 %v956_v43, %v401_v46  ;;  %v426_v49 = vadd.f32 %v956_v43, %v425_v47  ;;  %v962_v50 = vpop.permute.xlu0 %572  ;;  %v548_v46 = vld [vmem:[%s951_s10 + $0x58] sm:$0xff] }
  0x95   : > { %v575_v51 = vmul.f32 %v962_v50, %v537_v44  ;;  %v583_v52 = vmul.f32 %v962_v50, %v545_v45  ;;  %v591_v1 = vmul.f32 %v962_v50, %v553_v55  ;;  %v599_v2 = vmul.f32 %v962_v50, %v561_v56  ;;  %v563_v44 = vld [vmem:[%s951_s10 + $0xd0] sm:$0xff]  ;;  %v540_v45 = vld [vmem:[%s951_s10 + $0x18] sm:$0xff] }
  0x96   : > { %v504_v53 = vmul.f32 %v945_v42, %v402_v48  ;;  %v512_v54 = vmul.f32 %v945_v42, %v426_v49  ;;  %v576_v6 = vmul.f32 %v962_v50, %v538_v59  ;;  %v584_v8 = vmul.f32 %v962_v50, %v546_v60 }
  0x97   : > { %v592_v24 = vmul.f32 %v962_v50, %v554_v17  ;;  %v600_v26 = vmul.f32 %v962_v50, %v562_v18  ;;  %v577_v30 = vmul.f32 %v962_v50, %v539_v19  ;;  %v585_v32 = vmul.f32 %v962_v50, %v547_v20 }
  0x98   : > { %v607_v57 = vadd.f32 %v575_v51, %v504_v53  ;;  %v615_v58 = vadd.f32 %v583_v52, %v512_v54  ;;  %v593_v51 = vmul.f32 %v962_v50, %v555_v41  ;;  %v601_v53 = vmul.f32 %v962_v50, %v563_v44 }
  0x99   : > { %v586_v59 = vmul.f32 %v962_v50, %v548_v46 }
  0x9a   : > { %v449_v61 = vpop.f32.mrf.mxu2  ;;  %v473_v62 = vpop.f32.mrf.mxu3  ;;  %640 = vst.msk [vmem:[%s972_s15] sm:$0xff] %vm639_vm1, %v607_v57  ;;  %v578_v57 = vmul.f32 %v962_v50, %v540_v45 }
  0x9b   : > { %v450_v63 = vadd.f32 %v956_v43, %v449_v61  ;;  %v474_v0 = vadd.f32 %v956_v43, %v473_v62  ;;  %648 = vst.msk [vmem:[%s972_s15 + $0x40] sm:$0xff] %vm639_vm1, %v615_v58  ;;  %v404_v3 = vpop.f32.mrf.mxu0  ;;  %v428_v4 = vpop.f32.mrf.mxu1 }
  0x9c   : > { %v405_v5 = vadd.f32 %v956_v43, %v404_v3  ;;  %v429_v7 = vadd.f32 %v956_v43, %v428_v4 }
  0x9d   : > { %v520_v9 = vmul.f32 %v945_v42, %v450_v63  ;;  %v528_v10 = vmul.f32 %v945_v42, %v474_v0  ;;  %v568_v0 = vld [vmem:[%s951_s10 + $0xf8] sm:$0xff] }
  0x9e   : > { %v505_v11 = vmul.f32 %v945_v42, %v405_v5  ;;  %v513_v12 = vmul.f32 %v945_v42, %v429_v7  ;;  %v556_v5 = vld [vmem:[%s951_s10 + $0x98] sm:$0xff]  ;;  %v1046_v7 = vmul.f32 %v962_v50, %v568_v0 }
  0x9f   : > { %v623_v13 = vadd.f32 %v591_v1, %v520_v9  ;;  %v631_v14 = vadd.f32 %v599_v2, %v528_v10  ;;  %v549_v9 = vld [vmem:[%s951_s10 + $0x60] sm:$0xff] }
  0xa0   : > { %v608_v15 = vadd.f32 %v576_v6, %v505_v11  ;;  %v616_v16 = vadd.f32 %v584_v8, %v513_v12  ;;  %v564_v6 = vld [vmem:[%s951_s10 + $0xd8] sm:$0xff]  ;;  %v541_v8 = vld [vmem:[%s951_s10 + $0x20] sm:$0xff] }
  0xa1   : > { %656 = vst.msk [vmem:[%s972_s15 + $0x80] sm:$0xff] %vm639_vm1, %v623_v13  ;;  %v594_v13 = vmul.f32 %v962_v50, %v556_v5  ;;  %v579_v19 = vmul.f32 %v962_v50, %v541_v8 }
  0xa2   : > { %664 = vst.msk [vmem:[%s972_s15 + $0xc0] sm:$0xff] %vm639_vm1, %v631_v14  ;;  %v452_v21 = vpop.f32.mrf.mxu2  ;;  %v476_v22 = vpop.f32.mrf.mxu3 }
  0xa3   : > { %641 = vst.msk [vmem:[%s972_s15 + $0x8] sm:$0xff] %vm639_vm1, %v608_v15  ;;  %v453_v23 = vadd.f32 %v956_v43, %v452_v21  ;;  %v477_v25 = vadd.f32 %v956_v43, %v476_v22  ;;  %v407_v27 = vpop.f32.mrf.mxu0  ;;  %v431_v28 = vpop.f32.mrf.mxu1  ;;  %v602_v15 = vmul.f32 %v962_v50, %v564_v6  ;;  %v587_v21 = vmul.f32 %v962_v50, %v549_v9 }
  0xa4   : > { %649 = vst.msk [vmem:[%s972_s15 + $0x48] sm:$0xff] %vm639_vm1, %v616_v16  ;;  %v408_v29 = vadd.f32 %v956_v43, %v407_v27  ;;  %v432_v31 = vadd.f32 %v956_v43, %v431_v28 }
  0xa5   : > { %v521_v33 = vmul.f32 %v945_v42, %v453_v23  ;;  %v529_v34 = vmul.f32 %v945_v42, %v477_v25 }
  0xa6   : > { %v506_v35 = vmul.f32 %v945_v42, %v408_v29  ;;  %v514_v36 = vmul.f32 %v945_v42, %v432_v31  ;;  %v565_v31 = vld [vmem:[%s951_s10 + $0xe0] sm:$0xff] }
  0xa7   : > { %v624_v37 = vadd.f32 %v592_v24, %v521_v33  ;;  %v632_v38 = vadd.f32 %v600_v26, %v529_v34  ;;  %v550_v33 = vld [vmem:[%s951_s10 + $0x68] sm:$0xff] }
  0xa8   : > { %v609_v39 = vadd.f32 %v577_v30, %v506_v35  ;;  %v617_v40 = vadd.f32 %v585_v32, %v514_v36  ;;  %v557_v30 = vld [vmem:[%s951_s10 + $0xa0] sm:$0xff]  ;;  %v542_v32 = vld [vmem:[%s951_s10 + $0x28] sm:$0xff] }
  0xa9   : > { %657 = vst.msk [vmem:[%s972_s15 + $0x88] sm:$0xff] %vm639_vm1, %v624_v37  ;;  %v595_v37 = vmul.f32 %v962_v50, %v557_v30  ;;  %v580_v45 = vmul.f32 %v962_v50, %v542_v32 }
  0xaa   : > { %665 = vst.msk [vmem:[%s972_s15 + $0xc8] sm:$0xff] %vm639_vm1, %v632_v38  ;;  %v455_v47 = vpop.f32.mrf.mxu2  ;;  %v479_v48 = vpop.f32.mrf.mxu3 }
  0xab   : > { %642 = vst.msk [vmem:[%s972_s15 + $0x10] sm:$0xff] %vm639_vm1, %v609_v39  ;;  %v456_v49 = vadd.f32 %v956_v43, %v455_v47  ;;  %v480_v52 = vadd.f32 %v956_v43, %v479_v48  ;;  %v410_v54 = vpop.f32.mrf.mxu0  ;;  %v434_v55 = vpop.f32.mrf.mxu1  ;;  %v603_v39 = vmul.f32 %v962_v50, %v565_v31  ;;  %v588_v47 = vmul.f32 %v962_v50, %v550_v33 }
  0xac   : > { %650 = vst.msk [vmem:[%s972_s15 + $0x50] sm:$0xff] %vm639_vm1, %v617_v40  ;;  %v411_v56 = vadd.f32 %v956_v43, %v410_v54  ;;  %v435_v58 = vadd.f32 %v956_v43, %v434_v55 }
  0xad   : > { %v522_v60 = vmul.f32 %v945_v42, %v456_v49  ;;  %v530_v61 = vmul.f32 %v945_v42, %v480_v52 }
  0xae   : > { %v507_v62 = vmul.f32 %v945_v42, %v411_v56  ;;  %v515_v63 = vmul.f32 %v945_v42, %v435_v58  ;;  %v566_v58 = vld [vmem:[%s951_s10 + $0xe8] sm:$0xff] }
  0xaf   : > { %v625_v1 = vadd.f32 %v593_v51, %v522_v60  ;;  %v633_v2 = vadd.f32 %v601_v53, %v530_v61  ;;  %v551_v60 = vld [vmem:[%s951_s10 + $0x70] sm:$0xff] }
  0xb0   : > { %v610_v3 = vadd.f32 %v578_v57, %v507_v62  ;;  %v618_v4 = vadd.f32 %v586_v59, %v515_v63  ;;  %v558_v57 = vld [vmem:[%s951_s10 + $0xa8] sm:$0xff]  ;;  %v543_v59 = vld [vmem:[%s951_s10 + $0x30] sm:$0xff]  ;;  %v589_v9 = vmul.f32 %v962_v50, %v551_v60 }
  0xb1   : > { %658 = vst.msk [vmem:[%s972_s15 + $0x90] sm:$0xff] %vm639_vm1, %v625_v1  ;;  %v596_v0 = vmul.f32 %v962_v50, %v558_v57  ;;  %v581_v6 = vmul.f32 %v962_v50, %v543_v59 }
  0xb2   : > { %666 = vst.msk [vmem:[%s972_s15 + $0xd0] sm:$0xff] %vm639_vm1, %v633_v2  ;;  %v458_v10 = vpop.f32.mrf.mxu2  ;;  %v482_v11 = vpop.f32.mrf.mxu3  ;;  %v604_v2 = vmul.f32 %v962_v50, %v566_v58 }
  0xb3   : > { %643 = vst.msk [vmem:[%s972_s15 + $0x18] sm:$0xff] %vm639_vm1, %v610_v3  ;;  %v459_v12 = vadd.f32 %v956_v43, %v458_v10  ;;  %v483_v14 = vadd.f32 %v956_v43, %v482_v11  ;;  %v413_v16 = vpop.f32.mrf.mxu0  ;;  %v437_v17 = vpop.f32.mrf.mxu1 }
  0xb4   : > { %651 = vst.msk [vmem:[%s972_s15 + $0x58] sm:$0xff] %vm639_vm1, %v618_v4  ;;  %v414_v18 = vadd.f32 %v956_v43, %v413_v16  ;;  %v438_v20 = vadd.f32 %v956_v43, %v437_v17 }
  0xb5   : > { %v523_v22 = vmul.f32 %v945_v42, %v459_v12  ;;  %v531_v23 = vmul.f32 %v945_v42, %v483_v14 }
  0xb6   : > { %v508_v24 = vmul.f32 %v945_v42, %v414_v18  ;;  %v516_v25 = vmul.f32 %v945_v42, %v438_v20  ;;  %v559_v18 = vld [vmem:[%s951_s10 + $0xb0] sm:$0xff] }
  0xb7   : > { %v626_v26 = vadd.f32 %v594_v13, %v523_v22  ;;  %v634_v27 = vadd.f32 %v602_v15, %v531_v23  ;;  %v597_v23 = vmul.f32 %v962_v50, %v559_v18 }
  0xb8   : > { %v611_v28 = vadd.f32 %v579_v19, %v508_v24  ;;  %v619_v29 = vadd.f32 %v587_v21, %v516_v25  ;;  %v567_v19 = vld [vmem:[%s951_s10 + $0xf0] sm:$0xff] }
  0xb9   : > { %659 = vst.msk [vmem:[%s972_s15 + $0x98] sm:$0xff] %vm639_vm1, %v626_v26  ;;  %v605_v25 = vmul.f32 %v962_v50, %v567_v19 }
  0xba   : > { %667 = vst.msk [vmem:[%s972_s15 + $0xd8] sm:$0xff] %vm639_vm1, %v634_v27  ;;  %v461_v34 = vpop.f32.mrf.mxu2  ;;  %v485_v35 = vpop.f32.mrf.mxu3  ;;  %v544_v27 = vld [vmem:[%s951_s10 + $0x38] sm:$0xff] }
  0xbb   : > { %644 = vst.msk [vmem:[%s972_s15 + $0x20] sm:$0xff] %vm639_vm1, %v611_v28  ;;  %v462_v36 = vadd.f32 %v956_v43, %v461_v34  ;;  %v486_v38 = vadd.f32 %v956_v43, %v485_v35  ;;  %v416_v40 = vpop.f32.mrf.mxu0  ;;  %v440_v41 = vpop.f32.mrf.mxu1  ;;  %v582_v35 = vmul.f32 %v962_v50, %v544_v27 }
  0xbc   : > { %652 = vst.msk [vmem:[%s972_s15 + $0x60] sm:$0xff] %vm639_vm1, %v619_v29  ;;  %v417_v44 = vadd.f32 %v956_v43, %v416_v40  ;;  %v441_v46 = vadd.f32 %v956_v43, %v440_v41  ;;  %v552_v29 = vld [vmem:[%s951_s10 + $0x78] sm:$0xff] }
  0xbd   : > { %v524_v48 = vmul.f32 %v945_v42, %v462_v36  ;;  %v532_v49 = vmul.f32 %v945_v42, %v486_v38 }
  0xbe   : > { %v509_v51 = vmul.f32 %v945_v42, %v417_v44  ;;  %v517_v52 = vmul.f32 %v945_v42, %v441_v46 }
  0xbf   : > { %v627_v53 = vadd.f32 %v595_v37, %v524_v48  ;;  %v635_v54 = vadd.f32 %v603_v39, %v532_v49  ;;  %v590_v37 = vmul.f32 %v962_v50, %v552_v29 }
  0xc0   : > { %v612_v55 = vadd.f32 %v580_v45, %v509_v51  ;;  %v620_v56 = vadd.f32 %v588_v47, %v517_v52  ;;  %v560_v45 = vld [vmem:[%s951_s10 + $0xb8] sm:$0xff] }
  0xc1   : > { %660 = vst.msk [vmem:[%s972_s15 + $0xa0] sm:$0xff] %vm639_vm1, %v627_v53  ;;  %v598_v51 = vmul.f32 %v962_v50, %v560_v45 }
  0xc2   : > { %668 = vst.msk [vmem:[%s972_s15 + $0xe0] sm:$0xff] %vm639_vm1, %v635_v54  ;;  %v464_v61 = vpop.f32.mrf.mxu2  ;;  %v488_v62 = vpop.f32.mrf.mxu3 }
  0xc3   : > { %645 = vst.msk [vmem:[%s972_s15 + $0x28] sm:$0xff] %vm639_vm1, %v612_v55  ;;  %v465_v63 = vadd.f32 %v956_v43, %v464_v61  ;;  %v489_v1 = vadd.f32 %v956_v43, %v488_v62  ;;  %v419_v3 = vpop.f32.mrf.mxu0  ;;  %v443_v4 = vpop.f32.mrf.mxu1 }
  0xc4   : > { %653 = vst.msk [vmem:[%s972_s15 + $0x68] sm:$0xff] %vm639_vm1, %v620_v56  ;;  %v420_v5 = vadd.f32 %v956_v43, %v419_v3  ;;  %v444_v8 = vadd.f32 %v956_v43, %v443_v4 }
  0xc5   : > { %v525_v10 = vmul.f32 %v945_v42, %v465_v63  ;;  %v533_v11 = vmul.f32 %v945_v42, %v489_v1 }
  0xc6   : > { %v510_v12 = vmul.f32 %v945_v42, %v420_v5  ;;  %v518_v13 = vmul.f32 %v945_v42, %v444_v8 }
  0xc7   : > { %v628_v14 = vadd.f32 %v596_v0, %v525_v10  ;;  %v636_v15 = vadd.f32 %v604_v2, %v533_v11 }
  0xc8   : > { %v613_v16 = vadd.f32 %v581_v6, %v510_v12  ;;  %v621_v17 = vadd.f32 %v589_v9, %v518_v13 }
  0xc9   : > { %661 = vst.msk [vmem:[%s972_s15 + $0xa8] sm:$0xff] %vm639_vm1, %v628_v14 }
  0xca   : > { %669 = vst.msk [vmem:[%s972_s15 + $0xe8] sm:$0xff] %vm639_vm1, %v636_v15  ;;  %v467_v20 = vpop.f32.mrf.mxu2  ;;  %v491_v21 = vpop.f32.mrf.mxu3 }
  0xcb   : > { %646 = vst.msk [vmem:[%s972_s15 + $0x30] sm:$0xff] %vm639_vm1, %v613_v16  ;;  %v468_v22 = vadd.f32 %v956_v43, %v467_v20  ;;  %v492_v24 = vadd.f32 %v956_v43, %v491_v21  ;;  %v422_v26 = vpop.f32.mrf.mxu0  ;;  %v446_v28 = vpop.f32.mrf.mxu1 }
  0xcc   : > { %654 = vst.msk [vmem:[%s972_s15 + $0x70] sm:$0xff] %vm639_vm1, %v621_v17  ;;  %v423_v30 = vadd.f32 %v956_v43, %v422_v26  ;;  %v447_v31 = vadd.f32 %v956_v43, %v446_v28 }
  0xcd   : > { %v526_v32 = vmul.f32 %v945_v42, %v468_v22  ;;  %v534_v33 = vmul.f32 %v945_v42, %v492_v24 }
  0xce   : > { %v511_v34 = vmul.f32 %v945_v42, %v423_v30  ;;  %v519_v36 = vmul.f32 %v945_v42, %v447_v31 }
  0xcf   : > { %v629_v38 = vadd.f32 %v597_v23, %v526_v32  ;;  %v637_v39 = vadd.f32 %v605_v25, %v534_v33 }
  0xd0   : > { %v614_v40 = vadd.f32 %v582_v35, %v511_v34  ;;  %v622_v41 = vadd.f32 %v590_v37, %v519_v36 }
  0xd1   : > { %662 = vst.msk [vmem:[%s972_s15 + $0xb0] sm:$0xff] %vm639_vm1, %v629_v38 }
  0xd2   : > { %670 = vst.msk [vmem:[%s972_s15 + $0xf0] sm:$0xff] %vm639_vm1, %v637_v39  ;;  %v470_v44 = vpop.f32.mrf.mxu2  ;;  %v494_v46 = vpop.f32.mrf.mxu3 }
  0xd3   : > { %647 = vst.msk [vmem:[%s972_s15 + $0x38] sm:$0xff] %vm639_vm1, %v614_v40  ;;  %v471_v47 = vadd.f32 %v956_v43, %v470_v44  ;;  %v495_v48 = vadd.f32 %v956_v43, %v494_v46 }
  0xd4   : > { %655 = vst.msk [vmem:[%s972_s15 + $0x78] sm:$0xff] %vm639_vm1, %v622_v41 }
  0xd5   : > { %v527_v49 = vmul.f32 %v945_v42, %v471_v47  ;;  %v535_v52 = vmul.f32 %v945_v42, %v495_v48 }
  0xd7   : > { %v630_v53 = vadd.f32 %v598_v51, %v527_v49  ;;  %v638_v54 = vadd.f32 %v1046_v7, %v535_v52 }
  0xd9   : > { %663 = vst.msk [vmem:[%s972_s15 + $0xb8] sm:$0xff] %vm639_vm1, %v630_v53 }
  0xda   : > { %671 = vst.msk [vmem:[%s972_s15 + $0xf8] sm:$0xff] %vm639_vm1, %v638_v54 }
  0xdb PF: > { %s17_s20 = sadd.s32 1, %s817_s20  }
  0xdc   : > { %p14_p4 = scmp.ge.s32.totalorder %s17_s20, 4  }
  0xde   :  { %16 = sbr.rel (!%p14_p4) target bundleno = 3 (0x3), region = 73 }

// kernel: generator_forward.13
= control target key start
LH: loop header
LB: loop body
LE: loop exit
PB: predicated region body
PF: predicated region fallthrough
CT: control target
= control target key end

     0   :  { %s4240_s12 = smov 0   ;;  %s5636_s0 = inlined_call_operand.vmem [shape: f32[2,332,32], index: 0, kind: input, shape index: {}]   ;;  %s5637_s1 = inlined_call_operand.vmem [shape: f32[9,32,32], index: 1, kind: input, shape index: {}]   ;;  %s5638_s2 = inlined_call_operand.vmem [shape: f32[1,32], index: 2, kind: input, shape index: {}]   ;;  %s5639_s3 = inlined_call_operand.vmem [shape: f32[2,288,32], index: 3, kind: output, shape index: {}]  }
   0x1 LB: > { %s3747_s13 = sadd.s32 4294967295, %s4217_s12   ;;  %p3751_p0 = scmp.ge.s32.totalorder %s4217_s12, 1  ;;  %s4217_s12 = sphi %s4240_s12, %s13_s12  }
   0x2   : > { %p137_p1 = scmp.lt.s32.totalorder %s4217_s12, 3 }
   0x4   : > { %p138_p2 = pnand %p3751_p0, %p137_p1 }
   0x5   : > { %p161_p3 = scmp.lt.s32.totalorder (!%p138_p2), %s3747_s13, 1 }
   0x6   : > { %141 = sbr.rel (%p138_p2) target bundleno = 946 (0x3b2), region = 32 }
   0xb   : > { %v3757_v0 = vld [vmem:[%s5637_s1 + $0x38] sm:$0xff]  ;;  %v3756_v1 = vld [vmem:[%s5637_s1 + $0x30] sm:$0xff]  ;;  %v3755_v2 = vld [vmem:[%s5637_s1 + $0x28] sm:$0xff]  ;;  %s5641_s13 = smov (!%p161_p3, %s3747_s13), 1  ;;  %vm252_vm0 = vcmask 261120  }
   0xc   : > { %4112 = vmatpush.msra.mxu1 %v3757_v0  ;;  %4113 = vmatpush.msra.mxu2 %v3757_v0  ;;  %v3754_v3 = vld [vmem:[%s5637_s1 + $0x20] sm:$0xff]  ;;  %s4124_s22 = smul.u32 336, %s5641_s13  ;;  %v3833_v4 = vld [vmem:[%s5637_s1 + $0x58] sm:$0xff]  ;;  %v3832_v11 = vld [vmem:[%s5637_s1 + $0x50] sm:$0xff] }
   0xd   : > { %4114 = vmatpush.msra.mxu3 %v3757_v0  ;;  %373 = vmatpush.msra.mxu0 %v3757_v0  ;;  %v210_v5 = vld [vmem:[%s5637_s1 + $0x18] sm:$0xff]  ;;  %v3872_v13 = vld [vmem:[%s5637_s1 + $0x70] sm:$0xff]  ;;  %v3831_v18 = vld [vmem:[%s5637_s1 + $0x48] sm:$0xff]  ;;  %s4125_s19 = smul.u32 288, %s5641_s13 }
   0xe   : > { %4115 = vmatpush.msra.mxu1 %v3756_v1  ;;  %4116 = vmatpush.msra.mxu2 %v3756_v1  ;;  %s4266_s25 = scalar_lea.vmem %s5636_s0, %s4124_s22  ;;  %v3873_v9 = vld [vmem:[%s5637_s1 + $0x78] sm:$0xff]  ;;  %v209_v14 = vld [vmem:[%s5637_s1 + $0x10] sm:$0xff]  ;;  %v3871_v19 = vld [vmem:[%s5637_s1 + $0x68] sm:$0xff] }
   0xf   : > { %4117 = vmatpush.msra.mxu3 %v3756_v1  ;;  %374 = vmatpush.msra.mxu0 %v3756_v1  ;;  %v220_v6 = vld [vmem:[%s4266_s25 + $0x49] sm:$0xff]  ;;  %v229_v7 = vld [vmem:[%s4266_s25 + $0x91] sm:$0xff]  ;;  %v238_v8 = vld [vmem:[%s4266_s25 + $0xd9] sm:$0xff]  ;;  %s5283_s21 = scalar_lea.vmem %s5639_s3, %s4125_s19 }
  0x10   : > { %4118 = vmatpush.msra.mxu1 %v3755_v2  ;;  %4119 = vmatpush.msra.mxu2 %v3755_v2  ;;  %v211_v10 = vld [vmem:[%s4266_s25 + $0x1] sm:$0xff]  ;;  %v3913_v12 = vld [vmem:[%s5637_s1 + $0x98] sm:$0xff]  ;;  %v3912_v16 = vld [vmem:[%s5637_s1 + $0x90] sm:$0xff] }
  0x11   : > { %4120 = vmatpush.msra.mxu3 %v3755_v2  ;;  %375 = vmatpush.msra.mxu0 %v3755_v2  ;;  %v221_v15 = vld [vmem:[%s4266_s25 + $0x51] sm:$0xff]  ;;  %v230_v17 = vld [vmem:[%s4266_s25 + $0x99] sm:$0xff]  ;;  %v239_v20 = vld [vmem:[%s4266_s25 + $0xe1] sm:$0xff] }
  0x12   : > { %4121 = vmatpush.msra.mxu1 %v3754_v3  ;;  %4122 = vmatpush.msra.mxu2 %v3754_v3  ;;  %v208_v21 = vld [vmem:[%s5637_s1 + $0x8] sm:$0xff]  ;;  %v222_v24 = vld [vmem:[%s4266_s25 + $0x59] sm:$0xff]  ;;  %v213_v27 = vld [vmem:[%s4266_s25 + $0x11] sm:$0xff] }
  0x13   : > { %3767 = vmatmul.msk.f32.vlgmr.msra.gmra.mxu1 %vm252_vm0, %v220_v6  ;;  %3776 = vmatmul.msk.f32.vlgmr.msra.gmra.mxu2 %vm252_vm0, %v229_v7  ;;  %v212_v22 = vld [vmem:[%s4266_s25 + $0x9] sm:$0xff]  ;;  %v231_v25 = vld [vmem:[%s4266_s25 + $0xa1] sm:$0xff]  ;;  %v241_v31 = vld [vmem:[%s4266_s25 + $0xf1] sm:$0xff] }
  0x14   : > { %880 = vmatpush.msrb.mxu2 %v3833_v4  ;;  %4123 = vmatpush.msra.mxu3 %v3754_v3  ;;  %v3911_v23 = vld [vmem:[%s5637_s1 + $0x88] sm:$0xff]  ;;  %v3830_v28 = vld [vmem:[%s5637_s1 + $0x40] sm:$0xff]  ;;  %v233_v36 = vld [vmem:[%s4266_s25 + $0xb1] sm:$0xff] }
  0x15   : > { %3785 = vmatmul.msk.f32.vlgmr.msra.gmra.mxu3 %vm252_vm0, %v238_v8  ;;  %606 = vmatpush.msrb.mxu1 %v210_v5  ;;  %v240_v26 = vld [vmem:[%s4266_s25 + $0xe9] sm:$0xff]  ;;  %v223_v29 = vld [vmem:[%s4266_s25 + $0x61] sm:$0xff]  ;;  %v214_v33 = vld [vmem:[%s4266_s25 + $0x19] sm:$0xff] }
  0x16   : > { %1190 = vmatpush.msrb.mxu3 %v3873_v9  ;;  %376 = vmatpush.msra.mxu0 %v3754_v3  ;;  %v232_v30 = vld [vmem:[%s4266_s25 + $0xa9] sm:$0xff]  ;;  %v3870_v32 = vld [vmem:[%s5637_s1 + $0x60] sm:$0xff]  ;;  %v225_v40 = vld [vmem:[%s4266_s25 + $0x71] sm:$0xff] }
  0x17   : > { %3758 = vmatmul.msk.f32.vlgmr.msra.gmra.mxu0 %vm252_vm0, %v211_v10  ;;  %881 = vmatpush.msrb.mxu2 %v3832_v11  ;;  %v207_v34 = vld [vmem:[%s5637_s1] sm:$0xff]  ;;  %v224_v35 = vld [vmem:[%s4266_s25 + $0x69] sm:$0xff]  ;;  %v3993_v43 = vld [vmem:[%s5637_s1 + $0xd8] sm:$0xff] }
  0x18   : > { %1500 = vmatpush.msrb.mxu0 %v3913_v12  ;;  %1191 = vmatpush.msrb.mxu3 %v3872_v13  ;;  %v242_v37 = vld [vmem:[%s4266_s25 + $0xf9] sm:$0xff]  ;;  %v215_v39 = vld [vmem:[%s4266_s25 + $0x21] sm:$0xff]  ;;  %v216_v44 = vld [vmem:[%s4266_s25 + $0x29] sm:$0xff] }
  0x19   : > { %607 = vmatpush.msrb.mxu1 %v209_v14  ;;  %882 = vmatpush.msrb.mxu2 %v3831_v18  ;;  %v3910_v38 = vld [vmem:[%s5637_s1 + $0x80] sm:$0xff]  ;;  %v4033_v45 = vld [vmem:[%s5637_s1 + $0xf8] sm:$0xff]  ;;  %v244_v49 = vld [vmem:[%s4266_s25 + $0x109] sm:$0xff] }
  0x1a   : > { %1501 = vmatpush.msrb.mxu0 %v3912_v16  ;;  %1192 = vmatpush.msrb.mxu3 %v3871_v19  ;;  %v234_v41 = vld [vmem:[%s4266_s25 + $0xb9] sm:$0xff]  ;;  %v243_v42 = vld [vmem:[%s4266_s25 + $0x101] sm:$0xff]  ;;  %v217_v50 = vld [vmem:[%s4266_s25 + $0x31] sm:$0xff] }
  0x1b   : > { %3768 = vmatmul.msk.f32.gmra.mxu1 %vm252_vm0, %v221_v15  ;;  %3777 = vmatmul.msk.f32.gmra.mxu2 %vm252_vm0, %v230_v17  ;;  %v3953_v46 = vld [vmem:[%s5637_s1 + $0xb8] sm:$0xff]  ;;  %v235_v48 = vld [vmem:[%s4266_s25 + $0xc1] sm:$0xff]  ;;  %v236_v53 = vld [vmem:[%s4266_s25 + $0xc9] sm:$0xff] }
  0x1c   : > { %608 = vmatpush.msrb.mxu1 %v208_v21  ;;  %1502 = vmatpush.msrb.mxu0 %v3911_v23  ;;  %v226_v47 = vld [vmem:[%s4266_s25 + $0x79] sm:$0xff]  ;;  %v227_v52 = vld [vmem:[%s4266_s25 + $0x81] sm:$0xff]  ;;  %v245_v54 = vld [vmem:[%s4266_s25 + $0x111] sm:$0xff] }
  0x1d   : > { %3786 = vmatmul.msk.f32.gmra.mxu3 %vm252_vm0, %v239_v20  ;;  %883 = vmatpush.msrb.mxu2 %v3830_v28  ;;  %v4073_v51 = vld [vmem:[%s5637_s1 + $0x118] sm:$0xff]  ;;  %v228_v56 = vld [vmem:[%s4266_s25 + $0x89] sm:$0xff]  ;;  %v219_v59 = vld [vmem:[%s4266_s25 + $0x41] sm:$0xff] }
  0x1e   : > { %1193 = vmatpush.msrb.mxu3 %v3870_v32  ;;  %609 = vmatpush.msrb.mxu1 %v207_v34  ;;  %v218_v55 = vld [vmem:[%s4266_s25 + $0x39] sm:$0xff]  ;;  %v237_v57 = vld [vmem:[%s4266_s25 + $0xd1] sm:$0xff]  ;;  %v719_v61 = vld [vmem:[%s4266_s25 + $0x2] sm:$0xff] }
  0x1f   : > { %3759 = vmatmul.msk.f32.gmra.mxu0 %vm252_vm0, %v212_v22  ;;  %2120 = vmatpush.msra.mxu2 %v3993_v43  ;;  %v246_v58 = vld [vmem:[%s4266_s25 + $0x119] sm:$0xff]  ;;  %v172_v0 = vld [vmem:[%s4266_s25 + $0x8] sm:$0xff]  ;;  %v173_v4 = vld [vmem:[%s4266_s25 + $0x10] sm:$0xff] }
  0x20   : > { %1503 = vmatpush.msrb.mxu0 %v3910_v38  ;;  %2430 = vmatpush.msra.mxu3 %v4033_v45  ;;  %v171_v60 = vld [vmem:[%s4266_s25] sm:$0xff]  ;;  %v1029_v62 = vld [vmem:[%s4266_s25 + $0x12] sm:$0xff]  ;;  %v720_v1 = vld [vmem:[%s4266_s25 + $0xa] sm:$0xff] }
  0x21   : > { %1810 = vmatpush.msra.mxu1 %v3953_v46  ;;  %v1339_v63 = vld [vmem:[%s4266_s25 + $0x13] sm:$0xff]  ;;  %v1340_v3 = vld [vmem:[%s4266_s25 + $0x1b] sm:$0xff]  ;;  %v1341_v6 = vld [vmem:[%s4266_s25 + $0x23] sm:$0xff] }
  0x22   : > { %2740 = vmatpush.msra.mxu0 %v4073_v51  ;;  %v1030_v2 = vld [vmem:[%s4266_s25 + $0x1a] sm:$0xff]  ;;  %v1031_v5 = vld [vmem:[%s4266_s25 + $0x22] sm:$0xff]  ;;  %v1032_v8 = vld [vmem:[%s4266_s25 + $0x2a] sm:$0xff] }
  0x23   : > { %3769 = vmatmul.msk.f32.gmra.mxu1 %vm252_vm0, %v222_v24  ;;  %3778 = vmatmul.msk.f32.gmra.mxu2 %vm252_vm0, %v231_v25  ;;  %v174_v7 = vld [vmem:[%s4266_s25 + $0x18] sm:$0xff]  ;;  %v1342_v9 = vld [vmem:[%s4266_s25 + $0x2b] sm:$0xff]  ;;  %v175_v10 = vld [vmem:[%s4266_s25 + $0x20] sm:$0xff] }
  0x24   : > { %v1033_v11 = vld [vmem:[%s4266_s25 + $0x32] sm:$0xff]  ;;  %v176_v13 = vld [vmem:[%s4266_s25 + $0x28] sm:$0xff]  ;;  %v1034_v14 = vld [vmem:[%s4266_s25 + $0x3a] sm:$0xff] }
  0x25   : > { %3787 = vmatmul.msk.f32.gmra.mxu3 %vm252_vm0, %v240_v26  ;;  %v1343_v12 = vld [vmem:[%s4266_s25 + $0x33] sm:$0xff]  ;;  %v1344_v16 = vld [vmem:[%s4266_s25 + $0x3b] sm:$0xff]  ;;  %v1345_v21 = vld [vmem:[%s4266_s25 + $0x43] sm:$0xff] }
  0x26   : > { %v3992_v15 = vld [vmem:[%s5637_s1 + $0xd0] sm:$0xff]  ;;  %v1035_v20 = vld [vmem:[%s4266_s25 + $0x42] sm:$0xff]  ;;  %v178_v24 = vld [vmem:[%s4266_s25 + $0x38] sm:$0xff] }
  0x27   : > { %3760 = vmatmul.msk.f32.gmra.mxu0 %vm252_vm0, %v213_v27  ;;  %2121 = vmatpush.msra.mxu2 %v3992_v15  ;;  %v4032_v17 = vld [vmem:[%s5637_s1 + $0xf0] sm:$0xff]  ;;  %v180_v38 = vld [vmem:[%s4266_s25 + $0x48] sm:$0xff] }
  0x28   : > { %2431 = vmatpush.msra.mxu3 %v4032_v17  ;;  %v3952_v18 = vld [vmem:[%s5637_s1 + $0xb0] sm:$0xff]  ;;  %v1039_v46 = vld [vmem:[%s4266_s25 + $0x62] sm:$0xff] }
  0x29   : > { %1811 = vmatpush.msra.mxu1 %v3952_v18  ;;  %v177_v19 = vld [vmem:[%s4266_s25 + $0x30] sm:$0xff] }
  0x2a   : > { %v4072_v22 = vld [vmem:[%s5637_s1 + $0x110] sm:$0xff] }
  0x2b   : > { %3770 = vmatmul.msk.f32.gmra.mxu1 %vm252_vm0, %v223_v29  ;;  %3779 = vmatmul.msk.f32.gmra.mxu2 %vm252_vm0, %v232_v30  ;;  %v1036_v25 = vld [vmem:[%s4266_s25 + $0x4a] sm:$0xff]  ;;  %v1037_v32 = vld [vmem:[%s4266_s25 + $0x52] sm:$0xff] }
  0x2c   : > { %2741 = vmatpush.msra.mxu0 %v4072_v22  ;;  %v1346_v27 = vld [vmem:[%s4266_s25 + $0x4b] sm:$0xff]  ;;  %v1347_v34 = vld [vmem:[%s4266_s25 + $0x53] sm:$0xff] }
  0x2d   : > { %3788 = vmatmul.msk.f32.gmra.mxu3 %vm252_vm0, %v241_v31  ;;  %v179_v31 = vld [vmem:[%s4266_s25 + $0x40] sm:$0xff]  ;;  %v181_v45 = vld [vmem:[%s4266_s25 + $0x50] sm:$0xff] }
  0x2e   : > { %v1354_v22 = vld [vmem:[%s4266_s25 + $0x8b] sm:$0xff] }
  0x2f   : > { %3761 = vmatmul.msk.f32.gmra.mxu0 %vm252_vm0, %v214_v33 }
  0x33   : > { %3771 = vmatmul.msk.f32.gmra.mxu1 %vm252_vm0, %v224_v35  ;;  %3780 = vmatmul.msk.f32.gmra.mxu2 %vm252_vm0, %v233_v36 }
  0x35   : > { %3789 = vmatmul.msk.f32.gmra.mxu3 %vm252_vm0, %v242_v37 }
  0x37   : > { %3762 = vmatmul.msk.f32.gmra.mxu0 %vm252_vm0, %v215_v39  ;;  %v1038_v39 = vld [vmem:[%s4266_s25 + $0x5a] sm:$0xff] }
  0x3b   : > { %3772 = vmatmul.msk.f32.gmra.mxu1 %vm252_vm0, %v225_v40  ;;  %3781 = vmatmul.msk.f32.gmra.mxu2 %vm252_vm0, %v234_v41  ;;  %v1348_v41 = vld [vmem:[%s4266_s25 + $0x5b] sm:$0xff] }
  0x3d   : > { %3790 = vmatmul.msk.f32.gmra.mxu3 %vm252_vm0, %v243_v42 }
  0x3f   : > { %3763 = vmatmul.msk.f32.gmra.mxu0 %vm252_vm0, %v216_v44 }
  0x43   : > { %3773 = vmatmul.msk.f32.gmra.mxu1 %vm252_vm0, %v226_v47  ;;  %3782 = vmatmul.msk.f32.gmra.mxu2 %vm252_vm0, %v235_v48  ;;  %v1349_v48 = vld [vmem:[%s4266_s25 + $0x63] sm:$0xff] }
  0x45   : > { %3791 = vmatmul.msk.f32.gmra.mxu3 %vm252_vm0, %v244_v49 }
  0x47   : > { %3764 = vmatmul.msk.f32.gmra.mxu0 %vm252_vm0, %v217_v50 }
  0x4b   : > { %3774 = vmatmul.msk.f32.gmra.mxu1 %vm252_vm0, %v227_v52  ;;  %3783 = vmatmul.msk.f32.gmra.mxu2 %vm252_vm0, %v236_v53  ;;  %v182_v52 = vld [vmem:[%s4266_s25 + $0x58] sm:$0xff]  ;;  %v1040_v53 = vld [vmem:[%s4266_s25 + $0x6a] sm:$0xff] }
  0x4d   : > { %3792 = vmatmul.msk.f32.gmra.mxu3 %vm252_vm0, %v245_v54 }
  0x4f   : > { %3765 = vmatmul.msk.f32.gmra.mxu0 %vm252_vm0, %v218_v55  ;;  %v1350_v55 = vld [vmem:[%s4266_s25 + $0x6b] sm:$0xff] }
  0x53   : > { %3775 = vmatmul.msk.f32.gmra.mxu1 %vm252_vm0, %v228_v56  ;;  %3784 = vmatmul.msk.f32.gmra.mxu2 %vm252_vm0, %v237_v57 }
  0x55   : > { %3793 = vmatmul.msk.f32.gmra.mxu3 %vm252_vm0, %v246_v58 }
  0x57   : > { %3766 = vmatmul.msk.f32.gmra.mxu0 %vm252_vm0, %v219_v59  ;;  %v183_v59 = vld [vmem:[%s4266_s25 + $0x60] sm:$0xff] }
  0x5b   : > { %3794 = vmatmul.msk.f32.vlgmr.msrb.gmra.mxu1 %vm252_vm0, %v171_v60  ;;  %3834 = vmatmul.msk.f32.vlgmr.msrb.gmra.mxu2 %vm252_vm0, %v719_v61  ;;  %v1041_v60 = vld [vmem:[%s4266_s25 + $0x72] sm:$0xff] }
  0x5d   : > { %3874 = vmatmul.msk.f32.vlgmr.msrb.gmra.mxu3 %vm252_vm0, %v1029_v62 }
  0x5f   : > { %3914 = vmatmul.msk.f32.vlgmr.msrb.gmra.mxu0 %vm252_vm0, %v1339_v63 }
  0x63   : > { %3795 = vmatmul.msk.f32.gmra.mxu1 %vm252_vm0, %v172_v0  ;;  %3835 = vmatmul.msk.f32.gmra.mxu2 %vm252_vm0, %v720_v1 }
  0x65   : > { %3875 = vmatmul.msk.f32.gmra.mxu3 %vm252_vm0, %v1030_v2 }
  0x67   : > { %3915 = vmatmul.msk.f32.gmra.mxu0 %vm252_vm0, %v1340_v3  ;;  %v1042_v3 = vld [vmem:[%s4266_s25 + $0x7a] sm:$0xff] }
  0x6b   : > { %3796 = vmatmul.msk.f32.gmra.mxu1 %vm252_vm0, %v173_v4  ;;  %3836 = vmatmul.msk.f32.gmra.mxu2 %vm252_vm0, %v1029_v62  ;;  %v1351_v62 = vld [vmem:[%s4266_s25 + $0x73] sm:$0xff] }
  0x6d   : > { %3876 = vmatmul.msk.f32.gmra.mxu3 %vm252_vm0, %v1031_v5 }
  0x6f   : > { %3916 = vmatmul.msk.f32.gmra.mxu0 %vm252_vm0, %v1341_v6 }
  0x73   : > { %3797 = vmatmul.msk.f32.gmra.mxu1 %vm252_vm0, %v174_v7  ;;  %3837 = vmatmul.msk.f32.gmra.mxu2 %vm252_vm0, %v1030_v2  ;;  %v184_v2 = vld [vmem:[%s4266_s25 + $0x68] sm:$0xff] }
  0x75   : > { %3877 = vmatmul.msk.f32.gmra.mxu3 %vm252_vm0, %v1032_v8 }
  0x77   : > { %3917 = vmatmul.msk.f32.gmra.mxu0 %vm252_vm0, %v1342_v9  ;;  %v185_v9 = vld [vmem:[%s4266_s25 + $0x70] sm:$0xff] }
  0x7b   : > { %3798 = vmatmul.msk.f32.gmra.mxu1 %vm252_vm0, %v175_v10  ;;  %3838 = vmatmul.msk.f32.gmra.mxu2 %vm252_vm0, %v1031_v5  ;;  %v1352_v5 = vld [vmem:[%s4266_s25 + $0x7b] sm:$0xff] }
  0x7c   : > { %v1043_v10 = vld [vmem:[%s4266_s25 + $0x82] sm:$0xff] }
  0x7d   : > { %3878 = vmatmul.msk.f32.gmra.mxu3 %vm252_vm0, %v1033_v11 }
  0x7f   : > { %3918 = vmatmul.msk.f32.gmra.mxu0 %vm252_vm0, %v1343_v12 }
  0x83   : > { %3799 = vmatmul.msk.f32.gmra.mxu1 %vm252_vm0, %v176_v13  ;;  %3839 = vmatmul.msk.f32.gmra.mxu2 %vm252_vm0, %v1032_v8  ;;  %v1353_v13 = vld [vmem:[%s4266_s25 + $0x83] sm:$0xff] }
  0x85   : > { %3879 = vmatmul.msk.f32.gmra.mxu3 %vm252_vm0, %v1034_v14 }
  0x87   : > { %3919 = vmatmul.msk.f32.gmra.mxu0 %vm252_vm0, %v1344_v16  ;;  %v3951_v16 = vld [vmem:[%s5637_s1 + $0xa8] sm:$0xff] }
  0x88   : > { %1812 = vmatpush.msra.mxu1 %v3951_v16 }
  0x8b   : > { %3800 = vmatmul.msk.f32.gmra.mxu1 %vm252_vm0, %v177_v19  ;;  %3840 = vmatmul.msk.f32.gmra.mxu2 %vm252_vm0, %v1033_v11  ;;  %v3991_v11 = vld [vmem:[%s5637_s1 + $0xc8] sm:$0xff]  ;;  %v186_v19 = vld [vmem:[%s4266_s25 + $0x78] sm:$0xff] }
  0x8c   : > { %2122 = vmatpush.msra.mxu2 %v3991_v11  ;;  %v189_v11 = vld [vmem:[%s4266_s25 + $0x90] sm:$0xff] }
  0x8d   : > { %3880 = vmatmul.msk.f32.gmra.mxu3 %vm252_vm0, %v1035_v20 }
  0x8f   : > { %3920 = vmatmul.msk.f32.gmra.mxu0 %vm252_vm0, %v1345_v21 }
  0x90   : > { %v4463_v23 = vpop.f32.mrf.mxu1 }
  0x93   : > { %3801 = vmatmul.msk.f32.gmra.mxu1 %vm252_vm0, %v178_v24  ;;  %3841 = vmatmul.msk.f32.gmra.mxu2 %vm252_vm0, %v1034_v14  ;;  %v4031_v14 = vld [vmem:[%s5637_s1 + $0xe8] sm:$0xff] }
  0x94   : > { %v4469_v26 = vpop.f32.mrf.mxu0  ;;  %2432 = vmatpush.msra.mxu3 %v4031_v14  ;;  %v4071_v24 = vld [vmem:[%s5637_s1 + $0x108] sm:$0xff] }
  0x95   : > { %3881 = vmatmul.msk.f32.gmra.mxu3 %vm252_vm0, %v1036_v25  ;;  %2742 = vmatpush.msra.mxu0 %v4071_v24  ;;  %v1047_v14 = vld [vmem:[%s4266_s25 + $0xa2] sm:$0xff] }
  0x96   : > { %v4473_v28 = vpop.f32.mrf.mxu2 }
  0x97   : > { %3921 = vmatmul.msk.f32.gmra.mxu0 %vm252_vm0, %v1346_v27 }
  0x98   : > { %v4476_v29 = vpop.f32.mrf.mxu1  ;;  %v4478_v30 = vpop.f32.mrf.mxu3 }
  0x9b   : > { %3802 = vmatmul.msk.f32.gmra.mxu1 %vm252_vm0, %v179_v31  ;;  %3842 = vmatmul.msk.f32.gmra.mxu2 %vm252_vm0, %v1035_v20  ;;  %v1044_v20 = vld [vmem:[%s4266_s25 + $0x8a] sm:$0xff] }
  0x9c   : > { %v4484_v33 = vpop.f32.mrf.mxu0 }
  0x9d   : > { %3882 = vmatmul.msk.f32.gmra.mxu3 %vm252_vm0, %v1037_v32 }
  0x9e   : > { %v4488_v35 = vpop.f32.mrf.mxu2 }
  0x9f   : > { %3922 = vmatmul.msk.f32.gmra.mxu0 %vm252_vm0, %v1347_v34  ;;  %v1045_v34 = vld [vmem:[%s4266_s25 + $0x92] sm:$0xff] }
  0xa0   : > { %v4491_v36 = vpop.f32.mrf.mxu1  ;;  %v4493_v37 = vpop.f32.mrf.mxu3 }
  0xa3   : > { %3803 = vmatmul.msk.f32.gmra.mxu1 %vm252_vm0, %v180_v38  ;;  %3843 = vmatmul.msk.f32.gmra.mxu2 %vm252_vm0, %v1036_v25 }
  0xa4   : > { %v4499_v40 = vpop.f32.mrf.mxu0 }
  0xa5   : > { %3883 = vmatmul.msk.f32.gmra.mxu3 %vm252_vm0, %v1038_v39 }
  0xa6   : > { %v4503_v42 = vpop.f32.mrf.mxu2 }
  0xa7   : > { %3923 = vmatmul.msk.f32.gmra.mxu0 %vm252_vm0, %v1348_v41 }
  0xa8   : > { %v4506_v43 = vpop.f32.mrf.mxu1  ;;  %v4508_v44 = vpop.f32.mrf.mxu3 }
  0xab   : > { %3804 = vmatmul.msk.f32.gmra.mxu1 %vm252_vm0, %v181_v45  ;;  %3844 = vmatmul.msk.f32.gmra.mxu2 %vm252_vm0, %v1037_v32  ;;  %v187_v32 = vld [vmem:[%s4266_s25 + $0x80] sm:$0xff] }
  0xac   : > { %v4514_v47 = vpop.f32.mrf.mxu0 }
  0xad   : > { %3884 = vmatmul.msk.f32.gmra.mxu3 %vm252_vm0, %v1039_v46 }
  0xae   : > { %v4518_v49 = vpop.f32.mrf.mxu2 }
  0xaf   : > { %3924 = vmatmul.msk.f32.gmra.mxu0 %vm252_vm0, %v1349_v48 }
  0xb0   : > { %v4521_v50 = vpop.f32.mrf.mxu1  ;;  %v4523_v51 = vpop.f32.mrf.mxu3 }
  0xb3   : > { %3805 = vmatmul.msk.f32.gmra.mxu1 %vm252_vm0, %v182_v52  ;;  %3845 = vmatmul.msk.f32.gmra.mxu2 %vm252_vm0, %v1038_v39  ;;  %v1355_v39 = vld [vmem:[%s4266_s25 + $0x93] sm:$0xff] }
  0xb4   : > { %v4529_v54 = vpop.f32.mrf.mxu0 }
  0xb5   : > { %3885 = vmatmul.msk.f32.gmra.mxu3 %vm252_vm0, %v1040_v53 }
  0xb6   : > { %v4533_v56 = vpop.f32.mrf.mxu2 }
  0xb7   : > { %3925 = vmatmul.msk.f32.gmra.mxu0 %vm252_vm0, %v1350_v55 }
  0xb8   : > { %v4536_v57 = vpop.f32.mrf.mxu1  ;;  %v4538_v58 = vpop.f32.mrf.mxu3 }
  0xbb   : > { %3806 = vmatmul.msk.f32.gmra.mxu1 %vm252_vm0, %v183_v59  ;;  %3846 = vmatmul.msk.f32.gmra.mxu2 %vm252_vm0, %v1039_v46  ;;  %v1046_v59 = vld [vmem:[%s4266_s25 + $0x9a] sm:$0xff] }
  0xbc   : > { %v4544_v61 = vpop.f32.mrf.mxu0 }
  0xbd   : > { %3886 = vmatmul.msk.f32.gmra.mxu3 %vm252_vm0, %v1041_v60 }
  0xbe   : > { %v4548_v63 = vpop.f32.mrf.mxu2 }
  0xbf   : > { %3926 = vmatmul.msk.f32.gmra.mxu0 %vm252_vm0, %v1351_v62  ;;  %v1356_v62 = vld [vmem:[%s4266_s25 + $0x9b] sm:$0xff] }
  0xc0   : > { %v4551_v0 = vpop.f32.mrf.mxu1  ;;  %v4553_v1 = vpop.f32.mrf.mxu3 }
  0xc3   : > { %3807 = vmatmul.msk.f32.gmra.mxu1 %vm252_vm0, %v184_v2  ;;  %3847 = vmatmul.msk.f32.gmra.mxu2 %vm252_vm0, %v1040_v53  ;;  %v188_v53 = vld [vmem:[%s4266_s25 + $0x88] sm:$0xff] }
  0xc4   : > { %v4559_v4 = vpop.f32.mrf.mxu0 }
  0xc5   : > { %3887 = vmatmul.msk.f32.gmra.mxu3 %vm252_vm0, %v1042_v3 }
  0xc6   : > { %v4563_v6 = vpop.f32.mrf.mxu2 }
  0xc7   : > { %3927 = vmatmul.msk.f32.gmra.mxu0 %vm252_vm0, %v1352_v5 }
  0xc8   : > { %v4566_v7 = vpop.f32.mrf.mxu1  ;;  %v4568_v8 = vpop.f32.mrf.mxu3 }
  0xcb   : > { %3808 = vmatmul.msk.f32.gmra.mxu1 %vm252_vm0, %v185_v9  ;;  %3848 = vmatmul.msk.f32.gmra.mxu2 %vm252_vm0, %v1041_v60 }
  0xcc   : > { %v4577_v12 = vpop.f32.mrf.mxu0 }
  0xcd   : > { %3888 = vmatmul.msk.f32.gmra.mxu3 %vm252_vm0, %v1043_v10 }
  0xce   : > { %v4584_v15 = vpop.f32.mrf.mxu2 }
  0xcf   : > { %3928 = vmatmul.msk.f32.gmra.mxu0 %vm252_vm0, %v1353_v13 }
  0xd0   : > { %v4590_v17 = vpop.f32.mrf.mxu1  ;;  %v4592_v18 = vpop.f32.mrf.mxu3 }
  0xd3   : > { %3809 = vmatmul.msk.f32.gmra.mxu1 %vm252_vm0, %v186_v19  ;;  %3849 = vmatmul.msk.f32.gmra.mxu2 %vm252_vm0, %v1042_v3  ;;  %v1357_v19 = vld [vmem:[%s4266_s25 + $0xa3] sm:$0xff] }
  0xd4   : > { %v4598_v21 = vpop.f32.mrf.mxu0 }
  0xd5   : > { %3889 = vmatmul.msk.f32.gmra.mxu3 %vm252_vm0, %v1044_v20 }
  0xd6   : > { %v4605_v25 = vpop.f32.mrf.mxu2 }
  0xd7   : > { %3929 = vmatmul.msk.f32.gmra.mxu0 %vm252_vm0, %v1354_v22 }
  0xd8   : > { %v4608_v27 = vpop.f32.mrf.mxu3  ;;  %v611_v31 = vpop.f32.mrf.mxu1 }
  0xd9   : > { %v612_v41 = vadd.f32 %v611_v31, %v4469_v26 }
  0xdb   : > { %3810 = vmatmul.msk.f32.gmra.mxu1 %vm252_vm0, %v187_v32  ;;  %3850 = vmatmul.msk.f32.gmra.mxu2 %vm252_vm0, %v1043_v10 }
  0xdc   : > { %v1505_v38 = vpop.f32.mrf.mxu0 }
  0xdd   : > { %3890 = vmatmul.msk.f32.gmra.mxu3 %vm252_vm0, %v1045_v34 }
  0xde   : > { %v885_v45 = vpop.f32.mrf.mxu2 }
  0xdf   : > { %v993_v46 = vadd.f32 %v885_v45, %v612_v41  ;;  %3930 = vmatmul.msk.f32.gmra.mxu0 %vm252_vm0, %v1355_v39  ;;  %v1048_v41 = vld [vmem:[%s4266_s25 + $0xaa] sm:$0xff] }
  0xe0   : > { %v614_v48 = vpop.f32.mrf.mxu1  ;;  %v1195_v52 = vpop.f32.mrf.mxu3 }
  0xe1   : > { %v1303_v55 = vadd.f32 %v1195_v52, %v993_v46  ;;  %v615_v2 = vadd.f32 %v614_v48, %v4484_v33 }
  0xe3   : > { %v4620_v60 = vadd.f32 %v1505_v38, %v1303_v55  ;;  %3811 = vmatmul.msk.f32.gmra.mxu1 %vm252_vm0, %v188_v53  ;;  %3851 = vmatmul.msk.f32.gmra.mxu2 %vm252_vm0, %v1044_v20  ;;  %v190_v38 = vld [vmem:[%s4266_s25 + $0x98] sm:$0xff] }
  0xe4   : > { %v1508_v26 = vpop.f32.mrf.mxu0 }
  0xe5   : > { %3891 = vmatmul.msk.f32.gmra.mxu3 %vm252_vm0, %v1046_v59 }
  0xe6   : > { %v888_v3 = vpop.f32.mrf.mxu2 }
  0xe7   : > { %v994_v5 = vadd.f32 %v888_v3, %v615_v2  ;;  %3931 = vmatmul.msk.f32.gmra.mxu0 %vm252_vm0, %v1356_v62  ;;  %v1049_v2 = vld [vmem:[%s4266_s25 + $0xb2] sm:$0xff] }
  0xe8   : > { %v617_v9 = vpop.f32.mrf.mxu1  ;;  %v1198_v10 = vpop.f32.mrf.mxu3 }
  0xe9   : > { %v1304_v13 = vadd.f32 %v1198_v10, %v994_v5  ;;  %v618_v20 = vadd.f32 %v617_v9, %v4499_v40 }
  0xeb   : > { %v4630_v16 = vadd.f32 %v1508_v26, %v1304_v13  ;;  %3812 = vmatmul.msk.f32.gmra.mxu1 %vm252_vm0, %v189_v11  ;;  %3852 = vmatmul.msk.f32.gmra.mxu2 %vm252_vm0, %v1045_v34  ;;  %v1358_v34 = vld [vmem:[%s4266_s25 + $0xab] sm:$0xff]  ;;  %v191_v26 = vld [vmem:[%s4266_s25 + $0xa0] sm:$0xff] }
  0xec   : > { %v1511_v33 = vpop.f32.mrf.mxu0 }
  0xed   : > { %3892 = vmatmul.msk.f32.gmra.mxu3 %vm252_vm0, %v1047_v14 }
  0xee   : > { %v891_v22 = vpop.f32.mrf.mxu2 }
  0xef   : > { %v995_v24 = vadd.f32 %v891_v22, %v618_v20  ;;  %3932 = vmatmul.msk.f32.gmra.mxu0 %vm252_vm0, %v1357_v19  ;;  %v1050_v20 = vld [vmem:[%s4266_s25 + $0xba] sm:$0xff] }
  0xf0   : > { %v620_v31 = vpop.f32.mrf.mxu1  ;;  %v1201_v32 = vpop.f32.mrf.mxu3 }
  0xf1   : > { %v1305_v39 = vadd.f32 %v1201_v32, %v995_v24  ;;  %v621_v46 = vadd.f32 %v620_v31, %v4514_v47 }
  0xf3   : > { %v4640_v45 = vadd.f32 %v1511_v33, %v1305_v39  ;;  %3813 = vmatmul.msk.f32.gmra.mxu1 %vm252_vm0, %v190_v38  ;;  %3853 = vmatmul.msk.f32.gmra.mxu2 %vm252_vm0, %v1046_v59  ;;  %v1359_v59 = vld [vmem:[%s4266_s25 + $0xb3] sm:$0xff]  ;;  %v192_v33 = vld [vmem:[%s4266_s25 + $0xa8] sm:$0xff] }
  0xf4   : > { %v1514_v40 = vpop.f32.mrf.mxu0 }
  0xf5   : > { %3893 = vmatmul.msk.f32.gmra.mxu3 %vm252_vm0, %v1048_v41 }
  0xf6   : > { %v894_v48 = vpop.f32.mrf.mxu2 }
  0xf7   : > { %v996_v52 = vadd.f32 %v894_v48, %v621_v46  ;;  %3933 = vmatmul.msk.f32.gmra.mxu0 %vm252_vm0, %v1358_v34  ;;  %v1051_v46 = vld [vmem:[%s4266_s25 + $0xc2] sm:$0xff] }
  0xf8   : > { %v623_v53 = vpop.f32.mrf.mxu1  ;;  %v1204_v55 = vpop.f32.mrf.mxu3 }
  0xf9   : > { %v1306_v62 = vadd.f32 %v1204_v55, %v996_v52  ;;  %v624_v5 = vadd.f32 %v623_v53, %v4529_v54 }
  0xfb   : > { %v4650_v3 = vadd.f32 %v1514_v40, %v1306_v62  ;;  %3814 = vmatmul.msk.f32.gmra.mxu1 %vm252_vm0, %v191_v26  ;;  %3854 = vmatmul.msk.f32.gmra.mxu2 %vm252_vm0, %v1047_v14  ;;  %v1360_v14 = vld [vmem:[%s4266_s25 + $0xbb] sm:$0xff]  ;;  %v193_v40 = vld [vmem:[%s4266_s25 + $0xb0] sm:$0xff] }
  0xfc   : > { %v1517_v47 = vpop.f32.mrf.mxu0 }
  0xfd   : > { %3894 = vmatmul.msk.f32.gmra.mxu3 %vm252_vm0, %v1049_v2 }
  0xfe   : > { %v897_v9 = vpop.f32.mrf.mxu2 }
  0xff   : > { %v997_v10 = vadd.f32 %v897_v9, %v624_v5  ;;  %3934 = vmatmul.msk.f32.gmra.mxu0 %vm252_vm0, %v1359_v59  ;;  %v1052_v5 = vld [vmem:[%s4266_s25 + $0xca] sm:$0xff] }
 0x100   : > { %v626_v11 = vpop.f32.mrf.mxu1  ;;  %v1207_v13 = vpop.f32.mrf.mxu3 }
 0x101   : > { %v1307_v19 = vadd.f32 %v1207_v13, %v997_v10  ;;  %v627_v24 = vadd.f32 %v626_v11, %v4544_v61  ;;  %v1362_v10 = vld [vmem:[%s4266_s25 + $0xcb] sm:$0xff]  ;;  %v4030_v13 = vld [vmem:[%s5637_s1 + $0xe0] sm:$0xff] }
 0x102   : > { %2433 = vmatpush.msra.mxu3 %v4030_v13  ;;  %v197_v13 = vld [vmem:[%s4266_s25 + $0xd0] sm:$0xff] }
 0x103   : > { %v4660_v22 = vadd.f32 %v1517_v47, %v1307_v19  ;;  %3815 = vmatmul.msk.f32.gmra.mxu1 %vm252_vm0, %v192_v33  ;;  %3855 = vmatmul.msk.f32.gmra.mxu2 %vm252_vm0, %v1048_v41  ;;  %v1361_v41 = vld [vmem:[%s4266_s25 + $0xc3] sm:$0xff]  ;;  %v194_v47 = vld [vmem:[%s4266_s25 + $0xb8] sm:$0xff] }
 0x104   : > { %v1520_v54 = vpop.f32.mrf.mxu0 }
 0x105   : > { %3895 = vmatmul.msk.f32.gmra.mxu3 %vm252_vm0, %v1050_v20 }
 0x106   : > { %v900_v31 = vpop.f32.mrf.mxu2 }
 0x107   : > { %v998_v32 = vadd.f32 %v900_v31, %v627_v24  ;;  %3935 = vmatmul.msk.f32.gmra.mxu0 %vm252_vm0, %v1360_v14  ;;  %v195_v24 = vld [vmem:[%s4266_s25 + $0xc0] sm:$0xff]  ;;  %v1053_v31 = vld [vmem:[%s4266_s25 + $0xd2] sm:$0xff] }
 0x108   : > { %v629_v38 = vpop.f32.mrf.mxu1  ;;  %v1210_v39 = vpop.f32.mrf.mxu3 }
 0x109   : > { %v1308_v34 = vadd.f32 %v1210_v39, %v998_v32  ;;  %v630_v52 = vadd.f32 %v629_v38, %v4559_v4  ;;  %v3990_v4 = vld [vmem:[%s5637_s1 + $0xc0] sm:$0xff]  ;;  %v1363_v39 = vld [vmem:[%s4266_s25 + $0xd3] sm:$0xff] }
 0x10a   : > { %2123 = vmatpush.msra.mxu2 %v3990_v4 }
 0x10b   : > { %v4670_v48 = vadd.f32 %v1520_v54, %v1308_v34  ;;  %3816 = vmatmul.msk.f32.gmra.mxu1 %vm252_vm0, %v193_v40  ;;  %3856 = vmatmul.msk.f32.gmra.mxu2 %vm252_vm0, %v1049_v2  ;;  %v4070_v34 = vld [vmem:[%s5637_s1 + $0x100] sm:$0xff] }
 0x10c   : > { %v1523_v61 = vpop.f32.mrf.mxu0  ;;  %2743 = vmatpush.msra.mxu0 %v4070_v34  ;;  %v1056_v34 = vld [vmem:[%s4266_s25 + $0xea] sm:$0xff] }
 0x10d   : > { %3896 = vmatmul.msk.f32.gmra.mxu3 %vm252_vm0, %v1051_v46 }
 0x10e   : > { %v903_v53 = vpop.f32.mrf.mxu2 }
 0x10f   : > { %v999_v55 = vadd.f32 %v903_v53, %v630_v52  ;;  %3936 = vmatmul.msk.f32.gmra.mxu0 %vm252_vm0, %v1361_v41 }
 0x110   : > { %v632_v26 = vpop.f32.mrf.mxu1  ;;  %v1213_v62 = vpop.f32.mrf.mxu3 }
 0x111   : > { %v1309_v59 = vadd.f32 %v1213_v62, %v999_v55  ;;  %v633_v11 = vadd.f32 %v632_v26, %v4577_v12  ;;  %v1054_v26 = vld [vmem:[%s4266_s25 + $0xda] sm:$0xff] }
 0x113   : > { %v4680_v9 = vadd.f32 %v1523_v61, %v1309_v59  ;;  %3817 = vmatmul.msk.f32.gmra.mxu1 %vm252_vm0, %v194_v47  ;;  %3857 = vmatmul.msk.f32.gmra.mxu2 %vm252_vm0, %v1050_v20  ;;  %v3950_v20 = vld [vmem:[%s5637_s1 + $0xa0] sm:$0xff] }
 0x114   : > { %v1526_v2 = vpop.f32.mrf.mxu0  ;;  %1813 = vmatpush.msra.mxu1 %v3950_v20  ;;  %v1364_v47 = vld [vmem:[%s4266_s25 + $0xdb] sm:$0xff] }
 0x115   : > { %3897 = vmatmul.msk.f32.gmra.mxu3 %vm252_vm0, %v1052_v5 }
 0x116   : > { %v906_v33 = vpop.f32.mrf.mxu2 }
 0x117   : > { %v1000_v19 = vadd.f32 %v906_v33, %v633_v11  ;;  %3937 = vmatmul.msk.f32.gmra.mxu0 %vm252_vm0, %v1362_v10 }
 0x118   : > { %v635_v54 = vpop.f32.mrf.mxu1  ;;  %v1216_v14 = vpop.f32.mrf.mxu3 }
 0x119   : > { %v1310_v12 = vadd.f32 %v1216_v14, %v1000_v19  ;;  %v636_v40 = vadd.f32 %v635_v54, %v4598_v21  ;;  %v1055_v19 = vld [vmem:[%s4266_s25 + $0xe2] sm:$0xff] }
 0x11b   : > { %v4699_v32 = vadd.f32 %v1526_v2, %v1310_v12  ;;  %3818 = vmatmul.msk.f32.gmra.mxu1 %vm252_vm0, %v195_v24  ;;  %3858 = vmatmul.msk.f32.gmra.mxu2 %vm252_vm0, %v1051_v46  ;;  %v196_v46 = vld [vmem:[%s4266_s25 + $0xc8] sm:$0xff] }
 0x11c   : > { %v1529_v38 = vpop.f32.mrf.mxu0 }
 0x11d   : > { %3898 = vmatmul.msk.f32.gmra.mxu3 %vm252_vm0, %v1053_v31 }
 0x11e   : > { %v909_v61 = vpop.f32.mrf.mxu2 }
 0x11f   : > { %v1001_v41 = vadd.f32 %v909_v61, %v636_v40  ;;  %3938 = vmatmul.msk.f32.gmra.mxu0 %vm252_vm0, %v1363_v39  ;;  %v198_v39 = vld [vmem:[%s4266_s25 + $0xd8] sm:$0xff] }
 0x120   : > { %v638_v52 = vpop.f32.mrf.mxu1  ;;  %v1219_v53 = vpop.f32.mrf.mxu3 }
 0x121   : > { %v1311_v55 = vadd.f32 %v1219_v53, %v1001_v41  ;;  %v639_v59 = vadd.f32 %v638_v52, %v4463_v23 }
 0x123   : > { %v4712_v21 = vadd.f32 %v1529_v38, %v1311_v55  ;;  %3819 = vmatmul.msk.f32.gmra.mxu1 %vm252_vm0, %v196_v46  ;;  %3859 = vmatmul.msk.f32.gmra.mxu2 %vm252_vm0, %v1052_v5  ;;  %v1365_v5 = vld [vmem:[%s4266_s25 + $0xe3] sm:$0xff] }
 0x124   : > { %v1532_v62 = vpop.f32.mrf.mxu0 }
 0x125   : > { %3899 = vmatmul.msk.f32.gmra.mxu3 %vm252_vm0, %v1054_v26 }
 0x126   : > { %v912_v4 = vpop.f32.mrf.mxu2 }
 0x127   : > { %v1002_v2 = vadd.f32 %v912_v4, %v639_v59  ;;  %3939 = vmatmul.msk.f32.gmra.mxu0 %vm252_vm0, %v1364_v47  ;;  %v1057_v59 = vld [vmem:[%s4266_s25 + $0xf2] sm:$0xff] }
 0x128   : > { %v641_v10 = vpop.f32.mrf.mxu1  ;;  %v1222_v11 = vpop.f32.mrf.mxu3 }
 0x129   : > { %v1312_v33 = vadd.f32 %v1222_v11, %v1002_v2  ;;  %v642_v54 = vadd.f32 %v641_v10, %v4476_v29 }
 0x12b   : > { %v4722_v20 = vadd.f32 %v1532_v62, %v1312_v33  ;;  %3820 = vmatmul.msk.f32.gmra.mxu1 %vm252_vm0, %v197_v13  ;;  %3860 = vmatmul.msk.f32.gmra.mxu2 %vm252_vm0, %v1053_v31  ;;  %v1366_v31 = vld [vmem:[%s4266_s25 + $0xeb] sm:$0xff]  ;;  %v199_v62 = vld [vmem:[%s4266_s25 + $0xe0] sm:$0xff] }
 0x12c   : > { %v1535_v23 = vpop.f32.mrf.mxu0 }
 0x12d   : > { %3900 = vmatmul.msk.f32.gmra.mxu3 %vm252_vm0, %v1055_v19 }
 0x12e   : > { %v915_v14 = vpop.f32.mrf.mxu2 }
 0x12f   : > { %v1003_v24 = vadd.f32 %v915_v14, %v642_v54  ;;  %3940 = vmatmul.msk.f32.gmra.mxu0 %vm252_vm0, %v1365_v5  ;;  %v1058_v54 = vld [vmem:[%s4266_s25 + $0xfa] sm:$0xff] }
 0x130   : > { %v644_v12 = vpop.f32.mrf.mxu1  ;;  %v1225_v38 = vpop.f32.mrf.mxu3 }
 0x131   : > { %v1313_v40 = vadd.f32 %v1225_v38, %v1003_v24  ;;  %v645_v41 = vadd.f32 %v644_v12, %v4491_v36 }
 0x133   : > { %v4732_v61 = vadd.f32 %v1535_v23, %v1313_v40  ;;  %3821 = vmatmul.msk.f32.gmra.mxu1 %vm252_vm0, %v198_v39  ;;  %3861 = vmatmul.msk.f32.gmra.mxu2 %vm252_vm0, %v1054_v26  ;;  %v1367_v26 = vld [vmem:[%s4266_s25 + $0xf3] sm:$0xff]  ;;  %v200_v23 = vld [vmem:[%s4266_s25 + $0xe8] sm:$0xff] }
 0x134   : > { %v1538_v29 = vpop.f32.mrf.mxu0 }
 0x135   : > { %3901 = vmatmul.msk.f32.gmra.mxu3 %vm252_vm0, %v1056_v34 }
 0x136   : > { %v918_v52 = vpop.f32.mrf.mxu2 }
 0x137   : > { %v1004_v53 = vadd.f32 %v918_v52, %v645_v41  ;;  %3941 = vmatmul.msk.f32.gmra.mxu0 %vm252_vm0, %v1366_v31  ;;  %v1059_v41 = vld [vmem:[%s4266_s25 + $0x102] sm:$0xff] }
 0x138   : > { %v647_v46 = vpop.f32.mrf.mxu1  ;;  %v1228_v55 = vpop.f32.mrf.mxu3 }
 0x139   : > { %v1314_v47 = vadd.f32 %v1228_v55, %v1004_v53  ;;  %v648_v2 = vadd.f32 %v647_v46, %v4506_v43 }
 0x13b   : > { %v4742_v4 = vadd.f32 %v1538_v29, %v1314_v47  ;;  %3822 = vmatmul.msk.f32.gmra.mxu1 %vm252_vm0, %v199_v62  ;;  %3862 = vmatmul.msk.f32.gmra.mxu2 %vm252_vm0, %v1055_v19  ;;  %v1368_v19 = vld [vmem:[%s4266_s25 + $0xfb] sm:$0xff]  ;;  %v201_v29 = vld [vmem:[%s4266_s25 + $0xf0] sm:$0xff] }
 0x13c   : > { %v1541_v36 = vpop.f32.mrf.mxu0 }
 0x13d   : > { %3902 = vmatmul.msk.f32.gmra.mxu3 %vm252_vm0, %v1057_v59 }
 0x13e   : > { %v921_v10 = vpop.f32.mrf.mxu2 }
 0x13f   : > { %v1005_v11 = vadd.f32 %v921_v10, %v648_v2  ;;  %3942 = vmatmul.msk.f32.gmra.mxu0 %vm252_vm0, %v1367_v26  ;;  %v1060_v2 = vld [vmem:[%s4266_s25 + $0x10a] sm:$0xff] }
 0x140   : > { %v650_v13 = vpop.f32.mrf.mxu1  ;;  %v1231_v33 = vpop.f32.mrf.mxu3 }
 0x141   : > { %v1315_v5 = vadd.f32 %v1231_v33, %v1005_v11  ;;  %v651_v24 = vadd.f32 %v650_v13, %v4521_v50 }
 0x143   : > { %v4752_v14 = vadd.f32 %v1541_v36, %v1315_v5  ;;  %3823 = vmatmul.msk.f32.gmra.mxu1 %vm252_vm0, %v200_v23  ;;  %3863 = vmatmul.msk.f32.gmra.mxu2 %vm252_vm0, %v1056_v34  ;;  %v1369_v34 = vld [vmem:[%s4266_s25 + $0x103] sm:$0xff]  ;;  %v202_v36 = vld [vmem:[%s4266_s25 + $0xf8] sm:$0xff] }
 0x144   : > { %v1544_v43 = vpop.f32.mrf.mxu0 }
 0x145   : > { %3903 = vmatmul.msk.f32.gmra.mxu3 %vm252_vm0, %v1058_v54 }
 0x146   : > { %v924_v12 = vpop.f32.mrf.mxu2 }
 0x147   : > { %v1006_v38 = vadd.f32 %v924_v12, %v651_v24  ;;  %3943 = vmatmul.msk.f32.gmra.mxu0 %vm252_vm0, %v1368_v19  ;;  %v1061_v24 = vld [vmem:[%s4266_s25 + $0x112] sm:$0xff] }
 0x148   : > { %v653_v39 = vpop.f32.mrf.mxu1  ;;  %v1234_v40 = vpop.f32.mrf.mxu3 }
 0x149   : > { %v1316_v31 = vadd.f32 %v1234_v40, %v1006_v38  ;;  %v654_v53 = vadd.f32 %v653_v39, %v4536_v57 }
 0x14b   : > { %v4762_v52 = vadd.f32 %v1544_v43, %v1316_v31  ;;  %3824 = vmatmul.msk.f32.gmra.mxu1 %vm252_vm0, %v201_v29  ;;  %3864 = vmatmul.msk.f32.gmra.mxu2 %vm252_vm0, %v1057_v59  ;;  %v1370_v59 = vld [vmem:[%s4266_s25 + $0x10b] sm:$0xff]  ;;  %v203_v43 = vld [vmem:[%s4266_s25 + $0x100] sm:$0xff] }
 0x14c   : > { %v1547_v50 = vpop.f32.mrf.mxu0 }
 0x14d   : > { %3904 = vmatmul.msk.f32.gmra.mxu3 %vm252_vm0, %v1059_v41 }
 0x14e   : > { %v927_v46 = vpop.f32.mrf.mxu2 }
 0x14f   : > { %v1007_v55 = vadd.f32 %v927_v46, %v654_v53  ;;  %3944 = vmatmul.msk.f32.gmra.mxu0 %vm252_vm0, %v1369_v34  ;;  %v1062_v53 = vld [vmem:[%s4266_s25 + $0x11a] sm:$0xff] }
 0x150   : > { %v656_v62 = vpop.f32.mrf.mxu1  ;;  %v1237_v47 = vpop.f32.mrf.mxu3 }
 0x151   : > { %v1317_v26 = vadd.f32 %v1237_v47, %v1007_v55  ;;  %v657_v11 = vadd.f32 %v656_v62, %v4551_v0 }
 0x153   : > { %v4772_v10 = vadd.f32 %v1547_v50, %v1317_v26  ;;  %3825 = vmatmul.msk.f32.gmra.mxu1 %vm252_vm0, %v202_v36  ;;  %3865 = vmatmul.msk.f32.gmra.mxu2 %vm252_vm0, %v1058_v54  ;;  %v1371_v54 = vld [vmem:[%s4266_s25 + $0x113] sm:$0xff]  ;;  %v204_v50 = vld [vmem:[%s4266_s25 + $0x108] sm:$0xff] }
 0x154   : > { %v1550_v57 = vpop.f32.mrf.mxu0 }
 0x155   : > { %3905 = vmatmul.msk.f32.gmra.mxu3 %vm252_vm0, %v1060_v2 }
 0x156   : > { %v930_v13 = vpop.f32.mrf.mxu2 }
 0x157   : > { %v1008_v33 = vadd.f32 %v930_v13, %v657_v11  ;;  %3945 = vmatmul.msk.f32.gmra.mxu0 %vm252_vm0, %v1370_v59  ;;  %v1063_v11 = vld [vmem:[%s4266_s25 + $0x122] sm:$0xff] }
 0x158   : > { %v659_v23 = vpop.f32.mrf.mxu1  ;;  %v1240_v5 = vpop.f32.mrf.mxu3 }
 0x159   : > { %v1318_v19 = vadd.f32 %v1240_v5, %v1008_v33  ;;  %v660_v38 = vadd.f32 %v659_v23, %v4566_v7 }
 0x15b   : > { %v4782_v12 = vadd.f32 %v1550_v57, %v1318_v19  ;;  %3826 = vmatmul.msk.f32.gmra.mxu1 %vm252_vm0, %v203_v43  ;;  %3866 = vmatmul.msk.f32.gmra.mxu2 %vm252_vm0, %v1059_v41  ;;  %v1372_v41 = vld [vmem:[%s4266_s25 + $0x11b] sm:$0xff]  ;;  %v205_v57 = vld [vmem:[%s4266_s25 + $0x110] sm:$0xff] }
 0x15c   : > { %v1553_v0 = vpop.f32.mrf.mxu0 }
 0x15d   : > { %3906 = vmatmul.msk.f32.gmra.mxu3 %vm252_vm0, %v1061_v24 }
 0x15e   : > { %v933_v39 = vpop.f32.mrf.mxu2 }
 0x15f   : > { %v1009_v40 = vadd.f32 %v933_v39, %v660_v38  ;;  %3946 = vmatmul.msk.f32.gmra.mxu0 %vm252_vm0, %v1371_v54  ;;  %v1064_v38 = vld [vmem:[%s4266_s25 + $0x12a] sm:$0xff] }
 0x160   : > { %v662_v29 = vpop.f32.mrf.mxu1  ;;  %v1243_v31 = vpop.f32.mrf.mxu3  ;;  %v1374_v39 = vld [vmem:[%s4266_s25 + $0x12b] sm:$0xff] }
 0x161   : > { %v1319_v34 = vadd.f32 %v1243_v31, %v1009_v40  ;;  %v663_v55 = vadd.f32 %v662_v29, %v4590_v17 }
 0x163   : > { %v4792_v46 = vadd.f32 %v1553_v0, %v1319_v34  ;;  %3827 = vmatmul.msk.f32.gmra.mxu1 %vm252_vm0, %v204_v50  ;;  %3867 = vmatmul.msk.f32.gmra.mxu2 %vm252_vm0, %v1060_v2  ;;  %v1373_v2 = vld [vmem:[%s4266_s25 + $0x123] sm:$0xff]  ;;  %v206_v0 = vld [vmem:[%s4266_s25 + $0x118] sm:$0xff] }
 0x164   : > { %v1556_v7 = vpop.f32.mrf.mxu0 }
 0x165   : > { %3907 = vmatmul.msk.f32.gmra.mxu3 %vm252_vm0, %v1062_v53 }
 0x166   : > { %v936_v62 = vpop.f32.mrf.mxu2 }
 0x167   : > { %v1010_v47 = vadd.f32 %v936_v62, %v663_v55  ;;  %3947 = vmatmul.msk.f32.gmra.mxu0 %vm252_vm0, %v1372_v41  ;;  %v1959_v41 = vld [vmem:[%s4266_s25 + $0x24] sm:$0xff] }
 0x168   : > { %v665_v36 = vpop.f32.mrf.mxu1  ;;  %v1246_v26 = vpop.f32.mrf.mxu3  ;;  %v2269_v62 = vld [vmem:[%s4266_s25 + $0x25] sm:$0xff] }
 0x169   : > { %v1320_v59 = vadd.f32 %v1246_v26, %v1010_v47  ;;  %v666_v33 = vadd.f32 %v665_v36, %v4473_v28  ;;  %v2579_v47 = vld [vmem:[%s4266_s25 + $0x26] sm:$0xff] }
 0x16b   : > { %v4802_v13 = vadd.f32 %v1556_v7, %v1320_v59  ;;  %3828 = vmatmul.msk.f32.gmra.mxu1 %vm252_vm0, %v205_v57  ;;  %3868 = vmatmul.msk.f32.gmra.mxu2 %vm252_vm0, %v1061_v24  ;;  %v1649_v7 = vld [vmem:[%s4266_s25 + $0x14] sm:$0xff] }
 0x16c   : > { %v1559_v17 = vpop.f32.mrf.mxu0 }
 0x16d   : > { %3908 = vmatmul.msk.f32.gmra.mxu3 %vm252_vm0, %v1063_v11 }
 0x16e   : > { %v939_v23 = vpop.f32.mrf.mxu2 }
 0x16f   : > { %v1011_v5 = vadd.f32 %v939_v23, %v666_v33  ;;  %3948 = vmatmul.msk.f32.gmra.mxu0 %vm252_vm0, %v1373_v2  ;;  %v1960_v2 = vld [vmem:[%s4266_s25 + $0x2c] sm:$0xff] }
 0x170   : > { %v668_v43 = vpop.f32.mrf.mxu1  ;;  %v1249_v19 = vpop.f32.mrf.mxu3  ;;  %v2270_v23 = vld [vmem:[%s4266_s25 + $0x2d] sm:$0xff] }
 0x171   : > { %v1321_v54 = vadd.f32 %v1249_v19, %v1011_v5  ;;  %v669_v40 = vadd.f32 %v668_v43, %v4488_v35  ;;  %v2580_v43 = vld [vmem:[%s4266_s25 + $0x2e] sm:$0xff] }
 0x173   : > { %v4812_v24 = vadd.f32 %v1559_v17, %v1321_v54  ;;  %3829 = vmatmul.msk.f32.gmra.mxu1 %vm252_vm0, %v206_v0  ;;  %3869 = vmatmul.msk.f32.gmra.mxu2 %vm252_vm0, %v1062_v53  ;;  %v1650_v17 = vld [vmem:[%s4266_s25 + $0x1c] sm:$0xff] }
 0x174   : > { %v1562_v28 = vpop.f32.mrf.mxu0 }
 0x175   : > { %3909 = vmatmul.msk.f32.gmra.mxu3 %vm252_vm0, %v1064_v38 }
 0x176   : > { %v942_v29 = vpop.f32.mrf.mxu2 }
 0x177   : > { %v1012_v31 = vadd.f32 %v942_v29, %v669_v40  ;;  %3949 = vmatmul.msk.f32.gmra.mxu0 %vm252_vm0, %v1374_v39  ;;  %v1961_v39 = vld [vmem:[%s4266_s25 + $0x34] sm:$0xff] }
 0x178   : > { %v671_v50 = vpop.f32.mrf.mxu1  ;;  %v1252_v34 = vpop.f32.mrf.mxu3  ;;  %v2271_v29 = vld [vmem:[%s4266_s25 + $0x35] sm:$0xff] }
 0x179   : > { %v1322_v55 = vadd.f32 %v1252_v34, %v1012_v31  ;;  %v672_v36 = vadd.f32 %v671_v50, %v4503_v42  ;;  %v2581_v50 = vld [vmem:[%s4266_s25 + $0x36] sm:$0xff] }
 0x17b   : > { %v4823_v53 = vadd.f32 %v1562_v28, %v1322_v55  ;;  %3954 = vmatmul.msk.f32.vlgmr.msra.gmra.mxu1 %vm252_vm0, %v1649_v7  ;;  %3994 = vmatmul.msk.f32.vlgmr.msra.gmra.mxu2 %vm252_vm0, %v1959_v41 }
 0x17c   : > { %v1565_v35 = vpop.f32.mrf.mxu0 }
 0x17d   : > { %4034 = vmatmul.msk.f32.vlgmr.msra.gmra.mxu3 %vm252_vm0, %v2269_v62 }
 0x17e   : > { %v945_v26 = vpop.f32.mrf.mxu2 }
 0x17f   : > { %v1013_v57 = vadd.f32 %v945_v26, %v672_v36  ;;  %4074 = vmatmul.msk.f32.vlgmr.msra.gmra.mxu0 %vm252_vm0, %v2579_v47  ;;  %v1962_v47 = vld [vmem:[%s4266_s25 + $0x3c] sm:$0xff] }
 0x180   : > { %v674_v59 = vpop.f32.mrf.mxu1  ;;  %v1255_v11 = vpop.f32.mrf.mxu3 }
 0x181   : > { %v1323_v33 = vadd.f32 %v1255_v11, %v1013_v57  ;;  %v675_v19 = vadd.f32 %v674_v59, %v4518_v49  ;;  %v2582_v57 = vld [vmem:[%s4266_s25 + $0x3e] sm:$0xff] }
 0x183   : > { %v4834_v5 = vadd.f32 %v1565_v35, %v1323_v33  ;;  %3955 = vmatmul.msk.f32.gmra.mxu1 %vm252_vm0, %v1650_v17  ;;  %3995 = vmatmul.msk.f32.gmra.mxu2 %vm252_vm0, %v1960_v2 }
 0x184   : > { %v1568_v42 = vpop.f32.mrf.mxu0 }
 0x185   : > { %4035 = vmatmul.msk.f32.gmra.mxu3 %vm252_vm0, %v2270_v23 }
 0x186   : > { %v948_v0 = vpop.f32.mrf.mxu2 }
 0x187   : > { %v1014_v54 = vadd.f32 %v948_v0, %v675_v19  ;;  %4075 = vmatmul.msk.f32.gmra.mxu0 %vm252_vm0, %v2580_v43  ;;  %v2583_v0 = vld [vmem:[%s4266_s25 + $0x46] sm:$0xff] }
 0x188   : > { %v677_v38 = vpop.f32.mrf.mxu1  ;;  %v1258_v28 = vpop.f32.mrf.mxu3 }
 0x189   : > { %v1324_v40 = vadd.f32 %v1258_v28, %v1014_v54  ;;  %v678_v34 = vadd.f32 %v677_v38, %v4533_v56 }
 0x18b   : > { %v4844_v31 = vadd.f32 %v1568_v42, %v1324_v40  ;;  %3956 = vmatmul.msk.f32.gmra.mxu1 %vm252_vm0, %v1959_v41  ;;  %3996 = vmatmul.msk.f32.gmra.mxu2 %vm252_vm0, %v1961_v39  ;;  %v2272_v41 = vld [vmem:[%s4266_s25 + $0x3d] sm:$0xff] }
 0x18c   : > { %v1571_v49 = vpop.f32.mrf.mxu0  ;;  %v1963_v42 = vld [vmem:[%s4266_s25 + $0x44] sm:$0xff] }
 0x18d   : > { %4036 = vmatmul.msk.f32.gmra.mxu3 %vm252_vm0, %v2271_v29 }
 0x18e   : > { %v951_v7 = vpop.f32.mrf.mxu2 }
 0x18f   : > { %v1015_v55 = vadd.f32 %v951_v7, %v678_v34  ;;  %4076 = vmatmul.msk.f32.gmra.mxu0 %vm252_vm0, %v2581_v50  ;;  %v2584_v7 = vld [vmem:[%s4266_s25 + $0x4e] sm:$0xff] }
 0x190   : > { %v680_v62 = vpop.f32.mrf.mxu1  ;;  %v1261_v35 = vpop.f32.mrf.mxu3 }
 0x191   : > { %v1325_v36 = vadd.f32 %v1261_v35, %v1015_v55  ;;  %v681_v59 = vadd.f32 %v680_v62, %v4548_v63 }
 0x193   : > { %v4854_v26 = vadd.f32 %v1571_v49, %v1325_v36  ;;  %3957 = vmatmul.msk.f32.gmra.mxu1 %vm252_vm0, %v1960_v2  ;;  %3997 = vmatmul.msk.f32.gmra.mxu2 %vm252_vm0, %v1962_v47  ;;  %v2273_v2 = vld [vmem:[%s4266_s25 + $0x45] sm:$0xff] }
 0x194   : > { %v1574_v56 = vpop.f32.mrf.mxu0  ;;  %v1964_v49 = vld [vmem:[%s4266_s25 + $0x4c] sm:$0xff] }
 0x195   : > { %4037 = vmatmul.msk.f32.gmra.mxu3 %vm252_vm0, %v2272_v41 }
 0x196   : > { %v954_v11 = vpop.f32.mrf.mxu2 }
 0x197   : > { %v1016_v17 = vadd.f32 %v954_v11, %v681_v59  ;;  %4077 = vmatmul.msk.f32.gmra.mxu0 %vm252_vm0, %v2582_v57  ;;  %v2585_v11 = vld [vmem:[%s4266_s25 + $0x56] sm:$0xff] }
 0x198   : > { %v683_v33 = vpop.f32.mrf.mxu1  ;;  %v1264_v23 = vpop.f32.mrf.mxu3 }
 0x199   : > { %v1326_v43 = vadd.f32 %v1264_v23, %v1016_v17  ;;  %v684_v54 = vadd.f32 %v683_v33, %v4563_v6 }
 0x19b   : > { %v4864_v19 = vadd.f32 %v1574_v56, %v1326_v43  ;;  %3958 = vmatmul.msk.f32.gmra.mxu1 %vm252_vm0, %v1961_v39  ;;  %3998 = vmatmul.msk.f32.gmra.mxu2 %vm252_vm0, %v1963_v42  ;;  %v2274_v39 = vld [vmem:[%s4266_s25 + $0x4d] sm:$0xff] }
 0x19c   : > { %v1577_v63 = vpop.f32.mrf.mxu0  ;;  %v1965_v56 = vld [vmem:[%s4266_s25 + $0x54] sm:$0xff] }
 0x19d   : > { %4038 = vmatmul.msk.f32.gmra.mxu3 %vm252_vm0, %v2273_v2 }
 0x19e   : > { %v957_v38 = vpop.f32.mrf.mxu2 }
 0x19f   : > { %v1017_v28 = vadd.f32 %v957_v38, %v684_v54  ;;  %4078 = vmatmul.msk.f32.gmra.mxu0 %vm252_vm0, %v2583_v0  ;;  %v2586_v38 = vld [vmem:[%s4266_s25 + $0x5e] sm:$0xff] }
 0x1a0   : > { %v686_v40 = vpop.f32.mrf.mxu1  ;;  %v1267_v29 = vpop.f32.mrf.mxu3 }
 0x1a1   : > { %v1327_v50 = vadd.f32 %v1267_v29, %v1017_v28  ;;  %v687_v55 = vadd.f32 %v686_v40, %v4584_v15 }
 0x1a3   : > { %v4874_v34 = vadd.f32 %v1577_v63, %v1327_v50  ;;  %3959 = vmatmul.msk.f32.gmra.mxu1 %vm252_vm0, %v1962_v47  ;;  %3999 = vmatmul.msk.f32.gmra.mxu2 %vm252_vm0, %v1964_v49  ;;  %v2275_v47 = vld [vmem:[%s4266_s25 + $0x55] sm:$0xff] }
 0x1a4   : > { %v1580_v6 = vpop.f32.mrf.mxu0  ;;  %v1966_v63 = vld [vmem:[%s4266_s25 + $0x5c] sm:$0xff] }
 0x1a5   : > { %4039 = vmatmul.msk.f32.gmra.mxu3 %vm252_vm0, %v2274_v39 }
 0x1a6   : > { %v960_v62 = vpop.f32.mrf.mxu2 }
 0x1a7   : > { %v1018_v35 = vadd.f32 %v960_v62, %v687_v55  ;;  %4079 = vmatmul.msk.f32.gmra.mxu0 %vm252_vm0, %v2584_v7  ;;  %v2587_v62 = vld [vmem:[%s4266_s25 + $0x66] sm:$0xff] }
 0x1a8   : > { %v689_v36 = vpop.f32.mrf.mxu1  ;;  %v1270_v41 = vpop.f32.mrf.mxu3 }
 0x1a9   : > { %v1328_v57 = vadd.f32 %v1270_v41, %v1018_v35  ;;  %v690_v17 = vadd.f32 %v689_v36, %v4605_v25 }
 0x1ab   : > { %v4884_v59 = vadd.f32 %v1580_v6, %v1328_v57  ;;  %3960 = vmatmul.msk.f32.gmra.mxu1 %vm252_vm0, %v1963_v42  ;;  %4000 = vmatmul.msk.f32.gmra.mxu2 %vm252_vm0, %v1965_v56  ;;  %v2276_v42 = vld [vmem:[%s4266_s25 + $0x5d] sm:$0xff] }
 0x1ac   : > { %v1583_v15 = vpop.f32.mrf.mxu0  ;;  %v1967_v6 = vld [vmem:[%s4266_s25 + $0x64] sm:$0xff] }
 0x1ad   : > { %4040 = vmatmul.msk.f32.gmra.mxu3 %vm252_vm0, %v2275_v47 }
 0x1ae   : > { %v963_v33 = vpop.f32.mrf.mxu2 }
 0x1af   : > { %v1019_v23 = vadd.f32 %v963_v33, %v690_v17  ;;  %4080 = vmatmul.msk.f32.gmra.mxu0 %vm252_vm0, %v2585_v11  ;;  %v2588_v33 = vld [vmem:[%s4266_s25 + $0x6e] sm:$0xff] }
 0x1b0   : > { %v692_v43 = vpop.f32.mrf.mxu1  ;;  %v1273_v2 = vpop.f32.mrf.mxu3 }
 0x1b1   : > { %v1329_v0 = vadd.f32 %v1273_v2, %v1019_v23  ;;  %v693_v28 = vadd.f32 %v692_v43, %v4478_v30 }
 0x1b3   : > { %v4894_v54 = vadd.f32 %v1583_v15, %v1329_v0  ;;  %3961 = vmatmul.msk.f32.gmra.mxu1 %vm252_vm0, %v1964_v49  ;;  %4001 = vmatmul.msk.f32.gmra.mxu2 %vm252_vm0, %v1966_v63  ;;  %v2277_v49 = vld [vmem:[%s4266_s25 + $0x65] sm:$0xff] }
 0x1b4   : > { %v1586_v25 = vpop.f32.mrf.mxu0  ;;  %v1968_v15 = vld [vmem:[%s4266_s25 + $0x6c] sm:$0xff] }
 0x1b5   : > { %4041 = vmatmul.msk.f32.gmra.mxu3 %vm252_vm0, %v2276_v42 }
 0x1b6   : > { %v966_v40 = vpop.f32.mrf.mxu2 }
 0x1b7   : > { %v1020_v29 = vadd.f32 %v966_v40, %v693_v28  ;;  %4081 = vmatmul.msk.f32.gmra.mxu0 %vm252_vm0, %v2586_v38  ;;  %v2589_v40 = vld [vmem:[%s4266_s25 + $0x76] sm:$0xff] }
 0x1b8   : > { %v695_v50 = vpop.f32.mrf.mxu1  ;;  %v1276_v39 = vpop.f32.mrf.mxu3 }
 0x1b9   : > { %v1330_v7 = vadd.f32 %v1276_v39, %v1020_v29  ;;  %v696_v35 = vadd.f32 %v695_v50, %v4493_v37 }
 0x1bb   : > { %v4904_v55 = vadd.f32 %v1586_v25, %v1330_v7  ;;  %3962 = vmatmul.msk.f32.gmra.mxu1 %vm252_vm0, %v1965_v56  ;;  %4002 = vmatmul.msk.f32.gmra.mxu2 %vm252_vm0, %v1967_v6  ;;  %v2278_v56 = vld [vmem:[%s4266_s25 + $0x6d] sm:$0xff] }
 0x1bc   : > { %v1589_v30 = vpop.f32.mrf.mxu0  ;;  %v1969_v25 = vld [vmem:[%s4266_s25 + $0x74] sm:$0xff] }
 0x1bd   : > { %4042 = vmatmul.msk.f32.gmra.mxu3 %vm252_vm0, %v2277_v49 }
 0x1be   : > { %v969_v36 = vpop.f32.mrf.mxu2 }
 0x1bf   : > { %v1021_v41 = vadd.f32 %v969_v36, %v696_v35  ;;  %4082 = vmatmul.msk.f32.gmra.mxu0 %vm252_vm0, %v2587_v62  ;;  %v2590_v36 = vld [vmem:[%s4266_s25 + $0x7e] sm:$0xff] }
 0x1c0   : > { %v698_v57 = vpop.f32.mrf.mxu1  ;;  %v1279_v47 = vpop.f32.mrf.mxu3 }
 0x1c1   : > { %v1331_v11 = vadd.f32 %v1279_v47, %v1021_v41  ;;  %v699_v23 = vadd.f32 %v698_v57, %v4508_v44 }
 0x1c3   : > { %v4914_v17 = vadd.f32 %v1589_v30, %v1331_v11  ;;  %3963 = vmatmul.msk.f32.gmra.mxu1 %vm252_vm0, %v1966_v63  ;;  %4003 = vmatmul.msk.f32.gmra.mxu2 %vm252_vm0, %v1968_v15  ;;  %v2279_v63 = vld [vmem:[%s4266_s25 + $0x75] sm:$0xff] }
 0x1c4   : > { %v1592_v37 = vpop.f32.mrf.mxu0  ;;  %v1970_v30 = vld [vmem:[%s4266_s25 + $0x7c] sm:$0xff] }
 0x1c5   : > { %4043 = vmatmul.msk.f32.gmra.mxu3 %vm252_vm0, %v2278_v56 }
 0x1c6   : > { %v972_v43 = vpop.f32.mrf.mxu2 }
 0x1c7   : > { %v1022_v2 = vadd.f32 %v972_v43, %v699_v23  ;;  %4083 = vmatmul.msk.f32.gmra.mxu0 %vm252_vm0, %v2588_v33  ;;  %v2591_v43 = vld [vmem:[%s4266_s25 + $0x86] sm:$0xff] }
 0x1c8   : > { %v701_v0 = vpop.f32.mrf.mxu1  ;;  %v1282_v42 = vpop.f32.mrf.mxu3 }
 0x1c9   : > { %v1332_v38 = vadd.f32 %v1282_v42, %v1022_v2  ;;  %v702_v29 = vadd.f32 %v701_v0, %v4523_v51 }
 0x1cb   : > { %v4924_v28 = vadd.f32 %v1592_v37, %v1332_v38  ;;  %3964 = vmatmul.msk.f32.gmra.mxu1 %vm252_vm0, %v1967_v6  ;;  %4004 = vmatmul.msk.f32.gmra.mxu2 %vm252_vm0, %v1969_v25  ;;  %v2280_v6 = vld [vmem:[%s4266_s25 + $0x7d] sm:$0xff] }
 0x1cc   : > { %v1595_v44 = vpop.f32.mrf.mxu0  ;;  %v1971_v37 = vld [vmem:[%s4266_s25 + $0x84] sm:$0xff] }
 0x1cd   : > { %4044 = vmatmul.msk.f32.gmra.mxu3 %vm252_vm0, %v2279_v63 }
 0x1ce   : > { %v975_v50 = vpop.f32.mrf.mxu2 }
 0x1cf   : > { %v1023_v39 = vadd.f32 %v975_v50, %v702_v29  ;;  %4084 = vmatmul.msk.f32.gmra.mxu0 %vm252_vm0, %v2589_v40  ;;  %v2592_v50 = vld [vmem:[%s4266_s25 + $0x8e] sm:$0xff] }
 0x1d0   : > { %v704_v7 = vpop.f32.mrf.mxu1  ;;  %v1285_v49 = vpop.f32.mrf.mxu3 }
 0x1d1   : > { %v1333_v62 = vadd.f32 %v1285_v49, %v1023_v39  ;;  %v705_v41 = vadd.f32 %v704_v7, %v4538_v58 }
 0x1d3   : > { %v4934_v35 = vadd.f32 %v1595_v44, %v1333_v62  ;;  %3965 = vmatmul.msk.f32.gmra.mxu1 %vm252_vm0, %v1968_v15  ;;  %4005 = vmatmul.msk.f32.gmra.mxu2 %vm252_vm0, %v1970_v30  ;;  %v2281_v15 = vld [vmem:[%s4266_s25 + $0x85] sm:$0xff] }
 0x1d4   : > { %v1598_v51 = vpop.f32.mrf.mxu0  ;;  %v1972_v44 = vld [vmem:[%s4266_s25 + $0x8c] sm:$0xff] }
 0x1d5   : > { %4045 = vmatmul.msk.f32.gmra.mxu3 %vm252_vm0, %v2280_v6 }
 0x1d6   : > { %v978_v57 = vpop.f32.mrf.mxu2 }
 0x1d7   : > { %v1024_v47 = vadd.f32 %v978_v57, %v705_v41  ;;  %4085 = vmatmul.msk.f32.gmra.mxu0 %vm252_vm0, %v2590_v36  ;;  %v2593_v57 = vld [vmem:[%s4266_s25 + $0x96] sm:$0xff] }
 0x1d8   : > { %v707_v11 = vpop.f32.mrf.mxu1  ;;  %v1288_v56 = vpop.f32.mrf.mxu3 }
 0x1d9   : > { %v1334_v33 = vadd.f32 %v1288_v56, %v1024_v47  ;;  %v708_v2 = vadd.f32 %v707_v11, %v4553_v1 }
 0x1db   : > { %v4944_v23 = vadd.f32 %v1598_v51, %v1334_v33  ;;  %3966 = vmatmul.msk.f32.gmra.mxu1 %vm252_vm0, %v1969_v25  ;;  %4006 = vmatmul.msk.f32.gmra.mxu2 %vm252_vm0, %v1971_v37  ;;  %v2282_v25 = vld [vmem:[%s4266_s25 + $0x8d] sm:$0xff] }
 0x1dc   : > { %v1601_v58 = vpop.f32.mrf.mxu0  ;;  %v1973_v51 = vld [vmem:[%s4266_s25 + $0x94] sm:$0xff] }
 0x1dd   : > { %4046 = vmatmul.msk.f32.gmra.mxu3 %vm252_vm0, %v2281_v15 }
 0x1de   : > { %v981_v0 = vpop.f32.mrf.mxu2 }
 0x1df   : > { %v1025_v42 = vadd.f32 %v981_v0, %v708_v2  ;;  %4086 = vmatmul.msk.f32.gmra.mxu0 %vm252_vm0, %v2591_v43  ;;  %v2594_v0 = vld [vmem:[%s4266_s25 + $0x9e] sm:$0xff] }
 0x1e0   : > { %v710_v38 = vpop.f32.mrf.mxu1  ;;  %v1291_v63 = vpop.f32.mrf.mxu3 }
 0x1e1   : > { %v1335_v40 = vadd.f32 %v1291_v63, %v1025_v42  ;;  %v711_v39 = vadd.f32 %v710_v38, %v4568_v8 }
 0x1e3   : > { %v4954_v29 = vadd.f32 %v1601_v58, %v1335_v40  ;;  %3967 = vmatmul.msk.f32.gmra.mxu1 %vm252_vm0, %v1970_v30  ;;  %4007 = vmatmul.msk.f32.gmra.mxu2 %vm252_vm0, %v1972_v44  ;;  %v2283_v30 = vld [vmem:[%s4266_s25 + $0x95] sm:$0xff] }
 0x1e4   : > { %v1604_v1 = vpop.f32.mrf.mxu0  ;;  %v1974_v58 = vld [vmem:[%s4266_s25 + $0x9c] sm:$0xff] }
 0x1e5   : > { %4047 = vmatmul.msk.f32.gmra.mxu3 %vm252_vm0, %v2282_v25 }
 0x1e6   : > { %v984_v7 = vpop.f32.mrf.mxu2 }
 0x1e7   : > { %v1026_v49 = vadd.f32 %v984_v7, %v711_v39  ;;  %4087 = vmatmul.msk.f32.gmra.mxu0 %vm252_vm0, %v2592_v50  ;;  %v2285_v39 = vld [vmem:[%s4266_s25 + $0xa5] sm:$0xff] }
 0x1e8   : > { %v713_v62 = vpop.f32.mrf.mxu1  ;;  %v1294_v6 = vpop.f32.mrf.mxu3  ;;  %v2595_v7 = vld [vmem:[%s4266_s25 + $0xa6] sm:$0xff] }
 0x1e9   : > { %v1336_v36 = vadd.f32 %v1294_v6, %v1026_v49  ;;  %v714_v47 = vadd.f32 %v713_v62, %v4592_v18 }
 0x1eb   : > { %v4964_v41 = vadd.f32 %v1604_v1, %v1336_v36  ;;  %3968 = vmatmul.msk.f32.gmra.mxu1 %vm252_vm0, %v1971_v37  ;;  %4008 = vmatmul.msk.f32.gmra.mxu2 %vm252_vm0, %v1973_v51  ;;  %v2284_v37 = vld [vmem:[%s4266_s25 + $0x9d] sm:$0xff] }
 0x1ec   : > { %v1607_v8 = vpop.f32.mrf.mxu0  ;;  %v1975_v1 = vld [vmem:[%s4266_s25 + $0xa4] sm:$0xff] }
 0x1ed   : > { %4048 = vmatmul.msk.f32.gmra.mxu3 %vm252_vm0, %v2283_v30 }
 0x1ee   : > { %v987_v11 = vpop.f32.mrf.mxu2 }
 0x1ef   : > { %v1027_v56 = vadd.f32 %v987_v11, %v714_v47  ;;  %4088 = vmatmul.msk.f32.gmra.mxu0 %vm252_vm0, %v2593_v57  ;;  %v2286_v47 = vld [vmem:[%s4266_s25 + $0xad] sm:$0xff] }
 0x1f0   : > { %v716_v33 = vpop.f32.mrf.mxu1  ;;  %v1297_v15 = vpop.f32.mrf.mxu3 }
 0x1f1   : > { %v1337_v43 = vadd.f32 %v1297_v15, %v1027_v56  ;;  %v717_v42 = vadd.f32 %v716_v33, %v4608_v27  ;;  %v2596_v56 = vld [vmem:[%s4266_s25 + $0xae] sm:$0xff] }
 0x1f3   : > { %v4974_v2 = vadd.f32 %v1607_v8, %v1337_v43  ;;  %3969 = vmatmul.msk.f32.gmra.mxu1 %vm252_vm0, %v1972_v44  ;;  %4009 = vmatmul.msk.f32.gmra.mxu2 %vm252_vm0, %v1974_v58  ;;  %v1976_v8 = vld [vmem:[%s4266_s25 + $0xac] sm:$0xff] }
 0x1f4   : > { %v1610_v18 = vpop.f32.mrf.mxu0 }
 0x1f5   : > { %4049 = vmatmul.msk.f32.gmra.mxu3 %vm252_vm0, %v2284_v37 }
 0x1f6   : > { %v990_v38 = vpop.f32.mrf.mxu2 }
 0x1f7   : > { %v1028_v63 = vadd.f32 %v990_v38, %v717_v42  ;;  %4089 = vmatmul.msk.f32.gmra.mxu0 %vm252_vm0, %v2594_v0  ;;  %v1977_v42 = vld [vmem:[%s4266_s25 + $0xb4] sm:$0xff] }
 0x1f8   : > { %v1300_v40 = vpop.f32.mrf.mxu3  ;;  %v1815_v25 = vpop.f32.mrf.mxu1 }
 0x1f9   : > { %v1338_v50 = vadd.f32 %v1300_v40, %v1028_v63  ;;  %v1923_v49 = vadd.f32 %v1815_v25, %v4620_v60  ;;  %v2287_v40 = vld [vmem:[%s4266_s25 + $0xb5] sm:$0xff] }
 0x1fb   : > { %v4984_v44 = vadd.f32 %v1610_v18, %v1338_v50  ;;  %3970 = vmatmul.msk.f32.gmra.mxu1 %vm252_vm0, %v1973_v51  ;;  %4010 = vmatmul.msk.f32.gmra.mxu2 %vm252_vm0, %v1975_v1  ;;  %v4996_v51 = vld [vmem:[%s5638_s2] ss:$0 sm:$0xff] }
 0x1fc   : > { %v2745_v27 = vpop.f32.mrf.mxu0 }
 0x1fd   : > { %4050 = vmatmul.msk.f32.gmra.mxu3 %vm252_vm0, %v2285_v39 }
 0x1fe   : > { %v2125_v62 = vpop.f32.mrf.mxu2 }
 0x1ff   : > { %v2233_v6 = vadd.f32 %v2125_v62, %v1923_v49  ;;  %4090 = vmatmul.msk.f32.gmra.mxu0 %vm252_vm0, %v2595_v7 }
 0x200   : > { %v1818_v36 = vpop.f32.mrf.mxu1  ;;  %v2435_v30 = vpop.f32.mrf.mxu3 }
 0x201   : > { %v2543_v57 = vadd.f32 %v2435_v30, %v2233_v6  ;;  %v1924_v33 = vadd.f32 %v1818_v36, %v4630_v16 }
 0x203   : > { %v2853_v11 = vadd.f32 %v2745_v27, %v2543_v57  ;;  %3971 = vmatmul.msk.f32.gmra.mxu1 %vm252_vm0, %v1974_v58  ;;  %4011 = vmatmul.msk.f32.gmra.mxu2 %vm252_vm0, %v1976_v8  ;;  %v2597_v27 = vld [vmem:[%s4266_s25 + $0xb6] sm:$0xff] }
 0x204   : > { %v2748_v60 = vpop.f32.mrf.mxu0  ;;  %v1978_v57 = vld [vmem:[%s4266_s25 + $0xbc] sm:$0xff] }
 0x205   : > { %v2893_v15 = vadd.f32 %v4996_v51, %v2853_v11  ;;  %4051 = vmatmul.msk.f32.gmra.mxu3 %vm252_vm0, %v2286_v47 }
 0x206   : > { %v2128_v43 = vpop.f32.mrf.mxu2 }
 0x207   : > { %v2234_v37 = vadd.f32 %v2128_v43, %v1924_v33  ;;  %4091 = vmatmul.msk.f32.gmra.mxu0 %vm252_vm0, %v2596_v56  ;;  %vm2929_vm1 = vcmp.ge.f32.partialorder %v2893_v15, 0.0  ;;  %v2965_v18 = vmul.f32 0.2, %v2893_v15  ;;  %v2598_v43 = vld [vmem:[%s4266_s25 + $0xbe] sm:$0xff] }
 0x208   : > { %v1821_v0 = vpop.f32.mrf.mxu1  ;;  %v2438_v58 = vpop.f32.mrf.mxu3 }
 0x209   : > { %v2544_v38 = vadd.f32 %v2438_v58, %v2234_v37  ;;  %v5007_v63 = vsel %vm2929_vm1, %v2893_v15, %v2965_v18  ;;  %v1925_v7 = vadd.f32 %v1821_v0, %v4640_v45 }
 0x20a   : > { %v3037_v16 = vmul.f32 %v5007_v63, %v5007_v63 }
 0x20b   : > { %v2854_v25 = vadd.f32 %v2748_v60, %v2544_v38  ;;  %3972 = vmatmul.msk.f32.gmra.mxu1 %vm252_vm0, %v1975_v1  ;;  %4012 = vmatmul.msk.f32.gmra.mxu2 %vm252_vm0, %v1977_v42  ;;  %v2288_v60 = vld [vmem:[%s4266_s25 + $0xbd] sm:$0xff] }
 0x20c   : > { %v3073_v50 = vsel %vm252_vm0, %v3037_v16, 0.0  ;;  %v2751_v39 = vpop.f32.mrf.mxu0  ;;  %v1979_v16 = vld [vmem:[%s4266_s25 + $0xc4] sm:$0xff] }
 0x20d   : > { %v2894_v49 = vadd.f32 %v4996_v51, %v2854_v25  ;;  %4052 = vmatmul.msk.f32.gmra.mxu3 %vm252_vm0, %v2287_v40  ;;  %3074 = vadd.xlane.f32.xlu0 %v3073_v50 }
 0x20e   : > { %v2131_v62 = vpop.f32.mrf.mxu2 }
 0x20f   : > { %v2235_v6 = vadd.f32 %v2131_v62, %v1925_v7  ;;  %4092 = vmatmul.msk.f32.gmra.mxu0 %vm252_vm0, %v2597_v27  ;;  %vm2930_vm2 = vcmp.ge.f32.partialorder %v2894_v49, 0.0  ;;  %v2966_v1 = vmul.f32 0.2, %v2894_v49  ;;  %v2599_v62 = vld [vmem:[%s4266_s25 + $0xc6] sm:$0xff] }
 0x210   : > { %v1824_v36 = vpop.f32.mrf.mxu1  ;;  %v2441_v30 = vpop.f32.mrf.mxu3 }
 0x211   : > { %v2545_v47 = vadd.f32 %v2441_v30, %v2235_v6  ;;  %v5021_v11 = vsel %vm2930_vm2, %v2894_v49, %v2966_v1  ;;  %v1926_v37 = vadd.f32 %v1824_v36, %v4650_v3 }
 0x212   : > { %v3038_v45 = vmul.f32 %v5021_v11, %v5021_v11 }
 0x213   : > { %v2855_v56 = vadd.f32 %v2751_v39, %v2545_v47  ;;  %3973 = vmatmul.msk.f32.gmra.mxu1 %vm252_vm0, %v1976_v8  ;;  %4013 = vmatmul.msk.f32.gmra.mxu2 %vm252_vm0, %v1978_v57  ;;  %v2289_v39 = vld [vmem:[%s4266_s25 + $0xc5] sm:$0xff] }
 0x214   : > { %v3076_v33 = vsel %vm252_vm0, %v3038_v45, 0.0  ;;  %v2754_v15 = vpop.f32.mrf.mxu0  ;;  %v1980_v45 = vld [vmem:[%s4266_s25 + $0xcc] sm:$0xff] }
 0x215   : > { %v2895_v18 = vadd.f32 %v4996_v51, %v2855_v56  ;;  %4053 = vmatmul.msk.f32.gmra.mxu3 %vm252_vm0, %v2288_v60  ;;  %3077 = vadd.xlane.f32.xlu0 %v3076_v33 }
 0x216   : > { %v2134_v0 = vpop.f32.mrf.mxu2 }
 0x217   : > { %v2236_v58 = vadd.f32 %v2134_v0, %v1926_v37  ;;  %4093 = vmatmul.msk.f32.gmra.mxu0 %vm252_vm0, %v2598_v43  ;;  %vm2931_vm3 = vcmp.ge.f32.partialorder %v2895_v18, 0.0  ;;  %v2967_v8 = vmul.f32 0.2, %v2895_v18  ;;  %v2600_v0 = vld [vmem:[%s4266_s25 + $0xce] sm:$0xff] }
 0x218   : > { %v1827_v38 = vpop.f32.mrf.mxu1  ;;  %v2444_v40 = vpop.f32.mrf.mxu3 }
 0x219   : > { %v2546_v25 = vadd.f32 %v2444_v40, %v2236_v58  ;;  %v5035_v50 = vsel %vm2931_vm3, %v2895_v18, %v2967_v8  ;;  %v1927_v6 = vadd.f32 %v1827_v38, %v4660_v22 }
 0x21a   : > { %v3039_v3 = vmul.f32 %v5035_v50, %v5035_v50 }
 0x21b   : > { %v2856_v27 = vadd.f32 %v2754_v15, %v2546_v25  ;;  %3974 = vmatmul.msk.f32.gmra.mxu1 %vm252_vm0, %v1977_v42  ;;  %4014 = vmatmul.msk.f32.gmra.mxu2 %vm252_vm0, %v1979_v16  ;;  %v2290_v15 = vld [vmem:[%s4266_s25 + $0xcd] sm:$0xff] }
 0x21c   : > { %v3079_v7 = vsel %vm252_vm0, %v3039_v3, 0.0  ;;  %v2757_v49 = vpop.f32.mrf.mxu0  ;;  %v1981_v3 = vld [vmem:[%s4266_s25 + $0xd4] sm:$0xff] }
 0x21d   : > { %v2896_v1 = vadd.f32 %v4996_v51, %v2856_v27  ;;  %4054 = vmatmul.msk.f32.gmra.mxu3 %vm252_vm0, %v2289_v39  ;;  %3080 = vadd.xlane.f32.xlu1 %v3079_v7 }
 0x21e   : > { %v2137_v36 = vpop.f32.mrf.mxu2 }
 0x21f   : > { %v2237_v30 = vadd.f32 %v2137_v36, %v1927_v6  ;;  %4094 = vmatmul.msk.f32.gmra.mxu0 %vm252_vm0, %v2599_v62  ;;  %vm2932_vm4 = vcmp.ge.f32.partialorder %v2896_v1, 0.0  ;;  %v2968_v42 = vmul.f32 0.2, %v2896_v1  ;;  %v2601_v36 = vld [vmem:[%s4266_s25 + $0xd6] sm:$0xff] }
 0x220   : > { %v1830_v47 = vpop.f32.mrf.mxu1  ;;  %v2447_v60 = vpop.f32.mrf.mxu3 }
 0x221   : > { %v2547_v56 = vadd.f32 %v2447_v60, %v2237_v30  ;;  %v5049_v33 = vsel %vm2932_vm4, %v2896_v1, %v2968_v42  ;;  %v1928_v58 = vadd.f32 %v1830_v47, %v4670_v48 }
 0x222   : > { %v3040_v22 = vmul.f32 %v5049_v33, %v5049_v33 }
 0x223   : > { %v2857_v43 = vadd.f32 %v2757_v49, %v2547_v56  ;;  %3975 = vmatmul.msk.f32.gmra.mxu1 %vm252_vm0, %v1978_v57  ;;  %4015 = vmatmul.msk.f32.gmra.mxu2 %vm252_vm0, %v1980_v45  ;;  %v2291_v49 = vld [vmem:[%s4266_s25 + $0xd5] sm:$0xff] }
 0x224   : > { %v3082_v37 = vsel %vm252_vm0, %v3040_v22, 0.0  ;;  %v2760_v18 = vpop.f32.mrf.mxu0  ;;  %v1982_v22 = vld [vmem:[%s4266_s25 + $0xdc] sm:$0xff] }
 0x225   : > { %v2897_v8 = vadd.f32 %v4996_v51, %v2857_v43  ;;  %4055 = vmatmul.msk.f32.gmra.mxu3 %vm252_vm0, %v2290_v15  ;;  %3083 = vadd.xlane.f32.xlu1 %v3082_v37 }
 0x226   : > { %v2140_v38 = vpop.f32.mrf.mxu2 }
 0x227   : > { %v2238_v40 = vadd.f32 %v2140_v38, %v1928_v58  ;;  %4095 = vmatmul.msk.f32.gmra.mxu0 %vm252_vm0, %v2600_v0  ;;  %vm2933_vm5 = vcmp.ge.f32.partialorder %v2897_v8, 0.0  ;;  %v2969_v57 = vmul.f32 0.2, %v2897_v8  ;;  %v2602_v38 = vld [vmem:[%s4266_s25 + $0xde] sm:$0xff] }
 0x228   : > { %v1833_v25 = vpop.f32.mrf.mxu1  ;;  %v2450_v39 = vpop.f32.mrf.mxu3 }
 0x229   : > { %v2548_v27 = vadd.f32 %v2450_v39, %v2238_v40  ;;  %v5063_v7 = vsel %vm2933_vm5, %v2897_v8, %v2969_v57  ;;  %v1929_v30 = vadd.f32 %v1833_v25, %v4680_v9 }
 0x22a   : > { %v3041_v48 = vmul.f32 %v5063_v7, %v5063_v7 }
 0x22b   : > { %v2858_v62 = vadd.f32 %v2760_v18, %v2548_v27  ;;  %3976 = vmatmul.msk.f32.gmra.mxu1 %vm252_vm0, %v1979_v16  ;;  %4016 = vmatmul.msk.f32.gmra.mxu2 %vm252_vm0, %v1981_v3  ;;  %v2292_v18 = vld [vmem:[%s4266_s25 + $0xdd] sm:$0xff] }
 0x22c   : > { %v3085_v6 = vsel %vm252_vm0, %v3041_v48, 0.0  ;;  %v2763_v1 = vpop.f32.mrf.mxu0  ;;  %v1983_v48 = vld [vmem:[%s4266_s25 + $0xe4] sm:$0xff] }
 0x22d   : > { %v2898_v42 = vadd.f32 %v4996_v51, %v2858_v62  ;;  %4056 = vmatmul.msk.f32.gmra.mxu3 %vm252_vm0, %v2291_v49  ;;  %3086 = vadd.xlane.f32.xlu2 %v3085_v6 }
 0x22e   : > { %v2143_v47 = vpop.f32.mrf.mxu2 }
 0x22f   : > { %v2239_v60 = vadd.f32 %v2143_v47, %v1929_v30  ;;  %4096 = vmatmul.msk.f32.gmra.mxu0 %vm252_vm0, %v2601_v36  ;;  %vm2934_vm6 = vcmp.ge.f32.partialorder %v2898_v42, 0.0  ;;  %v2970_v16 = vmul.f32 0.2, %v2898_v42  ;;  %v2603_v47 = vld [vmem:[%s4266_s25 + $0xe6] sm:$0xff] }
 0x230   : > { %v1836_v56 = vpop.f32.mrf.mxu1  ;;  %v2453_v15 = vpop.f32.mrf.mxu3 }
 0x231   : > { %v2549_v43 = vadd.f32 %v2453_v15, %v2239_v60  ;;  %v5077_v37 = vsel %vm2934_vm6, %v2898_v42, %v2970_v16  ;;  %v1930_v40 = vadd.f32 %v1836_v56, %v4699_v32 }
 0x232   : > { %v3042_v9 = vmul.f32 %v5077_v37, %v5077_v37 }
 0x233   : > { %v2859_v0 = vadd.f32 %v2763_v1, %v2549_v43  ;;  %3977 = vmatmul.msk.f32.gmra.mxu1 %vm252_vm0, %v1980_v45  ;;  %4017 = vmatmul.msk.f32.gmra.mxu2 %vm252_vm0, %v1982_v22  ;;  %v2293_v1 = vld [vmem:[%s4266_s25 + $0xe5] sm:$0xff] }
 0x234   : > { %v3088_v58 = vsel %vm252_vm0, %v3042_v9, 0.0  ;;  %v2766_v8 = vpop.f32.mrf.mxu0  ;;  %v1984_v9 = vld [vmem:[%s4266_s25 + $0xec] sm:$0xff] }
 0x235   : > { %v2899_v57 = vadd.f32 %v4996_v51, %v2859_v0  ;;  %4057 = vmatmul.msk.f32.gmra.mxu3 %vm252_vm0, %v2292_v18  ;;  %3089 = vadd.xlane.f32.xlu2 %v3088_v58 }
 0x236   : > { %v2146_v25 = vpop.f32.mrf.mxu2 }
 0x237   : > { %v2240_v39 = vadd.f32 %v2146_v25, %v1930_v40  ;;  %4097 = vmatmul.msk.f32.gmra.mxu0 %vm252_vm0, %v2602_v38  ;;  %vm2935_vm7 = vcmp.ge.f32.partialorder %v2899_v57, 0.0  ;;  %v2971_v45 = vmul.f32 0.2, %v2899_v57  ;;  %v2604_v25 = vld [vmem:[%s4266_s25 + $0xee] sm:$0xff] }
 0x238   : > { %v1839_v27 = vpop.f32.mrf.mxu1  ;;  %v2456_v49 = vpop.f32.mrf.mxu3 }
 0x239   : > { %v2550_v62 = vadd.f32 %v2456_v49, %v2240_v39  ;;  %v5091_v6 = vsel %vm2935_vm7, %v2899_v57, %v2971_v45  ;;  %v1931_v60 = vadd.f32 %v1839_v27, %v4712_v21 }
 0x23a   : > { %v3043_v32 = vmul.f32 %v5091_v6, %v5091_v6 }
 0x23b   : > { %v2860_v36 = vadd.f32 %v2766_v8, %v2550_v62  ;;  %3978 = vmatmul.msk.f32.gmra.mxu1 %vm252_vm0, %v1981_v3  ;;  %4018 = vmatmul.msk.f32.gmra.mxu2 %vm252_vm0, %v1983_v48  ;;  %v2294_v8 = vld [vmem:[%s4266_s25 + $0xed] sm:$0xff] }
 0x23c   : > { %v3091_v30 = vsel %vm252_vm0, %v3043_v32, 0.0  ;;  %v2769_v42 = vpop.f32.mrf.mxu0  ;;  %v1985_v32 = vld [vmem:[%s4266_s25 + $0xf4] sm:$0xff] }
 0x23d   : > { %v2900_v16 = vadd.f32 %v4996_v51, %v2860_v36  ;;  %4058 = vmatmul.msk.f32.gmra.mxu3 %vm252_vm0, %v2293_v1  ;;  %3092 = vadd.xlane.f32.xlu0 %v3091_v30 }
 0x23e   : > { %v2149_v56 = vpop.f32.mrf.mxu2 }
 0x23f   : > { %v2241_v15 = vadd.f32 %v2149_v56, %v1931_v60  ;;  %4098 = vmatmul.msk.f32.gmra.mxu0 %vm252_vm0, %v2603_v47  ;;  %vm2936_vm8 = vcmp.ge.f32.partialorder %v2900_v16, 0.0  ;;  %v2972_v3 = vmul.f32 0.2, %v2900_v16  ;;  %v2605_v56 = vld [vmem:[%s4266_s25 + $0xf6] sm:$0xff] }
 0x240   : > { %v1842_v43 = vpop.f32.mrf.mxu1  ;;  %v2459_v18 = vpop.f32.mrf.mxu3 }
 0x241   : > { %v2551_v0 = vadd.f32 %v2459_v18, %v2241_v15  ;;  %v5105_v58 = vsel %vm2936_vm8, %v2900_v16, %v2972_v3  ;;  %v1932_v39 = vadd.f32 %v1842_v43, %v4722_v20 }
 0x242   : > { %v3044_v21 = vmul.f32 %v5105_v58, %v5105_v58 }
 0x243   : > { %v2861_v38 = vadd.f32 %v2769_v42, %v2551_v0  ;;  %3979 = vmatmul.msk.f32.gmra.mxu1 %vm252_vm0, %v1982_v22  ;;  %4019 = vmatmul.msk.f32.gmra.mxu2 %vm252_vm0, %v1984_v9  ;;  %v2295_v42 = vld [vmem:[%s4266_s25 + $0xf5] sm:$0xff] }
 0x244   : > { %v3094_v40 = vsel %vm252_vm0, %v3044_v21, 0.0  ;;  %v2772_v57 = vpop.f32.mrf.mxu0  ;;  %v1986_v21 = vld [vmem:[%s4266_s25 + $0xfc] sm:$0xff] }
 0x245   : > { %v2901_v45 = vadd.f32 %v4996_v51, %v2861_v38  ;;  %4059 = vmatmul.msk.f32.gmra.mxu3 %vm252_vm0, %v2294_v8  ;;  %3095 = vadd.xlane.f32.xlu1 %v3094_v40 }
 0x246   : > { %v2152_v27 = vpop.f32.mrf.mxu2 }
 0x247   : > { %v2242_v49 = vadd.f32 %v2152_v27, %v1932_v39  ;;  %4099 = vmatmul.msk.f32.gmra.mxu0 %vm252_vm0, %v2604_v25  ;;  %vm2937_vm9 = vcmp.ge.f32.partialorder %v2901_v45, 0.0  ;;  %v2973_v22 = vmul.f32 0.2, %v2901_v45  ;;  %v2606_v27 = vld [vmem:[%s4266_s25 + $0xfe] sm:$0xff] }
 0x248   : > { %v1845_v62 = vpop.f32.mrf.mxu1  ;;  %v2462_v1 = vpop.f32.mrf.mxu3 }
 0x249   : > { %v2552_v36 = vadd.f32 %v2462_v1, %v2242_v49  ;;  %v5119_v30 = vsel %vm2937_vm9, %v2901_v45, %v2973_v22  ;;  %v1933_v15 = vadd.f32 %v1845_v62, %v4732_v61 }
 0x24a   : > { %v3045_v20 = vmul.f32 %v5119_v30, %v5119_v30 }
 0x24b   : > { %v2862_v47 = vadd.f32 %v2772_v57, %v2552_v36  ;;  %3980 = vmatmul.msk.f32.gmra.mxu1 %vm252_vm0, %v1983_v48  ;;  %4020 = vmatmul.msk.f32.gmra.mxu2 %vm252_vm0, %v1985_v32  ;;  %v2296_v57 = vld [vmem:[%s4266_s25 + $0xfd] sm:$0xff] }
 0x24c   : > { %v3097_v60 = vsel %vm252_vm0, %v3045_v20, 0.0  ;;  %v2775_v16 = vpop.f32.mrf.mxu0  ;;  %v1987_v20 = vld [vmem:[%s4266_s25 + $0x104] sm:$0xff] }
 0x24d   : > { %v2902_v3 = vadd.f32 %v4996_v51, %v2862_v47  ;;  %4060 = vmatmul.msk.f32.gmra.mxu3 %vm252_vm0, %v2295_v42  ;;  %3098 = vadd.xlane.f32.xlu2 %v3097_v60 }
 0x24e   : > { %v2155_v43 = vpop.f32.mrf.mxu2 }
 0x24f   : > { %v2243_v18 = vadd.f32 %v2155_v43, %v1933_v15  ;;  %4100 = vmatmul.msk.f32.gmra.mxu0 %vm252_vm0, %v2605_v56  ;;  %vm2938_vm10 = vcmp.ge.f32.partialorder %v2902_v3, 0.0  ;;  %v2974_v48 = vmul.f32 0.2, %v2902_v3  ;;  %v2607_v43 = vld [vmem:[%s4266_s25 + $0x106] sm:$0xff] }
 0x250   : > { %v1848_v0 = vpop.f32.mrf.mxu1  ;;  %v2465_v8 = vpop.f32.mrf.mxu3 }
 0x251   : > { %v2553_v38 = vadd.f32 %v2465_v8, %v2243_v18  ;;  %v5133_v40 = vsel %vm2938_vm10, %v2902_v3, %v2974_v48  ;;  %v1934_v49 = vadd.f32 %v1848_v0, %v4742_v4 }
 0x252   : > { %v3046_v61 = vmul.f32 %v5133_v40, %v5133_v40 }
 0x253   : > { %v2863_v25 = vadd.f32 %v2775_v16, %v2553_v38  ;;  %3981 = vmatmul.msk.f32.gmra.mxu1 %vm252_vm0, %v1984_v9  ;;  %4021 = vmatmul.msk.f32.gmra.mxu2 %vm252_vm0, %v1986_v21  ;;  %v2297_v16 = vld [vmem:[%s4266_s25 + $0x105] sm:$0xff] }
 0x254   : > { %v3100_v39 = vsel %vm252_vm0, %v3046_v61, 0.0  ;;  %v2778_v45 = vpop.f32.mrf.mxu0  ;;  %v1988_v61 = vld [vmem:[%s4266_s25 + $0x10c] sm:$0xff] }
 0x255   : > { %v2903_v22 = vadd.f32 %v4996_v51, %v2863_v25  ;;  %4061 = vmatmul.msk.f32.gmra.mxu3 %vm252_vm0, %v2296_v57  ;;  %3101 = vadd.xlane.f32.xlu0 %v3100_v39 }
 0x256   : > { %v2158_v62 = vpop.f32.mrf.mxu2 }
 0x257   : > { %v2244_v1 = vadd.f32 %v2158_v62, %v1934_v49  ;;  %4101 = vmatmul.msk.f32.gmra.mxu0 %vm252_vm0, %v2606_v27  ;;  %vm2939_vm11 = vcmp.ge.f32.partialorder %v2903_v22, 0.0  ;;  %v2975_v9 = vmul.f32 0.2, %v2903_v22  ;;  %v2608_v62 = vld [vmem:[%s4266_s25 + $0x10e] sm:$0xff] }
 0x258   : > { %v1851_v36 = vpop.f32.mrf.mxu1  ;;  %v2468_v42 = vpop.f32.mrf.mxu3 }
 0x259   : > { %v2554_v47 = vadd.f32 %v2468_v42, %v2244_v1  ;;  %v5147_v60 = vsel %vm2939_vm11, %v2903_v22, %v2975_v9  ;;  %v1935_v18 = vadd.f32 %v1851_v36, %v4752_v14  ;;  %v4219_v42 = vmov 32.0  }
 0x25a   : > { %v3047_v4 = vmul.f32 %v5147_v60, %v5147_v60  ;;  %4136 = vrcp.f32 %v4219_v42 }
 0x25b   : > { %v2864_v56 = vadd.f32 %v2778_v45, %v2554_v47  ;;  %3982 = vmatmul.msk.f32.gmra.mxu1 %vm252_vm0, %v1985_v32  ;;  %4022 = vmatmul.msk.f32.gmra.mxu2 %vm252_vm0, %v1987_v20  ;;  %v2298_v45 = vld [vmem:[%s4266_s25 + $0x10d] sm:$0xff] }
 0x25c   : > { %v3103_v15 = vsel %vm252_vm0, %v3047_v4, 0.0  ;;  %v2781_v3 = vpop.f32.mrf.mxu0 }
 0x25d   : > { %v2904_v48 = vadd.f32 %v4996_v51, %v2864_v56  ;;  %4062 = vmatmul.msk.f32.gmra.mxu3 %vm252_vm0, %v2297_v16  ;;  %3104 = vadd.xlane.f32.xlu1 %v3103_v15  ;;  %v1989_v56 = vld [vmem:[%s4266_s25 + $0x114] sm:$0xff] }
 0x25e   : > { %v2161_v0 = vpop.f32.mrf.mxu2 }
 0x25f   : > { %v2245_v8 = vadd.f32 %v2161_v0, %v1935_v18  ;;  %4102 = vmatmul.msk.f32.gmra.mxu0 %vm252_vm0, %v2607_v43  ;;  %vm2940_vm12 = vcmp.ge.f32.partialorder %v2904_v48, 0.0  ;;  %v2976_v32 = vmul.f32 0.2, %v2904_v48 }
 0x260   : > { %v1854_v38 = vpop.f32.mrf.mxu1  ;;  %v2471_v57 = vpop.f32.mrf.mxu3 }
 0x261   : > { %v2555_v25 = vadd.f32 %v2471_v57, %v2245_v8  ;;  %v5161_v39 = vsel %vm2940_vm12, %v2904_v48, %v2976_v32  ;;  %v1936_v1 = vadd.f32 %v1854_v38, %v4762_v52  ;;  %v4137_v48 = vpop.eup %4136  ;;  %v2609_v32 = vld [vmem:[%s4266_s25 + $0x116] sm:$0xff] }
 0x262   : > { %v3048_v14 = vmul.f32 %v5161_v39, %v5161_v39  ;;  %vm3186_vm1 = vweird.f32 %v4137_v48 }
 0x263   : > { %v2865_v27 = vadd.f32 %v2781_v3, %v2555_v25  ;;  %3983 = vmatmul.msk.f32.gmra.mxu1 %vm252_vm0, %v1986_v21  ;;  %4023 = vmatmul.msk.f32.gmra.mxu2 %vm252_vm0, %v1988_v61  ;;  %v2299_v3 = vld [vmem:[%s4266_s25 + $0x115] sm:$0xff] }
 0x264   : > { %v3106_v49 = vsel %vm252_vm0, %v3048_v14, 0.0  ;;  %v2784_v22 = vpop.f32.mrf.mxu0 }
 0x265   : > { %v2905_v9 = vadd.f32 %v4996_v51, %v2865_v27  ;;  %4063 = vmatmul.msk.f32.gmra.mxu3 %vm252_vm0, %v2298_v45  ;;  %3107 = vadd.xlane.f32.xlu2 %v3106_v49 }
 0x266   : > { %v2164_v36 = vpop.f32.mrf.mxu2 }
 0x267   : > { %v2977_v47 = vmul.f32 0.2, %v2905_v9  ;;  %v2246_v21 = vadd.f32 %v2164_v36, %v1936_v1  ;;  %4103 = vmatmul.msk.f32.gmra.mxu0 %vm252_vm0, %v2608_v62  ;;  %vm2941_vm13 = vcmp.ge.f32.partialorder %v2905_v9, 0.0 }
 0x268   : > { %v1857_v16 = vpop.f32.mrf.mxu1  ;;  %v2474_v4 = vpop.f32.mrf.mxu3 }
 0x269   : > { %v2556_v15 = vadd.f32 %v2474_v4, %v2246_v21  ;;  %v5175_v52 = vsel %vm2941_vm13, %v2905_v9, %v2977_v47  ;;  %v1937_v38 = vadd.f32 %v1857_v16, %v4772_v10  ;;  %v2300_v10 = vld [vmem:[%s4266_s25 + $0x11d] sm:$0xff] }
 0x26a   : > { %v3049_v43 = vmul.f32 %v5175_v52, %v5175_v52  ;;  %v2610_v16 = vld [vmem:[%s4266_s25 + $0x11e] sm:$0xff] }
 0x26b   : > { %v2866_v18 = vadd.f32 %v2784_v22, %v2556_v15  ;;  %3984 = vmatmul.msk.f32.gmra.mxu1 %vm252_vm0, %v1987_v20  ;;  %4024 = vmatmul.msk.f32.gmra.mxu2 %vm252_vm0, %v1989_v56  ;;  %v3182_v20 = vmul.f32 32.0, %v4137_v48  ;;  %v1990_v22 = vld [vmem:[%s4266_s25 + $0x11c] sm:$0xff] }
 0x26c   : > { %v3109_v0 = vsel %vm252_vm0, %v3049_v43, 0.0  ;;  %v2787_v8 = vpop.f32.mrf.mxu0 }
 0x26d   : > { %v2906_v57 = vadd.f32 %v4996_v51, %v2866_v18  ;;  %4064 = vmatmul.msk.f32.gmra.mxu3 %vm252_vm0, %v2299_v3  ;;  %3110 = vadd.xlane.f32.xlu0 %v3109_v0  ;;  %v3183_v42 = vsub.f32 1.0, %v3182_v20 }
 0x26e   : > { %v2167_v25 = vpop.f32.mrf.mxu2 }
 0x26f   : > { %v2978_v45 = vmul.f32 0.2, %v2906_v57  ;;  %v2247_v14 = vadd.f32 %v2167_v25, %v1937_v38  ;;  %4104 = vmatmul.msk.f32.gmra.mxu0 %vm252_vm0, %v2609_v32  ;;  %vm2942_vm14 = vcmp.ge.f32.partialorder %v2906_v57, 0.0  ;;  %v1991_v32 = vld [vmem:[%s4266_s25 + $0x124] sm:$0xff] }
 0x270   : > { %v1860_v27 = vpop.f32.mrf.mxu1  ;;  %v2477_v49 = vpop.f32.mrf.mxu3 }
 0x271   : > { %v2557_v62 = vadd.f32 %v2477_v49, %v2247_v14  ;;  %v5189_v1 = vsel %vm2942_vm14, %v2906_v57, %v2978_v45  ;;  %v1938_v4 = vadd.f32 %v1860_v27, %v4782_v12  ;;  %v2301_v12 = vld [vmem:[%s4266_s25 + $0x125] sm:$0xff] }
 0x272   : > { %v3050_v9 = vmul.f32 %v5189_v1, %v5189_v1  ;;  %v2611_v49 = vld [vmem:[%s4266_s25 + $0x126] sm:$0xff] }
 0x273   : > { %v2867_v36 = vadd.f32 %v2787_v8, %v2557_v62  ;;  %3985 = vmatmul.msk.f32.gmra.mxu1 %vm252_vm0, %v1988_v61  ;;  %4025 = vmatmul.msk.f32.gmra.mxu2 %vm252_vm0, %v1990_v22  ;;  %v3184_v61 = vmul.f32 %v4137_v48, %v3183_v42 }
 0x274   : > { %v3112_v47 = vsel %vm252_vm0, %v3050_v9, 0.0  ;;  %v2790_v21 = vpop.f32.mrf.mxu0 }
 0x275   : > { %v2907_v15 = vadd.f32 %v4996_v51, %v2867_v36  ;;  %4065 = vmatmul.msk.f32.gmra.mxu3 %vm252_vm0, %v2300_v10  ;;  %3113 = vadd.xlane.f32.xlu1 %v3112_v47  ;;  %v3185_v14 = vadd.f32 %v4137_v48, %v3184_v61 }
 0x276   : > { %v2170_v3 = vpop.f32.mrf.mxu2 }
 0x277   : > { %v2979_v43 = vmul.f32 0.2, %v2907_v15  ;;  %v2248_v18 = vadd.f32 %v2170_v3, %v1938_v4  ;;  %4105 = vmatmul.msk.f32.gmra.mxu0 %vm252_vm0, %v2610_v16  ;;  %vm2943_vm15 = vcmp.ge.f32.partialorder %v2907_v15, 0.0  ;;  %v5215_v42 = vsel %vm3186_vm1, %v4137_v48, %v3185_v14  ;;  %v5219_v16 = vld [vmem:[%s4266_s25 + $0x12c] sm:$0xff] }
 0x278   : > { %v1863_v0 = vpop.f32.mrf.mxu1  ;;  %v2480_v8 = vpop.f32.mrf.mxu3 }
 0x279   : > { %v2558_v38 = vadd.f32 %v2480_v8, %v2248_v18  ;;  %v5203_v57 = vsel %vm2943_vm15, %v2907_v15, %v2979_v43  ;;  %v1939_v62 = vadd.f32 %v1863_v0, %v4792_v46  ;;  %v2302_v43 = vld [vmem:[%s4266_s25 + $0x12d] sm:$0xff] }
 0x27a   : > { %v3051_v25 = vmul.f32 %v5203_v57, %v5203_v57 }
 0x27b   : > { %v2868_v45 = vadd.f32 %v2790_v21, %v2558_v38  ;;  %3986 = vmatmul.msk.f32.gmra.mxu1 %vm252_vm0, %v1989_v56  ;;  %4026 = vmatmul.msk.f32.gmra.mxu2 %vm252_vm0, %v1991_v32  ;;  %v2612_v38 = vld [vmem:[%s4266_s25 + $0x12e] sm:$0xff] }
 0x27c   : > { %v3115_v20 = vsel %vm252_vm0, %v3051_v25, 0.0  ;;  %v2793_v27 = vpop.f32.mrf.mxu0 }
 0x27d   : > { %v2908_v10 = vadd.f32 %v4996_v51, %v2868_v45  ;;  %4066 = vmatmul.msk.f32.gmra.mxu3 %vm252_vm0, %v2301_v12  ;;  %3116 = vadd.xlane.f32.xlu2 %v3115_v20 }
 0x27e   : > { %v2173_v9 = vpop.f32.mrf.mxu2 }
 0x27f   : > { %v2980_v36 = vmul.f32 0.2, %v2908_v10  ;;  %v2249_v56 = vadd.f32 %v2173_v9, %v1939_v62  ;;  %4106 = vmatmul.msk.f32.gmra.mxu0 %vm252_vm0, %v2611_v49  ;;  %vm2944_vm2 = vcmp.ge.f32.partialorder %v2908_v10, 0.0  ;;  %v1993_v49 = vld [vmem:[%s4266_s25 + $0x134] sm:$0xff] }
 0x280   : > { %v1866_v47 = vpop.f32.mrf.mxu1  ;;  %v2483_v21 = vpop.f32.mrf.mxu3 }
 0x281   : > { %v2559_v46 = vadd.f32 %v2483_v21, %v2249_v56  ;;  %v3075_v4 = vpop.xlane.xlu0 %3074  ;;  %v5221_v15 = vsel %vm2944_vm2, %v2908_v10, %v2980_v36  ;;  %v1940_v12 = vadd.f32 %v1866_v47, %v4802_v13  ;;  %v2303_v36 = vld [vmem:[%s4266_s25 + $0x135] sm:$0xff] }
 0x282   : > { %v3188_v3 = vmul.f32 %v5215_v42, %v3075_v4  ;;  %v3052_v18 = vmul.f32 %v5221_v15, %v5221_v15 }
 0x283   : > { %v2869_v48 = vadd.f32 %v2793_v27, %v2559_v46  ;;  %3987 = vmatmul.msk.f32.gmra.mxu1 %vm252_vm0, %v1990_v22  ;;  %4027 = vmatmul.msk.f32.gmra.mxu2 %vm252_vm0, %v5219_v16 }
 0x284   : > { %v5230_v61 = vadd.f32 1e-08, %v3188_v3  ;;  %v3118_v0 = vsel %vm252_vm0, %v3052_v18, 0.0  ;;  %v2796_v8 = vpop.f32.mrf.mxu0 }
 0x285   : > { %v2909_v25 = vadd.f32 %v4996_v51, %v2869_v48  ;;  %4067 = vmatmul.msk.f32.gmra.mxu3 %vm252_vm0, %v2302_v43  ;;  %3119 = vadd.xlane.f32.xlu0 %v3118_v0  ;;  %v2613_v43 = vld [vmem:[%s4266_s25 + $0x136] sm:$0xff] }
 0x286   : > { %4138 = vrsqrt.f32 %v5230_v61  ;;  %v2176_v22 = vpop.f32.mrf.mxu2  ;;  %vm3266_vm6 = vweird.f32 %v5230_v61 }
 0x287   : > { %v2981_v45 = vmul.f32 0.2, %v2909_v25  ;;  %v2250_v14 = vadd.f32 %v2176_v22, %v1940_v12  ;;  %4107 = vmatmul.msk.f32.gmra.mxu0 %vm252_vm0, %v2612_v38  ;;  %vm2945_vm3 = vcmp.ge.f32.partialorder %v2909_v25, 0.0 }
 0x288   : > { %v1869_v20 = vpop.f32.mrf.mxu1  ;;  %v2486_v27 = vpop.f32.mrf.mxu3 }
 0x289   : > { %v2560_v62 = vadd.f32 %v2486_v27, %v2250_v14  ;;  %v3078_v13 = vpop.xlane.xlu0 %3077  ;;  %v5240_v10 = vsel %vm2945_vm3, %v2909_v25, %v2981_v45  ;;  %v1941_v48 = vadd.f32 %v1869_v20, %v4812_v24  ;;  %v1994_v45 = vld [vmem:[%s4266_s25 + $0x13c] sm:$0xff] }
 0x28a   : > { %v3189_v9 = vmul.f32 %v5215_v42, %v3078_v13  ;;  %v3053_v56 = vmul.f32 %v5240_v10, %v5240_v10 }
 0x28b   : > { %v2870_v47 = vadd.f32 %v2796_v8, %v2560_v62  ;;  %3988 = vmatmul.msk.f32.gmra.mxu1 %vm252_vm0, %v1991_v32  ;;  %4028 = vmatmul.msk.f32.gmra.mxu2 %vm252_vm0, %v1993_v49  ;;  %v2304_v62 = vld [vmem:[%s4266_s25 + $0x13d] sm:$0xff] }
 0x28c   : > { %v4139_v21 = vpop.eup %4138  ;;  %v5248_v46 = vadd.f32 1e-08, %v3189_v9  ;;  %v3121_v4 = vsel %vm252_vm0, %v3053_v56, 0.0  ;;  %v2799_v3 = vpop.f32.mrf.mxu0 }
 0x28d   : > { %v3261_v18 = vmul.f32 %v4139_v21, %v5230_v61  ;;  %v2910_v0 = vadd.f32 %v4996_v51, %v2870_v47  ;;  %4068 = vmatmul.msk.f32.gmra.mxu3 %vm252_vm0, %v2303_v36  ;;  %3122 = vadd.xlane.f32.xlu1 %v3121_v4  ;;  %vm3267_vm5 = vweird.f32 %v4139_v21 }
 0x28e   : > { %4140 = vrsqrt.f32 %v5248_v46  ;;  %v2179_v32 = vpop.f32.mrf.mxu2  ;;  %vm3268_vm7 = vmor %vm3266_vm6, %vm3267_vm5  ;;  %vm3276_vm10 = vweird.f32 %v5248_v46 }
 0x28f   : > { %v3262_v8 = vmul.f32 %v4139_v21, %v3261_v18  ;;  %v2982_v38 = vmul.f32 0.2, %v2910_v0  ;;  %v2251_v12 = vadd.f32 %v2179_v32, %v1941_v48  ;;  %4108 = vmatmul.msk.f32.gmra.mxu0 %vm252_vm0, %v2613_v43  ;;  %vm2946_vm4 = vcmp.ge.f32.partialorder %v2910_v0, 0.0  ;;  %v2614_v48 = vld [vmem:[%s4266_s25 + $0x13e] sm:$0xff] }
 0x290   : > { %v1872_v25 = vpop.f32.mrf.mxu1  ;;  %v2489_v22 = vpop.f32.mrf.mxu3 }
 0x291   : > { %v3263_v24 = vmul.f32 0.5, %v3262_v8  ;;  %v2561_v14 = vadd.f32 %v2489_v22, %v2251_v12  ;;  %v3081_v20 = vpop.xlane.xlu1 %3080  ;;  %v5259_v27 = vsel %vm2946_vm4, %v2910_v0, %v2982_v38  ;;  %v1942_v47 = vadd.f32 %v1872_v25, %v4823_v53 }
 0x292   : > { %v3190_v49 = vmul.f32 %v5215_v42, %v3081_v20  ;;  %v3054_v13 = vmul.f32 %v5259_v27, %v5259_v27 }
 0x293   : > { %v3264_v9 = vsub.f32 1.5, %v3263_v24  ;;  %v2871_v36 = vadd.f32 %v2799_v3, %v2561_v14  ;;  %3989 = vmatmul.msk.f32.gmra.mxu1 %vm252_vm0, %v5219_v16  ;;  %4029 = vmatmul.msk.f32.gmra.mxu2 %vm252_vm0, %v1994_v45 }
 0x294   : > { %v4141_v56 = vpop.eup %4140  ;;  %v5270_v4 = vadd.f32 1e-08, %v3190_v49  ;;  %v3124_v43 = vsel %vm252_vm0, %v3054_v13, 0.0  ;;  %v2802_v18 = vpop.f32.mrf.mxu0 }
 0x295   : > { %v3265_v0 = vmul.f32 %v4139_v21, %v3264_v9  ;;  %v3271_v32 = vmul.f32 %v4141_v56, %v5248_v46  ;;  %v2911_v3 = vadd.f32 %v4996_v51, %v2871_v36  ;;  %4069 = vmatmul.msk.f32.gmra.mxu3 %vm252_vm0, %v2304_v62  ;;  %3125 = vadd.xlane.f32.xlu2 %v3124_v43  ;;  %vm3277_vm9 = vweird.f32 %v4141_v56 }
 0x296   : > { %4142 = vrsqrt.f32 %v5270_v4  ;;  %v2182_v53 = vpop.f32.mrf.mxu2  ;;  %vm3278_vm11 = vmor %vm3276_vm10, %vm3277_vm9  ;;  %vm3286_vm14 = vweird.f32 %v5270_v4 }
 0x297   : > { %v3269_v16 = vsel %vm3268_vm7, %v4139_v21, %v3265_v0  ;;  %v3272_v61 = vmul.f32 %v4141_v56, %v3271_v32  ;;  %v2983_v8 = vmul.f32 0.2, %v2911_v3  ;;  %v2252_v38 = vadd.f32 %v2182_v53, %v1942_v47  ;;  %4109 = vmatmul.msk.f32.gmra.mxu0 %vm252_vm0, %v2614_v48 }
 0x298   : > { %v3620_v12 = vmul.f32 %v3269_v16, %v5007_v63  ;;  %v1875_v25 = vpop.f32.mrf.mxu1  ;;  %v2492_v22 = vpop.f32.mrf.mxu3  ;;  %vm2947_vm8 = vcmp.ge.f32.partialorder %v2911_v3, 0.0 }
 0x299   : > { %v3273_v45 = vmul.f32 0.5, %v3272_v61  ;;  %v2562_v24 = vadd.f32 %v2492_v22, %v2252_v38  ;;  %v3084_v14 = vpop.xlane.xlu1 %3083  ;;  %v5287_v20 = vsel %vm2947_vm8, %v2911_v3, %v2983_v8  ;;  %v1943_v0 = vadd.f32 %v1875_v25, %v4834_v5 }
 0x29a   : > { %3656 = vst.msk [vmem:[%s5283_s21] sm:$0xff] %vm252_vm0, %v3620_v12  ;;  %v3191_v49 = vmul.f32 %v5215_v42, %v3084_v14  ;;  %v3055_v21 = vmul.f32 %v5287_v20, %v5287_v20 }
 0x29b   : > { %v3274_v62 = vsub.f32 1.5, %v3273_v45  ;;  %v2872_v13 = vadd.f32 %v2802_v18, %v2562_v24 }
 0x29c   : > { %v4143_v9 = vpop.eup %4142  ;;  %v5295_v63 = vadd.f32 1e-08, %v3191_v49  ;;  %v3127_v36 = vsel %vm252_vm0, %v3055_v21, 0.0  ;;  %v2805_v47 = vpop.f32.mrf.mxu0 }
 0x29d   : > { %v3275_v43 = vmul.f32 %v4141_v56, %v3274_v62  ;;  %v3281_v48 = vmul.f32 %v4143_v9, %v5270_v4  ;;  %v2912_v32 = vadd.f32 %v4996_v51, %v2872_v13  ;;  %3128 = vadd.xlane.f32.xlu0 %v3127_v36  ;;  %vm3287_vm13 = vweird.f32 %v4143_v9 }
 0x29e   : > { %4144 = vrsqrt.f32 %v5295_v63  ;;  %v2185_v18 = vpop.f32.mrf.mxu2  ;;  %vm3288_vm15 = vmor %vm3286_vm14, %vm3287_vm13  ;;  %vm3296_vm3 = vweird.f32 %v5295_v63 }
 0x29f   : > { %v3279_v3 = vsel %vm3278_vm11, %v4141_v56, %v3275_v43  ;;  %v3282_v46 = vmul.f32 %v4143_v9, %v3281_v48  ;;  %v2984_v53 = vmul.f32 0.2, %v2912_v32  ;;  %v2253_v16 = vadd.f32 %v2185_v18, %v1943_v0 }
 0x2a0   : > { %v3621_v61 = vmul.f32 %v3279_v3, %v5021_v11  ;;  %v1878_v8 = vpop.f32.mrf.mxu1  ;;  %v2495_v38 = vpop.f32.mrf.mxu3  ;;  %vm2948_vm12 = vcmp.ge.f32.partialorder %v2912_v32, 0.0 }
 0x2a1   : > { %v3283_v12 = vmul.f32 0.5, %v3282_v46  ;;  %v2563_v22 = vadd.f32 %v2495_v38, %v2253_v16  ;;  %v3087_v5 = vpop.xlane.xlu2 %3086  ;;  %v5303_v25 = vsel %vm2948_vm12, %v2912_v32, %v2984_v53  ;;  %v1944_v43 = vadd.f32 %v1878_v8, %v4844_v31 }
 0x2a2   : > { %3657 = vst.msk [vmem:[%s5283_s21 + $0x8] sm:$0xff] %vm252_vm0, %v3621_v61  ;;  %v3192_v45 = vmul.f32 %v5215_v42, %v3087_v5  ;;  %v3056_v56 = vmul.f32 %v5303_v25, %v5303_v25 }
 0x2a3   : > { %v3284_v24 = vsub.f32 1.5, %v3283_v12  ;;  %v2873_v14 = vadd.f32 %v2805_v47, %v2563_v22 }
 0x2a4   : > { %v4145_v49 = vpop.eup %4144  ;;  %v5311_v11 = vadd.f32 1e-08, %v3192_v45  ;;  %v3130_v21 = vsel %vm252_vm0, %v3056_v56, 0.0  ;;  %v2808_v62 = vpop.f32.mrf.mxu0 }
 0x2a5   : > { %v3285_v13 = vmul.f32 %v4143_v9, %v3284_v24  ;;  %v3291_v36 = vmul.f32 %v4145_v49, %v5295_v63  ;;  %v2913_v48 = vadd.f32 %v4996_v51, %v2873_v14  ;;  %3131 = vadd.xlane.f32.xlu1 %v3130_v21  ;;  %vm3297_vm2 = vweird.f32 %v4145_v49  ;;  %v5335_v21 = vld [vmem:[%s5638_s2] ss:$0 sm:$0xff] }
 0x2a6   : > { %4146 = vrsqrt.f32 %v5311_v11  ;;  %v2188_v47 = vpop.f32.mrf.mxu2  ;;  %vm3298_vm4 = vmor %vm3296_vm3, %vm3297_vm2  ;;  %vm3306_vm7 = vweird.f32 %v5311_v11 }
 0x2a7   : > { %v3289_v0 = vsel %vm3288_vm15, %v4143_v9, %v3285_v13  ;;  %v3292_v4 = vmul.f32 %v4145_v49, %v3291_v36  ;;  %v2985_v32 = vmul.f32 0.2, %v2913_v48  ;;  %v2254_v18 = vadd.f32 %v2188_v47, %v1944_v43 }
 0x2a8   : > { %v3622_v3 = vmul.f32 %v3289_v0, %v5035_v50  ;;  %v1881_v46 = vpop.f32.mrf.mxu1  ;;  %v2498_v53 = vpop.f32.mrf.mxu3  ;;  %vm2949_vm1 = vcmp.ge.f32.partialorder %v2913_v48, 0.0 }
 0x2a9   : > { %v3293_v16 = vmul.f32 0.5, %v3292_v4  ;;  %v2564_v61 = vadd.f32 %v2498_v53, %v2254_v18  ;;  %v3090_v31 = vpop.xlane.xlu2 %3089  ;;  %v5319_v8 = vsel %vm2949_vm1, %v2913_v48, %v2985_v32  ;;  %v1945_v14 = vadd.f32 %v1881_v46, %v4854_v26 }
 0x2aa   : > { %3658 = vst.msk [vmem:[%s5283_s21 + $0x10] sm:$0xff] %vm252_vm0, %v3622_v3  ;;  %v3193_v51 = vmul.f32 %v5215_v42, %v3090_v31  ;;  %v3057_v9 = vmul.f32 %v5319_v8, %v5319_v8 }
 0x2ab   : > { %v3294_v38 = vsub.f32 1.5, %v3293_v16  ;;  %v2874_v12 = vadd.f32 %v2808_v62, %v2564_v61 }
 0x2ac   : > { %v4147_v22 = vpop.eup %4146  ;;  %v5327_v50 = vadd.f32 1e-08, %v3193_v51  ;;  %v3133_v5 = vsel %vm252_vm0, %v3057_v9, 0.0  ;;  %v2811_v45 = vpop.f32.mrf.mxu0 }
 0x2ad   : > { %v3295_v56 = vmul.f32 %v4145_v49, %v3294_v38  ;;  %v3301_v24 = vmul.f32 %v4147_v22, %v5311_v11  ;;  %v2914_v62 = vadd.f32 %v5335_v21, %v2874_v12  ;;  %3134 = vadd.xlane.f32.xlu2 %v3133_v5  ;;  %vm3307_vm6 = vweird.f32 %v4147_v22 }
 0x2ae   : > { %4148 = vrsqrt.f32 %v5327_v50  ;;  %v2191_v63 = vpop.f32.mrf.mxu2  ;;  %vm3308_vm8 = vmor %vm3306_vm7, %vm3307_vm6  ;;  %vm3316_vm11 = vweird.f32 %v5327_v50 }
 0x2af   : > { %v3299_v13 = vsel %vm3298_vm4, %v4145_v49, %v3295_v56  ;;  %v3302_v36 = vmul.f32 %v4147_v22, %v3301_v24  ;;  %v2986_v43 = vmul.f32 0.2, %v2914_v62  ;;  %v2255_v48 = vadd.f32 %v2191_v63, %v1945_v14 }
 0x2b0   : > { %v3623_v47 = vmul.f32 %v3299_v13, %v5049_v33  ;;  %v1884_v26 = vpop.f32.mrf.mxu1  ;;  %v2501_v0 = vpop.f32.mrf.mxu3  ;;  %vm2950_vm5 = vcmp.ge.f32.partialorder %v2914_v62, 0.0 }
 0x2b1   : > { %v3303_v4 = vmul.f32 0.5, %v3302_v36  ;;  %v2565_v32 = vadd.f32 %v2501_v0, %v2255_v48  ;;  %v3093_v18 = vpop.xlane.xlu0 %3092  ;;  %v5340_v3 = vsel %vm2950_vm5, %v2914_v62, %v2986_v43  ;;  %v1946_v12 = vadd.f32 %v1884_v26, %v4864_v19 }
 0x2b2   : > { %3659 = vst.msk [vmem:[%s5283_s21 + $0x18] sm:$0xff] %vm252_vm0, %v3623_v47  ;;  %v3194_v46 = vmul.f32 %v5215_v42, %v3093_v18  ;;  %v3058_v49 = vmul.f32 %v5340_v3, %v5340_v3 }
 0x2b3   : > { %v3304_v53 = vsub.f32 1.5, %v3303_v4  ;;  %v2875_v16 = vadd.f32 %v2811_v45, %v2565_v32 }
 0x2b4   : > { %v4149_v61 = vpop.eup %4148  ;;  %v5348_v33 = vadd.f32 1e-08, %v3194_v46  ;;  %v3136_v31 = vsel %vm252_vm0, %v3058_v49, 0.0  ;;  %v2814_v51 = vpop.f32.mrf.mxu0 }
 0x2b5   : > { %v3305_v9 = vmul.f32 %v4147_v22, %v3304_v53  ;;  %v3311_v38 = vmul.f32 %v4149_v61, %v5327_v50  ;;  %v2915_v5 = vadd.f32 %v5335_v21, %v2875_v16  ;;  %3137 = vadd.xlane.f32.xlu0 %v3136_v31  ;;  %vm3317_vm10 = vweird.f32 %v4149_v61 }
 0x2b6   : > { %4150 = vrsqrt.f32 %v5348_v33  ;;  %v2194_v45 = vpop.f32.mrf.mxu2  ;;  %vm3318_vm12 = vmor %vm3316_vm11, %vm3317_vm10  ;;  %vm3326_vm15 = vweird.f32 %v5348_v33 }
 0x2b7   : > { %v3309_v56 = vsel %vm3308_vm8, %v4147_v22, %v3305_v9  ;;  %v3312_v11 = vmul.f32 %v4149_v61, %v3311_v38  ;;  %v2987_v24 = vmul.f32 0.2, %v2915_v5  ;;  %v2256_v14 = vadd.f32 %v2194_v45, %v1946_v12 }
 0x2b8   : > { %v3624_v62 = vmul.f32 %v3309_v56, %v5063_v7  ;;  %v1887_v63 = vpop.f32.mrf.mxu1  ;;  %v2504_v13 = vpop.f32.mrf.mxu3  ;;  %vm2951_vm9 = vcmp.ge.f32.partialorder %v2915_v5, 0.0 }
 0x2b9   : > { %v3313_v36 = vmul.f32 0.5, %v3312_v11  ;;  %v2566_v43 = vadd.f32 %v2504_v13, %v2256_v14  ;;  %v3096_v19 = vpop.xlane.xlu1 %3095  ;;  %v5356_v48 = vsel %vm2951_vm9, %v2915_v5, %v2987_v24  ;;  %v1947_v53 = vadd.f32 %v1887_v63, %v4874_v34 }
 0x2ba   : > { %3660 = vst.msk [vmem:[%s5283_s21 + $0x20] sm:$0xff] %vm252_vm0, %v3624_v62  ;;  %v3195_v47 = vmul.f32 %v5215_v42, %v3096_v19  ;;  %v3059_v22 = vmul.f32 %v5356_v48, %v5356_v48 }
 0x2bb   : > { %v3314_v26 = vsub.f32 1.5, %v3313_v36  ;;  %v2876_v0 = vadd.f32 %v2814_v51, %v2566_v43 }
 0x2bc   : > { %v4151_v4 = vpop.eup %4150  ;;  %v5364_v7 = vadd.f32 1e-08, %v3195_v47  ;;  %v3139_v32 = vsel %vm252_vm0, %v3059_v22, 0.0  ;;  %v2817_v18 = vpop.f32.mrf.mxu0 }
 0x2bd   : > { %v3315_v46 = vmul.f32 %v4149_v61, %v3314_v26  ;;  %v3321_v49 = vmul.f32 %v4151_v4, %v5348_v33  ;;  %v2916_v16 = vadd.f32 %v5335_v21, %v2876_v0  ;;  %3140 = vadd.xlane.f32.xlu1 %v3139_v32  ;;  %vm3327_vm14 = vweird.f32 %v4151_v4 }
 0x2be   : > { %4152 = vrsqrt.f32 %v5364_v7  ;;  %v2197_v31 = vpop.f32.mrf.mxu2  ;;  %vm3328_vm1 = vmor %vm3326_vm15, %vm3327_vm14  ;;  %vm3336_vm4 = vweird.f32 %v5364_v7 }
 0x2bf   : > { %v3319_v51 = vsel %vm3318_vm12, %v4149_v61, %v3315_v46  ;;  %v3322_v50 = vmul.f32 %v4151_v4, %v3321_v49  ;;  %v2988_v9 = vmul.f32 0.2, %v2916_v16  ;;  %v2257_v38 = vadd.f32 %v2197_v31, %v1947_v53 }
 0x2c0   : > { %v3625_v12 = vmul.f32 %v3319_v51, %v5077_v37  ;;  %v1890_v5 = vpop.f32.mrf.mxu1  ;;  %v2507_v45 = vpop.f32.mrf.mxu3  ;;  %vm2952_vm13 = vcmp.ge.f32.partialorder %v2916_v16, 0.0 }
 0x2c1   : > { %v3323_v56 = vmul.f32 0.5, %v3322_v50  ;;  %v2567_v11 = vadd.f32 %v2507_v45, %v2257_v38  ;;  %v3099_v34 = vpop.xlane.xlu2 %3098  ;;  %v5372_v24 = vsel %vm2952_vm13, %v2916_v16, %v2988_v9  ;;  %v1948_v22 = vadd.f32 %v1890_v5, %v4884_v59 }
 0x2c2   : > { %3661 = vst.msk [vmem:[%s5283_s21 + $0x28] sm:$0xff] %vm252_vm0, %v3625_v12  ;;  %v3196_v14 = vmul.f32 %v5215_v42, %v3099_v34  ;;  %v3060_v61 = vmul.f32 %v5372_v24, %v5372_v24 }
 0x2c3   : > { %v3324_v62 = vsub.f32 1.5, %v3323_v56  ;;  %v2877_v63 = vadd.f32 %v2817_v18, %v2567_v11 }
 0x2c4   : > { %v4153_v13 = vpop.eup %4152  ;;  %v5380_v37 = vadd.f32 1e-08, %v3196_v14  ;;  %v3142_v36 = vsel %vm252_vm0, %v3060_v61, 0.0  ;;  %v2820_v43 = vpop.f32.mrf.mxu0 }
 0x2c5   : > { %v3325_v19 = vmul.f32 %v4151_v4, %v3324_v62  ;;  %v3331_v47 = vmul.f32 %v4153_v13, %v5364_v7  ;;  %v2917_v26 = vadd.f32 %v5335_v21, %v2877_v63  ;;  %3143 = vadd.xlane.f32.xlu2 %v3142_v36  ;;  %vm3337_vm3 = vweird.f32 %v4153_v13 }
 0x2c6   : > { %4154 = vrsqrt.f32 %v5380_v37  ;;  %v2200_v0 = vpop.f32.mrf.mxu2  ;;  %vm3338_vm5 = vmor %vm3336_vm4, %vm3337_vm3  ;;  %vm3346_vm8 = vweird.f32 %v5380_v37 }
 0x2c7   : > { %v3329_v32 = vsel %vm3328_vm1, %v4151_v4, %v3325_v19  ;;  %v3332_v33 = vmul.f32 %v4153_v13, %v3331_v47  ;;  %v2989_v18 = vmul.f32 0.2, %v2917_v26  ;;  %v2258_v46 = vadd.f32 %v2200_v0, %v1948_v22 }
 0x2c8   : > { %v3626_v49 = vmul.f32 %v3329_v32, %v5091_v6  ;;  %v1893_v53 = vpop.f32.mrf.mxu1  ;;  %v2510_v16 = vpop.f32.mrf.mxu3  ;;  %vm2953_vm2 = vcmp.ge.f32.partialorder %v2917_v26, 0.0 }
 0x2c9   : > { %v3333_v31 = vmul.f32 0.5, %v3332_v33  ;;  %v2568_v51 = vadd.f32 %v2510_v16, %v2258_v46  ;;  %v3102_v59 = vpop.xlane.xlu0 %3101  ;;  %v5388_v50 = vsel %vm2953_vm2, %v2917_v26, %v2989_v18  ;;  %v1949_v14 = vadd.f32 %v1893_v53, %v4894_v54 }
 0x2ca   : > { %3662 = vst.msk [vmem:[%s5283_s21 + $0x30] sm:$0xff] %vm252_vm0, %v3626_v49  ;;  %v3197_v9 = vmul.f32 %v5215_v42, %v3102_v59  ;;  %v3061_v4 = vmul.f32 %v5388_v50, %v5388_v50 }
 0x2cb   : > { %v3334_v38 = vsub.f32 1.5, %v3333_v31  ;;  %v2878_v12 = vadd.f32 %v2820_v43, %v2568_v51 }
 0x2cc   : > { %v4155_v5 = vpop.eup %4154  ;;  %v5396_v6 = vadd.f32 1e-08, %v3197_v9  ;;  %v3145_v45 = vsel %vm252_vm0, %v3061_v4, 0.0  ;;  %v2823_v56 = vpop.f32.mrf.mxu0 }
 0x2cd   : > { %v3335_v11 = vmul.f32 %v4153_v13, %v3334_v38  ;;  %v3341_v34 = vmul.f32 %v4155_v5, %v5380_v37  ;;  %v2918_v61 = vadd.f32 %v5335_v21, %v2878_v12  ;;  %3146 = vadd.xlane.f32.xlu0 %v3145_v45  ;;  %vm3347_vm7 = vweird.f32 %v4155_v5 }
 0x2ce   : > { %4156 = vrsqrt.f32 %v5396_v6  ;;  %v2203_v62 = vpop.f32.mrf.mxu2  ;;  %vm3348_vm9 = vmor %vm3346_vm8, %vm3347_vm7  ;;  %vm3356_vm12 = vweird.f32 %v5396_v6 }
 0x2cf   : > { %v3339_v63 = vsel %vm3338_vm5, %v4153_v13, %v3335_v11  ;;  %v3342_v7 = vmul.f32 %v4155_v5, %v3341_v34  ;;  %v2990_v36 = vmul.f32 0.2, %v2918_v61  ;;  %v2259_v43 = vadd.f32 %v2203_v62, %v1949_v14 }
 0x2d0   : > { %v3627_v19 = vmul.f32 %v3339_v63, %v5105_v58  ;;  %v1896_v47 = vpop.f32.mrf.mxu1  ;;  %v2513_v22 = vpop.f32.mrf.mxu3  ;;  %vm2954_vm6 = vcmp.ge.f32.partialorder %v2918_v61, 0.0 }
 0x2d1   : > { %v3343_v26 = vmul.f32 0.5, %v3342_v7  ;;  %v2569_v0 = vadd.f32 %v2513_v22, %v2259_v43  ;;  %v3105_v54 = vpop.xlane.xlu1 %3104  ;;  %v5404_v32 = vsel %vm2954_vm6, %v2918_v61, %v2990_v36  ;;  %v1950_v59 = vadd.f32 %v1896_v47, %v4904_v55 }
 0x2d2   : > { %3663 = vst.msk [vmem:[%s5283_s21 + $0x38] sm:$0xff] %vm252_vm0, %v3627_v19  ;;  %v3198_v33 = vmul.f32 %v5215_v42, %v3105_v54  ;;  %v3062_v13 = vmul.f32 %v5404_v32, %v5404_v32 }
 0x2d3   : > { %v3344_v18 = vsub.f32 1.5, %v3343_v26  ;;  %v2879_v46 = vadd.f32 %v2823_v56, %v2569_v0 }
 0x2d4   : > { %v4157_v49 = vpop.eup %4156  ;;  %v5412_v58 = vadd.f32 1e-08, %v3198_v33  ;;  %v3148_v53 = vsel %vm252_vm0, %v3062_v13, 0.0  ;;  %v2826_v16 = vpop.f32.mrf.mxu0 }
 0x2d5   : > { %v3345_v31 = vmul.f32 %v4155_v5, %v3344_v18  ;;  %v3351_v51 = vmul.f32 %v4157_v49, %v5396_v6  ;;  %v2919_v9 = vadd.f32 %v5335_v21, %v2879_v46  ;;  %3149 = vadd.xlane.f32.xlu1 %v3148_v53  ;;  %vm3357_vm11 = vweird.f32 %v4157_v49 }
 0x2d6   : > { %4158 = vrsqrt.f32 %v5412_v58  ;;  %v2206_v4 = vpop.f32.mrf.mxu2  ;;  %vm3358_vm13 = vmor %vm3356_vm12, %vm3357_vm11  ;;  %vm3366_vm1 = vweird.f32 %v5412_v58 }
 0x2d7   : > { %v3349_v38 = vsel %vm3348_vm9, %v4155_v5, %v3345_v31  ;;  %v3352_v37 = vmul.f32 %v4157_v49, %v3351_v51  ;;  %v2991_v12 = vmul.f32 0.2, %v2919_v9  ;;  %v2260_v45 = vadd.f32 %v2206_v4, %v1950_v59 }
 0x2d8   : > { %v3628_v56 = vmul.f32 %v3349_v38, %v5119_v30  ;;  %v1899_v11 = vpop.f32.mrf.mxu1  ;;  %v2516_v34 = vpop.f32.mrf.mxu3  ;;  %vm2955_vm10 = vcmp.ge.f32.partialorder %v2919_v9, 0.0 }
 0x2d9   : > { %v3353_v14 = vmul.f32 0.5, %v3352_v37  ;;  %v2570_v61 = vadd.f32 %v2516_v34, %v2260_v45  ;;  %v3108_v55 = vpop.xlane.xlu2 %3107  ;;  %v5420_v62 = vsel %vm2955_vm10, %v2919_v9, %v2991_v12  ;;  %v1951_v0 = vadd.f32 %v1899_v11, %v4914_v17 }
 0x2da   : > { %3664 = vst.msk [vmem:[%s5283_s21 + $0x40] sm:$0xff] %vm252_vm0, %v3628_v56  ;;  %v3199_v63 = vmul.f32 %v5215_v42, %v3108_v55  ;;  %v3063_v5 = vmul.f32 %v5420_v62, %v5420_v62 }
 0x2db   : > { %v3354_v7 = vsub.f32 1.5, %v3353_v14  ;;  %v2880_v36 = vadd.f32 %v2826_v16, %v2570_v61 }
 0x2dc   : > { %v4159_v43 = vpop.eup %4158  ;;  %v5428_v30 = vadd.f32 1e-08, %v3199_v63  ;;  %v3151_v19 = vsel %vm252_vm0, %v3063_v5, 0.0  ;;  %v2829_v47 = vpop.f32.mrf.mxu0 }
 0x2dd   : > { %v3355_v22 = vmul.f32 %v4157_v49, %v3354_v7  ;;  %v3361_v26 = vmul.f32 %v4159_v43, %v5412_v58  ;;  %v2920_v54 = vadd.f32 %v5335_v21, %v2880_v36  ;;  %3152 = vadd.xlane.f32.xlu2 %v3151_v19  ;;  %vm3367_vm15 = vweird.f32 %v4159_v43 }
 0x2de   : > { %4160 = vrsqrt.f32 %v5428_v30  ;;  %v2209_v33 = vpop.f32.mrf.mxu2  ;;  %vm3368_vm2 = vmor %vm3366_vm1, %vm3367_vm15  ;;  %vm3376_vm5 = vweird.f32 %v5428_v30 }
 0x2df   : > { %v3359_v13 = vsel %vm3358_vm13, %v4157_v49, %v3355_v22  ;;  %v3362_v6 = vmul.f32 %v4159_v43, %v3361_v26  ;;  %v2992_v18 = vmul.f32 0.2, %v2920_v54  ;;  %v2261_v46 = vadd.f32 %v2209_v33, %v1951_v0 }
 0x2e0   : > { %v3629_v53 = vmul.f32 %v3359_v13, %v5133_v40  ;;  %v1902_v16 = vpop.f32.mrf.mxu1  ;;  %v2519_v31 = vpop.f32.mrf.mxu3  ;;  %vm2956_vm14 = vcmp.ge.f32.partialorder %v2920_v54, 0.0 }
 0x2e1   : > { %v3363_v51 = vmul.f32 0.5, %v3362_v6  ;;  %v2571_v59 = vadd.f32 %v2519_v31, %v2261_v46  ;;  %v3111_v17 = vpop.xlane.xlu0 %3110  ;;  %v5436_v9 = vsel %vm2956_vm14, %v2920_v54, %v2992_v18  ;;  %v1952_v14 = vadd.f32 %v1902_v16, %v4924_v28 }
 0x2e2   : > { %3665 = vst.msk [vmem:[%s5283_s21 + $0x48] sm:$0xff] %vm252_vm0, %v3629_v53  ;;  %v3200_v4 = vmul.f32 %v5215_v42, %v3111_v17  ;;  %v3064_v49 = vmul.f32 %v5436_v9, %v5436_v9 }
 0x2e3   : > { %v3364_v38 = vsub.f32 1.5, %v3363_v51  ;;  %v2881_v37 = vadd.f32 %v2829_v47, %v2571_v59 }
 0x2e4   : > { %v4161_v12 = vpop.eup %4160  ;;  %v5444_v40 = vadd.f32 1e-08, %v3200_v4  ;;  %v3154_v45 = vsel %vm252_vm0, %v3064_v49, 0.0  ;;  %v2832_v56 = vpop.f32.mrf.mxu0 }
 0x2e5   : > { %v3365_v11 = vmul.f32 %v4159_v43, %v3364_v38  ;;  %v3371_v34 = vmul.f32 %v4161_v12, %v5428_v30  ;;  %v2921_v61 = vadd.f32 %v5335_v21, %v2881_v37  ;;  %3155 = vadd.xlane.f32.xlu0 %v3154_v45  ;;  %vm3377_vm4 = vweird.f32 %v4161_v12 }
 0x2e6   : > { %4162 = vrsqrt.f32 %v5444_v40  ;;  %v2212_v55 = vpop.f32.mrf.mxu2  ;;  %vm3378_vm6 = vmor %vm3376_vm5, %vm3377_vm4  ;;  %vm3386_vm9 = vweird.f32 %v5444_v40 }
 0x2e7   : > { %v3369_v63 = vsel %vm3368_vm2, %v4159_v43, %v3365_v11  ;;  %v3372_v58 = vmul.f32 %v4161_v12, %v3371_v34  ;;  %v2993_v5 = vmul.f32 0.2, %v2921_v61  ;;  %v2262_v7 = vadd.f32 %v2212_v55, %v1952_v14 }
 0x2e8   : > { %v3630_v36 = vmul.f32 %v3369_v63, %v5147_v60  ;;  %v1905_v19 = vpop.f32.mrf.mxu1  ;;  %v2522_v47 = vpop.f32.mrf.mxu3  ;;  %vm2957_vm3 = vcmp.ge.f32.partialorder %v2921_v61, 0.0 }
 0x2e9   : > { %v3373_v22 = vmul.f32 0.5, %v3372_v58  ;;  %v2572_v26 = vadd.f32 %v2522_v47, %v2262_v7  ;;  %v3114_v28 = vpop.xlane.xlu1 %3113  ;;  %v5452_v0 = vsel %vm2957_vm3, %v2921_v61, %v2993_v5  ;;  %v1953_v31 = vadd.f32 %v1905_v19, %v4934_v35 }
 0x2ea   : > { %3666 = vst.msk [vmem:[%s5283_s21 + $0x50] sm:$0xff] %vm252_vm0, %v3630_v36  ;;  %v3201_v54 = vmul.f32 %v5215_v42, %v3114_v28  ;;  %v3065_v43 = vmul.f32 %v5452_v0, %v5452_v0 }
 0x2eb   : > { %v3374_v33 = vsub.f32 1.5, %v3373_v22  ;;  %v2882_v13 = vadd.f32 %v2832_v56, %v2572_v26 }
 0x2ec   : > { %v4163_v6 = vpop.eup %4162  ;;  %v5460_v60 = vadd.f32 1e-08, %v3201_v54  ;;  %v3157_v18 = vsel %vm252_vm0, %v3065_v43, 0.0  ;;  %v2835_v46 = vpop.f32.mrf.mxu0 }
 0x2ed   : > { %v3375_v53 = vmul.f32 %v4161_v12, %v3374_v33  ;;  %v3381_v16 = vmul.f32 %v4163_v6, %v5444_v40  ;;  %v2922_v51 = vadd.f32 %v5335_v21, %v2882_v13  ;;  %3158 = vadd.xlane.f32.xlu1 %v3157_v18  ;;  %vm3387_vm8 = vweird.f32 %v4163_v6 }
 0x2ee   : > { %4164 = vrsqrt.f32 %v5460_v60  ;;  %v2215_v59 = vpop.f32.mrf.mxu2  ;;  %vm3388_vm10 = vmor %vm3386_vm9, %vm3387_vm8  ;;  %vm3396_vm13 = vweird.f32 %v5460_v60 }
 0x2ef   : > { %v3379_v17 = vsel %vm3378_vm6, %v4161_v12, %v3375_v53  ;;  %v3382_v30 = vmul.f32 %v4163_v6, %v3381_v16  ;;  %v2994_v4 = vmul.f32 0.2, %v2922_v51  ;;  %v2263_v49 = vadd.f32 %v2215_v59, %v1953_v31 }
 0x2f0   : > { %v3631_v38 = vmul.f32 %v3379_v17, %v5161_v39  ;;  %v1908_v37 = vpop.f32.mrf.mxu1  ;;  %v2525_v45 = vpop.f32.mrf.mxu3  ;;  %vm2958_vm7 = vcmp.ge.f32.partialorder %v2922_v51, 0.0 }
 0x2f1   : > { %v3383_v56 = vmul.f32 0.5, %v3382_v30  ;;  %v2573_v11 = vadd.f32 %v2525_v45, %v2263_v49  ;;  %v3117_v35 = vpop.xlane.xlu2 %3116  ;;  %v5468_v34 = vsel %vm2958_vm7, %v2922_v51, %v2994_v4  ;;  %v1954_v19 = vadd.f32 %v1908_v37, %v4944_v23 }
 0x2f2   : > { %3667 = vst.msk [vmem:[%s5283_s21 + $0x58] sm:$0xff] %vm252_vm0, %v3631_v38  ;;  %v3202_v14 = vmul.f32 %v5215_v42, %v3117_v35  ;;  %v3066_v12 = vmul.f32 %v5468_v34, %v5468_v34 }
 0x2f3   : > { %v3384_v61 = vsub.f32 1.5, %v3383_v56  ;;  %v2883_v55 = vadd.f32 %v2835_v46, %v2573_v11 }
 0x2f4   : > { %v4165_v63 = vpop.eup %4164  ;;  %v5476_v39 = vadd.f32 1e-08, %v3202_v14  ;;  %v3160_v58 = vsel %vm252_vm0, %v3066_v12, 0.0  ;;  %v2838_v5 = vpop.f32.mrf.mxu0 }
 0x2f5   : > { %v3385_v7 = vmul.f32 %v4163_v6, %v3384_v61  ;;  %v3391_v36 = vmul.f32 %v4165_v63, %v5460_v60  ;;  %v2923_v47 = vadd.f32 %v5335_v21, %v2883_v55  ;;  %3161 = vadd.xlane.f32.xlu2 %v3160_v58  ;;  %vm3397_vm12 = vweird.f32 %v4165_v63 }
 0x2f6   : > { %4166 = vrsqrt.f32 %v5476_v39  ;;  %v2218_v22 = vpop.f32.mrf.mxu2  ;;  %vm3398_vm14 = vmor %vm3396_vm13, %vm3397_vm12  ;;  %vm3406_vm2 = vweird.f32 %v5476_v39 }
 0x2f7   : > { %v3389_v26 = vsel %vm3388_vm10, %v4163_v6, %v3385_v7  ;;  %v3392_v40 = vmul.f32 %v4165_v63, %v3391_v36  ;;  %v2995_v28 = vmul.f32 0.2, %v2923_v47  ;;  %v2264_v54 = vadd.f32 %v2218_v22, %v1954_v19 }
 0x2f8   : > { %v3632_v43 = vmul.f32 %v3389_v26, %v5175_v52  ;;  %v1911_v33 = vpop.f32.mrf.mxu1  ;;  %v2528_v13 = vpop.f32.mrf.mxu3  ;;  %vm2959_vm11 = vcmp.ge.f32.partialorder %v2923_v47, 0.0 }
 0x2f9   : > { %v3393_v18 = vmul.f32 0.5, %v3392_v40  ;;  %v2574_v46 = vadd.f32 %v2528_v13, %v2264_v54  ;;  %v3120_v23 = vpop.xlane.xlu0 %3119  ;;  %v5484_v53 = vsel %vm2959_vm11, %v2923_v47, %v2995_v28  ;;  %v1955_v38 = vadd.f32 %v1911_v33, %v4954_v29 }
 0x2fa   : > { %3668 = vst.msk [vmem:[%s5283_s21 + $0x60] sm:$0xff] %vm252_vm0, %v3632_v43  ;;  %v3203_v16 = vmul.f32 %v5215_v42, %v3120_v23  ;;  %v3067_v6 = vmul.f32 %v5484_v53, %v5484_v53 }
 0x2fb   : > { %v3394_v31 = vsub.f32 1.5, %v3393_v18  ;;  %v2884_v51 = vadd.f32 %v2838_v5, %v2574_v46 }
 0x2fc   : > { %v4167_v59 = vpop.eup %4166  ;;  %v5492_v52 = vadd.f32 1e-08, %v3203_v16  ;;  %v3163_v17 = vsel %vm252_vm0, %v3067_v6, 0.0  ;;  %v2841_v30 = vpop.f32.mrf.mxu0 }
 0x2fd   : > { %v3395_v4 = vmul.f32 %v4165_v63, %v3394_v31  ;;  %v3401_v49 = vmul.f32 %v4167_v59, %v5476_v39  ;;  %v2924_v37 = vadd.f32 %v5335_v21, %v2884_v51  ;;  %3164 = vadd.xlane.f32.xlu0 %v3163_v17  ;;  %vm3407_vm1 = vweird.f32 %v4167_v59 }
 0x2fe   : > { %4168 = vrsqrt.f32 %v5492_v52  ;;  %v2221_v45 = vpop.f32.mrf.mxu2  ;;  %vm3408_vm3 = vmor %vm3406_vm2, %vm3407_vm1  ;;  %vm3416_vm6 = vweird.f32 %v5492_v52 }
 0x2ff   : > { %v3399_v56 = vsel %vm3398_vm14, %v4165_v63, %v3395_v4  ;;  %v3402_v60 = vmul.f32 %v4167_v59, %v3401_v49  ;;  %v2996_v11 = vmul.f32 0.2, %v2924_v37  ;;  %v2265_v35 = vadd.f32 %v2221_v45, %v1955_v38 }
 0x300   : > { %v3633_v14 = vmul.f32 %v3399_v56, %v5189_v1  ;;  %v1914_v12 = vpop.f32.mrf.mxu1  ;;  %v2531_v61 = vpop.f32.mrf.mxu3  ;;  %vm2960_vm15 = vcmp.ge.f32.partialorder %v2924_v37, 0.0 }
 0x301   : > { %v3403_v55 = vmul.f32 0.5, %v3402_v60  ;;  %v2575_v58 = vadd.f32 %v2531_v61, %v2265_v35  ;;  %v3123_v29 = vpop.xlane.xlu1 %3122  ;;  %v5500_v5 = vsel %vm2960_vm15, %v2924_v37, %v2996_v11  ;;  %v1956_v54 = vadd.f32 %v1914_v12, %v4964_v41 }
 0x302   : > { %3669 = vst.msk [vmem:[%s5283_s21 + $0x68] sm:$0xff] %vm252_vm0, %v3633_v14  ;;  %v3204_v7 = vmul.f32 %v5215_v42, %v3123_v29  ;;  %v3068_v63 = vmul.f32 %v5500_v5, %v5500_v5 }
 0x303   : > { %v3404_v36 = vsub.f32 1.5, %v3403_v55  ;;  %v2885_v19 = vadd.f32 %v2841_v30, %v2575_v58 }
 0x304   : > { %v4169_v47 = vpop.eup %4168  ;;  %v5508_v1 = vadd.f32 1e-08, %v3204_v7  ;;  %v3166_v22 = vsel %vm252_vm0, %v3068_v63, 0.0  ;;  %v2844_v26 = vpop.f32.mrf.mxu0 }
 0x305   : > { %v3405_v40 = vmul.f32 %v4167_v59, %v3404_v36  ;;  %v3411_v28 = vmul.f32 %v4169_v47, %v5492_v52  ;;  %v2925_v43 = vadd.f32 %v5335_v21, %v2885_v19  ;;  %3167 = vadd.xlane.f32.xlu1 %v3166_v22  ;;  %vm3417_vm5 = vweird.f32 %v4169_v47 }
 0x306   : > { %4170 = vrsqrt.f32 %v5508_v1  ;;  %v2224_v33 = vpop.f32.mrf.mxu2  ;;  %vm3418_vm7 = vmor %vm3416_vm6, %vm3417_vm5  ;;  %vm3426_vm10 = vweird.f32 %v5508_v1 }
 0x307   : > { %v3409_v13 = vsel %vm3408_vm3, %v4167_v59, %v3405_v40  ;;  %v3412_v39 = vmul.f32 %v4169_v47, %v3411_v28  ;;  %v2997_v18 = vmul.f32 0.2, %v2925_v43  ;;  %v2266_v46 = vadd.f32 %v2224_v33, %v1956_v54 }
 0x308   : > { %v3634_v23 = vmul.f32 %v3409_v13, %v5203_v57  ;;  %v1917_v16 = vpop.f32.mrf.mxu1  ;;  %v2534_v6 = vpop.f32.mrf.mxu3  ;;  %vm2961_vm4 = vcmp.ge.f32.partialorder %v2925_v43, 0.0 }
 0x309   : > { %v3413_v31 = vmul.f32 0.5, %v3412_v39  ;;  %v2576_v51 = vadd.f32 %v2534_v6, %v2266_v46  ;;  %v3126_v41 = vpop.xlane.xlu2 %3125  ;;  %v5516_v17 = vsel %vm2961_vm4, %v2925_v43, %v2997_v18  ;;  %v1957_v60 = vadd.f32 %v1917_v16, %v4974_v2 }
 0x30a   : > { %3670 = vst.msk [vmem:[%s5283_s21 + $0x70] sm:$0xff] %vm252_vm0, %v3634_v23  ;;  %v3205_v30 = vmul.f32 %v5215_v42, %v3126_v41  ;;  %v3069_v59 = vmul.f32 %v5516_v17, %v5516_v17 }
 0x30b   : > { %v3414_v4 = vsub.f32 1.5, %v3413_v31  ;;  %v2886_v49 = vadd.f32 %v2844_v26, %v2576_v51 }
 0x30c   : > { %v4171_v38 = vpop.eup %4170  ;;  %v5524_v57 = vadd.f32 1e-08, %v3205_v30  ;;  %v3169_v37 = vsel %vm252_vm0, %v3069_v59, 0.0  ;;  %v2847_v35 = vpop.f32.mrf.mxu0 }
 0x30d   : > { %v3415_v45 = vmul.f32 %v4169_v47, %v3414_v4  ;;  %v3421_v56 = vmul.f32 %v4171_v38, %v5508_v1  ;;  %v2926_v11 = vadd.f32 %v5335_v21, %v2886_v49  ;;  %3170 = vadd.xlane.f32.xlu2 %v3169_v37  ;;  %vm3427_vm9 = vweird.f32 %v4171_v38 }
 0x30e   : > { %4172 = vrsqrt.f32 %v5524_v57  ;;  %v2227_v14 = vpop.f32.mrf.mxu2  ;;  %vm3428_vm11 = vmor %vm3426_vm10, %vm3427_vm9  ;;  %vm3436_vm14 = vweird.f32 %v5524_v57 }
 0x30f   : > { %v3419_v12 = vsel %vm3418_vm7, %v4169_v47, %v3415_v45  ;;  %v3422_v52 = vmul.f32 %v4171_v38, %v3421_v56  ;;  %v2998_v61 = vmul.f32 0.2, %v2926_v11  ;;  %v2267_v55 = vadd.f32 %v2227_v14, %v1957_v60 }
 0x310   : > { %v3635_v58 = vmul.f32 %v3419_v12, %v5221_v15  ;;  %v2537_v29 = vpop.f32.mrf.mxu3  ;;  %vm2962_vm8 = vcmp.ge.f32.partialorder %v2926_v11, 0.0  ;;  %v3129_v2 = vpop.xlane.xlu0 %3128 }
 0x311   : > { %v3423_v7 = vmul.f32 0.5, %v3422_v52  ;;  %v2577_v63 = vadd.f32 %v2537_v29, %v2267_v55  ;;  %v5532_v36 = vsel %vm2962_vm8, %v2926_v11, %v2998_v61  ;;  %v1920_v19 = vpop.f32.mrf.mxu1  ;;  %v3206_v22 = vmul.f32 %v5215_v42, %v3129_v2 }
 0x312   : > { %3671 = vst.msk [vmem:[%s5283_s21 + $0x78] sm:$0xff] %vm252_vm0, %v3635_v58  ;;  %v3070_v47 = vmul.f32 %v5532_v36, %v5532_v36  ;;  %v1958_v13 = vadd.f32 %v1920_v19, %v4984_v44 }
 0x313   : > { %v3424_v26 = vsub.f32 1.5, %v3423_v7  ;;  %v2887_v40 = vadd.f32 %v2847_v35, %v2577_v63  ;;  %v3242_v15 = vadd.f32 1e-08, %v3206_v22 }
 0x314   : > { %v4173_v28 = vpop.eup %4172  ;;  %v3172_v54 = vsel %vm252_vm0, %v3070_v47, 0.0  ;;  %v2850_v1 = vpop.f32.mrf.mxu0 }
 0x315   : > { %v3425_v43 = vmul.f32 %v4171_v38, %v3424_v26  ;;  %v3431_v33 = vmul.f32 %v4173_v28, %v5524_v57  ;;  %v2927_v39 = vadd.f32 %v5335_v21, %v2887_v40  ;;  %3173 = vadd.xlane.f32.xlu0 %v3172_v54  ;;  %4174 = vrsqrt.f32 %v3242_v15 }
 0x316   : > { %v2230_v18 = vpop.f32.mrf.mxu2  ;;  %vm3437_vm13 = vweird.f32 %v4173_v28  ;;  %vm3446_vm3 = vweird.f32 %v3242_v15 }
 0x317   : > { %v3429_v46 = vsel %vm3428_vm11, %v4171_v38, %v3425_v43  ;;  %v3432_v23 = vmul.f32 %v4173_v28, %v3431_v33  ;;  %v2999_v16 = vmul.f32 0.2, %v2927_v39  ;;  %v2268_v6 = vadd.f32 %v2230_v18, %v1958_v13  ;;  %vm3438_vm15 = vmor %vm3436_vm14, %vm3437_vm13 }
 0x318   : > { %v3636_v31 = vmul.f32 %v3429_v46, %v5240_v10  ;;  %v2540_v51 = vpop.f32.mrf.mxu3  ;;  %v3132_v41 = vpop.xlane.xlu1 %3131  ;;  %vm2963_vm12 = vcmp.ge.f32.partialorder %v2927_v39, 0.0 }
 0x319   : > { %v3433_v30 = vmul.f32 0.5, %v3432_v23  ;;  %v2578_v59 = vadd.f32 %v2540_v51, %v2268_v6  ;;  %v3207_v44 = vmul.f32 %v5215_v42, %v3132_v41  ;;  %v5546_v4 = vsel %vm2963_vm12, %v2927_v39, %v2999_v16 }
 0x31a   : > { %3672 = vst.msk [vmem:[%s5283_s21 + $0x80] sm:$0xff] %vm252_vm0, %v3636_v31  ;;  %v3071_v49 = vmul.f32 %v5546_v4, %v5546_v4 }
 0x31b   : > { %v3434_v38 = vsub.f32 1.5, %v3433_v30  ;;  %v3243_v37 = vadd.f32 1e-08, %v3207_v44  ;;  %v2888_v45 = vadd.f32 %v2850_v1, %v2578_v59  ;;  %v4175_v56 = vpop.eup %4174 }
 0x31c   : > { %v3175_v10 = vsel %vm252_vm0, %v3071_v49, 0.0  ;;  %v3441_v11 = vmul.f32 %v4175_v56, %v3242_v15  ;;  %vm3447_vm2 = vweird.f32 %v4175_v56 }
 0x31d   : > { %v3435_v60 = vmul.f32 %v4173_v28, %v3434_v38  ;;  %4176 = vrsqrt.f32 %v3243_v37  ;;  %3176 = vadd.xlane.f32.xlu1 %v3175_v10  ;;  %v2928_v35 = vadd.f32 %v5335_v21, %v2888_v45  ;;  %vm3448_vm4 = vmor %vm3446_vm3, %vm3447_vm2  ;;  %vm3456_vm6 = vweird.f32 %v3243_v37 }
 0x31e   : > { %v3442_v12 = vmul.f32 %v4175_v56, %v3441_v11 }
 0x31f   : > { %v3439_v14 = vsel %vm3438_vm15, %v4173_v28, %v3435_v60  ;;  %v3000_v61 = vmul.f32 0.2, %v2928_v35  ;;  %vm2964_vm1 = vcmp.ge.f32.partialorder %v2928_v35, 0.0 }
 0x320   : > { %v3637_v52 = vmul.f32 %v3439_v14, %v5259_v27  ;;  %v3135_v55 = vpop.xlane.xlu2 %3134  ;;  %v3443_v58 = vmul.f32 0.5, %v3442_v12 }
 0x321   : > { %v3208_v29 = vmul.f32 %v5215_v42, %v3135_v55  ;;  %v5559_v7 = vsel %vm2964_vm1, %v2928_v35, %v3000_v61 }
 0x322   : > { %3673 = vst.msk [vmem:[%s5283_s21 + $0x88] sm:$0xff] %vm252_vm0, %v3637_v52  ;;  %v3444_v63 = vsub.f32 1.5, %v3443_v58  ;;  %v3072_v21 = vmul.f32 %v5559_v7, %v5559_v7 }
 0x323   : > { %v4177_v57 = vpop.eup %4176  ;;  %v3244_v2 = vadd.f32 1e-08, %v3208_v29 }
 0x324   : > { %v3451_v19 = vmul.f32 %v4177_v57, %v3243_v37  ;;  %v3445_v27 = vmul.f32 %v4175_v56, %v3444_v63  ;;  %v3178_v22 = vsel %vm252_vm0, %v3072_v21, 0.0  ;;  %vm3457_vm5 = vweird.f32 %v4177_v57 }
 0x325   : > { %4178 = vrsqrt.f32 %v3244_v2  ;;  %3179 = vadd.xlane.f32.xlu2 %v3178_v22  ;;  %vm3458_vm7 = vmor %vm3456_vm6, %vm3457_vm5  ;;  %vm3466_vm9 = vweird.f32 %v3244_v2 }
 0x326   : > { %v3452_v47 = vmul.f32 %v4177_v57, %v3451_v19  ;;  %v3449_v26 = vsel %vm3448_vm4, %v4175_v56, %v3445_v27 }
 0x327   : > { %v3638_v40 = vmul.f32 %v3449_v26, %v5287_v20 }
 0x328   : > { %v3453_v28 = vmul.f32 0.5, %v3452_v47  ;;  %v3138_v54 = vpop.xlane.xlu0 %3137 }
 0x329   : > { %v3209_v43 = vmul.f32 %v5215_v42, %v3138_v54  ;;  %3674 = vst.msk [vmem:[%s5283_s21 + $0x90] sm:$0xff] %vm252_vm0, %v3638_v40 }
 0x32a   : > { %v3454_v33 = vsub.f32 1.5, %v3453_v28 }
 0x32b   : > { %v4179_v13 = vpop.eup %4178  ;;  %v3245_v15 = vadd.f32 1e-08, %v3209_v43 }
 0x32c   : > { %v3455_v39 = vmul.f32 %v4177_v57, %v3454_v33  ;;  %v3461_v18 = vmul.f32 %v4179_v13, %v3244_v2  ;;  %vm3467_vm8 = vweird.f32 %v4179_v13 }
 0x32d   : > { %4180 = vrsqrt.f32 %v3245_v15  ;;  %vm3468_vm10 = vmor %vm3466_vm9, %vm3467_vm8  ;;  %vm3476_vm12 = vweird.f32 %v3245_v15 }
 0x32e   : > { %v3459_v46 = vsel %vm3458_vm7, %v4177_v57, %v3455_v39  ;;  %v3462_v23 = vmul.f32 %v4179_v13, %v3461_v18 }
 0x32f   : > { %v3639_v20 = vmul.f32 %v3459_v46, %v5303_v25 }
 0x330   : > { %v3463_v16 = vmul.f32 0.5, %v3462_v23  ;;  %v3141_v6 = vpop.xlane.xlu1 %3140 }
 0x331   : > { %3675 = vst.msk [vmem:[%s5283_s21 + $0x98] sm:$0xff] %vm252_vm0, %v3639_v20  ;;  %v3210_v1 = vmul.f32 %v5215_v42, %v3141_v6 }
 0x332   : > { %v3464_v31 = vsub.f32 1.5, %v3463_v16 }
 0x333   : > { %v4181_v51 = vpop.eup %4180  ;;  %v3246_v41 = vadd.f32 1e-08, %v3210_v1 }
 0x334   : > { %v3465_v30 = vmul.f32 %v4179_v13, %v3464_v31  ;;  %v3471_v59 = vmul.f32 %v4181_v51, %v3245_v15  ;;  %vm3477_vm11 = vweird.f32 %v4181_v51 }
 0x335   : > { %4182 = vrsqrt.f32 %v3246_v41  ;;  %vm3478_vm13 = vmor %vm3476_vm12, %vm3477_vm11  ;;  %vm3486_vm15 = vweird.f32 %v3246_v41 }
 0x336   : > { %v3469_v44 = vsel %vm3468_vm10, %v4179_v13, %v3465_v30  ;;  %v3472_v49 = vmul.f32 %v4181_v51, %v3471_v59 }
 0x337   : > { %v3640_v25 = vmul.f32 %v3469_v44, %v5319_v8 }
 0x338   : > { %v3473_v38 = vmul.f32 0.5, %v3472_v49  ;;  %v3144_v37 = vpop.xlane.xlu2 %3143 }
 0x339   : > { %3676 = vst.msk [vmem:[%s5283_s21 + $0xa0] sm:$0xff] %vm252_vm0, %v3640_v25  ;;  %v3211_v45 = vmul.f32 %v5215_v42, %v3144_v37 }
 0x33a   : > { %v3474_v56 = vsub.f32 1.5, %v3473_v38 }
 0x33b   : > { %v4183_v10 = vpop.eup %4182  ;;  %v3247_v60 = vadd.f32 1e-08, %v3211_v45 }
 0x33c   : > { %v3475_v11 = vmul.f32 %v4181_v51, %v3474_v56  ;;  %v3481_v35 = vmul.f32 %v4183_v10, %v3246_v41  ;;  %vm3487_vm14 = vweird.f32 %v4183_v10 }
 0x33d   : > { %4184 = vrsqrt.f32 %v3247_v60  ;;  %vm3488_vm1 = vmor %vm3486_vm15, %vm3487_vm14  ;;  %vm3496_vm3 = vweird.f32 %v3247_v60 }
 0x33e   : > { %v3479_v14 = vsel %vm3478_vm13, %v4181_v51, %v3475_v11  ;;  %v3482_v12 = vmul.f32 %v4183_v10, %v3481_v35 }
 0x33f   : > { %v3641_v8 = vmul.f32 %v3479_v14, %v5340_v3 }
 0x340   : > { %v3483_v52 = vmul.f32 0.5, %v3482_v12  ;;  %v3147_v61 = vpop.xlane.xlu0 %3146 }
 0x341   : > { %3677 = vst.msk [vmem:[%s5283_s21 + $0xa8] sm:$0xff] %vm252_vm0, %v3641_v8  ;;  %v3212_v55 = vmul.f32 %v5215_v42, %v3147_v61 }
 0x342   : > { %v3484_v58 = vsub.f32 1.5, %v3483_v52 }
 0x343   : > { %v4185_v29 = vpop.eup %4184  ;;  %v3248_v57 = vadd.f32 1e-08, %v3212_v55 }
 0x344   : > { %v3485_v63 = vmul.f32 %v4183_v10, %v3484_v58  ;;  %v3491_v2 = vmul.f32 %v4185_v29, %v3247_v60  ;;  %vm3497_vm2 = vweird.f32 %v4185_v29 }
 0x345   : > { %4186 = vrsqrt.f32 %v3248_v57  ;;  %vm3498_vm4 = vmor %vm3496_vm3, %vm3497_vm2  ;;  %vm3506_vm6 = vweird.f32 %v3248_v57 }
 0x346   : > { %v3489_v21 = vsel %vm3488_vm1, %v4183_v10, %v3485_v63  ;;  %v3492_v19 = vmul.f32 %v4185_v29, %v3491_v2 }
 0x347   : > { %v3642_v3 = vmul.f32 %v3489_v21, %v5356_v48 }
 0x348   : > { %v3493_v27 = vmul.f32 0.5, %v3492_v19  ;;  %v3150_v22 = vpop.xlane.xlu1 %3149 }
 0x349   : > { %3678 = vst.msk [vmem:[%s5283_s21 + $0xb0] sm:$0xff] %vm252_vm0, %v3642_v3  ;;  %v3213_v47 = vmul.f32 %v5215_v42, %v3150_v22 }
 0x34a   : > { %v3494_v26 = vsub.f32 1.5, %v3493_v27 }
 0x34b   : > { %v4187_v40 = vpop.eup %4186  ;;  %v3249_v28 = vadd.f32 1e-08, %v3213_v47 }
 0x34c   : > { %v3495_v54 = vmul.f32 %v4185_v29, %v3494_v26  ;;  %v3501_v43 = vmul.f32 %v4187_v40, %v3248_v57  ;;  %vm3507_vm5 = vweird.f32 %v4187_v40 }
 0x34d   : > { %4188 = vrsqrt.f32 %v3249_v28  ;;  %vm3508_vm7 = vmor %vm3506_vm6, %vm3507_vm5  ;;  %vm3516_vm9 = vweird.f32 %v3249_v28 }
 0x34e   : > { %v3499_v33 = vsel %vm3498_vm4, %v4185_v29, %v3495_v54  ;;  %v3502_v13 = vmul.f32 %v4187_v40, %v3501_v43 }
 0x34f   : > { %v3643_v48 = vmul.f32 %v3499_v33, %v5372_v24 }
 0x350   : > { %v3503_v15 = vmul.f32 0.5, %v3502_v13  ;;  %v3153_v39 = vpop.xlane.xlu2 %3152 }
 0x351   : > { %3679 = vst.msk [vmem:[%s5283_s21 + $0xb8] sm:$0xff] %vm252_vm0, %v3643_v48  ;;  %v3214_v18 = vmul.f32 %v5215_v42, %v3153_v39 }
 0x352   : > { %v3504_v46 = vsub.f32 1.5, %v3503_v15 }
 0x353   : > { %v4189_v23 = vpop.eup %4188  ;;  %v3250_v20 = vadd.f32 1e-08, %v3214_v18 }
 0x354   : > { %v3505_v16 = vmul.f32 %v4187_v40, %v3504_v46  ;;  %v3511_v6 = vmul.f32 %v4189_v23, %v3249_v28  ;;  %vm3517_vm8 = vweird.f32 %v4189_v23 }
 0x355   : > { %4190 = vrsqrt.f32 %v3250_v20  ;;  %vm3518_vm10 = vmor %vm3516_vm9, %vm3517_vm8  ;;  %vm3526_vm12 = vweird.f32 %v3250_v20 }
 0x356   : > { %v3509_v1 = vsel %vm3508_vm7, %v4187_v40, %v3505_v16  ;;  %v3512_v31 = vmul.f32 %v4189_v23, %v3511_v6 }
 0x357   : > { %v3644_v24 = vmul.f32 %v3509_v1, %v5388_v50 }
 0x358   : > { %v3513_v51 = vmul.f32 0.5, %v3512_v31  ;;  %v3156_v41 = vpop.xlane.xlu0 %3155 }
 0x359   : > { %3680 = vst.msk [vmem:[%s5283_s21 + $0xc0] sm:$0xff] %vm252_vm0, %v3644_v24  ;;  %v3215_v30 = vmul.f32 %v5215_v42, %v3156_v41 }
 0x35a   : > { %v3514_v59 = vsub.f32 1.5, %v3513_v51 }
 0x35b   : > { %v4191_v44 = vpop.eup %4190  ;;  %v3251_v49 = vadd.f32 1e-08, %v3215_v30 }
 0x35c   : > { %v3515_v25 = vmul.f32 %v4189_v23, %v3514_v59  ;;  %v3521_v38 = vmul.f32 %v4191_v44, %v3250_v20  ;;  %vm3527_vm11 = vweird.f32 %v4191_v44 }
 0x35d   : > { %4192 = vrsqrt.f32 %v3251_v49  ;;  %vm3528_vm13 = vmor %vm3526_vm12, %vm3527_vm11  ;;  %vm3536_vm15 = vweird.f32 %v3251_v49 }
 0x35e   : > { %v3519_v37 = vsel %vm3518_vm10, %v4189_v23, %v3515_v25  ;;  %v3522_v45 = vmul.f32 %v4191_v44, %v3521_v38 }
 0x35f   : > { %v3645_v50 = vmul.f32 %v3519_v37, %v5404_v32 }
 0x360   : > { %v3523_v56 = vmul.f32 0.5, %v3522_v45  ;;  %v3159_v10 = vpop.xlane.xlu1 %3158 }
 0x361   : > { %3681 = vst.msk [vmem:[%s5283_s21 + $0xc8] sm:$0xff] %vm252_vm0, %v3645_v50  ;;  %v3216_v60 = vmul.f32 %v5215_v42, %v3159_v10 }
 0x362   : > { %v3524_v11 = vsub.f32 1.5, %v3523_v56 }
 0x363   : > { %v4193_v35 = vpop.eup %4192  ;;  %v3252_v14 = vadd.f32 1e-08, %v3216_v60 }
 0x364   : > { %v3525_v12 = vmul.f32 %v4191_v44, %v3524_v11  ;;  %v3531_v8 = vmul.f32 %v4193_v35, %v3251_v49  ;;  %vm3537_vm14 = vweird.f32 %v4193_v35 }
 0x365   : > { %4194 = vrsqrt.f32 %v3252_v14  ;;  %vm3538_vm1 = vmor %vm3536_vm15, %vm3537_vm14  ;;  %vm3546_vm3 = vweird.f32 %v3252_v14 }
 0x366   : > { %v3529_v52 = vsel %vm3528_vm13, %v4191_v44, %v3525_v12  ;;  %v3532_v61 = vmul.f32 %v4193_v35, %v3531_v8 }
 0x367   : > { %v3646_v32 = vmul.f32 %v3529_v52, %v5420_v62 }
 0x368   : > { %v3533_v55 = vmul.f32 0.5, %v3532_v61  ;;  %v3162_v58 = vpop.xlane.xlu2 %3161 }
 0x369   : > { %3682 = vst.msk [vmem:[%s5283_s21 + $0xd0] sm:$0xff] %vm252_vm0, %v3646_v32  ;;  %v3217_v29 = vmul.f32 %v5215_v42, %v3162_v58 }
 0x36a   : > { %v3534_v57 = vsub.f32 1.5, %v3533_v55 }
 0x36b   : > { %v4195_v63 = vpop.eup %4194  ;;  %v3253_v2 = vadd.f32 1e-08, %v3217_v29 }
 0x36c   : > { %v3535_v21 = vmul.f32 %v4193_v35, %v3534_v57  ;;  %v3541_v19 = vmul.f32 %v4195_v63, %v3252_v14  ;;  %vm3547_vm2 = vweird.f32 %v4195_v63 }
 0x36d   : > { %4196 = vrsqrt.f32 %v3253_v2  ;;  %vm3548_vm4 = vmor %vm3546_vm3, %vm3547_vm2  ;;  %vm3556_vm6 = vweird.f32 %v3253_v2 }
 0x36e   : > { %v3539_v3 = vsel %vm3538_vm1, %v4193_v35, %v3535_v21  ;;  %v3542_v27 = vmul.f32 %v4195_v63, %v3541_v19 }
 0x36f   : > { %v3647_v62 = vmul.f32 %v3539_v3, %v5436_v9 }
 0x370   : > { %v3543_v22 = vmul.f32 0.5, %v3542_v27  ;;  %v3165_v47 = vpop.xlane.xlu0 %3164 }
 0x371   : > { %3683 = vst.msk [vmem:[%s5283_s21 + $0xd8] sm:$0xff] %vm252_vm0, %v3647_v62  ;;  %v3218_v26 = vmul.f32 %v5215_v42, %v3165_v47 }
 0x372   : > { %v3544_v40 = vsub.f32 1.5, %v3543_v22 }
 0x373   : > { %v4197_v28 = vpop.eup %4196  ;;  %v3254_v54 = vadd.f32 1e-08, %v3218_v26 }
 0x374   : > { %v3545_v43 = vmul.f32 %v4195_v63, %v3544_v40  ;;  %v3551_v33 = vmul.f32 %v4197_v28, %v3253_v2  ;;  %vm3557_vm5 = vweird.f32 %v4197_v28 }
 0x375   : > { %4198 = vrsqrt.f32 %v3254_v54  ;;  %vm3558_vm7 = vmor %vm3556_vm6, %vm3557_vm5  ;;  %vm3566_vm9 = vweird.f32 %v3254_v54 }
 0x376   : > { %v3549_v13 = vsel %vm3548_vm4, %v4195_v63, %v3545_v43  ;;  %v3552_v48 = vmul.f32 %v4197_v28, %v3551_v33 }
 0x377   : > { %v3648_v9 = vmul.f32 %v3549_v13, %v5452_v0 }
 0x378   : > { %v3553_v15 = vmul.f32 0.5, %v3552_v48  ;;  %v3168_v39 = vpop.xlane.xlu1 %3167 }
 0x379   : > { %3684 = vst.msk [vmem:[%s5283_s21 + $0xe0] sm:$0xff] %vm252_vm0, %v3648_v9  ;;  %v3219_v18 = vmul.f32 %v5215_v42, %v3168_v39 }
 0x37a   : > { %v3554_v46 = vsub.f32 1.5, %v3553_v15 }
 0x37b   : > { %v4199_v23 = vpop.eup %4198  ;;  %v3255_v20 = vadd.f32 1e-08, %v3219_v18 }
 0x37c   : > { %v3555_v16 = vmul.f32 %v4197_v28, %v3554_v46  ;;  %v3561_v6 = vmul.f32 %v4199_v23, %v3254_v54  ;;  %vm3567_vm8 = vweird.f32 %v4199_v23 }
 0x37d   : > { %4200 = vrsqrt.f32 %v3255_v20  ;;  %vm3568_vm10 = vmor %vm3566_vm9, %vm3567_vm8  ;;  %vm3576_vm12 = vweird.f32 %v3255_v20 }
 0x37e   : > { %v3559_v1 = vsel %vm3558_vm7, %v4197_v28, %v3555_v16  ;;  %v3562_v31 = vmul.f32 %v4199_v23, %v3561_v6 }
 0x37f   : > { %v3649_v0 = vmul.f32 %v3559_v1, %v5468_v34 }
 0x380   : > { %v3563_v24 = vmul.f32 0.5, %v3562_v31  ;;  %v3171_v51 = vpop.xlane.xlu2 %3170 }
 0x381   : > { %3685 = vst.msk [vmem:[%s5283_s21 + $0xe8] sm:$0xff] %vm252_vm0, %v3649_v0  ;;  %v3220_v41 = vmul.f32 %v5215_v42, %v3171_v51 }
 0x382   : > { %v3564_v30 = vsub.f32 1.5, %v3563_v24 }
 0x383   : > { %v4201_v59 = vpop.eup %4200  ;;  %v3256_v44 = vadd.f32 1e-08, %v3220_v41 }
 0x384   : > { %v3565_v49 = vmul.f32 %v4199_v23, %v3564_v30  ;;  %v3571_v25 = vmul.f32 %v4201_v59, %v3255_v20  ;;  %vm3577_vm11 = vweird.f32 %v4201_v59 }
 0x385   : > { %4202 = vrsqrt.f32 %v3256_v44  ;;  %vm3578_vm13 = vmor %vm3576_vm12, %vm3577_vm11  ;;  %vm3586_vm15 = vweird.f32 %v3256_v44 }
 0x386   : > { %v3569_v38 = vsel %vm3568_vm10, %v4199_v23, %v3565_v49  ;;  %v3572_v37 = vmul.f32 %v4201_v59, %v3571_v25 }
 0x387   : > { %v3650_v34 = vmul.f32 %v3569_v38, %v5484_v53 }
 0x388   : > { %v3573_v45 = vmul.f32 0.5, %v3572_v37  ;;  %v3174_v50 = vpop.xlane.xlu0 %3173 }
 0x389   : > { %3686 = vst.msk [vmem:[%s5283_s21 + $0xf0] sm:$0xff] %vm252_vm0, %v3650_v34  ;;  %v3221_v56 = vmul.f32 %v5215_v42, %v3174_v50 }
 0x38a   : > { %v3574_v10 = vsub.f32 1.5, %v3573_v45 }
 0x38b   : > { %v4203_v60 = vpop.eup %4202  ;;  %v3257_v11 = vadd.f32 1e-08, %v3221_v56 }
 0x38c   : > { %v3575_v35 = vmul.f32 %v4201_v59, %v3574_v10  ;;  %v3581_v14 = vmul.f32 %v4203_v60, %v3256_v44  ;;  %vm3587_vm14 = vweird.f32 %v4203_v60 }
 0x38d   : > { %4204 = vrsqrt.f32 %v3257_v11  ;;  %vm3588_vm1 = vmor %vm3586_vm15, %vm3587_vm14  ;;  %vm3596_vm3 = vweird.f32 %v3257_v11 }
 0x38e   : > { %v3579_v12 = vsel %vm3578_vm13, %v4201_v59, %v3575_v35  ;;  %v3582_v8 = vmul.f32 %v4203_v60, %v3581_v14 }
 0x38f   : > { %v3651_v53 = vmul.f32 %v3579_v12, %v5500_v5 }
 0x390   : > { %v3583_v52 = vmul.f32 0.5, %v3582_v8  ;;  %v3177_v61 = vpop.xlane.xlu1 %3176 }
 0x391   : > { %3687 = vst.msk [vmem:[%s5283_s21 + $0xf8] sm:$0xff] %vm252_vm0, %v3651_v53  ;;  %v3222_v32 = vmul.f32 %v5215_v42, %v3177_v61 }
 0x392   : > { %v3584_v55 = vsub.f32 1.5, %v3583_v52 }
 0x393   : > { %v4205_v58 = vpop.eup %4204  ;;  %v3258_v29 = vadd.f32 1e-08, %v3222_v32 }
 0x394   : > { %v3585_v57 = vmul.f32 %v4203_v60, %v3584_v55  ;;  %v3591_v63 = vmul.f32 %v4205_v58, %v3257_v11  ;;  %vm3597_vm2 = vweird.f32 %v4205_v58 }
 0x395   : > { %4206 = vrsqrt.f32 %v3258_v29  ;;  %vm3598_vm4 = vmor %vm3596_vm3, %vm3597_vm2  ;;  %vm3606_vm6 = vweird.f32 %v3258_v29 }
 0x396   : > { %v3589_v2 = vsel %vm3588_vm1, %v4203_v60, %v3585_v57  ;;  %v3592_v21 = vmul.f32 %v4205_v58, %v3591_v63 }
 0x397   : > { %v3652_v5 = vmul.f32 %v3589_v2, %v5516_v17 }
 0x398   : > { %v3593_v19 = vmul.f32 0.5, %v3592_v21  ;;  %v3180_v3 = vpop.xlane.xlu2 %3179 }
 0x399   : > { %3688 = vst.msk [vmem:[%s5283_s21 + $0x100] sm:$0xff] %vm252_vm0, %v3652_v5  ;;  %v3223_v62 = vmul.f32 %v5215_v42, %v3180_v3 }
 0x39a   : > { %v3594_v27 = vsub.f32 1.5, %v3593_v19 }
 0x39b   : > { %v4207_v22 = vpop.eup %4206  ;;  %v3259_v40 = vadd.f32 1e-08, %v3223_v62 }
 0x39c   : > { %v3595_v47 = vmul.f32 %v4205_v58, %v3594_v27  ;;  %v3601_v26 = vmul.f32 %v4207_v22, %v3258_v29  ;;  %vm3607_vm5 = vweird.f32 %v4207_v22 }
 0x39d   : > { %4208 = vrsqrt.f32 %v3259_v40  ;;  %vm3608_vm7 = vmor %vm3606_vm6, %vm3607_vm5  ;;  %vm3616_vm9 = vweird.f32 %v3259_v40 }
 0x39e   : > { %v3599_v28 = vsel %vm3598_vm4, %v4205_v58, %v3595_v47  ;;  %v3602_v54 = vmul.f32 %v4207_v22, %v3601_v26 }
 0x39f   : > { %v3653_v17 = vmul.f32 %v3599_v28, %v5532_v36 }
 0x3a0   : > { %v3603_v43 = vmul.f32 0.5, %v3602_v54 }
 0x3a1   : > { %3689 = vst.msk [vmem:[%s5283_s21 + $0x108] sm:$0xff] %vm252_vm0, %v3653_v17 }
 0x3a2   : > { %v3604_v33 = vsub.f32 1.5, %v3603_v43 }
 0x3a3   : > { %v4209_v13 = vpop.eup %4208 }
 0x3a4   : > { %v3605_v48 = vmul.f32 %v4207_v22, %v3604_v33  ;;  %v3611_v42 = vmul.f32 %v4209_v13, %v3259_v40  ;;  %vm3617_vm8 = vweird.f32 %v4209_v13 }
 0x3a5   : > { %vm3618_vm10 = vmor %vm3616_vm9, %vm3617_vm8 }
 0x3a6   : > { %v3609_v9 = vsel %vm3608_vm7, %v4207_v22, %v3605_v48  ;;  %v3612_v39 = vmul.f32 %v4209_v13, %v3611_v42 }
 0x3a7   : > { %v3654_v15 = vmul.f32 %v3609_v9, %v5546_v4 }
 0x3a8   : > { %v3613_v18 = vmul.f32 0.5, %v3612_v39 }
 0x3a9   : > { %3690 = vst.msk [vmem:[%s5283_s21 + $0x110] sm:$0xff] %vm252_vm0, %v3654_v15 }
 0x3aa   : > { %v3614_v46 = vsub.f32 1.5, %v3613_v18 }
 0x3ac   : > { %v3615_v36 = vmul.f32 %v4209_v13, %v3614_v46 }
 0x3ae   : > { %v3619_v23 = vsel %vm3618_vm10, %v4209_v13, %v3615_v36 }
 0x3af   : > { %v3655_v20 = vmul.f32 %v3619_v23, %v5559_v7 }
 0x3b1   : > { %3691 = vst.msk [vmem:[%s5283_s21 + $0x118] sm:$0xff] %vm252_vm0, %v3655_v20 }
 0x3b2 PF: > { %s13_s12 = sadd.s32 1, %s4217_s12  }
 0x3b3   : > { %p10_p4 = scmp.ge.s32.totalorder %s13_s12, 4  }
 0x3b5   :  { %12 = sbr.rel (!%p10_p4) target bundleno = 1 (0x1), region = 70 }

</bundles_post_ra>
